<compile_context>
chip_gen: v6e
topology: v6e:2x2x1
jax: 0.10.0
libtpu: 0.0.40
codegen_flags: <defaults>
</compile_context>

<pallas_src>
import jax
import jax.numpy as jnp
from jax.experimental import pallas as pl
from jax.experimental.pallas import tpu as pltpu

# ----------------------------- problem sizes --------------------------------
BATCH = 4                    # forward() hard-codes stacking tmp_result[0..3]
N_VIEW = 2
C, H, W = 3, 32, 32
IN_FLAT = C * H * W          # 3072
FEAT = 1000                  # resnet50 classifier output dim
FEAT_PAD = 1024              # padded to a multiple of 128 (zero-padded, exact)
HID = 512
OUT = 1024 * 3               # 3072

KT = 3                       # grid steps: wf K-chunks and w3 column slabs
TK = IN_FLAT // KT           # 1024 (K-chunk of the backbone projection)
ON = OUT // KT               # 1024 (fc_3 output-column slab per step)

# Packed aux layout (biases + per-column dequant scales, all f32).
# Every offset is a multiple of 128 -> clean lane slices.
OFF_BF = 0
OFF_B0 = OFF_BF + FEAT_PAD   # 1024
OFF_B1 = OFF_B0 + HID        # 1536
OFF_B2 = OFF_B1 + HID        # 2048
OFF_B3 = OFF_B2 + HID        # 2560
OFF_SF = OFF_B3 + OUT        # 5632  (wf per-output-column scale)
OFF_S3 = OFF_SF + FEAT_PAD   # 6656  (w3 per-output-column scale)
AUX_TOT = OFF_S3 + OUT       # 9728


# ------------------------------ Pallas kernel -------------------------------
def coarse_kernel(img_ref, wfq_ref, w3q_ref, aux_ref,
                  w0_ref, w1_ref, w2_ref,
                  out_ref, feat_acc, w3_deq):
    k = pl.program_id(0)

    # Backbone stand-in projection, K-streamed.  int8 weight chunk -> bf16
    # (exact cast) -> bf16 MXU dot with f32 accumulation.  The per-column
    # dequant scale is applied once to the accumulated result in the epilogue.
    part = jnp.dot(img_ref[...], wfq_ref[...].astype(jnp.bfloat16),
                   preferred_element_type=jnp.float32)          # (N, FEAT_PAD)

    @pl.when(k == 0)
    def _():
        feat_acc[...] = part            # init folded into the first partial dot

    @pl.when(k != 0)
    def _():
        feat_acc[...] += part

    # Stream-dequantize this step's fc_3 column slab (int8 -> bf16, unscaled);
    # the cast is hidden under this step's weight DMA instead of the epilogue.
    w3_deq[k] = w3q_ref[...].astype(jnp.bfloat16)               # (HID, ON)

    @pl.when(k == pl.num_programs(0) - 1)
    def _():
        bf = aux_ref[:, OFF_BF:OFF_BF + FEAT_PAD]               # (1, 1024)
        b0 = aux_ref[:, OFF_B0:OFF_B0 + HID]                    # (1, 512)
        b1 = aux_ref[:, OFF_B1:OFF_B1 + HID]
        b2 = aux_ref[:, OFF_B2:OFF_B2 + HID]
        b3 = aux_ref[:, OFF_B3:OFF_B3 + OUT]                    # (1, 3072)
        sf = aux_ref[:, OFF_SF:OFF_SF + FEAT_PAD]               # (1, 1024)
        s3 = aux_ref[:, OFF_S3:OFF_S3 + OUT]                    # (1, 3072)

        # Per-column dequant of the accumulated projection + backbone bias.
        feat = feat_acc[...] * sf + bf                          # (N, 1024) f32

        # fc_0
        h0 = jnp.dot(feat.astype(jnp.bfloat16), w0_ref[...],
                     preferred_element_type=jnp.float32) + b0   # (N, 512)
        # fc_1(Dropout(relu(x)))  -- Dropout is identity in eval mode
        h1 = jnp.dot(jnp.maximum(h0, 0.0).astype(jnp.bfloat16), w1_ref[...],
                     preferred_element_type=jnp.float32) + b1   # (N, 512)
        # fc_2(Dropout(relu(x)))
        h2 = jnp.dot(jnp.maximum(h1, 0.0).astype(jnp.bfloat16), w2_ref[...],
                     preferred_element_type=jnp.float32) + b2   # (N, 512)
        a2 = jnp.maximum(h2, 0.0).astype(jnp.bfloat16)

        # fc_3 against the already-dequantized bf16 slabs; per-column scale is
        # applied to the output (equivalent to dequantizing the weight).
        for j in range(KT):                                     # static unroll
            hj = jnp.dot(a2, w3_deq[j], preferred_element_type=jnp.float32)
            lo, hi = j * ON, (j + 1) * ON
            out_ref[:, lo:hi] = (hj * s3[:, lo:hi]
                                 + b3[:, lo:hi]).astype(out_ref.dtype)


def coarse_forward(inp, params):
    """inp: (BATCH, N_VIEW, C, H, W) f32  ->  (4, N_VIEW, 1024, 3) f32."""
    b, v = inp.shape[0], inp.shape[1]
    n = b * v
    # bf16 images: halves image DMA, removes the per-step in-kernel cast.
    img_flat = inp.reshape(n, IN_FLAT).astype(jnp.bfloat16)

    grid_spec = pltpu.PrefetchScalarGridSpec(
        num_scalar_prefetch=0,
        grid=(KT,),
        in_specs=[
            pl.BlockSpec((n, TK), lambda k: (0, k)),             # image K-chunks (bf16)
            pl.BlockSpec((TK, FEAT_PAD), lambda k: (k, 0)),      # wf K-chunks (int8, streamed)
            pl.BlockSpec((HID, ON), lambda k: (0, k)),           # w3 OUT-slabs (int8, streamed)
            pl.BlockSpec((1, AUX_TOT), lambda k: (0, 0)),        # packed biases + scales (f32)
            pl.BlockSpec((FEAT_PAD, HID), lambda k: (0, 0)),     # w0 (bf16)
            pl.BlockSpec((HID, HID), lambda k: (0, 0)),          # w1 (bf16)
            pl.BlockSpec((HID, HID), lambda k: (0, 0)),          # w2 (bf16)
        ],
        out_specs=pl.BlockSpec((n, OUT), lambda k: (0, 0)),
        scratch_shapes=[
            pltpu.VMEM((n, FEAT_PAD), jnp.float32),              # feat accumulator
            pltpu.VMEM((KT, HID, ON), jnp.bfloat16),             # dequantized fc_3 weight
        ],
    )

    out_flat = pl.pallas_call(
        coarse_kernel,
        out_shape=jax.ShapeDtypeStruct((n, OUT), jnp.float32),
        grid_spec=grid_spec,
        compiler_params=pltpu.CompilerParams(
            # Reduction-style accumulation over k; do NOT split across the two
            # v7x TensorCores (it would duplicate the dominant weight traffic).
            dimension_semantics=("arbitrary",),
            vmem_limit_bytes=32 * 1024 * 1024,   # actual residency ~10 MiB
        ),
    )(img_flat,
      params["wf_q"], params["w3_q"], params["aux"],
      params["w0"], params["w1"], params["w2"])

    # x.view(n_view, 1024, 3) per batch element, then torch.stack over the 4
    # batch elements -> (4, n_view, 1024, 3)
    return out_flat.reshape(b, v, 1024, 3)


# --------------------------- deterministic params ----------------------------
def _quantize_per_col(w):
    """Symmetric per-output-column int8 quantization with f32 scales."""
    amax = jnp.max(jnp.abs(w), axis=0)                       # (out,)
    safe = jnp.where(amax > 0, amax, 1.0)
    q = jnp.clip(jnp.round(w * (127.0 / safe)), -127.0, 127.0).astype(jnp.int8)
    scale = jnp.where(amax > 0, amax / 127.0, 0.0).astype(jnp.float32)
    return q, scale


def make_params(key):
    ks = jax.random.split(key, 10)

    def lin(kw, kb, fan_in, fan_out):
        s = 1.0 / jnp.sqrt(jnp.float32(fan_in))
        w = jax.random.uniform(kw, (fan_in, fan_out), jnp.float32, -s, s)
        bvec = jax.random.uniform(kb, (fan_out,), jnp.float32, -s, s)
        return w, bvec

    wf, bf = lin(ks[0], ks[1], IN_FLAT, FEAT)   # backbone stand-in projection
    w0, b0 = lin(ks[2], ks[3], FEAT, HID)       # fc_0: 1000 -> 512
    w1, b1 = lin(ks[4], ks[5], HID, HID)        # fc_1: 512 -> 512
    w2, b2 = lin(ks[6], ks[7], HID, HID)        # fc_2: 512 -> 512
    w3, b3 = lin(ks[8], ks[9], HID, OUT)        # fc_3: 512 -> 3072

    # Pad FEAT 1000 -> 1024 with zeros: padded wf columns / bf entries are zero
    # and the matching w0 rows are zero, so the result is numerically identical
    # to the unpadded computation while giving clean (8,128)-aligned tiles.
    wf = jnp.pad(wf, ((0, 0), (0, FEAT_PAD - FEAT)))
    bf = jnp.pad(bf, ((0, FEAT_PAD - FEAT),))
    w0 = jnp.pad(w0, ((0, FEAT_PAD - FEAT), (0, 0)))

    # The two dominant weights are stored int8 + per-column f32 scale (padded
    # zero columns get scale 0 -> dequantize exactly to zero).
    wf_q, wf_s = _quantize_per_col(wf)
    w3_q, w3_s = _quantize_per_col(w3)

    # All biases and scales packed into one lane-aligned f32 vector (one DMA).
    aux = jnp.concatenate([bf, b0, b1, b2, b3, wf_s, w3_s]).reshape(1, AUX_TOT)

    as_bf16 = lambda a: a.astype(jnp.bfloat16)
    return dict(wf_q=wf_q, w3_q=w3_q, aux=aux,
                w0=as_bf16(w0), w1=as_bf16(w1), w2=as_bf16(w2))


if __name__ == "__main__":
    key = jax.random.PRNGKey(0)
    k_in, k_par = jax.random.split(key)

    inp = jax.random.normal(k_in, (BATCH, N_VIEW, C, H, W), dtype=jnp.float32)
    params = make_params(k_par)

    out = coarse_forward(inp, params)
    out = jax.block_until_ready(out)

    assert out.shape == (BATCH, N_VIEW, 1024, 3), out.shape
    assert out.dtype == jnp.float32
    assert bool(jnp.all(jnp.isfinite(out)))
    print("KERNEL_OK")
</pallas_src>

<mosaic_0001>
module attributes {stable_mosaic.version = 11 : i64} {
  func.func @coarse_kernel(%arg0: i32, %arg1: memref<8x1024xbf16, #tpu.memory_space<vmem>>, %arg2: memref<1024x1024xi8, #tpu.memory_space<vmem>>, %arg3: memref<512x1024xi8, #tpu.memory_space<vmem>>, %arg4: memref<1x9728xf32, #tpu.memory_space<vmem>>, %arg5: memref<1024x512xbf16, #tpu.memory_space<vmem>>, %arg6: memref<512x512xbf16, #tpu.memory_space<vmem>>, %arg7: memref<512x512xbf16, #tpu.memory_space<vmem>>, %arg8: memref<8x3072xf32, #tpu.memory_space<vmem>>, %arg9: memref<8x1024xf32, #tpu.memory_space<vmem>>, %arg10: memref<3x512x1024xbf16, #tpu.memory_space<vmem>>) attributes {dimension_semantics = [#tpu.dimension_semantics<arbitrary>], iteration_bounds = array<i64: 3>, scalar_prefetch = 0 : i64, scratch_operands = 2 : i64, tpu.core_type = #tpu.core_type<tc>, window_params = [{transform_indices = @transform_0, window_bounds = array<i64: 8, 1024>}, {transform_indices = @transform_1, window_bounds = array<i64: 1024, 1024>}, {transform_indices = @transform_2, window_bounds = array<i64: 512, 1024>}, {pipeline_mode = #tpu.pipeline_mode<synchronous>, transform_indices = @transform_3, window_bounds = array<i64: 1, 9728>}, {pipeline_mode = #tpu.pipeline_mode<synchronous>, transform_indices = @transform_4, window_bounds = array<i64: 1024, 512>}, {pipeline_mode = #tpu.pipeline_mode<synchronous>, transform_indices = @transform_5, window_bounds = array<i64: 512, 512>}, {pipeline_mode = #tpu.pipeline_mode<synchronous>, transform_indices = @transform_6, window_bounds = array<i64: 512, 512>}, {pipeline_mode = #tpu.pipeline_mode<synchronous>, transform_indices = @transform_7, window_bounds = array<i64: 8, 3072>}]} {
    %c0 = arith.constant 0 : index
    %c0_0 = arith.constant 0 : index
    %0 = vector.load %arg1[%c0, %c0_0] : memref<8x1024xbf16, #tpu.memory_space<vmem>>, vector<8x1024xbf16>
    %c0_1 = arith.constant 0 : index
    %c0_2 = arith.constant 0 : index
    %1 = vector.load %arg2[%c0_1, %c0_2] : memref<1024x1024xi8, #tpu.memory_space<vmem>>, vector<1024x1024xi8>
    %2 = arith.sitofp %1 : vector<1024x1024xi8> to vector<1024x1024xbf16>
    %cst = arith.constant dense<0.000000e+00> : vector<8x1024xf32>
    %3 = tpu.matmul %0, %2, %cst {dimension_numbers = #tpu.dot_dimension_numbers<[1], [0], [0], [1], [0, 0, 1, 1], [], []>} : vector<8x1024xbf16>, vector<1024x1024xbf16>, vector<8x1024xf32> -> vector<8x1024xf32>
    %c0_i32 = arith.constant 0 : i32
    %4 = arith.cmpi eq, %arg0, %c0_i32 : i32
    %5 = arith.extui %4 : i1 to i32
    %c0_i32_3 = arith.constant 0 : i32
    %6 = arith.cmpi ne, %5, %c0_i32_3 : i32
    scf.if %6 {
      %c0_11 = arith.constant 0 : index
      %c0_12 = arith.constant 0 : index
      %19 = vector.load %arg9[%c0_11, %c0_12] : memref<8x1024xf32, #tpu.memory_space<vmem>>, vector<8x1024xf32>
      tpu.vector_store %arg9[%c0_11, %c0_12], %3 {strides = array<i32>} : memref<8x1024xf32, #tpu.memory_space<vmem>>, vector<8x1024xf32>,
    } else {
    }
    %c0_i32_4 = arith.constant 0 : i32
    %7 = arith.cmpi ne, %arg0, %c0_i32_4 : i32
    %8 = arith.extui %7 : i1 to i32
    %c0_i32_5 = arith.constant 0 : i32
    %9 = arith.cmpi ne, %8, %c0_i32_5 : i32
    scf.if %9 {
      %c0_11 = arith.constant 0 : index
      %c0_12 = arith.constant 0 : index
      %19 = vector.load %arg9[%c0_11, %c0_12] : memref<8x1024xf32, #tpu.memory_space<vmem>>, vector<8x1024xf32>
      %20 = arith.addf %19, %3 : vector<8x1024xf32>
      %c0_13 = arith.constant 0 : index
      %c0_14 = arith.constant 0 : index
      %21 = vector.load %arg9[%c0_13, %c0_14] : memref<8x1024xf32, #tpu.memory_space<vmem>>, vector<8x1024xf32>
      tpu.vector_store %arg9[%c0_13, %c0_14], %20 {strides = array<i32>} : memref<8x1024xf32, #tpu.memory_space<vmem>>, vector<8x1024xf32>,
    } else {
    }
    %c0_6 = arith.constant 0 : index
    %c0_7 = arith.constant 0 : index
    %10 = vector.load %arg3[%c0_6, %c0_7] : memref<512x1024xi8, #tpu.memory_space<vmem>>, vector<512x1024xi8>
    %11 = arith.sitofp %10 : vector<512x1024xi8> to vector<512x1024xbf16>
    %12 = arith.index_cast %arg0 : i32 to index
    %c0_8 = arith.constant 0 : index
    %c0_9 = arith.constant 0 : index
    %13 = vector.load %arg10[%12, %c0_8, %c0_9] : memref<3x512x1024xbf16, #tpu.memory_space<vmem>>, vector<1x512x1024xbf16>
    %14 = vector.shape_cast %13 : vector<1x512x1024xbf16> to vector<512x1024xbf16>
    %15 = vector.shape_cast %11 : vector<512x1024xbf16> to vector<1x512x1024xbf16>
    tpu.vector_store %arg10[%12, %c0_8, %c0_9], %15 {strides = array<i32>} : memref<3x512x1024xbf16, #tpu.memory_space<vmem>>, vector<1x512x1024xbf16>,
    %c2_i32 = arith.constant 2 : i32
    %16 = arith.cmpi eq, %arg0, %c2_i32 : i32
    %17 = arith.extui %16 : i1 to i32
    %c0_i32_10 = arith.constant 0 : i32
    %18 = arith.cmpi ne, %17, %c0_i32_10 : i32
    scf.if %18 {
      %c0_11 = arith.constant 0 : index
      %c0_12 = arith.constant 0 : index
      %19 = vector.load %arg4[%c0_11, %c0_12] : memref<1x9728xf32, #tpu.memory_space<vmem>>, vector<1x1024xf32>
      %c0_13 = arith.constant 0 : index
      %c1024 = arith.constant 1024 : index
      %20 = vector.load %arg4[%c0_13, %c1024] : memref<1x9728xf32, #tpu.memory_space<vmem>>, vector<1x512xf32>
      %c0_14 = arith.constant 0 : index
      %c1536 = arith.constant 1536 : index
      %21 = vector.load %arg4[%c0_14, %c1536] : memref<1x9728xf32, #tpu.memory_space<vmem>>, vector<1x512xf32>
      %c0_15 = arith.constant 0 : index
      %c2048 = arith.constant 2048 : index
      %22 = vector.load %arg4[%c0_15, %c2048] : memref<1x9728xf32, #tpu.memory_space<vmem>>, vector<1x512xf32>
      %c0_16 = arith.constant 0 : index
      %c2560 = arith.constant 2560 : index
      %23 = vector.load %arg4[%c0_16, %c2560] : memref<1x9728xf32, #tpu.memory_space<vmem>>, vector<1x3072xf32>
      %c0_17 = arith.constant 0 : index
      %c5632 = arith.constant 5632 : index
      %24 = vector.load %arg4[%c0_17, %c5632] : memref<1x9728xf32, #tpu.memory_space<vmem>>, vector<1x1024xf32>
      %c0_18 = arith.constant 0 : index
      %c6656 = arith.constant 6656 : index
      %25 = vector.load %arg4[%c0_18, %c6656] : memref<1x9728xf32, #tpu.memory_space<vmem>>, vector<1x3072xf32>
      %c0_19 = arith.constant 0 : index
      %c0_20 = arith.constant 0 : index
      %26 = vector.load %arg9[%c0_19, %c0_20] : memref<8x1024xf32, #tpu.memory_space<vmem>>, vector<8x1024xf32>
      %27 = vector.broadcast %24 : vector<1x1024xf32> to vector<8x1024xf32>
      %28 = arith.mulf %26, %27 : vector<8x1024xf32>
      %29 = vector.broadcast %19 : vector<1x1024xf32> to vector<8x1024xf32>
      %30 = arith.addf %28, %29 : vector<8x1024xf32>
      %31 = arith.truncf %30 : vector<8x1024xf32> to vector<8x1024xbf16>
      %c0_21 = arith.constant 0 : index
      %c0_22 = arith.constant 0 : index
      %32 = vector.load %arg5[%c0_21, %c0_22] : memref<1024x512xbf16, #tpu.memory_space<vmem>>, vector<1024x512xbf16>
      %cst_23 = arith.constant dense<0.000000e+00> : vector<8x512xf32>
      %33 = tpu.matmul %31, %32, %cst_23 {dimension_numbers = #tpu.dot_dimension_numbers<[1], [0], [0], [1], [0, 0, 1, 1], [], []>} : vector<8x1024xbf16>, vector<1024x512xbf16>, vector<8x512xf32> -> vector<8x512xf32>
      %34 = vector.broadcast %20 : vector<1x512xf32> to vector<8x512xf32>
      %35 = arith.addf %33, %34 : vector<8x512xf32>
      %cst_24 = arith.constant 0.000000e+00 : f32
      %36 = vector.broadcast %cst_24 : f32 to vector<8x512xf32>
      %37 = arith.maximumf %35, %36 : vector<8x512xf32>
      %38 = arith.truncf %37 : vector<8x512xf32> to vector<8x512xbf16>
      %c0_25 = arith.constant 0 : index
      %c0_26 = arith.constant 0 : index
      %39 = vector.load %arg6[%c0_25, %c0_26] : memref<512x512xbf16, #tpu.memory_space<vmem>>, vector<512x512xbf16>
      %cst_27 = arith.constant dense<0.000000e+00> : vector<8x512xf32>
      %40 = tpu.matmul %38, %39, %cst_27 {dimension_numbers = #tpu.dot_dimension_numbers<[1], [0], [0], [1], [0, 0, 1, 1], [], []>} : vector<8x512xbf16>, vector<512x512xbf16>, vector<8x512xf32> -> vector<8x512xf32>
      %41 = vector.broadcast %21 : vector<1x512xf32> to vector<8x512xf32>
      %42 = arith.addf %40, %41 : vector<8x512xf32>
      %cst_28 = arith.constant 0.000000e+00 : f32
      %43 = vector.broadcast %cst_28 : f32 to vector<8x512xf32>
      %44 = arith.maximumf %42, %43 : vector<8x512xf32>
      %45 = arith.truncf %44 : vector<8x512xf32> to vector<8x512xbf16>
      %c0_29 = arith.constant 0 : index
      %c0_30 = arith.constant 0 : index
      %46 = vector.load %arg7[%c0_29, %c0_30] : memref<512x512xbf16, #tpu.memory_space<vmem>>, vector<512x512xbf16>
      %cst_31 = arith.constant dense<0.000000e+00> : vector<8x512xf32>
      %47 = tpu.matmul %45, %46, %cst_31 {dimension_numbers = #tpu.dot_dimension_numbers<[1], [0], [0], [1], [0, 0, 1, 1], [], []>} : vector<8x512xbf16>, vector<512x512xbf16>, vector<8x512xf32> -> vector<8x512xf32>
      %48 = vector.broadcast %22 : vector<1x512xf32> to vector<8x512xf32>
      %49 = arith.addf %47, %48 : vector<8x512xf32>
      %cst_32 = arith.constant 0.000000e+00 : f32
      %50 = vector.broadcast %cst_32 : f32 to vector<8x512xf32>
      %51 = arith.maximumf %49, %50 : vector<8x512xf32>
      %52 = arith.truncf %51 : vector<8x512xf32> to vector<8x512xbf16>
      %c0_33 = arith.constant 0 : index
      %c0_34 = arith.constant 0 : index
      %c0_35 = arith.constant 0 : index
      %53 = vector.load %arg10[%c0_33, %c0_34, %c0_35] : memref<3x512x1024xbf16, #tpu.memory_space<vmem>>, vector<1x512x1024xbf16>
      %54 = vector.shape_cast %53 : vector<1x512x1024xbf16> to vector<512x1024xbf16>
      %cst_36 = arith.constant dense<0.000000e+00> : vector<8x1024xf32>
      %55 = tpu.matmul %52, %54, %cst_36 {dimension_numbers = #tpu.dot_dimension_numbers<[1], [0], [0], [1], [0, 0, 1, 1], [], []>} : vector<8x512xbf16>, vector<512x1024xbf16>, vector<8x1024xf32> -> vector<8x1024xf32>
      %56 = vector.extract_strided_slice %25 {offsets = [0, 0], sizes = [1, 1024], strides = [1, 1]} : vector<1x3072xf32> to vector<1x1024xf32>
      %57 = vector.broadcast %56 : vector<1x1024xf32> to vector<8x1024xf32>
      %58 = arith.mulf %55, %57 : vector<8x1024xf32>
      %59 = vector.extract_strided_slice %23 {offsets = [0, 0], sizes = [1, 1024], strides = [1, 1]} : vector<1x3072xf32> to vector<1x1024xf32>
      %60 = vector.broadcast %59 : vector<1x1024xf32> to vector<8x1024xf32>
      %61 = arith.addf %58, %60 : vector<8x1024xf32>
      %c0_37 = arith.constant 0 : index
      %c0_38 = arith.constant 0 : index
      %62 = vector.load %arg8[%c0_37, %c0_38] : memref<8x3072xf32, #tpu.memory_space<vmem>>, vector<8x1024xf32>
      tpu.vector_store %arg8[%c0_37, %c0_38], %61 {strides = array<i32>} : memref<8x3072xf32, #tpu.memory_space<vmem>>, vector<8x1024xf32>,
      %c1 = arith.constant 1 : index
      %c0_39 = arith.constant 0 : index
      %c0_40 = arith.constant 0 : index
      %63 = vector.load %arg10[%c1, %c0_39, %c0_40] : memref<3x512x1024xbf16, #tpu.memory_space<vmem>>, vector<1x512x1024xbf16>
      %64 = vector.shape_cast %63 : vector<1x512x1024xbf16> to vector<512x1024xbf16>
      %cst_41 = arith.constant dense<0.000000e+00> : vector<8x1024xf32>
      %65 = tpu.matmul %52, %64, %cst_41 {dimension_numbers = #tpu.dot_dimension_numbers<[1], [0], [0], [1], [0, 0, 1, 1], [], []>} : vector<8x512xbf16>, vector<512x1024xbf16>, vector<8x1024xf32> -> vector<8x1024xf32>
      %66 = vector.extract_strided_slice %25 {offsets = [0, 1024], sizes = [1, 1024], strides = [1, 1]} : vector<1x3072xf32> to vector<1x1024xf32>
      %67 = vector.broadcast %66 : vector<1x1024xf32> to vector<8x1024xf32>
      %68 = arith.mulf %65, %67 : vector<8x1024xf32>
      %69 = vector.extract_strided_slice %23 {offsets = [0, 1024], sizes = [1, 1024], strides = [1, 1]} : vector<1x3072xf32> to vector<1x1024xf32>
      %70 = vector.broadcast %69 : vector<1x1024xf32> to vector<8x1024xf32>
      %71 = arith.addf %68, %70 : vector<8x1024xf32>
      %c0_42 = arith.constant 0 : index
      %c1024_43 = arith.constant 1024 : index
      %72 = vector.load %arg8[%c0_42, %c1024_43] : memref<8x3072xf32, #tpu.memory_space<vmem>>, vector<8x1024xf32>
      tpu.vector_store %arg8[%c0_42, %c1024_43], %71 {strides = array<i32>} : memref<8x3072xf32, #tpu.memory_space<vmem>>, vector<8x1024xf32>,
      %c2 = arith.constant 2 : index
      %c0_44 = arith.constant 0 : index
      %c0_45 = arith.constant 0 : index
      %73 = vector.load %arg10[%c2, %c0_44, %c0_45] : memref<3x512x1024xbf16, #tpu.memory_space<vmem>>, vector<1x512x1024xbf16>
      %74 = vector.shape_cast %73 : vector<1x512x1024xbf16> to vector<512x1024xbf16>
      %cst_46 = arith.constant dense<0.000000e+00> : vector<8x1024xf32>
      %75 = tpu.matmul %52, %74, %cst_46 {dimension_numbers = #tpu.dot_dimension_numbers<[1], [0], [0], [1], [0, 0, 1, 1], [], []>} : vector<8x512xbf16>, vector<512x1024xbf16>, vector<8x1024xf32> -> vector<8x1024xf32>
      %76 = vector.extract_strided_slice %25 {offsets = [0, 2048], sizes = [1, 1024], strides = [1, 1]} : vector<1x3072xf32> to vector<1x1024xf32>
      %77 = vector.broadcast %76 : vector<1x1024xf32> to vector<8x1024xf32>
      %78 = arith.mulf %75, %77 : vector<8x1024xf32>
      %79 = vector.extract_strided_slice %23 {offsets = [0, 2048], sizes = [1, 1024], strides = [1, 1]} : vector<1x3072xf32> to vector<1x1024xf32>
      %80 = vector.broadcast %79 : vector<1x1024xf32> to vector<8x1024xf32>
      %81 = arith.addf %78, %80 : vector<8x1024xf32>
      %c0_47 = arith.constant 0 : index
      %c2048_48 = arith.constant 2048 : index
      %82 = vector.load %arg8[%c0_47, %c2048_48] : memref<8x3072xf32, #tpu.memory_space<vmem>>, vector<8x1024xf32>
      tpu.vector_store %arg8[%c0_47, %c2048_48], %81 {strides = array<i32>} : memref<8x3072xf32, #tpu.memory_space<vmem>>, vector<8x1024xf32>,
    } else {
    }
    return
  }
  func.func @transform_0(%arg0: i32) -> (i32, i32) {
    %c0_i32 = arith.constant 0 : i32
    %c0_i32_0 = arith.constant 0 : i32
    return %c0_i32, %arg0 : i32, i32
  }
  func.func @transform_1(%arg0: i32) -> (i32, i32) {
    %c0_i32 = arith.constant 0 : i32
    %c0_i32_0 = arith.constant 0 : i32
    return %arg0, %c0_i32 : i32, i32
  }
  func.func @transform_2(%arg0: i32) -> (i32, i32) {
    %c0_i32 = arith.constant 0 : i32
    %c0_i32_0 = arith.constant 0 : i32
    return %c0_i32, %arg0 : i32, i32
  }
  func.func @transform_3(%arg0: i32) -> (i32, i32) {
    %c0_i32 = arith.constant 0 : i32
    %c0_i32_0 = arith.constant 0 : i32
    %c0_i32_1 = arith.constant 0 : i32
    return %c0_i32, %c0_i32_0 : i32, i32
  }
  func.func @transform_4(%arg0: i32) -> (i32, i32) {
    %c0_i32 = arith.constant 0 : i32
    %c0_i32_0 = arith.constant 0 : i32
    %c0_i32_1 = arith.constant 0 : i32
    return %c0_i32, %c0_i32_0 : i32, i32
  }
  func.func @transform_5(%arg0: i32) -> (i32, i32) {
    %c0_i32 = arith.constant 0 : i32
    %c0_i32_0 = arith.constant 0 : i32
    %c0_i32_1 = arith.constant 0 : i32
    return %c0_i32, %c0_i32_0 : i32, i32
  }
  func.func @transform_6(%arg0: i32) -> (i32, i32) {
    %c0_i32 = arith.constant 0 : i32
    %c0_i32_0 = arith.constant 0 : i32
    %c0_i32_1 = arith.constant 0 : i32
    return %c0_i32, %c0_i32_0 : i32, i32
  }
  func.func @transform_7(%arg0: i32) -> (i32, i32) {
    %c0_i32 = arith.constant 0 : i32
    %c0_i32_0 = arith.constant 0 : i32
    %c0_i32_1 = arith.constant 0 : i32
    return %c0_i32, %c0_i32_0 : i32, i32
  }
}

</mosaic_0001>

<bundles_post_ra>
// kernel: tpu_custom_call.1
= control target key start
LH: loop header
LB: loop body
LE: loop exit
PB: predicated region body
PF: predicated region fallthrough
CT: control target
= control target key end

     0   :  { %s18379_s0 = inlined_call_operand.hbm [shape: bf16[8,3072], index: 0, kind: input, shape index: {}]   ;;  %s18380_s1 = inlined_call_operand.hbm [shape: s8[3072,1024], index: 1, kind: input, shape index: {}]   ;;  %s18381_s2 = inlined_call_operand.hbm [shape: s8[512,3072], index: 2, kind: input, shape index: {}]   ;;  %s18382_s3 = inlined_call_operand.hbm [shape: f32[1,9728], index: 3, kind: input, shape index: {}]   ;;  %s18383_s4 = inlined_call_operand.hbm [shape: bf16[1024,512], index: 4, kind: input, shape index: {}]   ;;  %s18384_s5 = inlined_call_operand.hbm [shape: bf16[512,512], index: 5, kind: input, shape index: {}]   ;;  %s18385_s6 = inlined_call_operand.hbm [shape: bf16[512,512], index: 6, kind: input, shape index: {}]   ;;  %s18386_s7 = inlined_call_operand.hbm [shape: f32[8,3072], index: 7, kind: output, shape index: {}]  }
   0x1   :  { %18399 = sst [smem:[#allocation22_spill]] %s18380_s1 }
   0x2   :  { %18400 = sst [smem:[#allocation23_spill]] %s18382_s3 }
   0x3   :  { %12 = vsyncpa [#allocation5], 0 }
   0x4   :  { %14 = vsyncpa [#allocation5 + $0x1], 0 }
   0x5   :  { %15 = vsyncpa [#allocation8], 0 }
   0x6   :  { %17 = vsyncpa [#allocation8 + $0x1], 0 }
   0x7   :  { %18 = vsyncpa [#allocation11], 0 }
   0x8   :  { %19 = vsyncpa [#allocation14], 0 }
   0x9   :  { %20 = vsyncpa [#allocation6], 0  ;;  %s16617_s24 = smov 0   ;;  %s16619_s25 = smov 0  }
   0xa   :  { %s16621_s26 = smov 0   ;;  %s16623_s27 = smov 0  }
   0xb LB: > { %s16636_s28 = sadd.s32 4294967295, %s16562_s27   ;;  %p46_p0 = scmp.ne.s32.totalorder %s16554_s25, %s16550_s24  ;;  %s16562_s27 = sphi %s16623_s27, %s18426_s27   ;;  %s16558_s26 = sphi %s16621_s26, %s18425_s26   ;;  %s16554_s25 = sphi %s16619_s25, %s18424_s25   ;;  %s16550_s24 = sphi %s16617_s24, %s18423_s24  }
   0xc   : > { %p18387_p1 = scmp.eq.s32.totalorder %s16636_s28, 0  ;;  %p13836_p2 = scmp.ge.s32.totalorder %s16562_s27, 1 }
   0xd   : > { %p214_p3 = scmp.lt.s32.totalorder %s16562_s27, 4  ;;  %s16564_s8 = smov [#allocation10]  }
   0xe   : > { %p16645_p5 = por %p18387_p1, %p46_p0  ;;  %s227_s9 = sshll.u32 %s16564_s8, 4  ;;  %s228_s9 = int_to_ptr.vmem [resolvable:$true] %s227_s9 }
   0xf   : > { %p16649_p6 = pnand %p13836_p2, %p214_p3  ;;  %s16565_s11 = smov [#allocation13]  }
  0x10   : > { %s18401_s29 = scalar_select %p16645_p5, 1, 0 }
  0x11   : > { %s18402_s30 = scalar_select %p16649_p6, 1, 0 }
  0x12   : > { %p15444_p7 = pneg %p16649_p6  ;;  %s250_s12 = sshll.u32 %s16565_s11, 4  ;;  %s251_s12 = int_to_ptr.vmem [resolvable:$true] %s250_s12 }
  0x13   : > { %s16311_s13 = scalar_lea.vmem %s228_s9, 1216  ;;  %p16319_p13 = scmp.lt.s32.totalorder %s228_s9, %s228_s9 }
  0x14   : > { %p16657_p8 = pnand %p15444_p7, %p18387_p1  ;;  %p16312_p10 = scmp.ne.s32.totalorder %s228_s9, %s16311_s13 }
  0x15   : > { %p16320_p0 = scmp.lt.s32.totalorder %s16311_s13, %s16311_s13 }
  0x16   : > { %s18403_s10 = scalar_select %p16657_p8, 1, 0 }
  0x17   : > { %p18394_p9 = pneg %p16657_p8  ;;  %p16321_p2 = por %p16320_p0, %p16319_p13 }
  0x19   : > { %p16314_p11 = pnand %p16312_p10, %p18394_p9 }
  0x1b   : > { %p16315_p12 = pneg %p16314_p11 }
  0x1d   : > { %p16322_p3 = pnand %p16321_p2, %p16315_p12 }
  0x1f   : > { %16325 = shalt.err (!%p16322_p3)
}
  0x20   : > { %s18404_s3 = sld [smem:[#allocation23_spill]]  ;;  %s16337_s16 = scalar_lea.vmem %s251_s12, 16384 }
  0x21   : > { %p16338_p7 = scmp.ne.s32.totalorder %s251_s12, %s16337_s16  ;;  %p16345_p10 = scmp.lt.s32.totalorder %s251_s12, %s251_s12 }
  0x22   : > { %p16346_p11 = scmp.lt.s32.totalorder %s16337_s16, %s16337_s16 }
  0x23   : > { %p16340_p4 = pnand %p16338_p7, %p18394_p9 }
  0x24   : > { %p16347_p5 = por %p16346_p11, %p16345_p10 }
  0x25   : > { %p16341_p1 = pneg %p16340_p4 }
  0x26   : > { %15447 = dma.hbm_to_vmem [thread:$0]  (!%p16657_p8), %s18404_s3, 1216, %s228_s9, [#allocation11]  }
  0x27   : > { %p16348_p6 = pnand %p16347_p5, %p16341_p1 }
  0x29   : > { %16351 = shalt.err (!%p16348_p6)
}
  0x2a   : > { %s18390_s17 = smov 256   ;;  %s18392_s18 = smov 16  }
  0x2b   : > { %15453 = dma.hbm_to_vmem [thread:$0]  (!%p16657_p8), %s18384_s5, 16384, %s251_s12, [#allocation14], %s18390_s17, %s18390_s17, %s18392_s18  }
  0x2c   : > { %s16683_s21 = sadd.s32 1, %s16562_s27   ;;  %s33_s22 = sadd.s32 1, %s16558_s26 }
  0x2d   : > { %s30_s23 = ssub.s32 %s16562_s27, %s16683_s21  ;;  %p40_p1 = scmp.ne.s32.totalorder %s16558_s26, %s16554_s25 }
  0x2e   : > { %p31_p4 = scmp.eq.s32.totalorder %s30_s23, 0  ;;  %p41_p5 = scmp.eq.s32.totalorder %s16562_s27, 0 }
  0x2f   : > { %p15471_p6 = scmp.lt.s32.totalorder %s16562_s27, 3  ;;  %s16693_s24 = sand.u32 1, %s16558_s26  }
  0x30   : > { %s16696_s8 = scalar_select %p31_p4, %s16558_s26, %s33_s22  }
  0x31   : > { %p42_p12 = por %p41_p5, %p40_p1  ;;  %s296_s9 = sand.u32 1, %s16562_s27  }
  0x32   : > { %s13845_s11 = sshll.u32 %s16693_s24, 11  ;;  %s15415_s12 = sshll.u32 %s16562_s27, 15 }
  0x33   : > { %p16700_p13 = pnand %p15471_p6, %p42_p12  ;;  %s300_s14 = scalar_lea.vmem [#allocation7], %s13845_s11 }
  0x34   : > { %s308_s15 = sshll.u32 %s300_s14, 4  ;;  %s18406_s1 = sld [smem:[#allocation22_spill]]  ;;  %s16710_s15 = int_to_ptr.vmem [resolvable:$true] %s308_s15 }
  0x35   : > { %s16712_s22 = scalar_lea.sflag [#allocation8], %s296_s9  ;;  %p16718_p2 = pneg %p16700_p13 }
  0x3a   : > { %s16708_s20 = scalar_lea.hbm %s18406_s1, %s15415_s12  ;;  %s16357_s14 = scalar_lea.hbm %s18406_s1, 98304 }
  0x3b   : > { %s16352_s23 = scalar_lea.hbm %s16708_s20, 32768  ;;  %p16358_p10 = scmp.lt.s32.totalorder %s16708_s20, %s18406_s1 }
  0x3c   : > { %p16353_p0 = scmp.ne.s32.totalorder %s16708_s20, %s16352_s23  ;;  %p16359_p11 = scmp.lt.s32.totalorder %s16357_s14, %s16352_s23 }
  0x3e   : > { %p16355_p3 = pnand %p16718_p2, %p16353_p0  ;;  %p16360_p1 = por %p16359_p11, %p16358_p10 }
  0x40   : > { %p16356_p7 = pneg %p16355_p3 }
  0x42   : > { %p16361_p4 = pnand %p16360_p1, %p16356_p7 }
  0x44   : > { %16364 = shalt.err (!%p16361_p4)
}
  0x45   : > { %s16365_s9 = scalar_lea.vmem %s16710_s15, 32768  ;;  %s16568_s18 = smov [#allocation7]  }
  0x46   : > { %p16366_p5 = scmp.ne.s32.totalorder %s16710_s15, %s16365_s9  ;;  %s16370_s11 = sshll.u32 %s16568_s18, 4  ;;  %s16371_s11 = int_to_ptr.vmem [resolvable:$false] %s16370_s11 }
  0x47   : > { %s16372_s12 = scalar_lea.vmem %s16371_s11, 65536  ;;  %p16373_p0 = scmp.lt.s32.totalorder %s16710_s15, %s16371_s11 }
  0x48   : > { %p16368_p6 = pnand %p16366_p5, %p16718_p2  ;;  %p16374_p3 = scmp.lt.s32.totalorder %s16372_s12, %s16365_s9 }
  0x4a   : > { %p16369_p12 = pneg %p16368_p6  ;;  %p16375_p9 = por %p16374_p3, %p16373_p0 }
  0x4c   : > { %p16376_p8 = pnand %p16375_p9, %p16369_p12 }
  0x4e   : > { %16379 = shalt.err (!%p16376_p8)
}
  0x4f   : > { %s18397_s23 = smov 1024   ;;  %s18398_s14 = smov 64  }
  0x50   : > { %15463 = dma.hbm_to_vmem [thread:$0]  (!%p16700_p13), %s16708_s20, 32768, %s16710_s15, %s16712_s22, %s18397_s23, %s18397_s23, %s18398_s14  }
  0x51   : > { %s16571_s18 = smov [#allocation12]   ;;  %s16572_s19 = smov [#allocation15]  }
  0x52   : > { %s237_s16 = sshll.u32 %s16571_s18, 4  ;;  %s263_s9 = sshll.u32 %s16572_s19, 4  ;;  %s238_s16 = int_to_ptr.vmem [resolvable:$true] %s237_s16  ;;  %s264_s9 = int_to_ptr.vmem [resolvable:$true] %s263_s9 }
  0x53   : > { %s16391_s11 = scalar_lea.vmem %s238_s16, 32768  ;;  %p18408_p8 = scmp.ne.s32.totalorder %s18403_s10, 0 }
  0x54   : > { %p16392_p9 = scmp.ne.s32.totalorder %s238_s16, %s16391_s11  ;;  %p16399_p1 = scmp.lt.s32.totalorder %s238_s16, %s238_s16 }
  0x55   : > { %p18409_p7 = pneg %p18408_p8  ;;  %p16400_p4 = scmp.lt.s32.totalorder %s16391_s11, %s16391_s11 }
  0x57   : > { %p16394_p10 = pnand %p16392_p9, %p18409_p7  ;;  %p16401_p5 = por %p16400_p4, %p16399_p1 }
  0x59   : > { %p16395_p11 = pneg %p16394_p10 }
  0x5b   : > { %p16402_p6 = pnand %p16401_p5, %p16395_p11 }
  0x5d   : > { %16405 = shalt.err (!%p16402_p6)
}
  0x5e   : > { %s18410_s12 = smov 16   ;;  %s18411_s15 = smov 256  }
  0x5f   : > { %15450 = dma.hbm_to_vmem [thread:$0]  (!%p18408_p8), %s18383_s4, 32768, %s238_s16, [#allocation11], %s18411_s15, %s18411_s15, %s18410_s12  }
  0x60   : > { %s16417_s19 = scalar_lea.vmem %s264_s9, 16384  ;;  %p18412_p0 = pmov %p18409_p7 }
  0x61   : > { %p16418_p12 = scmp.ne.s32.totalorder %s264_s9, %s16417_s19  ;;  %p16425_p7 = scmp.lt.s32.totalorder %s264_s9, %s264_s9 }
  0x62   : > { %p16426_p10 = scmp.lt.s32.totalorder %s16417_s19, %s16417_s19 }
  0x63   : > { %p16420_p3 = pnand %p16418_p12, %p18412_p0 }
  0x64   : > { %p16427_p11 = por %p16426_p10, %p16425_p7 }
  0x65   : > { %p16421_p9 = pneg %p16420_p3 }
  0x67   : > { %p16428_p1 = pnand %p16427_p11, %p16421_p9 }
  0x69   : > { %16431 = shalt.err (!%p16428_p1)
}
  0x6a   : > { %15456 = dma.hbm_to_vmem [thread:$0]  (!%p18408_p8), %s18385_s6, 16384, %s264_s9, [#allocation14], %s18411_s15, %s18411_s15, %s18410_s12  }
  0x6b   : > { %s13842_s16 = sshll.u32 %s16693_s24, 5  ;;  %s15413_s18 = sshll.u32 %s16562_s27, 9 }
  0x6c   : > { %s16771_s14 = scalar_lea.hbm %s18379_s0, %s15413_s18  ;;  %s281_s10 = scalar_lea.vmem [#allocation4], %s13842_s16 }
  0x6d   : > { %s289_s1 = sshll.u32 %s281_s10, 4  ;;  %s13849_s3 = sshll.u32 %s16693_s24, 10  ;;  %s290_s1 = int_to_ptr.vmem [resolvable:$true] %s289_s1 }
  0x6e   : > { %s278_s11 = scalar_lea.sflag [#allocation5], %s16693_s24  ;;  %s16432_s20 = scalar_lea.hbm %s16771_s14, 512 }
  0x6f   : > { %p16433_p4 = scmp.ne.s32.totalorder %s16771_s14, %s16432_s20  ;;  %s16437_s15 = scalar_lea.hbm %s18379_s0, 1536 }
  0x70   : > { %p16438_p6 = scmp.lt.s32.totalorder %s16771_s14, %s18379_s0  ;;  %p16439_p12 = scmp.lt.s32.totalorder %s16437_s15, %s16432_s20 }
  0x71   : > { %p16435_p5 = pnand %p16433_p4, %p16718_p2 }
  0x72   : > { %p16440_p0 = por %p16439_p12, %p16438_p6 }
  0x73   : > { %p16436_p8 = pneg %p16435_p5 }
  0x75   : > { %p16441_p3 = pnand %p16440_p0, %p16436_p8 }
  0x77   : > { %16444 = shalt.err (!%p16441_p3)
}
  0x78   : > { %s16445_s16 = scalar_lea.vmem %s290_s1, 512  ;;  %s16573_s24 = smov [#allocation4]  }
  0x79   : > { %p16446_p9 = scmp.ne.s32.totalorder %s290_s1, %s16445_s16  ;;  %s16450_s19 = sshll.u32 %s16573_s24, 4  ;;  %s16451_s19 = int_to_ptr.vmem [resolvable:$false] %s16450_s19 }
  0x7a   : > { %s16452_s10 = scalar_lea.vmem %s16451_s19, 1024  ;;  %p16453_p11 = scmp.lt.s32.totalorder %s290_s1, %s16451_s19 }
  0x7b   : > { %p16448_p7 = pnand %p16446_p9, %p16718_p2  ;;  %p16454_p1 = scmp.lt.s32.totalorder %s16452_s10, %s16445_s16 }
  0x7d   : > { %p16449_p10 = pneg %p16448_p7  ;;  %p16455_p4 = por %p16454_p1, %p16453_p11 }
  0x7f   : > { %p16456_p5 = pnand %p16455_p4, %p16449_p10 }
  0x81   : > { %16459 = shalt.err (!%p16456_p5)
}
  0x82   : > { %15460 = dma.hbm_to_vmem [thread:$0]  (!%p16700_p13), %s16771_s14, 512, %s290_s1, %s278_s11  }
  0x83   : > { %s15416_s20 = sshll.u32 %s16562_s27, 10  ;;  %s322_s9 = scalar_lea.vmem [#allocation9], %s13849_s3 }
  0x84   : > { %s329_s12 = sshll.u32 %s322_s9, 4  ;;  %s16795_s18 = scalar_lea.hbm %s18381_s2, %s15416_s20  ;;  %s16797_s12 = int_to_ptr.vmem [resolvable:$true] %s329_s12 }
  0x85   : > { %s16460_s16 = scalar_lea.hbm %s16795_s18, 16384  ;;  %s16465_s3 = scalar_lea.hbm %s18381_s2, 49152 }
  0x86   : > { %p16461_p8 = scmp.ne.s32.totalorder %s16795_s18, %s16460_s16  ;;  %p16466_p0 = scmp.lt.s32.totalorder %s16795_s18, %s18381_s2 }
  0x87   : > { %p16467_p3 = scmp.lt.s32.totalorder %s16465_s3, %s16460_s16 }
  0x88   : > { %p16463_p6 = pnand %p16461_p8, %p16718_p2 }
  0x89   : > { %p16468_p9 = por %p16467_p3, %p16466_p0 }
  0x8a   : > { %p16464_p12 = pneg %p16463_p6 }
  0x8c   : > { %p16469_p7 = pnand %p16468_p9, %p16464_p12 }
  0x8e   : > { %16472 = shalt.err (!%p16469_p7)
}
  0x8f   : > { %s16473_s11 = scalar_lea.vmem %s16797_s12, 16384  ;;  %s16574_s19 = smov [#allocation9]  }
  0x90   : > { %p16474_p10 = scmp.ne.s32.totalorder %s16797_s12, %s16473_s11  ;;  %s16478_s10 = sshll.u32 %s16574_s19, 4  ;;  %s16479_s10 = int_to_ptr.vmem [resolvable:$false] %s16478_s10 }
  0x91   : > { %s16480_s20 = scalar_lea.vmem %s16479_s10, 32768  ;;  %p16481_p4 = scmp.lt.s32.totalorder %s16797_s12, %s16479_s10 }
  0x92   : > { %p16476_p11 = pnand %p16474_p10, %p16718_p2  ;;  %p16482_p5 = scmp.lt.s32.totalorder %s16480_s20, %s16473_s11 }
  0x94   : > { %p16477_p1 = pneg %p16476_p11  ;;  %p16483_p8 = por %p16482_p5, %p16481_p4 }
  0x96   : > { %p16484_p6 = pnand %p16483_p8, %p16477_p1 }
  0x98   : > { %16487 = shalt.err (!%p16484_p6)
}
  0x99   : > { %s16575_s9 = smov 3072   ;;  %s18413_s15 = smov 64  }
  0x9a   : > { %s18414_s23 = smov 1024   ;;  %p18415_p2 = scmp.ne.s32.totalorder %s18402_s30, 0 }
  0x9b   : > { %15466 = dma.hbm_to_vmem [thread:$0]  (!%p16700_p13), %s16795_s18, 16384, %s16797_s12, %s16712_s22, %s16575_s9, %s18414_s23, %s18413_s15  }
  0x9c   : > { %341 = sbr.rel (%p18415_p2) target bundleno = 2952 (0xb88), region = 48  ;;  %s343_s17 = sand.u32 (!%p18415_p2), 1, %s16554_s25  }
  0x9d   : > { %s13853_s16 = sshll.u32 (!%p18415_p2), %s343_s17, 5  ;;  %s344_s24 = scalar_lea.sflag (!%p18415_p2), [#allocation5], %s343_s17 }
  0x9e   : > { %s16825_s1 = scalar_lea.vmem (!%p18415_p2), [#allocation4], %s13853_s16  ;;  %p18416_p12 = scmp.ne.s32.totalorder (!%p18415_p2), %s18401_s29, 0 }
  0xa1   : > { %16529 = dma.done.wait (%p18416_p12), %s344_s24, 512  }
  0xa2   : > { %16531 = vsyncadd (%p18416_p12), %s344_s24, 4294966784  ;;  %s352_s13 = sand.u32 1, %s16636_s28   ;;  %s13854_s3 = sshll.u32 %s343_s17, 11 }
  0xa3   : > { %s353_s22 = scalar_lea.sflag [#allocation8], %s352_s13  ;;  %s16832_s12 = scalar_lea.vmem [#allocation7], %s13854_s3 }
  0xa4   : > { %16533 = dma.done.wait (%p18416_p12), %s353_s22, 49152  }
  0xa5   : > { %16535 = vsyncadd (%p18416_p12), %s353_s22, 4294918144  ;;  %s13855_s30 = sshll.u32 %s343_s17, 10  ;;  %p18417_p13 = scmp.eq.s32.totalorder %s16636_s28, 0 }
  0xa6   : > { %s16838_s18 = scalar_lea.vmem [#allocation9], %s13855_s30 }
  0xa7   : > { %16537 = dma.done.wait (%p18417_p13), [#allocation11], 33984   ;;  %p18418_p0 = pmov %p18417_p13 }
  0xa9   : > { %16539 = vsyncadd (%p18418_p0), [#allocation11], 4294933312  ;;  %p18419_p3 = pmov %p18418_p0 }
  0xaa   : > { %p18420_p9 = pmov %p18418_p0 }
  0xab   : > { %16541 = dma.done.wait (%p18419_p3), [#allocation14], 32768  }
  0xac   : > { %16543 = vsyncadd (%p18420_p9), [#allocation14], 4294934528  ;;  %v449_v0 = vld [vmem:[%s16832_s12 + $0xc8] sm:$0xff]  ;;  %v448_v2 = vld [vmem:[%s16832_s12 + $0xc0] sm:$0xff]  ;;  %p18421_p7 = scmp.ne.s32.totalorder %s16636_s28, 0 }
  0xad   : > { %v513_v1 = vld [vmem:[%s16832_s12 + $0x2c8] sm:$0xff]  ;;  %v729_v3 = vunpack.c.l.s8.bf16 %v449_v0  ;;  %v737_v4 = vunpack.c.h.s8.bf16 %v449_v0  ;;  %v512_v7 = vld [vmem:[%s16832_s12 + $0x2c0] sm:$0xff]  ;;  %v736_v8 = vunpack.c.h.s8.bf16 %v448_v2  ;;  %v728_v12 = vunpack.c.l.s8.bf16 %v448_v2 }
  0xae   : > { %v857_v5 = vunpack.c.l.s8.bf16 %v513_v1  ;;  %v865_v6 = vunpack.c.h.s8.bf16 %v513_v1  ;;  %v864_v9 = vunpack.c.h.s8.bf16 %v512_v7  ;;  %v441_v10 = vld [vmem:[%s16832_s12 + $0x88] sm:$0xff]  ;;  %v856_v13 = vunpack.c.l.s8.bf16 %v512_v7  ;;  %v440_v16 = vld [vmem:[%s16832_s12 + $0x80] sm:$0xff] }
  0xaf   : > { %v505_v11 = vld [vmem:[%s16832_s12 + $0x288] sm:$0xff]  ;;  %1220 = vmatprep.subr.bf16.mxu0 %v737_v4  ;;  %v721_v14 = vunpack.c.h.s8.bf16 %v441_v10  ;;  %v504_v17 = vld [vmem:[%s16832_s12 + $0x280] sm:$0xff]  ;;  %v720_v18 = vunpack.c.h.s8.bf16 %v440_v16  ;;  %v713_v20 = vunpack.c.l.s8.bf16 %v441_v10  ;;  %v712_v24 = vunpack.c.l.s8.bf16 %v440_v16 }
  0xb0   : > { %1261 = vmatprep.subr.bf16.mxu1 %v865_v6  ;;  %1221 = vmatpush1.bf16.msra.mxu0 %v736_v8  ;;  %v849_v15 = vunpack.c.h.s8.bf16 %v505_v11  ;;  %v848_v19 = vunpack.c.h.s8.bf16 %v504_v17  ;;  %v841_v21 = vunpack.c.l.s8.bf16 %v505_v11  ;;  %v433_v22 = vld [vmem:[%s16832_s12 + $0x48] sm:$0xff]  ;;  %v840_v25 = vunpack.c.l.s8.bf16 %v504_v17  ;;  %v432_v28 = vld [vmem:[%s16832_s12 + $0x40] sm:$0xff] }
  0xb1   : > { %1262 = vmatpush1.bf16.msra.mxu1 %v864_v9  ;;  %1222 = vmatprep.subr.bf16.mxu0 %v729_v3  ;;  %v497_v23 = vld [vmem:[%s16832_s12 + $0x248] sm:$0xff]  ;;  %v705_v26 = vunpack.c.h.s8.bf16 %v433_v22  ;;  %v496_v29 = vld [vmem:[%s16832_s12 + $0x240] sm:$0xff]  ;;  %v704_v32 = vunpack.c.h.s8.bf16 %v432_v28  ;;  %v697_v34 = vunpack.c.l.s8.bf16 %v433_v22  ;;  %v696_v40 = vunpack.c.l.s8.bf16 %v432_v28 }
  0xb2   : > { %1263 = vmatprep.subr.bf16.mxu1 %v857_v5  ;;  %v833_v27 = vunpack.c.h.s8.bf16 %v497_v23  ;;  %v16861_v30 = vld [vmem:[%s16825_s1] sm:$0xff]  ;;  %v16864_v31 = vld [vmem:[%s16825_s1 + $0x8] sm:$0xff]  ;;  %v832_v33 = vunpack.c.h.s8.bf16 %v496_v29  ;;  %v825_v35 = vunpack.c.l.s8.bf16 %v497_v23  ;;  %v824_v41 = vunpack.c.l.s8.bf16 %v496_v29 }
  0xb3   : > { %v16868_v36 = vcombine.high %v16861_v30, %v16861_v30  ;;  %v16872_v37 = vcombine.high %v16864_v31, %v16864_v31  ;;  %v425_v38 = vld [vmem:[%s16832_s12 + $0x8] sm:$0xff]  ;;  %v424_v44 = vld [vmem:[%s16832_s12] sm:$0xff] }
  0xb4   : > { %1223 = vmatpush1.bf16.msra.mxu0 %v728_v12  ;;  %v489_v39 = vld [vmem:[%s16832_s12 + $0x208] sm:$0xff]  ;;  %v689_v42 = vunpack.c.h.s8.bf16 %v425_v38  ;;  %v488_v45 = vld [vmem:[%s16832_s12 + $0x200] sm:$0xff]  ;;  %v688_v46 = vunpack.c.h.s8.bf16 %v424_v44  ;;  %v681_v48 = vunpack.c.l.s8.bf16 %v425_v38  ;;  %v680_v52 = vunpack.c.l.s8.bf16 %v424_v44 }
  0xb5   : > { %1264 = vmatpush1.bf16.msra.mxu1 %v856_v13  ;;  %1224 = vmatprep.subr.bf16.mxu0 %v721_v14  ;;  %v817_v43 = vunpack.c.h.s8.bf16 %v489_v39  ;;  %v816_v47 = vunpack.c.h.s8.bf16 %v488_v45  ;;  %v809_v49 = vunpack.c.l.s8.bf16 %v489_v39  ;;  %v481_v50 = vld [vmem:[%s16832_s12 + $0x1c8] sm:$0xff]  ;;  %v808_v53 = vunpack.c.l.s8.bf16 %v488_v45  ;;  %v480_v56 = vld [vmem:[%s16832_s12 + $0x1c0] sm:$0xff] }
  0xb6   : > { %1265 = vmatprep.subr.bf16.mxu1 %v849_v15  ;;  %1252 = vmatprep.mubr.bf16.mxu0 %v16868_v36  ;;  %v545_v51 = vld [vmem:[%s16832_s12 + $0x3c8] sm:$0xff]  ;;  %v801_v54 = vunpack.c.h.s8.bf16 %v481_v50  ;;  %v544_v57 = vld [vmem:[%s16832_s12 + $0x3c0] sm:$0xff]  ;;  %v800_v58 = vunpack.c.h.s8.bf16 %v480_v56  ;;  %v793_v60 = vunpack.c.l.s8.bf16 %v481_v50  ;;  %v792_v0 = vunpack.c.l.s8.bf16 %v480_v56 }
  0xb7   : > { %1293 = vmatprep.mubr.bf16.mxu1 %v16872_v37  ;;  %v929_v55 = vunpack.c.h.s8.bf16 %v545_v51  ;;  %v928_v59 = vunpack.c.h.s8.bf16 %v544_v57  ;;  %v921_v61 = vunpack.c.l.s8.bf16 %v545_v51  ;;  %v473_v62 = vld [vmem:[%s16832_s12 + $0x188] sm:$0xff]  ;;  %v920_v1 = vunpack.c.l.s8.bf16 %v544_v57  ;;  %v472_v4 = vld [vmem:[%s16832_s12 + $0x180] sm:$0xff] }
  0xb8   : > { %1225 = vmatpush1.bf16.msra.mxu0 %v720_v18  ;;  %v537_v63 = vld [vmem:[%s16832_s12 + $0x388] sm:$0xff]  ;;  %v785_v2 = vunpack.c.h.s8.bf16 %v473_v62  ;;  %v536_v5 = vld [vmem:[%s16832_s12 + $0x380] sm:$0xff]  ;;  %v784_v6 = vunpack.c.h.s8.bf16 %v472_v4  ;;  %v777_v8 = vunpack.c.l.s8.bf16 %v473_v62  ;;  %v776_v12 = vunpack.c.l.s8.bf16 %v472_v4 }
  0xb9   : > { %1266 = vmatpush1.bf16.msra.mxu1 %v848_v19  ;;  %1226 = vmatprep.subr.bf16.mxu0 %v713_v20  ;;  %v913_v3 = vunpack.c.h.s8.bf16 %v537_v63  ;;  %v912_v7 = vunpack.c.h.s8.bf16 %v536_v5  ;;  %v905_v9 = vunpack.c.l.s8.bf16 %v537_v63  ;;  %v465_v10 = vld [vmem:[%s16832_s12 + $0x148] sm:$0xff]  ;;  %v904_v13 = vunpack.c.l.s8.bf16 %v536_v5  ;;  %v464_v16 = vld [vmem:[%s16832_s12 + $0x140] sm:$0xff] }
  0xba   : > { %1267 = vmatprep.subr.bf16.mxu1 %v841_v21  ;;  %v529_v11 = vld [vmem:[%s16832_s12 + $0x348] sm:$0xff]  ;;  %v769_v14 = vunpack.c.h.s8.bf16 %v465_v10  ;;  %v528_v17 = vld [vmem:[%s16832_s12 + $0x340] sm:$0xff]  ;;  %v768_v18 = vunpack.c.h.s8.bf16 %v464_v16  ;;  %v761_v20 = vunpack.c.l.s8.bf16 %v465_v10 }
  0xbb   : > { %v897_v15 = vunpack.c.h.s8.bf16 %v529_v11  ;;  %v896_v19 = vunpack.c.h.s8.bf16 %v528_v17  ;;  %v889_v21 = vunpack.c.l.s8.bf16 %v529_v11  ;;  %v457_v22 = vld [vmem:[%s16832_s12 + $0x108] sm:$0xff]  ;;  %v456_v28 = vld [vmem:[%s16832_s12 + $0x100] sm:$0xff] }
  0xbc   : > { %1227 = vmatpush1.bf16.msra.mxu0 %v712_v24  ;;  %v521_v23 = vld [vmem:[%s16832_s12 + $0x308] sm:$0xff]  ;;  %v760_v24 = vunpack.c.l.s8.bf16 %v464_v16  ;;  %v520_v29 = vld [vmem:[%s16832_s12 + $0x300] sm:$0xff] }
  0xbd   : > { %1268 = vmatpush1.bf16.msra.mxu1 %v840_v25  ;;  %1228 = vmatprep.subr.bf16.mxu0 %v705_v26  ;;  %v888_v25 = vunpack.c.l.s8.bf16 %v528_v17  ;;  %v753_v26 = vunpack.c.h.s8.bf16 %v457_v22  ;;  %v577_v38 = vld [vmem:[%s16832_s12 + $0x4c8] sm:$0xff]  ;;  %v576_v44 = vld [vmem:[%s16832_s12 + $0x4c0] sm:$0xff] }
  0xbe   : > { %1269 = vmatprep.subr.bf16.mxu1 %v833_v27  ;;  %v881_v27 = vunpack.c.h.s8.bf16 %v521_v23  ;;  %v641_v39 = vld [vmem:[%s16832_s12 + $0x6c8] sm:$0xff]  ;;  %v640_v45 = vld [vmem:[%s16832_s12 + $0x6c0] sm:$0xff]  ;;  %v992_v50 = vunpack.c.h.s8.bf16 %v576_v44  ;;  %v984_v56 = vunpack.c.l.s8.bf16 %v576_v44 }
  0xbf   : > { %v1120_v51 = vunpack.c.h.s8.bf16 %v640_v45  ;;  %v1112_v57 = vunpack.c.l.s8.bf16 %v640_v45 }
  0xc0   : > { %1229 = vmatpush1.bf16.msra.mxu0 %v704_v32  ;;  %v752_v32 = vunpack.c.h.s8.bf16 %v456_v28 }
  0xc1   : > { %1270 = vmatpush1.bf16.msra.mxu1 %v832_v33  ;;  %1230 = vmatprep.subr.bf16.mxu0 %v697_v34  ;;  %v880_v33 = vunpack.c.h.s8.bf16 %v520_v29  ;;  %v745_v34 = vunpack.c.l.s8.bf16 %v457_v22 }
  0xc2   : > { %1271 = vmatprep.subr.bf16.mxu1 %v825_v35  ;;  %v873_v35 = vunpack.c.l.s8.bf16 %v521_v23 }
  0xc4   : > { %1231 = vmatpush1.bf16.msra.mxu0 %v696_v40  ;;  %v744_v40 = vunpack.c.l.s8.bf16 %v456_v28 }
  0xc5   : > { %1272 = vmatpush1.bf16.msra.mxu1 %v824_v41  ;;  %1232 = vmatprep.subr.bf16.mxu0 %v689_v42  ;;  %v872_v41 = vunpack.c.l.s8.bf16 %v520_v29  ;;  %v993_v42 = vunpack.c.h.s8.bf16 %v577_v38 }
  0xc6   : > { %1273 = vmatprep.subr.bf16.mxu1 %v817_v43  ;;  %v1121_v43 = vunpack.c.h.s8.bf16 %v641_v39 }
  0xc8   : > { %1233 = vmatpush1.bf16.msra.mxu0 %v688_v46  ;;  %v16902_v46 = vcombine.low %v16861_v30, %v16861_v30  ;;  %v569_v30 = vld [vmem:[%s16832_s12 + $0x488] sm:$0xff] }
  0xc9   : > { %1274 = vmatpush1.bf16.msra.mxu1 %v816_v47  ;;  %1234 = vmatprep.subr.bf16.mxu0 %v681_v48  ;;  %v16906_v47 = vcombine.low %v16864_v31, %v16864_v31  ;;  %v16909_v48 = vld [vmem:[%s16825_s1 + $0x10] sm:$0xff] }
  0xca   : > { %1275 = vmatprep.subr.bf16.mxu1 %v809_v49  ;;  %v16912_v49 = vld [vmem:[%s16825_s1 + $0x18] sm:$0xff]  ;;  %v16918_v31 = vcombine.high %v16909_v48, %v16909_v48 }
  0xcc   : > { %1235 = vmatpush1.bf16.msra.mxu0 %v680_v52  ;;  %v985_v52 = vunpack.c.l.s8.bf16 %v577_v38 }
  0xcd   : > { %1276 = vmatpush1.bf16.msra.mxu1 %v808_v53  ;;  %1236 = vmatprep.subr.bf16.mxu0 %v801_v54  ;;  %v1113_v53 = vunpack.c.l.s8.bf16 %v641_v39  ;;  %v633_v54 = vld [vmem:[%s16832_s12 + $0x688] sm:$0xff] }
  0xce   : > { %1277 = vmatprep.subr.bf16.mxu1 %v929_v55  ;;  %v16922_v55 = vcombine.high %v16912_v49, %v16912_v49 }
  0xd0   : > { %1237 = vmatpush2.bf16.msra.mxu0 %v800_v58  ;;  %v977_v58 = vunpack.c.h.s8.bf16 %v569_v30 }
  0xd1   : > { %1278 = vmatpush2.bf16.msra.mxu1 %v928_v59  ;;  %1238 = vmatprep.subr.bf16.mxu0 %v793_v60  ;;  %v1105_v59 = vunpack.c.h.s8.bf16 %v633_v54  ;;  %v568_v60 = vld [vmem:[%s16832_s12 + $0x480] sm:$0xff] }
  0xd2   : > { %1279 = vmatprep.subr.bf16.mxu1 %v921_v61  ;;  %v632_v61 = vld [vmem:[%s16832_s12 + $0x680] sm:$0xff]  ;;  %v976_v62 = vunpack.c.h.s8.bf16 %v568_v60  ;;  %v968_v4 = vunpack.c.l.s8.bf16 %v568_v60 }
  0xd3   : > { %v1104_v63 = vunpack.c.h.s8.bf16 %v632_v61  ;;  %v1096_v5 = vunpack.c.l.s8.bf16 %v632_v61 }
  0xd4   : > { %1239 = vmatpush2.bf16.msra.mxu0 %v792_v0  ;;  %v969_v0 = vunpack.c.l.s8.bf16 %v569_v30 }
  0xd5   : > { %1280 = vmatpush2.bf16.msra.mxu1 %v920_v1  ;;  %1240 = vmatprep.subr.bf16.mxu0 %v785_v2  ;;  %v1097_v1 = vunpack.c.l.s8.bf16 %v633_v54  ;;  %v561_v2 = vld [vmem:[%s16832_s12 + $0x448] sm:$0xff] }
  0xd6   : > { %1281 = vmatprep.subr.bf16.mxu1 %v913_v3  ;;  %v625_v3 = vld [vmem:[%s16832_s12 + $0x648] sm:$0xff] }
  0xd8   : > { %1241 = vmatpush2.bf16.msra.mxu0 %v784_v6  ;;  %v961_v6 = vunpack.c.h.s8.bf16 %v561_v2 }
  0xd9   : > { %1282 = vmatpush2.bf16.msra.mxu1 %v912_v7  ;;  %1242 = vmatprep.subr.bf16.mxu0 %v777_v8  ;;  %v1089_v7 = vunpack.c.h.s8.bf16 %v625_v3  ;;  %v560_v8 = vld [vmem:[%s16832_s12 + $0x440] sm:$0xff] }
  0xda   : > { %1283 = vmatprep.subr.bf16.mxu1 %v905_v9  ;;  %v624_v9 = vld [vmem:[%s16832_s12 + $0x640] sm:$0xff]  ;;  %v960_v10 = vunpack.c.h.s8.bf16 %v560_v8  ;;  %v952_v16 = vunpack.c.l.s8.bf16 %v560_v8 }
  0xdb   : > { %v1088_v11 = vunpack.c.h.s8.bf16 %v624_v9  ;;  %v1080_v17 = vunpack.c.l.s8.bf16 %v624_v9 }
  0xdc   : > { %1243 = vmatpush2.bf16.msra.mxu0 %v776_v12  ;;  %v953_v12 = vunpack.c.l.s8.bf16 %v561_v2 }
  0xdd   : > { %1284 = vmatpush2.bf16.msra.mxu1 %v904_v13  ;;  %1244 = vmatprep.subr.bf16.mxu0 %v769_v14  ;;  %v1081_v13 = vunpack.c.l.s8.bf16 %v625_v3  ;;  %v553_v14 = vld [vmem:[%s16832_s12 + $0x408] sm:$0xff] }
  0xde   : > { %1285 = vmatprep.subr.bf16.mxu1 %v897_v15  ;;  %v617_v15 = vld [vmem:[%s16832_s12 + $0x608] sm:$0xff] }
  0xe0   : > { %1245 = vmatpush2.bf16.msra.mxu0 %v768_v18  ;;  %v945_v18 = vunpack.c.h.s8.bf16 %v553_v14 }
  0xe1   : > { %1286 = vmatpush2.bf16.msra.mxu1 %v896_v19  ;;  %1246 = vmatprep.subr.bf16.mxu0 %v761_v20  ;;  %v1073_v19 = vunpack.c.h.s8.bf16 %v617_v15  ;;  %v552_v20 = vld [vmem:[%s16832_s12 + $0x400] sm:$0xff] }
  0xe2   : > { %1287 = vmatprep.subr.bf16.mxu1 %v889_v21  ;;  %v616_v21 = vld [vmem:[%s16832_s12 + $0x600] sm:$0xff]  ;;  %v944_v22 = vunpack.c.h.s8.bf16 %v552_v20  ;;  %v936_v28 = vunpack.c.l.s8.bf16 %v552_v20 }
  0xe3   : > { %v1072_v23 = vunpack.c.h.s8.bf16 %v616_v21  ;;  %v1064_v29 = vunpack.c.l.s8.bf16 %v616_v21 }
  0xe4   : > { %1247 = vmatpush2.bf16.msra.mxu0 %v760_v24  ;;  %v937_v24 = vunpack.c.l.s8.bf16 %v553_v14 }
  0xe5   : > { %1288 = vmatpush2.bf16.msra.mxu1 %v888_v25  ;;  %1248 = vmatprep.subr.bf16.mxu0 %v753_v26  ;;  %v1065_v25 = vunpack.c.l.s8.bf16 %v617_v15  ;;  %v609_v26 = vld [vmem:[%s16832_s12 + $0x5c8] sm:$0xff] }
  0xe6   : > { %1289 = vmatprep.subr.bf16.mxu1 %v881_v27  ;;  %v673_v27 = vld [vmem:[%s16832_s12 + $0x7c8] sm:$0xff] }
  0xe8   : > { %1249 = vmatpush2.bf16.msra.mxu0 %v752_v32  ;;  %v1057_v32 = vunpack.c.h.s8.bf16 %v609_v26 }
  0xe9   : > { %1290 = vmatpush2.bf16.msra.mxu1 %v880_v33  ;;  %1250 = vmatprep.subr.bf16.mxu0 %v745_v34  ;;  %v1185_v33 = vunpack.c.h.s8.bf16 %v673_v27  ;;  %v608_v34 = vld [vmem:[%s16832_s12 + $0x5c0] sm:$0xff] }
  0xea   : > { %1291 = vmatprep.subr.bf16.mxu1 %v873_v35  ;;  %v672_v35 = vld [vmem:[%s16832_s12 + $0x7c0] sm:$0xff]  ;;  %v1056_v38 = vunpack.c.h.s8.bf16 %v608_v34  ;;  %v1048_v44 = vunpack.c.l.s8.bf16 %v608_v34  ;;  %v443_v34 = vld [vmem:[%s16832_s12 + $0x98] sm:$0xff] }
  0xeb   : > { %v1184_v39 = vunpack.c.h.s8.bf16 %v672_v35  ;;  %v1176_v45 = vunpack.c.l.s8.bf16 %v672_v35  ;;  %v507_v35 = vld [vmem:[%s16832_s12 + $0x298] sm:$0xff] }
  0xec   : > { %1251 = vmatpush2.bf16.msra.mxu0 %v744_v40  ;;  %v1049_v40 = vunpack.c.l.s8.bf16 %v609_v26  ;;  %v16960_v26 = vcombine.low %v16909_v48, %v16909_v48 }
  0xed   : > { %1292 = vmatpush2.bf16.msra.mxu1 %v872_v41  ;;  %1302 = vmatprep.subr.bf16.mxu0 %v993_v42  ;;  %v1177_v41 = vunpack.c.l.s8.bf16 %v673_v27  ;;  %v601_v42 = vld [vmem:[%s16832_s12 + $0x588] sm:$0xff]  ;;  %v16964_v27 = vcombine.low %v16912_v49, %v16912_v49 }
  0xee   : > { %1343 = vmatprep.subr.bf16.mxu1 %v1121_v43  ;;  %v665_v43 = vld [vmem:[%s16832_s12 + $0x788] sm:$0xff] }
  0xef   : > { %1253 = vmatmul.mubr.bf16.vlgmr.msra.gmra.mxu0 %v16902_v46 }
  0xf0   : > { %1294 = vmatmul.mubr.bf16.vlgmr.msra.gmra.mxu1 %v16906_v47  ;;  %1303 = vmatpush1.bf16.msra.mxu0 %v992_v50  ;;  %v1041_v50 = vunpack.c.h.s8.bf16 %v601_v42 }
  0xf1   : > { %1344 = vmatpush1.bf16.msra.mxu1 %v1120_v51  ;;  %1304 = vmatprep.subr.bf16.mxu0 %v985_v52  ;;  %v1169_v51 = vunpack.c.h.s8.bf16 %v665_v43  ;;  %v600_v52 = vld [vmem:[%s16832_s12 + $0x580] sm:$0xff] }
  0xf2   : > { %1345 = vmatprep.subr.bf16.mxu1 %v1113_v53  ;;  %1334 = vmatprep.mubr.bf16.mxu0 %v16918_v31  ;;  %v664_v53 = vld [vmem:[%s16832_s12 + $0x780] sm:$0xff]  ;;  %v1040_v30 = vunpack.c.h.s8.bf16 %v600_v52  ;;  %v1032_v60 = vunpack.c.l.s8.bf16 %v600_v52 }
  0xf3   : > { %1375 = vmatprep.mubr.bf16.mxu1 %v16922_v55  ;;  %v1168_v54 = vunpack.c.h.s8.bf16 %v664_v53  ;;  %v1160_v61 = vunpack.c.l.s8.bf16 %v664_v53 }
  0xf4   : > { %1305 = vmatpush1.bf16.msra.mxu0 %v984_v56  ;;  %v1033_v56 = vunpack.c.l.s8.bf16 %v601_v42 }
  0xf5   : > { %1346 = vmatpush1.bf16.msra.mxu1 %v1112_v57  ;;  %1306 = vmatprep.subr.bf16.mxu0 %v977_v58  ;;  %v1161_v57 = vunpack.c.l.s8.bf16 %v665_v43  ;;  %v593_v58 = vld [vmem:[%s16832_s12 + $0x548] sm:$0xff] }
  0xf6   : > { %1347 = vmatprep.subr.bf16.mxu1 %v1105_v59  ;;  %v657_v59 = vld [vmem:[%s16832_s12 + $0x748] sm:$0xff] }
  0xf8   : > { %1307 = vmatpush1.bf16.msra.mxu0 %v976_v62  ;;  %v1025_v62 = vunpack.c.h.s8.bf16 %v593_v58 }
  0xf9   : > { %1348 = vmatpush1.bf16.msra.mxu1 %v1104_v63  ;;  %1308 = vmatprep.subr.bf16.mxu0 %v969_v0  ;;  %v1153_v63 = vunpack.c.h.s8.bf16 %v657_v59  ;;  %v592_v0 = vld [vmem:[%s16832_s12 + $0x540] sm:$0xff] }
  0xfa   : > { %1349 = vmatprep.subr.bf16.mxu1 %v1097_v1  ;;  %v656_v1 = vld [vmem:[%s16832_s12 + $0x740] sm:$0xff]  ;;  %v1024_v2 = vunpack.c.h.s8.bf16 %v592_v0  ;;  %v1016_v8 = vunpack.c.l.s8.bf16 %v592_v0 }
  0xfb   : > { %v1152_v3 = vunpack.c.h.s8.bf16 %v656_v1  ;;  %v1144_v9 = vunpack.c.l.s8.bf16 %v656_v1 }
  0xfc   : > { %1309 = vmatpush1.bf16.msra.mxu0 %v968_v4  ;;  %v1017_v4 = vunpack.c.l.s8.bf16 %v593_v58 }
  0xfd   : > { %1350 = vmatpush1.bf16.msra.mxu1 %v1096_v5  ;;  %1310 = vmatprep.subr.bf16.mxu0 %v961_v6  ;;  %v1145_v5 = vunpack.c.l.s8.bf16 %v657_v59  ;;  %v585_v6 = vld [vmem:[%s16832_s12 + $0x508] sm:$0xff] }
  0xfe   : > { %1351 = vmatprep.subr.bf16.mxu1 %v1089_v7  ;;  %v649_v7 = vld [vmem:[%s16832_s12 + $0x708] sm:$0xff] }
 0x100   : > { %1311 = vmatpush1.bf16.msra.mxu0 %v960_v10  ;;  %v1009_v10 = vunpack.c.h.s8.bf16 %v585_v6 }
 0x101   : > { %1352 = vmatpush1.bf16.msra.mxu1 %v1088_v11  ;;  %1312 = vmatprep.subr.bf16.mxu0 %v953_v12  ;;  %v1137_v11 = vunpack.c.h.s8.bf16 %v649_v7  ;;  %v584_v12 = vld [vmem:[%s16832_s12 + $0x500] sm:$0xff] }
 0x102   : > { %1353 = vmatprep.subr.bf16.mxu1 %v1081_v13  ;;  %v648_v13 = vld [vmem:[%s16832_s12 + $0x700] sm:$0xff]  ;;  %v1008_v14 = vunpack.c.h.s8.bf16 %v584_v12  ;;  %v1000_v20 = vunpack.c.l.s8.bf16 %v584_v12 }
 0x103   : > { %v1136_v15 = vunpack.c.h.s8.bf16 %v648_v13  ;;  %v1128_v21 = vunpack.c.l.s8.bf16 %v648_v13 }
 0x104   : > { %1313 = vmatpush1.bf16.msra.mxu0 %v952_v16  ;;  %v1001_v16 = vunpack.c.l.s8.bf16 %v585_v6 }
 0x105   : > { %1354 = vmatpush1.bf16.msra.mxu1 %v1080_v17  ;;  %1314 = vmatprep.subr.bf16.mxu0 %v945_v18  ;;  %v1129_v17 = vunpack.c.l.s8.bf16 %v649_v7  ;;  %v451_v18 = vld [vmem:[%s16832_s12 + $0xd8] sm:$0xff] }
 0x106   : > { %1355 = vmatprep.subr.bf16.mxu1 %v1073_v19  ;;  %v515_v19 = vld [vmem:[%s16832_s12 + $0x2d8] sm:$0xff] }
 0x108   : > { %1315 = vmatpush1.bf16.msra.mxu0 %v944_v22  ;;  %v739_v22 = vunpack.c.h.s8.bf16 %v451_v18 }
 0x109   : > { %1356 = vmatpush1.bf16.msra.mxu1 %v1072_v23  ;;  %1316 = vmatprep.subr.bf16.mxu0 %v937_v24  ;;  %v867_v23 = vunpack.c.h.s8.bf16 %v515_v19  ;;  %v450_v24 = vld [vmem:[%s16832_s12 + $0xd0] sm:$0xff] }
 0x10a   : > { %1357 = vmatprep.subr.bf16.mxu1 %v1065_v25  ;;  %v514_v25 = vld [vmem:[%s16832_s12 + $0x2d0] sm:$0xff]  ;;  %v730_v48 = vunpack.c.l.s8.bf16 %v450_v24 }
 0x10b   : > { %v858_v49 = vunpack.c.l.s8.bf16 %v514_v25 }
 0x10c   : > { %1317 = vmatpush1.bf16.msra.mxu0 %v936_v28  ;;  %v738_v28 = vunpack.c.h.s8.bf16 %v450_v24 }
 0x10d   : > { %1358 = vmatpush1.bf16.msra.mxu1 %v1064_v29  ;;  %1318 = vmatprep.subr.bf16.mxu0 %v1057_v32  ;;  %v866_v29 = vunpack.c.h.s8.bf16 %v514_v25  ;;  %v731_v32 = vunpack.c.l.s8.bf16 %v451_v18 }
 0x10e   : > { %1359 = vmatprep.subr.bf16.mxu1 %v1185_v33  ;;  %v859_v33 = vunpack.c.l.s8.bf16 %v515_v19 }
 0x110   : > { %1319 = vmatpush2.bf16.msra.mxu0 %v1056_v38  ;;  %v723_v38 = vunpack.c.h.s8.bf16 %v443_v34 }
 0x111   : > { %1360 = vmatpush2.bf16.msra.mxu1 %v1184_v39  ;;  %1320 = vmatprep.subr.bf16.mxu0 %v1049_v40  ;;  %v851_v39 = vunpack.c.h.s8.bf16 %v507_v35  ;;  %v442_v40 = vld [vmem:[%s16832_s12 + $0x90] sm:$0xff] }
 0x112   : > { %1361 = vmatprep.subr.bf16.mxu1 %v1177_v41  ;;  %v506_v41 = vld [vmem:[%s16832_s12 + $0x290] sm:$0xff]  ;;  %v722_v42 = vunpack.c.h.s8.bf16 %v442_v40  ;;  %v714_v52 = vunpack.c.l.s8.bf16 %v442_v40 }
 0x113   : > { %v850_v43 = vunpack.c.h.s8.bf16 %v506_v41  ;;  %v842_v53 = vunpack.c.l.s8.bf16 %v506_v41 }
 0x114   : > { %1321 = vmatpush2.bf16.msra.mxu0 %v1048_v44  ;;  %v715_v44 = vunpack.c.l.s8.bf16 %v443_v34 }
 0x115   : > { %1362 = vmatpush2.bf16.msra.mxu1 %v1176_v45  ;;  %1322 = vmatprep.subr.bf16.mxu0 %v1041_v50  ;;  %v843_v45 = vunpack.c.l.s8.bf16 %v507_v35  ;;  %v435_v50 = vld [vmem:[%s16832_s12 + $0x58] sm:$0xff] }
 0x116   : > { %1363 = vmatprep.subr.bf16.mxu1 %v1169_v51  ;;  %v499_v51 = vld [vmem:[%s16832_s12 + $0x258] sm:$0xff] }
 0x118   : > { %1323 = vmatpush2.bf16.msra.mxu0 %v1040_v30  ;;  %v707_v30 = vunpack.c.h.s8.bf16 %v435_v50 }
 0x119   : > { %1364 = vmatpush2.bf16.msra.mxu1 %v1168_v54  ;;  %1324 = vmatprep.subr.bf16.mxu0 %v1033_v56  ;;  %v835_v54 = vunpack.c.h.s8.bf16 %v499_v51  ;;  %v434_v56 = vld [vmem:[%s16832_s12 + $0x50] sm:$0xff] }
 0x11a   : > { %1365 = vmatprep.subr.bf16.mxu1 %v1161_v57  ;;  %v498_v57 = vld [vmem:[%s16832_s12 + $0x250] sm:$0xff]  ;;  %v706_v58 = vunpack.c.h.s8.bf16 %v434_v56  ;;  %v698_v0 = vunpack.c.l.s8.bf16 %v434_v56 }
 0x11b   : > { %v834_v59 = vunpack.c.h.s8.bf16 %v498_v57  ;;  %v826_v1 = vunpack.c.l.s8.bf16 %v498_v57 }
 0x11c   : > { %1325 = vmatpush2.bf16.msra.mxu0 %v1032_v60  ;;  %v699_v60 = vunpack.c.l.s8.bf16 %v435_v50 }
 0x11d   : > { %1366 = vmatpush2.bf16.msra.mxu1 %v1160_v61  ;;  %1326 = vmatprep.subr.bf16.mxu0 %v1025_v62  ;;  %v827_v61 = vunpack.c.l.s8.bf16 %v499_v51  ;;  %v427_v62 = vld [vmem:[%s16832_s12 + $0x18] sm:$0xff] }
 0x11e   : > { %1367 = vmatprep.subr.bf16.mxu1 %v1153_v63  ;;  %v491_v63 = vld [vmem:[%s16832_s12 + $0x218] sm:$0xff] }
 0x120   : > { %1327 = vmatpush2.bf16.msra.mxu0 %v1024_v2  ;;  %v691_v2 = vunpack.c.h.s8.bf16 %v427_v62 }
 0x121   : > { %1368 = vmatpush2.bf16.msra.mxu1 %v1152_v3  ;;  %1328 = vmatprep.subr.bf16.mxu0 %v1017_v4  ;;  %v819_v3 = vunpack.c.h.s8.bf16 %v491_v63  ;;  %v426_v4 = vld [vmem:[%s16832_s12 + $0x10] sm:$0xff] }
 0x122   : > { %1369 = vmatprep.subr.bf16.mxu1 %v1145_v5  ;;  %v490_v5 = vld [vmem:[%s16832_s12 + $0x210] sm:$0xff]  ;;  %v690_v6 = vunpack.c.h.s8.bf16 %v426_v4  ;;  %v682_v12 = vunpack.c.l.s8.bf16 %v426_v4 }
 0x123   : > { %v818_v7 = vunpack.c.h.s8.bf16 %v490_v5  ;;  %v810_v13 = vunpack.c.l.s8.bf16 %v490_v5 }
 0x124   : > { %1329 = vmatpush2.bf16.msra.mxu0 %v1016_v8  ;;  %v683_v8 = vunpack.c.l.s8.bf16 %v427_v62 }
 0x125   : > { %1370 = vmatpush2.bf16.msra.mxu1 %v1144_v9  ;;  %1330 = vmatprep.subr.bf16.mxu0 %v1009_v10  ;;  %v811_v9 = vunpack.c.l.s8.bf16 %v491_v63  ;;  %v483_v10 = vld [vmem:[%s16832_s12 + $0x1d8] sm:$0xff] }
 0x126   : > { %1371 = vmatprep.subr.bf16.mxu1 %v1137_v11  ;;  %v547_v11 = vld [vmem:[%s16832_s12 + $0x3d8] sm:$0xff] }
 0x128   : > { %1331 = vmatpush2.bf16.msra.mxu0 %v1008_v14  ;;  %v803_v14 = vunpack.c.h.s8.bf16 %v483_v10 }
 0x129   : > { %1372 = vmatpush2.bf16.msra.mxu1 %v1136_v15  ;;  %1332 = vmatprep.subr.bf16.mxu0 %v1001_v16  ;;  %v931_v15 = vunpack.c.h.s8.bf16 %v547_v11  ;;  %v482_v16 = vld [vmem:[%s16832_s12 + $0x1d0] sm:$0xff] }
 0x12a   : > { %1373 = vmatprep.subr.bf16.mxu1 %v1129_v17  ;;  %v546_v17 = vld [vmem:[%s16832_s12 + $0x3d0] sm:$0xff]  ;;  %v802_v18 = vunpack.c.h.s8.bf16 %v482_v16  ;;  %v794_v24 = vunpack.c.l.s8.bf16 %v482_v16 }
 0x12b   : > { %v930_v19 = vunpack.c.h.s8.bf16 %v546_v17  ;;  %v922_v25 = vunpack.c.l.s8.bf16 %v546_v17 }
 0x12c   : > { %1333 = vmatpush2.bf16.msra.mxu0 %v1000_v20  ;;  %v795_v20 = vunpack.c.l.s8.bf16 %v483_v10 }
 0x12d   : > { %1374 = vmatpush2.bf16.msra.mxu1 %v1128_v21  ;;  %1384 = vmatprep.subr.bf16.mxu0 %v739_v22  ;;  %v923_v21 = vunpack.c.l.s8.bf16 %v547_v11  ;;  %v475_v22 = vld [vmem:[%s16832_s12 + $0x198] sm:$0xff] }
 0x12e   : > { %1425 = vmatprep.subr.bf16.mxu1 %v867_v23  ;;  %v539_v23 = vld [vmem:[%s16832_s12 + $0x398] sm:$0xff] }
 0x12f   : > { %1335 = vmatmul.mubr.bf16.vlgmr.msra.gmra.mxu0 %v16960_v26 }
 0x130   : > { %1376 = vmatmul.mubr.bf16.vlgmr.msra.gmra.mxu1 %v16964_v27  ;;  %1385 = vmatpush1.bf16.msra.mxu0 %v738_v28  ;;  %v787_v28 = vunpack.c.h.s8.bf16 %v475_v22 }
 0x131   : > { %1426 = vmatpush1.bf16.msra.mxu1 %v866_v29  ;;  %1386 = vmatprep.subr.bf16.mxu0 %v731_v32  ;;  %v915_v29 = vunpack.c.h.s8.bf16 %v539_v23  ;;  %v474_v32 = vld [vmem:[%s16832_s12 + $0x190] sm:$0xff] }
 0x132   : > { %1427 = vmatprep.subr.bf16.mxu1 %v859_v33  ;;  %1416 = vmatprep.mubr.bf16.mxu0 %v16868_v36  ;;  %v538_v33 = vld [vmem:[%s16832_s12 + $0x390] sm:$0xff]  ;;  %v786_v34 = vunpack.c.h.s8.bf16 %v474_v32  ;;  %v778_v40 = vunpack.c.l.s8.bf16 %v474_v32 }
 0x133   : > { %1457 = vmatprep.mubr.bf16.mxu1 %v16872_v37  ;;  %v914_v35 = vunpack.c.h.s8.bf16 %v538_v33  ;;  %v906_v41 = vunpack.c.l.s8.bf16 %v538_v33 }
 0x134   : > { %1387 = vmatpush1.bf16.msra.mxu0 %v730_v48  ;;  %v779_v48 = vunpack.c.l.s8.bf16 %v475_v22 }
 0x135   : > { %1428 = vmatpush1.bf16.msra.mxu1 %v858_v49  ;;  %1388 = vmatprep.subr.bf16.mxu0 %v723_v38  ;;  %v907_v49 = vunpack.c.l.s8.bf16 %v539_v23  ;;  %v467_v38 = vld [vmem:[%s16832_s12 + $0x158] sm:$0xff] }
 0x136   : > { %1429 = vmatprep.subr.bf16.mxu1 %v851_v39  ;;  %v531_v39 = vld [vmem:[%s16832_s12 + $0x358] sm:$0xff] }
 0x138   : > { %1389 = vmatpush1.bf16.msra.mxu0 %v722_v42  ;;  %v771_v42 = vunpack.c.h.s8.bf16 %v467_v38 }
 0x139   : > { %1430 = vmatpush1.bf16.msra.mxu1 %v850_v43  ;;  %1390 = vmatprep.subr.bf16.mxu0 %v715_v44  ;;  %v899_v43 = vunpack.c.h.s8.bf16 %v531_v39  ;;  %v466_v44 = vld [vmem:[%s16832_s12 + $0x150] sm:$0xff] }
 0x13a   : > { %1431 = vmatprep.subr.bf16.mxu1 %v843_v45  ;;  %v530_v45 = vld [vmem:[%s16832_s12 + $0x350] sm:$0xff]  ;;  %v770_v50 = vunpack.c.h.s8.bf16 %v466_v44  ;;  %v762_v56 = vunpack.c.l.s8.bf16 %v466_v44 }
 0x13b   : > { %v898_v51 = vunpack.c.h.s8.bf16 %v530_v45  ;;  %v890_v57 = vunpack.c.l.s8.bf16 %v530_v45 }
 0x13c   : > { %1391 = vmatpush1.bf16.msra.mxu0 %v714_v52  ;;  %v763_v52 = vunpack.c.l.s8.bf16 %v467_v38 }
 0x13d   : > { %1432 = vmatpush1.bf16.msra.mxu1 %v842_v53  ;;  %1392 = vmatprep.subr.bf16.mxu0 %v707_v30  ;;  %v891_v53 = vunpack.c.l.s8.bf16 %v531_v39  ;;  %v459_v30 = vld [vmem:[%s16832_s12 + $0x118] sm:$0xff] }
 0x13e   : > { %1433 = vmatprep.subr.bf16.mxu1 %v835_v54  ;;  %v523_v54 = vld [vmem:[%s16832_s12 + $0x318] sm:$0xff] }
 0x140   : > { %1393 = vmatpush1.bf16.msra.mxu0 %v706_v58  ;;  %v755_v58 = vunpack.c.h.s8.bf16 %v459_v30 }
 0x141   : > { %1434 = vmatpush1.bf16.msra.mxu1 %v834_v59  ;;  %1394 = vmatprep.subr.bf16.mxu0 %v699_v60  ;;  %v883_v59 = vunpack.c.h.s8.bf16 %v523_v54  ;;  %v458_v60 = vld [vmem:[%s16832_s12 + $0x110] sm:$0xff] }
 0x142   : > { %1435 = vmatprep.subr.bf16.mxu1 %v827_v61  ;;  %v522_v61 = vld [vmem:[%s16832_s12 + $0x310] sm:$0xff]  ;;  %v754_v62 = vunpack.c.h.s8.bf16 %v458_v60  ;;  %v746_v4 = vunpack.c.l.s8.bf16 %v458_v60 }
 0x143   : > { %v882_v63 = vunpack.c.h.s8.bf16 %v522_v61  ;;  %v874_v5 = vunpack.c.l.s8.bf16 %v522_v61 }
 0x144   : > { %1395 = vmatpush1.bf16.msra.mxu0 %v698_v0  ;;  %v747_v0 = vunpack.c.l.s8.bf16 %v459_v30 }
 0x145   : > { %1436 = vmatpush1.bf16.msra.mxu1 %v826_v1  ;;  %1396 = vmatprep.subr.bf16.mxu0 %v691_v2  ;;  %v875_v1 = vunpack.c.l.s8.bf16 %v523_v54  ;;  %v579_v2 = vld [vmem:[%s16832_s12 + $0x4d8] sm:$0xff] }
 0x146   : > { %1437 = vmatprep.subr.bf16.mxu1 %v819_v3  ;;  %v643_v3 = vld [vmem:[%s16832_s12 + $0x6d8] sm:$0xff] }
 0x148   : > { %1397 = vmatpush1.bf16.msra.mxu0 %v690_v6  ;;  %v995_v6 = vunpack.c.h.s8.bf16 %v579_v2 }
 0x149   : > { %1438 = vmatpush1.bf16.msra.mxu1 %v818_v7  ;;  %1398 = vmatprep.subr.bf16.mxu0 %v683_v8  ;;  %v1123_v7 = vunpack.c.h.s8.bf16 %v643_v3  ;;  %v578_v8 = vld [vmem:[%s16832_s12 + $0x4d0] sm:$0xff] }
 0x14a   : > { %1439 = vmatprep.subr.bf16.mxu1 %v811_v9  ;;  %v642_v9 = vld [vmem:[%s16832_s12 + $0x6d0] sm:$0xff]  ;;  %v994_v10 = vunpack.c.h.s8.bf16 %v578_v8  ;;  %v986_v16 = vunpack.c.l.s8.bf16 %v578_v8 }
 0x14b   : > { %v1122_v11 = vunpack.c.h.s8.bf16 %v642_v9  ;;  %v1114_v17 = vunpack.c.l.s8.bf16 %v642_v9 }
 0x14c   : > { %1399 = vmatpush1.bf16.msra.mxu0 %v682_v12  ;;  %v987_v12 = vunpack.c.l.s8.bf16 %v579_v2 }
 0x14d   : > { %1440 = vmatpush1.bf16.msra.mxu1 %v810_v13  ;;  %1400 = vmatprep.subr.bf16.mxu0 %v803_v14  ;;  %v1115_v13 = vunpack.c.l.s8.bf16 %v643_v3  ;;  %v571_v14 = vld [vmem:[%s16832_s12 + $0x498] sm:$0xff] }
 0x14e   : > { %1441 = vmatprep.subr.bf16.mxu1 %v931_v15  ;;  %v635_v15 = vld [vmem:[%s16832_s12 + $0x698] sm:$0xff] }
 0x150   : > { %1401 = vmatpush2.bf16.msra.mxu0 %v802_v18  ;;  %v979_v18 = vunpack.c.h.s8.bf16 %v571_v14 }
 0x151   : > { %1442 = vmatpush2.bf16.msra.mxu1 %v930_v19  ;;  %1402 = vmatprep.subr.bf16.mxu0 %v795_v20  ;;  %v1107_v19 = vunpack.c.h.s8.bf16 %v635_v15  ;;  %v570_v20 = vld [vmem:[%s16832_s12 + $0x490] sm:$0xff] }
 0x152   : > { %1443 = vmatprep.subr.bf16.mxu1 %v923_v21  ;;  %v634_v21 = vld [vmem:[%s16832_s12 + $0x690] sm:$0xff]  ;;  %v978_v22 = vunpack.c.h.s8.bf16 %v570_v20  ;;  %v970_v32 = vunpack.c.l.s8.bf16 %v570_v20 }
 0x153   : > { %v1106_v23 = vunpack.c.h.s8.bf16 %v634_v21  ;;  %v1098_v33 = vunpack.c.l.s8.bf16 %v634_v21 }
 0x154   : > { %1403 = vmatpush2.bf16.msra.mxu0 %v794_v24  ;;  %v971_v24 = vunpack.c.l.s8.bf16 %v571_v14 }
 0x155   : > { %1444 = vmatpush2.bf16.msra.mxu1 %v922_v25  ;;  %1404 = vmatprep.subr.bf16.mxu0 %v787_v28  ;;  %v1099_v25 = vunpack.c.l.s8.bf16 %v635_v15  ;;  %v563_v28 = vld [vmem:[%s16832_s12 + $0x458] sm:$0xff] }
 0x156   : > { %1445 = vmatprep.subr.bf16.mxu1 %v915_v29  ;;  %v627_v29 = vld [vmem:[%s16832_s12 + $0x658] sm:$0xff] }
 0x158   : > { %1405 = vmatpush2.bf16.msra.mxu0 %v786_v34  ;;  %v963_v34 = vunpack.c.h.s8.bf16 %v563_v28 }
 0x159   : > { %1446 = vmatpush2.bf16.msra.mxu1 %v914_v35  ;;  %1406 = vmatprep.subr.bf16.mxu0 %v779_v48  ;;  %v1091_v35 = vunpack.c.h.s8.bf16 %v627_v29  ;;  %v562_v48 = vld [vmem:[%s16832_s12 + $0x450] sm:$0xff] }
 0x15a   : > { %1447 = vmatprep.subr.bf16.mxu1 %v907_v49  ;;  %v626_v49 = vld [vmem:[%s16832_s12 + $0x650] sm:$0xff]  ;;  %v962_v38 = vunpack.c.h.s8.bf16 %v562_v48  ;;  %v954_v44 = vunpack.c.l.s8.bf16 %v562_v48 }
 0x15b   : > { %v1090_v39 = vunpack.c.h.s8.bf16 %v626_v49  ;;  %v1082_v45 = vunpack.c.l.s8.bf16 %v626_v49 }
 0x15c   : > { %1407 = vmatpush2.bf16.msra.mxu0 %v778_v40  ;;  %v955_v40 = vunpack.c.l.s8.bf16 %v563_v28 }
 0x15d   : > { %1448 = vmatpush2.bf16.msra.mxu1 %v906_v41  ;;  %1408 = vmatprep.subr.bf16.mxu0 %v771_v42  ;;  %v1083_v41 = vunpack.c.l.s8.bf16 %v627_v29  ;;  %v555_v42 = vld [vmem:[%s16832_s12 + $0x418] sm:$0xff] }
 0x15e   : > { %1449 = vmatprep.subr.bf16.mxu1 %v899_v43  ;;  %v619_v43 = vld [vmem:[%s16832_s12 + $0x618] sm:$0xff] }
 0x160   : > { %1409 = vmatpush2.bf16.msra.mxu0 %v770_v50  ;;  %v947_v50 = vunpack.c.h.s8.bf16 %v555_v42 }
 0x161   : > { %1450 = vmatpush2.bf16.msra.mxu1 %v898_v51  ;;  %1410 = vmatprep.subr.bf16.mxu0 %v763_v52  ;;  %v1075_v51 = vunpack.c.h.s8.bf16 %v619_v43  ;;  %v554_v52 = vld [vmem:[%s16832_s12 + $0x410] sm:$0xff] }
 0x162   : > { %1451 = vmatprep.subr.bf16.mxu1 %v891_v53  ;;  %v618_v53 = vld [vmem:[%s16832_s12 + $0x610] sm:$0xff]  ;;  %v946_v30 = vunpack.c.h.s8.bf16 %v554_v52  ;;  %v938_v60 = vunpack.c.l.s8.bf16 %v554_v52 }
 0x163   : > { %v1074_v54 = vunpack.c.h.s8.bf16 %v618_v53  ;;  %v1066_v61 = vunpack.c.l.s8.bf16 %v618_v53 }
 0x164   : > { %1411 = vmatpush2.bf16.msra.mxu0 %v762_v56  ;;  %v939_v56 = vunpack.c.l.s8.bf16 %v555_v42 }
 0x165   : > { %1452 = vmatpush2.bf16.msra.mxu1 %v890_v57  ;;  %1412 = vmatprep.subr.bf16.mxu0 %v755_v58  ;;  %v1067_v57 = vunpack.c.l.s8.bf16 %v619_v43  ;;  %v611_v58 = vld [vmem:[%s16832_s12 + $0x5d8] sm:$0xff] }
 0x166   : > { %1453 = vmatprep.subr.bf16.mxu1 %v883_v59  ;;  %v675_v59 = vld [vmem:[%s16832_s12 + $0x7d8] sm:$0xff] }
 0x168   : > { %1413 = vmatpush2.bf16.msra.mxu0 %v754_v62  ;;  %v1059_v62 = vunpack.c.h.s8.bf16 %v611_v58 }
 0x169   : > { %1454 = vmatpush2.bf16.msra.mxu1 %v882_v63  ;;  %1414 = vmatprep.subr.bf16.mxu0 %v747_v0  ;;  %v1187_v63 = vunpack.c.h.s8.bf16 %v675_v59  ;;  %v610_v0 = vld [vmem:[%s16832_s12 + $0x5d0] sm:$0xff] }
 0x16a   : > { %1455 = vmatprep.subr.bf16.mxu1 %v875_v1  ;;  %v674_v1 = vld [vmem:[%s16832_s12 + $0x7d0] sm:$0xff]  ;;  %v1058_v2 = vunpack.c.h.s8.bf16 %v610_v0  ;;  %v1050_v8 = vunpack.c.l.s8.bf16 %v610_v0 }
 0x16b   : > { %v1186_v3 = vunpack.c.h.s8.bf16 %v674_v1  ;;  %v1178_v9 = vunpack.c.l.s8.bf16 %v674_v1 }
 0x16c   : > { %1415 = vmatpush2.bf16.msra.mxu0 %v746_v4  ;;  %v1051_v4 = vunpack.c.l.s8.bf16 %v611_v58 }
 0x16d   : > { %1456 = vmatpush2.bf16.msra.mxu1 %v874_v5  ;;  %1466 = vmatprep.subr.bf16.mxu0 %v995_v6  ;;  %v1179_v5 = vunpack.c.l.s8.bf16 %v675_v59  ;;  %v603_v6 = vld [vmem:[%s16832_s12 + $0x598] sm:$0xff] }
 0x16e   : > { %1507 = vmatprep.subr.bf16.mxu1 %v1123_v7  ;;  %v667_v7 = vld [vmem:[%s16832_s12 + $0x798] sm:$0xff] }
 0x16f   : > { %1417 = vmatmul.mubr.bf16.vlgmr.msra.gmra.mxu0 %v16902_v46 }
 0x170   : > { %1458 = vmatmul.mubr.bf16.vlgmr.msra.gmra.mxu1 %v16906_v47  ;;  %1467 = vmatpush1.bf16.msra.mxu0 %v994_v10  ;;  %v1043_v10 = vunpack.c.h.s8.bf16 %v603_v6 }
 0x171   : > { %1508 = vmatpush1.bf16.msra.mxu1 %v1122_v11  ;;  %1468 = vmatprep.subr.bf16.mxu0 %v987_v12  ;;  %v1171_v11 = vunpack.c.h.s8.bf16 %v667_v7  ;;  %v602_v12 = vld [vmem:[%s16832_s12 + $0x590] sm:$0xff] }
 0x172   : > { %1509 = vmatprep.subr.bf16.mxu1 %v1115_v13  ;;  %1498 = vmatprep.mubr.bf16.mxu0 %v16918_v31  ;;  %v666_v13 = vld [vmem:[%s16832_s12 + $0x790] sm:$0xff]  ;;  %v1042_v14 = vunpack.c.h.s8.bf16 %v602_v12  ;;  %v1034_v20 = vunpack.c.l.s8.bf16 %v602_v12 }
 0x173   : > { %1539 = vmatprep.mubr.bf16.mxu1 %v16922_v55  ;;  %v1170_v15 = vunpack.c.h.s8.bf16 %v666_v13  ;;  %v1162_v21 = vunpack.c.l.s8.bf16 %v666_v13 }
 0x174   : > { %1469 = vmatpush1.bf16.msra.mxu0 %v986_v16  ;;  %v1035_v16 = vunpack.c.l.s8.bf16 %v603_v6 }
 0x175   : > { %1510 = vmatpush1.bf16.msra.mxu1 %v1114_v17  ;;  %1470 = vmatprep.subr.bf16.mxu0 %v979_v18  ;;  %v1163_v17 = vunpack.c.l.s8.bf16 %v667_v7  ;;  %v595_v18 = vld [vmem:[%s16832_s12 + $0x558] sm:$0xff] }
 0x176   : > { %1511 = vmatprep.subr.bf16.mxu1 %v1107_v19  ;;  %v659_v19 = vld [vmem:[%s16832_s12 + $0x758] sm:$0xff] }
 0x178   : > { %1471 = vmatpush1.bf16.msra.mxu0 %v978_v22  ;;  %v1027_v22 = vunpack.c.h.s8.bf16 %v595_v18 }
 0x179   : > { %1512 = vmatpush1.bf16.msra.mxu1 %v1106_v23  ;;  %1472 = vmatprep.subr.bf16.mxu0 %v971_v24  ;;  %v1155_v23 = vunpack.c.h.s8.bf16 %v659_v19  ;;  %v594_v24 = vld [vmem:[%s16832_s12 + $0x550] sm:$0xff] }
 0x17a   : > { %1513 = vmatprep.subr.bf16.mxu1 %v1099_v25  ;;  %v658_v25 = vld [vmem:[%s16832_s12 + $0x750] sm:$0xff]  ;;  %v1026_v28 = vunpack.c.h.s8.bf16 %v594_v24  ;;  %v1018_v48 = vunpack.c.l.s8.bf16 %v594_v24 }
 0x17b   : > { %v1154_v29 = vunpack.c.h.s8.bf16 %v658_v25  ;;  %v1146_v49 = vunpack.c.l.s8.bf16 %v658_v25 }
 0x17c   : > { %1473 = vmatpush1.bf16.msra.mxu0 %v970_v32  ;;  %v1019_v32 = vunpack.c.l.s8.bf16 %v595_v18 }
 0x17d   : > { %1514 = vmatpush1.bf16.msra.mxu1 %v1098_v33  ;;  %1474 = vmatprep.subr.bf16.mxu0 %v963_v34  ;;  %v1147_v33 = vunpack.c.l.s8.bf16 %v659_v19  ;;  %v587_v34 = vld [vmem:[%s16832_s12 + $0x518] sm:$0xff] }
 0x17e   : > { %1515 = vmatprep.subr.bf16.mxu1 %v1091_v35  ;;  %v651_v35 = vld [vmem:[%s16832_s12 + $0x718] sm:$0xff] }
 0x180   : > { %1475 = vmatpush1.bf16.msra.mxu0 %v962_v38  ;;  %v1011_v38 = vunpack.c.h.s8.bf16 %v587_v34 }
 0x181   : > { %1516 = vmatpush1.bf16.msra.mxu1 %v1090_v39  ;;  %1476 = vmatprep.subr.bf16.mxu0 %v955_v40  ;;  %v1139_v39 = vunpack.c.h.s8.bf16 %v651_v35  ;;  %v586_v40 = vld [vmem:[%s16832_s12 + $0x510] sm:$0xff] }
 0x182   : > { %1517 = vmatprep.subr.bf16.mxu1 %v1083_v41  ;;  %v650_v41 = vld [vmem:[%s16832_s12 + $0x710] sm:$0xff]  ;;  %v1010_v42 = vunpack.c.h.s8.bf16 %v586_v40  ;;  %v1002_v52 = vunpack.c.l.s8.bf16 %v586_v40 }
 0x183   : > { %v1138_v43 = vunpack.c.h.s8.bf16 %v650_v41  ;;  %v1130_v53 = vunpack.c.l.s8.bf16 %v650_v41 }
 0x184   : > { %1477 = vmatpush1.bf16.msra.mxu0 %v954_v44  ;;  %v1003_v44 = vunpack.c.l.s8.bf16 %v587_v34 }
 0x185   : > { %1518 = vmatpush1.bf16.msra.mxu1 %v1082_v45  ;;  %1478 = vmatprep.subr.bf16.mxu0 %v947_v50  ;;  %v1131_v45 = vunpack.c.l.s8.bf16 %v651_v35  ;;  %v453_v50 = vld [vmem:[%s16832_s12 + $0xe8] sm:$0xff] }
 0x186   : > { %1519 = vmatprep.subr.bf16.mxu1 %v1075_v51  ;;  %v517_v51 = vld [vmem:[%s16832_s12 + $0x2e8] sm:$0xff] }
 0x188   : > { %1479 = vmatpush1.bf16.msra.mxu0 %v946_v30  ;;  %v741_v30 = vunpack.c.h.s8.bf16 %v453_v50 }
 0x189   : > { %1520 = vmatpush1.bf16.msra.mxu1 %v1074_v54  ;;  %1480 = vmatprep.subr.bf16.mxu0 %v939_v56  ;;  %v869_v54 = vunpack.c.h.s8.bf16 %v517_v51  ;;  %v452_v56 = vld [vmem:[%s16832_s12 + $0xe0] sm:$0xff] }
 0x18a   : > { %1521 = vmatprep.subr.bf16.mxu1 %v1067_v57  ;;  %v516_v57 = vld [vmem:[%s16832_s12 + $0x2e0] sm:$0xff]  ;;  %v740_v58 = vunpack.c.h.s8.bf16 %v452_v56 }
 0x18b   : > { %v868_v59 = vunpack.c.h.s8.bf16 %v516_v57 }
 0x18c   : > { %1481 = vmatpush1.bf16.msra.mxu0 %v938_v60  ;;  %v733_v60 = vunpack.c.l.s8.bf16 %v453_v50 }
 0x18d   : > { %1522 = vmatpush1.bf16.msra.mxu1 %v1066_v61  ;;  %1482 = vmatprep.subr.bf16.mxu0 %v1059_v62  ;;  %v861_v61 = vunpack.c.l.s8.bf16 %v517_v51  ;;  %v445_v62 = vld [vmem:[%s16832_s12 + $0xa8] sm:$0xff] }
 0x18e   : > { %1523 = vmatprep.subr.bf16.mxu1 %v1187_v63  ;;  %v509_v63 = vld [vmem:[%s16832_s12 + $0x2a8] sm:$0xff]  ;;  %v725_v7 = vunpack.c.h.s8.bf16 %v445_v62  ;;  %v717_v18 = vunpack.c.l.s8.bf16 %v445_v62 }
 0x18f   : > { %v845_v19 = vunpack.c.l.s8.bf16 %v509_v63 }
 0x190   : > { %1483 = vmatpush2.bf16.msra.mxu0 %v1058_v2 }
 0x191   : > { %1524 = vmatpush2.bf16.msra.mxu1 %v1186_v3  ;;  %1484 = vmatprep.subr.bf16.mxu0 %v1051_v4  ;;  %v732_v3 = vunpack.c.l.s8.bf16 %v452_v56  ;;  %v860_v4 = vunpack.c.l.s8.bf16 %v516_v57 }
 0x192   : > { %1525 = vmatprep.subr.bf16.mxu1 %v1179_v5 }
 0x194   : > { %1485 = vmatpush2.bf16.msra.mxu0 %v1050_v8  ;;  %v853_v8 = vunpack.c.h.s8.bf16 %v509_v63 }
 0x195   : > { %1526 = vmatpush2.bf16.msra.mxu1 %v1178_v9  ;;  %1486 = vmatprep.subr.bf16.mxu0 %v1043_v10  ;;  %v444_v9 = vld [vmem:[%s16832_s12 + $0xa0] sm:$0xff] }
 0x196   : > { %1527 = vmatprep.subr.bf16.mxu1 %v1171_v11  ;;  %v508_v10 = vld [vmem:[%s16832_s12 + $0x2a0] sm:$0xff] }
 0x198   : > { %1487 = vmatpush2.bf16.msra.mxu0 %v1042_v14  ;;  %v724_v14 = vunpack.c.h.s8.bf16 %v444_v9 }
 0x199   : > { %1528 = vmatpush2.bf16.msra.mxu1 %v1170_v15  ;;  %1488 = vmatprep.subr.bf16.mxu0 %v1035_v16  ;;  %v852_v15 = vunpack.c.h.s8.bf16 %v508_v10 }
 0x19a   : > { %1529 = vmatprep.subr.bf16.mxu1 %v1163_v17 }
 0x19c   : > { %1489 = vmatpush2.bf16.msra.mxu0 %v1034_v20  ;;  %v437_v20 = vld [vmem:[%s16832_s12 + $0x68] sm:$0xff] }
 0x19d   : > { %1530 = vmatpush2.bf16.msra.mxu1 %v1162_v21  ;;  %1490 = vmatprep.subr.bf16.mxu0 %v1027_v22  ;;  %v501_v21 = vld [vmem:[%s16832_s12 + $0x268] sm:$0xff]  ;;  %v716_v22 = vunpack.c.l.s8.bf16 %v444_v9  ;;  %v709_v24 = vunpack.c.h.s8.bf16 %v437_v20  ;;  %v701_v34 = vunpack.c.l.s8.bf16 %v437_v20  ;;  %v468_v20 = vld [vmem:[%s16832_s12 + $0x160] sm:$0xff] }
 0x19e   : > { %1531 = vmatprep.subr.bf16.mxu1 %v1155_v23  ;;  %v844_v23 = vunpack.c.l.s8.bf16 %v508_v10  ;;  %v837_v25 = vunpack.c.h.s8.bf16 %v501_v21  ;;  %v829_v35 = vunpack.c.l.s8.bf16 %v501_v21  ;;  %v532_v21 = vld [vmem:[%s16832_s12 + $0x360] sm:$0xff] }
 0x1a0   : > { %1491 = vmatpush2.bf16.msra.mxu0 %v1026_v28  ;;  %v436_v28 = vld [vmem:[%s16832_s12 + $0x60] sm:$0xff] }
 0x1a1   : > { %1532 = vmatpush2.bf16.msra.mxu1 %v1154_v29  ;;  %1492 = vmatprep.subr.bf16.mxu0 %v1019_v32  ;;  %v500_v29 = vld [vmem:[%s16832_s12 + $0x260] sm:$0xff]  ;;  %v708_v32 = vunpack.c.h.s8.bf16 %v436_v28 }
 0x1a2   : > { %1533 = vmatprep.subr.bf16.mxu1 %v1147_v33  ;;  %v836_v33 = vunpack.c.h.s8.bf16 %v500_v29 }
 0x1a4   : > { %1493 = vmatpush2.bf16.msra.mxu0 %v1018_v48  ;;  %v429_v48 = vld [vmem:[%s16832_s12 + $0x28] sm:$0xff] }
 0x1a5   : > { %1534 = vmatpush2.bf16.msra.mxu1 %v1146_v49  ;;  %1494 = vmatprep.subr.bf16.mxu0 %v1011_v38  ;;  %v493_v49 = vld [vmem:[%s16832_s12 + $0x228] sm:$0xff]  ;;  %v700_v38 = vunpack.c.l.s8.bf16 %v436_v28  ;;  %v693_v40 = vunpack.c.h.s8.bf16 %v429_v48  ;;  %v685_v50 = vunpack.c.l.s8.bf16 %v429_v48  ;;  %v460_v48 = vld [vmem:[%s16832_s12 + $0x120] sm:$0xff] }
 0x1a6   : > { %1535 = vmatprep.subr.bf16.mxu1 %v1139_v39  ;;  %v828_v39 = vunpack.c.l.s8.bf16 %v500_v29  ;;  %v821_v41 = vunpack.c.h.s8.bf16 %v493_v49  ;;  %v813_v51 = vunpack.c.l.s8.bf16 %v493_v49  ;;  %v461_v28 = vld [vmem:[%s16832_s12 + $0x128] sm:$0xff]  ;;  %v524_v49 = vld [vmem:[%s16832_s12 + $0x320] sm:$0xff] }
 0x1a7   : > { %v525_v29 = vld [vmem:[%s16832_s12 + $0x328] sm:$0xff] }
 0x1a8   : > { %1495 = vmatpush2.bf16.msra.mxu0 %v1010_v42  ;;  %v428_v42 = vld [vmem:[%s16832_s12 + $0x20] sm:$0xff] }
 0x1a9   : > { %1536 = vmatpush2.bf16.msra.mxu1 %v1138_v43  ;;  %1496 = vmatprep.subr.bf16.mxu0 %v1003_v44  ;;  %v492_v43 = vld [vmem:[%s16832_s12 + $0x220] sm:$0xff]  ;;  %v692_v44 = vunpack.c.h.s8.bf16 %v428_v42 }
 0x1aa   : > { %1537 = vmatprep.subr.bf16.mxu1 %v1131_v45  ;;  %v820_v45 = vunpack.c.h.s8.bf16 %v492_v43 }
 0x1ac   : > { %1497 = vmatpush2.bf16.msra.mxu0 %v1002_v52  ;;  %v485_v52 = vld [vmem:[%s16832_s12 + $0x1e8] sm:$0xff] }
 0x1ad   : > { %1538 = vmatpush2.bf16.msra.mxu1 %v1130_v53  ;;  %1548 = vmatprep.subr.bf16.mxu0 %v741_v30  ;;  %v549_v53 = vld [vmem:[%s16832_s12 + $0x3e8] sm:$0xff]  ;;  %v684_v30 = vunpack.c.l.s8.bf16 %v428_v42  ;;  %v805_v56 = vunpack.c.h.s8.bf16 %v485_v52  ;;  %v797_v62 = vunpack.c.l.s8.bf16 %v485_v52  ;;  %v580_v52 = vld [vmem:[%s16832_s12 + $0x4e0] sm:$0xff] }
 0x1ae   : > { %1589 = vmatprep.subr.bf16.mxu1 %v869_v54  ;;  %v812_v54 = vunpack.c.l.s8.bf16 %v492_v43  ;;  %v933_v57 = vunpack.c.h.s8.bf16 %v549_v53  ;;  %v925_v63 = vunpack.c.l.s8.bf16 %v549_v53  ;;  %v581_v42 = vld [vmem:[%s16832_s12 + $0x4e8] sm:$0xff]  ;;  %v644_v53 = vld [vmem:[%s16832_s12 + $0x6e0] sm:$0xff] }
 0x1af   : > { %v1254_v0 = vpop.f32.mrf.mxu0  ;;  %1499 = vmatmul.mubr.bf16.vlgmr.msra.gmra.mxu0 %v16960_v26  ;;  %v645_v43 = vld [vmem:[%s16832_s12 + $0x6e8] sm:$0xff] }
 0x1b0   : > { %v1295_v1 = vpop.f32.mrf.mxu1  ;;  %1540 = vmatmul.mubr.bf16.vlgmr.msra.gmra.mxu1 %v16964_v27  ;;  %1549 = vmatpush1.bf16.msra.mxu0 %v740_v58  ;;  %v484_v58 = vld [vmem:[%s16832_s12 + $0x1e0] sm:$0xff] }
 0x1b1   : > { %v17042_v2 = vadd.f32 %v1295_v1, %v1254_v0  ;;  %1590 = vmatpush1.bf16.msra.mxu1 %v868_v59  ;;  %v1256_v5 = vpop.f32.mrf.mxu0  ;;  %1550 = vmatprep.subr.bf16.mxu0 %v733_v60  ;;  %v548_v59 = vld [vmem:[%s16832_s12 + $0x3e0] sm:$0xff]  ;;  %v804_v60 = vunpack.c.h.s8.bf16 %v484_v58  ;;  %v477_v0 = vld [vmem:[%s16832_s12 + $0x1a8] sm:$0xff] }
 0x1b2   : > { %v1297_v6 = vpop.f32.mrf.mxu1  ;;  %1591 = vmatprep.subr.bf16.mxu1 %v861_v61  ;;  %1580 = vmatprep.mubr.bf16.mxu0 %v16868_v36  ;;  %v932_v61 = vunpack.c.h.s8.bf16 %v548_v59  ;;  %v541_v1 = vld [vmem:[%s16832_s12 + $0x3a8] sm:$0xff] }
 0x1b3   : > { %v17046_v11 = vadd.f32 %v1297_v6, %v1256_v5  ;;  %1621 = vmatprep.mubr.bf16.mxu1 %v16872_v37  ;;  %v1258_v12 = vpop.f32.mrf.mxu0  ;;  %v789_v5 = vunpack.c.h.s8.bf16 %v477_v0  ;;  %v917_v6 = vunpack.c.h.s8.bf16 %v541_v1 }
 0x1b4   : > { %v1299_v13 = vpop.f32.mrf.mxu1  ;;  %1551 = vmatpush1.bf16.msra.mxu0 %v732_v3  ;;  %v796_v3 = vunpack.c.l.s8.bf16 %v484_v58  ;;  %v781_v12 = vunpack.c.l.s8.bf16 %v477_v0  ;;  %v573_v58 = vld [vmem:[%s16832_s12 + $0x4a8] sm:$0xff]  ;;  %v1116_v0 = vunpack.c.l.s8.bf16 %v644_v53 }
 0x1b5   : > { %1592 = vmatpush1.bf16.msra.mxu1 %v860_v4  ;;  %v1259_v16 = vpop.f32.mrf.mxu0  ;;  %1552 = vmatprep.subr.bf16.mxu0 %v725_v7  ;;  %v924_v4 = vunpack.c.l.s8.bf16 %v548_v59  ;;  %v476_v7 = vld [vmem:[%s16832_s12 + $0x1a0] sm:$0xff]  ;;  %v909_v13 = vunpack.c.l.s8.bf16 %v541_v1  ;;  %v637_v59 = vld [vmem:[%s16832_s12 + $0x6a8] sm:$0xff] }
 0x1b6   : > { %v1300_v17 = vpop.f32.mrf.mxu1  ;;  %1593 = vmatprep.subr.bf16.mxu1 %v853_v8  ;;  %v540_v8 = vld [vmem:[%s16832_s12 + $0x3a0] sm:$0xff]  ;;  %v788_v9 = vunpack.c.h.s8.bf16 %v476_v7  ;;  %v780_v16 = vunpack.c.l.s8.bf16 %v476_v7 }
 0x1b7   : > { %v916_v10 = vunpack.c.h.s8.bf16 %v540_v8  ;;  %v908_v17 = vunpack.c.l.s8.bf16 %v540_v8  ;;  %v636_v7 = vld [vmem:[%s16832_s12 + $0x6a0] sm:$0xff] }
 0x1b8   : > { %1553 = vmatpush1.bf16.msra.mxu0 %v724_v14  ;;  %v469_v14 = vld [vmem:[%s16832_s12 + $0x168] sm:$0xff] }
 0x1b9   : > { %1594 = vmatpush1.bf16.msra.mxu1 %v852_v15  ;;  %1554 = vmatprep.subr.bf16.mxu0 %v717_v18  ;;  %v533_v15 = vld [vmem:[%s16832_s12 + $0x368] sm:$0xff]  ;;  %v773_v18 = vunpack.c.h.s8.bf16 %v469_v14 }
 0x1ba   : > { %1595 = vmatprep.subr.bf16.mxu1 %v845_v19  ;;  %v901_v19 = vunpack.c.h.s8.bf16 %v533_v15 }
 0x1bc   : > { %1555 = vmatpush1.bf16.msra.mxu0 %v716_v22  ;;  %v772_v22 = vunpack.c.h.s8.bf16 %v468_v20 }
 0x1bd   : > { %1596 = vmatpush1.bf16.msra.mxu1 %v844_v23  ;;  %1556 = vmatprep.subr.bf16.mxu0 %v709_v24  ;;  %v900_v23 = vunpack.c.h.s8.bf16 %v532_v21  ;;  %v765_v24 = vunpack.c.l.s8.bf16 %v469_v14  ;;  %v1108_v14 = vunpack.c.h.s8.bf16 %v636_v7 }
 0x1be   : > { %1597 = vmatprep.subr.bf16.mxu1 %v837_v25  ;;  %v893_v25 = vunpack.c.l.s8.bf16 %v533_v15 }
 0x1c0   : > { %1557 = vmatpush1.bf16.msra.mxu0 %v708_v32  ;;  %v764_v32 = vunpack.c.l.s8.bf16 %v468_v20 }
 0x1c1   : > { %1598 = vmatpush1.bf16.msra.mxu1 %v836_v33  ;;  %1558 = vmatprep.subr.bf16.mxu0 %v701_v34  ;;  %v892_v33 = vunpack.c.l.s8.bf16 %v532_v21  ;;  %v757_v34 = vunpack.c.h.s8.bf16 %v461_v28  ;;  %v1100_v21 = vunpack.c.l.s8.bf16 %v636_v7 }
 0x1c2   : > { %1599 = vmatprep.subr.bf16.mxu1 %v829_v35  ;;  %v885_v35 = vunpack.c.h.s8.bf16 %v525_v29 }
 0x1c4   : > { %1559 = vmatpush1.bf16.msra.mxu0 %v700_v38  ;;  %v756_v38 = vunpack.c.h.s8.bf16 %v460_v48 }
 0x1c5   : > { %1600 = vmatpush1.bf16.msra.mxu1 %v828_v39  ;;  %1560 = vmatprep.subr.bf16.mxu0 %v693_v40  ;;  %v884_v39 = vunpack.c.h.s8.bf16 %v524_v49  ;;  %v749_v40 = vunpack.c.l.s8.bf16 %v461_v28 }
 0x1c6   : > { %1601 = vmatprep.subr.bf16.mxu1 %v821_v41  ;;  %v877_v41 = vunpack.c.l.s8.bf16 %v525_v29 }
 0x1c8   : > { %1561 = vmatpush1.bf16.msra.mxu0 %v692_v44  ;;  %v748_v44 = vunpack.c.l.s8.bf16 %v460_v48 }
 0x1c9   : > { %1602 = vmatpush1.bf16.msra.mxu1 %v820_v45  ;;  %1562 = vmatprep.subr.bf16.mxu0 %v685_v50  ;;  %v876_v45 = vunpack.c.l.s8.bf16 %v524_v49  ;;  %v997_v50 = vunpack.c.h.s8.bf16 %v581_v42 }
 0x1ca   : > { %1603 = vmatprep.subr.bf16.mxu1 %v813_v51  ;;  %v1125_v51 = vunpack.c.h.s8.bf16 %v645_v43 }
 0x1cc   : > { %1563 = vmatpush1.bf16.msra.mxu0 %v684_v30  ;;  %v996_v30 = vunpack.c.h.s8.bf16 %v580_v52 }
 0x1cd   : > { %1604 = vmatpush1.bf16.msra.mxu1 %v812_v54  ;;  %1564 = vmatprep.subr.bf16.mxu0 %v805_v56  ;;  %v1124_v54 = vunpack.c.h.s8.bf16 %v644_v53  ;;  %v989_v56 = vunpack.c.l.s8.bf16 %v581_v42 }
 0x1ce   : > { %1605 = vmatprep.subr.bf16.mxu1 %v933_v57  ;;  %v1117_v57 = vunpack.c.l.s8.bf16 %v645_v43 }
 0x1d0   : > { %1565 = vmatpush2.bf16.msra.mxu0 %v804_v60 }
 0x1d1   : > { %1606 = vmatpush2.bf16.msra.mxu1 %v932_v61  ;;  %1566 = vmatprep.subr.bf16.mxu0 %v797_v62 }
 0x1d2   : > { %1607 = vmatprep.subr.bf16.mxu1 %v925_v63  ;;  %v988_v63 = vunpack.c.l.s8.bf16 %v580_v52 }
 0x1d4   : > { %1567 = vmatpush2.bf16.msra.mxu0 %v796_v3 }
 0x1d5   : > { %1608 = vmatpush2.bf16.msra.mxu1 %v924_v4  ;;  %1568 = vmatprep.subr.bf16.mxu0 %v789_v5  ;;  %v981_v4 = vunpack.c.h.s8.bf16 %v573_v58  ;;  %v1109_v5 = vunpack.c.h.s8.bf16 %v637_v59 }
 0x1d6   : > { %1609 = vmatprep.subr.bf16.mxu1 %v917_v6  ;;  %v572_v6 = vld [vmem:[%s16832_s12 + $0x4a0] sm:$0xff] }
 0x1d7   : > { %v972_v20 = vunpack.c.l.s8.bf16 %v572_v6 }
 0x1d8   : > { %1569 = vmatpush2.bf16.msra.mxu0 %v788_v9 }
 0x1d9   : > { %1610 = vmatpush2.bf16.msra.mxu1 %v916_v10  ;;  %1570 = vmatprep.subr.bf16.mxu0 %v781_v12 }
 0x1da   : > { %1611 = vmatprep.subr.bf16.mxu1 %v909_v13  ;;  %v980_v13 = vunpack.c.h.s8.bf16 %v572_v6  ;;  %v668_v6 = vld [vmem:[%s16832_s12 + $0x7a0] sm:$0xff] }
 0x1dc   : > { %1571 = vmatpush2.bf16.msra.mxu0 %v780_v16 }
 0x1dd   : > { %1612 = vmatpush2.bf16.msra.mxu1 %v908_v17  ;;  %1572 = vmatprep.subr.bf16.mxu0 %v773_v18  ;;  %v1101_v17 = vunpack.c.l.s8.bf16 %v637_v59  ;;  %v565_v18 = vld [vmem:[%s16832_s12 + $0x468] sm:$0xff] }
 0x1de   : > { %1613 = vmatprep.subr.bf16.mxu1 %v901_v19  ;;  %v629_v19 = vld [vmem:[%s16832_s12 + $0x668] sm:$0xff] }
 0x1e0   : > { %1573 = vmatpush2.bf16.msra.mxu0 %v772_v22  ;;  %v965_v22 = vunpack.c.h.s8.bf16 %v565_v18 }
 0x1e1   : > { %1614 = vmatpush2.bf16.msra.mxu1 %v900_v23  ;;  %1574 = vmatprep.subr.bf16.mxu0 %v765_v24  ;;  %v1093_v23 = vunpack.c.h.s8.bf16 %v629_v19  ;;  %v564_v24 = vld [vmem:[%s16832_s12 + $0x460] sm:$0xff] }
 0x1e2   : > { %1615 = vmatprep.subr.bf16.mxu1 %v893_v25  ;;  %v628_v25 = vld [vmem:[%s16832_s12 + $0x660] sm:$0xff]  ;;  %v964_v28 = vunpack.c.h.s8.bf16 %v564_v24  ;;  %v956_v48 = vunpack.c.l.s8.bf16 %v564_v24  ;;  %v589_v24 = vld [vmem:[%s16832_s12 + $0x528] sm:$0xff] }
 0x1e3   : > { %v1092_v29 = vunpack.c.h.s8.bf16 %v628_v25  ;;  %v1084_v49 = vunpack.c.l.s8.bf16 %v628_v25  ;;  %v653_v25 = vld [vmem:[%s16832_s12 + $0x728] sm:$0xff] }
 0x1e4   : > { %1575 = vmatpush2.bf16.msra.mxu0 %v764_v32  ;;  %v957_v32 = vunpack.c.l.s8.bf16 %v565_v18  ;;  %v596_v18 = vld [vmem:[%s16832_s12 + $0x560] sm:$0xff] }
 0x1e5   : > { %1616 = vmatpush2.bf16.msra.mxu1 %v892_v33  ;;  %1576 = vmatprep.subr.bf16.mxu0 %v757_v34  ;;  %v1085_v33 = vunpack.c.l.s8.bf16 %v629_v19  ;;  %v557_v34 = vld [vmem:[%s16832_s12 + $0x428] sm:$0xff]  ;;  %v660_v19 = vld [vmem:[%s16832_s12 + $0x760] sm:$0xff] }
 0x1e6   : > { %1617 = vmatprep.subr.bf16.mxu1 %v885_v35  ;;  %v621_v35 = vld [vmem:[%s16832_s12 + $0x628] sm:$0xff] }
 0x1e8   : > { %1577 = vmatpush2.bf16.msra.mxu0 %v756_v38  ;;  %v949_v38 = vunpack.c.h.s8.bf16 %v557_v34 }
 0x1e9   : > { %1618 = vmatpush2.bf16.msra.mxu1 %v884_v39  ;;  %1578 = vmatprep.subr.bf16.mxu0 %v749_v40  ;;  %v1077_v39 = vunpack.c.h.s8.bf16 %v621_v35  ;;  %v556_v40 = vld [vmem:[%s16832_s12 + $0x420] sm:$0xff] }
 0x1ea   : > { %1619 = vmatprep.subr.bf16.mxu1 %v877_v41  ;;  %v620_v41 = vld [vmem:[%s16832_s12 + $0x620] sm:$0xff]  ;;  %v948_v42 = vunpack.c.h.s8.bf16 %v556_v40  ;;  %v940_v52 = vunpack.c.l.s8.bf16 %v556_v40  ;;  %v455_v40 = vld [vmem:[%s16832_s12 + $0xf8] sm:$0xff] }
 0x1eb   : > { %v1076_v43 = vunpack.c.h.s8.bf16 %v620_v41  ;;  %v1068_v53 = vunpack.c.l.s8.bf16 %v620_v41  ;;  %v519_v41 = vld [vmem:[%s16832_s12 + $0x2f8] sm:$0xff] }
 0x1ec   : > { %1579 = vmatpush2.bf16.msra.mxu0 %v748_v44  ;;  %v941_v44 = vunpack.c.l.s8.bf16 %v557_v34  ;;  %v588_v34 = vld [vmem:[%s16832_s12 + $0x520] sm:$0xff] }
 0x1ed   : > { %1620 = vmatpush2.bf16.msra.mxu1 %v876_v45  ;;  %1630 = vmatprep.subr.bf16.mxu0 %v997_v50  ;;  %v1069_v45 = vunpack.c.l.s8.bf16 %v621_v35  ;;  %v613_v50 = vld [vmem:[%s16832_s12 + $0x5e8] sm:$0xff]  ;;  %v652_v35 = vld [vmem:[%s16832_s12 + $0x720] sm:$0xff] }
 0x1ee   : > { %1671 = vmatprep.subr.bf16.mxu1 %v1125_v51  ;;  %v677_v51 = vld [vmem:[%s16832_s12 + $0x7e8] sm:$0xff] }
 0x1ef   : > { %v1336_v60 = vpop.f32.mrf.mxu0  ;;  %1581 = vmatmul.mubr.bf16.vlgmr.msra.gmra.mxu0 %v16902_v46 }
 0x1f0   : > { %v1377_v61 = vpop.f32.mrf.mxu1  ;;  %1622 = vmatmul.mubr.bf16.vlgmr.msra.gmra.mxu1 %v16906_v47  ;;  %v1337_v62 = vadd.f32 %v1336_v60, %v17042_v2  ;;  %1631 = vmatpush1.bf16.msra.mxu0 %v996_v30  ;;  %v1061_v30 = vunpack.c.h.s8.bf16 %v613_v50  ;;  %v1053_v60 = vunpack.c.l.s8.bf16 %v613_v50  ;;  %v454_v50 = vld [vmem:[%s16832_s12 + $0xf0] sm:$0xff] }
 0x1f1   : > { %1672 = vmatpush1.bf16.msra.mxu1 %v1124_v54  ;;  %v1338_v1 = vpop.f32.mrf.mxu0  ;;  %1632 = vmatprep.subr.bf16.mxu0 %v989_v56  ;;  %v1189_v54 = vunpack.c.h.s8.bf16 %v677_v51  ;;  %v612_v56 = vld [vmem:[%s16832_s12 + $0x5e0] sm:$0xff] }
 0x1f2   : > { %v1379_v3 = vpop.f32.mrf.mxu1  ;;  %1673 = vmatprep.subr.bf16.mxu1 %v1117_v57  ;;  %v17085_v8 = vadd.f32 %v1377_v61, %v1337_v62  ;;  %v1339_v9 = vadd.f32 %v1338_v1, %v17046_v11  ;;  %1662 = vmatprep.mubr.bf16.mxu0 %v16918_v31  ;;  %v973_v11 = vunpack.c.l.s8.bf16 %v573_v58  ;;  %v676_v57 = vld [vmem:[%s16832_s12 + $0x7e0] sm:$0xff]  ;;  %v1060_v58 = vunpack.c.h.s8.bf16 %v612_v56  ;;  %v605_v62 = vld [vmem:[%s16832_s12 + $0x5a8] sm:$0xff] }
 0x1f3   : > { %1703 = vmatprep.mubr.bf16.mxu1 %v16922_v55  ;;  %v1340_v2 = vpop.f32.mrf.mxu0  ;;  %v1188_v59 = vunpack.c.h.s8.bf16 %v676_v57  ;;  %v1181_v61 = vunpack.c.l.s8.bf16 %v677_v51  ;;  %v1180_v1 = vunpack.c.l.s8.bf16 %v676_v57  ;;  %v518_v51 = vld [vmem:[%s16832_s12 + $0x2f0] sm:$0xff]  ;;  %v511_v57 = vld [vmem:[%s16832_s12 + $0x2b8] sm:$0xff] }
 0x1f4   : > { %v1381_v10 = vpop.f32.mrf.mxu1  ;;  %v17090_v12 = vadd.f32 %v1379_v3, %v1339_v9  ;;  %1633 = vmatpush1.bf16.msra.mxu0 %v988_v63  ;;  %v669_v63 = vld [vmem:[%s16832_s12 + $0x7a8] sm:$0xff]  ;;  %v1045_v3 = vunpack.c.h.s8.bf16 %v605_v62  ;;  %v1172_v9 = vunpack.c.h.s8.bf16 %v668_v6  ;;  %v1037_v2 = vunpack.c.l.s8.bf16 %v605_v62 }
 0x1f5   : > { %1674 = vmatpush1.bf16.msra.mxu1 %v1116_v0  ;;  %v1341_v15 = vpop.f32.mrf.mxu0  ;;  %1634 = vmatprep.subr.bf16.mxu0 %v981_v4  ;;  %v1052_v0 = vunpack.c.l.s8.bf16 %v612_v56  ;;  %v1173_v4 = vunpack.c.h.s8.bf16 %v669_v63  ;;  %v1165_v10 = vunpack.c.l.s8.bf16 %v669_v63  ;;  %v447_v56 = vld [vmem:[%s16832_s12 + $0xb8] sm:$0xff]  ;;  %v862_v62 = vunpack.c.l.s8.bf16 %v518_v51 }
 0x1f6   : > { %v1382_v16 = vpop.f32.mrf.mxu1  ;;  %1675 = vmatprep.subr.bf16.mxu1 %v1109_v5  ;;  %v604_v5 = vld [vmem:[%s16832_s12 + $0x5a0] sm:$0xff] }
 0x1f7   : > { %v1044_v7 = vunpack.c.h.s8.bf16 %v604_v5  ;;  %v1036_v15 = vunpack.c.l.s8.bf16 %v604_v5  ;;  %v1164_v16 = vunpack.c.l.s8.bf16 %v668_v6  ;;  %v510_v5 = vld [vmem:[%s16832_s12 + $0x2b0] sm:$0xff] }
 0x1f8   : > { %1635 = vmatpush1.bf16.msra.mxu0 %v980_v13  ;;  %v597_v13 = vld [vmem:[%s16832_s12 + $0x568] sm:$0xff] }
 0x1f9   : > { %1676 = vmatpush1.bf16.msra.mxu1 %v1108_v14  ;;  %1636 = vmatprep.subr.bf16.mxu0 %v973_v11  ;;  %v661_v14 = vld [vmem:[%s16832_s12 + $0x768] sm:$0xff]  ;;  %v1029_v11 = vunpack.c.h.s8.bf16 %v597_v13 }
 0x1fa   : > { %1677 = vmatprep.subr.bf16.mxu1 %v1101_v17  ;;  %v1157_v17 = vunpack.c.h.s8.bf16 %v661_v14 }
 0x1fc   : > { %1637 = vmatpush1.bf16.msra.mxu0 %v972_v20  ;;  %v1028_v20 = vunpack.c.h.s8.bf16 %v596_v18 }
 0x1fd   : > { %1678 = vmatpush1.bf16.msra.mxu1 %v1100_v21  ;;  %1638 = vmatprep.subr.bf16.mxu0 %v965_v22  ;;  %v1156_v21 = vunpack.c.h.s8.bf16 %v660_v19  ;;  %v1021_v22 = vunpack.c.l.s8.bf16 %v597_v13 }
 0x1fe   : > { %1679 = vmatprep.subr.bf16.mxu1 %v1093_v23  ;;  %v1149_v23 = vunpack.c.l.s8.bf16 %v661_v14 }
 0x200   : > { %1639 = vmatpush1.bf16.msra.mxu0 %v964_v28  ;;  %v1020_v28 = vunpack.c.l.s8.bf16 %v596_v18 }
 0x201   : > { %1680 = vmatpush1.bf16.msra.mxu1 %v1092_v29  ;;  %1640 = vmatprep.subr.bf16.mxu0 %v957_v32  ;;  %v1148_v29 = vunpack.c.l.s8.bf16 %v660_v19  ;;  %v1013_v32 = vunpack.c.h.s8.bf16 %v589_v24 }
 0x202   : > { %1681 = vmatprep.subr.bf16.mxu1 %v1085_v33  ;;  %v1141_v33 = vunpack.c.h.s8.bf16 %v653_v25 }
 0x204   : > { %1641 = vmatpush1.bf16.msra.mxu0 %v956_v48  ;;  %v1012_v48 = vunpack.c.h.s8.bf16 %v588_v34 }
 0x205   : > { %1682 = vmatpush1.bf16.msra.mxu1 %v1084_v49  ;;  %1642 = vmatprep.subr.bf16.mxu0 %v949_v38  ;;  %v1140_v49 = vunpack.c.h.s8.bf16 %v652_v35  ;;  %v1005_v38 = vunpack.c.l.s8.bf16 %v589_v24 }
 0x206   : > { %1683 = vmatprep.subr.bf16.mxu1 %v1077_v39  ;;  %v1133_v39 = vunpack.c.l.s8.bf16 %v653_v25 }
 0x208   : > { %1643 = vmatpush1.bf16.msra.mxu0 %v948_v42  ;;  %v1004_v42 = vunpack.c.l.s8.bf16 %v588_v34 }
 0x209   : > { %1684 = vmatpush1.bf16.msra.mxu1 %v1076_v43  ;;  %1644 = vmatprep.subr.bf16.mxu0 %v941_v44  ;;  %v1132_v43 = vunpack.c.l.s8.bf16 %v652_v35  ;;  %v743_v44 = vunpack.c.h.s8.bf16 %v455_v40 }
 0x20a   : > { %1685 = vmatprep.subr.bf16.mxu1 %v1069_v45  ;;  %v871_v45 = vunpack.c.h.s8.bf16 %v519_v41 }
 0x20c   : > { %1645 = vmatpush1.bf16.msra.mxu0 %v940_v52  ;;  %v742_v52 = vunpack.c.h.s8.bf16 %v454_v50 }
 0x20d   : > { %1686 = vmatpush1.bf16.msra.mxu1 %v1068_v53  ;;  %1646 = vmatprep.subr.bf16.mxu0 %v1061_v30  ;;  %v870_v53 = vunpack.c.h.s8.bf16 %v518_v51  ;;  %v735_v30 = vunpack.c.l.s8.bf16 %v455_v40 }
 0x20e   : > { %1687 = vmatprep.subr.bf16.mxu1 %v1189_v54  ;;  %v863_v54 = vunpack.c.l.s8.bf16 %v519_v41 }
 0x210   : > { %1647 = vmatpush2.bf16.msra.mxu0 %v1060_v58 }
 0x211   : > { %1688 = vmatpush2.bf16.msra.mxu1 %v1188_v59  ;;  %1648 = vmatprep.subr.bf16.mxu0 %v1053_v60 }
 0x212   : > { %1689 = vmatprep.subr.bf16.mxu1 %v1181_v61  ;;  %v734_v61 = vunpack.c.l.s8.bf16 %v454_v50 }
 0x214   : > { %1649 = vmatpush2.bf16.msra.mxu0 %v1052_v0 }
 0x215   : > { %1690 = vmatpush2.bf16.msra.mxu1 %v1180_v1  ;;  %1650 = vmatprep.subr.bf16.mxu0 %v1045_v3  ;;  %v727_v1 = vunpack.c.h.s8.bf16 %v447_v56  ;;  %v855_v3 = vunpack.c.h.s8.bf16 %v511_v57 }
 0x216   : > { %1691 = vmatprep.subr.bf16.mxu1 %v1173_v4  ;;  %v446_v4 = vld [vmem:[%s16832_s12 + $0xb0] sm:$0xff] }
 0x218   : > { %1651 = vmatpush2.bf16.msra.mxu0 %v1044_v7 }
 0x219   : > { %1692 = vmatpush2.bf16.msra.mxu1 %v1172_v9  ;;  %1652 = vmatprep.subr.bf16.mxu0 %v1037_v2  ;;  %v726_v2 = vunpack.c.h.s8.bf16 %v446_v4 }
 0x21a   : > { %1693 = vmatprep.subr.bf16.mxu1 %v1165_v10  ;;  %v854_v10 = vunpack.c.h.s8.bf16 %v510_v5 }
 0x21c   : > { %1653 = vmatpush2.bf16.msra.mxu0 %v1036_v15  ;;  %v719_v15 = vunpack.c.l.s8.bf16 %v447_v56 }
 0x21d   : > { %1694 = vmatpush2.bf16.msra.mxu1 %v1164_v16  ;;  %1654 = vmatprep.subr.bf16.mxu0 %v1029_v11  ;;  %v847_v16 = vunpack.c.l.s8.bf16 %v511_v57  ;;  %v439_v11 = vld [vmem:[%s16832_s12 + $0x78] sm:$0xff] }
 0x21e   : > { %1695 = vmatprep.subr.bf16.mxu1 %v1157_v17  ;;  %v503_v17 = vld [vmem:[%s16832_s12 + $0x278] sm:$0xff]  ;;  %v711_v18 = vunpack.c.h.s8.bf16 %v439_v11  ;;  %v703_v24 = vunpack.c.l.s8.bf16 %v439_v11  ;;  %v470_v11 = vld [vmem:[%s16832_s12 + $0x170] sm:$0xff] }
 0x21f   : > { %v839_v19 = vunpack.c.h.s8.bf16 %v503_v17  ;;  %v831_v25 = vunpack.c.l.s8.bf16 %v503_v17  ;;  %v534_v17 = vld [vmem:[%s16832_s12 + $0x370] sm:$0xff] }
 0x220   : > { %1655 = vmatpush2.bf16.msra.mxu0 %v1028_v20  ;;  %v438_v20 = vld [vmem:[%s16832_s12 + $0x70] sm:$0xff] }
 0x221   : > { %1696 = vmatpush2.bf16.msra.mxu1 %v1156_v21  ;;  %1656 = vmatprep.subr.bf16.mxu0 %v1021_v22  ;;  %v502_v21 = vld [vmem:[%s16832_s12 + $0x270] sm:$0xff]  ;;  %v710_v22 = vunpack.c.h.s8.bf16 %v438_v20 }
 0x222   : > { %1697 = vmatprep.subr.bf16.mxu1 %v1149_v23  ;;  %v838_v23 = vunpack.c.h.s8.bf16 %v502_v21 }
 0x224   : > { %1657 = vmatpush2.bf16.msra.mxu0 %v1020_v28  ;;  %v431_v28 = vld [vmem:[%s16832_s12 + $0x38] sm:$0xff] }
 0x225   : > { %1698 = vmatpush2.bf16.msra.mxu1 %v1148_v29  ;;  %1658 = vmatprep.subr.bf16.mxu0 %v1013_v32  ;;  %v495_v29 = vld [vmem:[%s16832_s12 + $0x238] sm:$0xff]  ;;  %v702_v32 = vunpack.c.l.s8.bf16 %v438_v20  ;;  %v695_v34 = vunpack.c.h.s8.bf16 %v431_v28  ;;  %v687_v40 = vunpack.c.l.s8.bf16 %v431_v28  ;;  %v462_v28 = vld [vmem:[%s16832_s12 + $0x130] sm:$0xff] }
 0x226   : > { %1699 = vmatprep.subr.bf16.mxu1 %v1141_v33  ;;  %v830_v33 = vunpack.c.l.s8.bf16 %v502_v21  ;;  %v823_v35 = vunpack.c.h.s8.bf16 %v495_v29  ;;  %v815_v41 = vunpack.c.l.s8.bf16 %v495_v29  ;;  %v463_v20 = vld [vmem:[%s16832_s12 + $0x138] sm:$0xff]  ;;  %v526_v29 = vld [vmem:[%s16832_s12 + $0x330] sm:$0xff] }
 0x227   : > { %v527_v21 = vld [vmem:[%s16832_s12 + $0x338] sm:$0xff] }
 0x228   : > { %1659 = vmatpush2.bf16.msra.mxu0 %v1012_v48  ;;  %v430_v48 = vld [vmem:[%s16832_s12 + $0x30] sm:$0xff] }
 0x229   : > { %1700 = vmatpush2.bf16.msra.mxu1 %v1140_v49  ;;  %1660 = vmatprep.subr.bf16.mxu0 %v1005_v38  ;;  %v494_v49 = vld [vmem:[%s16832_s12 + $0x230] sm:$0xff]  ;;  %v694_v38 = vunpack.c.h.s8.bf16 %v430_v48 }
 0x22a   : > { %1701 = vmatprep.subr.bf16.mxu1 %v1133_v39  ;;  %v822_v39 = vunpack.c.h.s8.bf16 %v494_v49 }
 0x22c   : > { %1661 = vmatpush2.bf16.msra.mxu0 %v1004_v42  ;;  %v487_v42 = vld [vmem:[%s16832_s12 + $0x1f8] sm:$0xff] }
 0x22d   : > { %1702 = vmatpush2.bf16.msra.mxu1 %v1132_v43  ;;  %1712 = vmatprep.subr.bf16.mxu0 %v743_v44  ;;  %v551_v43 = vld [vmem:[%s16832_s12 + $0x3f8] sm:$0xff]  ;;  %v686_v44 = vunpack.c.l.s8.bf16 %v430_v48  ;;  %v807_v50 = vunpack.c.h.s8.bf16 %v487_v42  ;;  %v799_v56 = vunpack.c.l.s8.bf16 %v487_v42  ;;  %v582_v42 = vld [vmem:[%s16832_s12 + $0x4f0] sm:$0xff] }
 0x22e   : > { %1753 = vmatprep.subr.bf16.mxu1 %v871_v45  ;;  %v814_v45 = vunpack.c.l.s8.bf16 %v494_v49  ;;  %v935_v51 = vunpack.c.h.s8.bf16 %v551_v43  ;;  %v927_v57 = vunpack.c.l.s8.bf16 %v551_v43  ;;  %v583_v48 = vld [vmem:[%s16832_s12 + $0x4f8] sm:$0xff]  ;;  %v646_v43 = vld [vmem:[%s16832_s12 + $0x6f0] sm:$0xff] }
 0x22f   : > { %v1418_v58 = vpop.f32.mrf.mxu0  ;;  %1663 = vmatmul.mubr.bf16.vlgmr.msra.gmra.mxu0 %v16960_v26  ;;  %v647_v49 = vld [vmem:[%s16832_s12 + $0x6f8] sm:$0xff] }
 0x230   : > { %v1459_v59 = vpop.f32.mrf.mxu1  ;;  %1704 = vmatmul.mubr.bf16.vlgmr.msra.gmra.mxu1 %v16964_v27  ;;  %1713 = vmatpush1.bf16.msra.mxu0 %v742_v52  ;;  %v486_v52 = vld [vmem:[%s16832_s12 + $0x1f0] sm:$0xff] }
 0x231   : > { %v17124_v60 = vadd.f32 %v1459_v59, %v1418_v58  ;;  %1754 = vmatpush1.bf16.msra.mxu1 %v870_v53  ;;  %v1420_v63 = vpop.f32.mrf.mxu0  ;;  %1714 = vmatprep.subr.bf16.mxu0 %v735_v30  ;;  %v550_v53 = vld [vmem:[%s16832_s12 + $0x3f0] sm:$0xff]  ;;  %v806_v30 = vunpack.c.h.s8.bf16 %v486_v52  ;;  %v479_v58 = vld [vmem:[%s16832_s12 + $0x1b8] sm:$0xff] }
 0x232   : > { %v1461_v0 = vpop.f32.mrf.mxu1  ;;  %1755 = vmatprep.subr.bf16.mxu1 %v863_v54  ;;  %1744 = vmatprep.mubr.bf16.mxu0 %v16868_v36  ;;  %v718_v36 = vunpack.c.l.s8.bf16 %v446_v4  ;;  %v934_v54 = vunpack.c.h.s8.bf16 %v550_v53  ;;  %v543_v59 = vld [vmem:[%s16832_s12 + $0x3b8] sm:$0xff] }
 0x233   : > { %v17128_v6 = vadd.f32 %v1461_v0, %v1420_v63  ;;  %1785 = vmatprep.mubr.bf16.mxu1 %v16872_v37  ;;  %v1422_v7 = vpop.f32.mrf.mxu0  ;;  %v846_v37 = vunpack.c.l.s8.bf16 %v510_v5  ;;  %v791_v63 = vunpack.c.h.s8.bf16 %v479_v58  ;;  %v919_v0 = vunpack.c.h.s8.bf16 %v543_v59 }
 0x234   : > { %v1463_v9 = vpop.f32.mrf.mxu1  ;;  %1715 = vmatpush1.bf16.msra.mxu0 %v734_v61  ;;  %v798_v61 = vunpack.c.l.s8.bf16 %v486_v52  ;;  %v783_v7 = vunpack.c.l.s8.bf16 %v479_v58  ;;  %v575_v52 = vld [vmem:[%s16832_s12 + $0x4b8] sm:$0xff]  ;;  %v1118_v58 = vunpack.c.l.s8.bf16 %v646_v43 }
 0x235   : > { %1756 = vmatpush1.bf16.msra.mxu1 %v862_v62  ;;  %v1423_v13 = vpop.f32.mrf.mxu0  ;;  %1716 = vmatprep.subr.bf16.mxu0 %v727_v1  ;;  %v926_v62 = vunpack.c.l.s8.bf16 %v550_v53  ;;  %v478_v1 = vld [vmem:[%s16832_s12 + $0x1b0] sm:$0xff]  ;;  %v911_v9 = vunpack.c.l.s8.bf16 %v543_v59  ;;  %v639_v53 = vld [vmem:[%s16832_s12 + $0x6b8] sm:$0xff] }
 0x236   : > { %v1464_v14 = vpop.f32.mrf.mxu1  ;;  %1757 = vmatprep.subr.bf16.mxu1 %v855_v3  ;;  %v542_v3 = vld [vmem:[%s16832_s12 + $0x3b0] sm:$0xff]  ;;  %v790_v4 = vunpack.c.h.s8.bf16 %v478_v1  ;;  %v782_v13 = vunpack.c.l.s8.bf16 %v478_v1 }
 0x237   : > { %v918_v5 = vunpack.c.h.s8.bf16 %v542_v3  ;;  %v910_v14 = vunpack.c.l.s8.bf16 %v542_v3  ;;  %v638_v1 = vld [vmem:[%s16832_s12 + $0x6b0] sm:$0xff] }
 0x238   : > { %1717 = vmatpush1.bf16.msra.mxu0 %v726_v2  ;;  %v471_v2 = vld [vmem:[%s16832_s12 + $0x178] sm:$0xff] }
 0x239   : > { %1758 = vmatpush1.bf16.msra.mxu1 %v854_v10  ;;  %1718 = vmatprep.subr.bf16.mxu0 %v719_v15  ;;  %v535_v10 = vld [vmem:[%s16832_s12 + $0x378] sm:$0xff]  ;;  %v775_v15 = vunpack.c.h.s8.bf16 %v471_v2 }
 0x23a   : > { %1759 = vmatprep.subr.bf16.mxu1 %v847_v16  ;;  %v903_v16 = vunpack.c.h.s8.bf16 %v535_v10 }
 0x23c   : > { %1719 = vmatpush1.bf16.msra.mxu0 %v718_v36  ;;  %v774_v36 = vunpack.c.h.s8.bf16 %v470_v11 }
 0x23d   : > { %1760 = vmatpush1.bf16.msra.mxu1 %v846_v37  ;;  %1720 = vmatprep.subr.bf16.mxu0 %v711_v18  ;;  %v902_v37 = vunpack.c.h.s8.bf16 %v534_v17  ;;  %v767_v18 = vunpack.c.l.s8.bf16 %v471_v2 }
 0x23e   : > { %1761 = vmatprep.subr.bf16.mxu1 %v839_v19  ;;  %v895_v19 = vunpack.c.l.s8.bf16 %v535_v10  ;;  %v1103_v10 = vunpack.c.l.s8.bf16 %v639_v53 }
 0x240   : > { %1721 = vmatpush1.bf16.msra.mxu0 %v710_v22  ;;  %v766_v22 = vunpack.c.l.s8.bf16 %v470_v11  ;;  %v566_v11 = vld [vmem:[%s16832_s12 + $0x470] sm:$0xff] }
 0x241   : > { %1762 = vmatpush1.bf16.msra.mxu1 %v838_v23  ;;  %1722 = vmatprep.subr.bf16.mxu0 %v703_v24  ;;  %v894_v23 = vunpack.c.l.s8.bf16 %v534_v17  ;;  %v759_v24 = vunpack.c.h.s8.bf16 %v463_v20  ;;  %v630_v17 = vld [vmem:[%s16832_s12 + $0x670] sm:$0xff] }
 0x242   : > { %1763 = vmatprep.subr.bf16.mxu1 %v831_v25  ;;  %v887_v25 = vunpack.c.h.s8.bf16 %v527_v21 }
 0x244   : > { %1723 = vmatpush1.bf16.msra.mxu0 %v702_v32  ;;  %v758_v32 = vunpack.c.h.s8.bf16 %v462_v28 }
 0x245   : > { %1764 = vmatpush1.bf16.msra.mxu1 %v830_v33  ;;  %1724 = vmatprep.subr.bf16.mxu0 %v695_v34  ;;  %v886_v33 = vunpack.c.h.s8.bf16 %v526_v29  ;;  %v751_v34 = vunpack.c.l.s8.bf16 %v463_v20  ;;  %v559_v20 = vld [vmem:[%s16832_s12 + $0x438] sm:$0xff] }
 0x246   : > { %1765 = vmatprep.subr.bf16.mxu1 %v823_v35  ;;  %v879_v35 = vunpack.c.l.s8.bf16 %v527_v21  ;;  %v623_v21 = vld [vmem:[%s16832_s12 + $0x638] sm:$0xff] }
 0x248   : > { %1725 = vmatpush1.bf16.msra.mxu0 %v694_v38  ;;  %v750_v38 = vunpack.c.l.s8.bf16 %v462_v28  ;;  %v558_v28 = vld [vmem:[%s16832_s12 + $0x430] sm:$0xff] }
 0x249   : > { %1766 = vmatpush1.bf16.msra.mxu1 %v822_v39  ;;  %1726 = vmatprep.subr.bf16.mxu0 %v687_v40  ;;  %v878_v39 = vunpack.c.l.s8.bf16 %v526_v29  ;;  %v999_v40 = vunpack.c.h.s8.bf16 %v583_v48  ;;  %v622_v29 = vld [vmem:[%s16832_s12 + $0x630] sm:$0xff] }
 0x24a   : > { %1767 = vmatprep.subr.bf16.mxu1 %v815_v41  ;;  %v1127_v41 = vunpack.c.h.s8.bf16 %v647_v49 }
 0x24c   : > { %1727 = vmatpush1.bf16.msra.mxu0 %v686_v44  ;;  %v998_v44 = vunpack.c.h.s8.bf16 %v582_v42 }
 0x24d   : > { %1768 = vmatpush1.bf16.msra.mxu1 %v814_v45  ;;  %1728 = vmatprep.subr.bf16.mxu0 %v807_v50  ;;  %v1126_v45 = vunpack.c.h.s8.bf16 %v646_v43  ;;  %v991_v50 = vunpack.c.l.s8.bf16 %v583_v48  ;;  %v615_v48 = vld [vmem:[%s16832_s12 + $0x5f8] sm:$0xff]  ;;  %v678_v43 = vld [vmem:[%s16832_s12 + $0x7f0] sm:$0xff] }
 0x24e   : > { %1769 = vmatprep.subr.bf16.mxu1 %v935_v51  ;;  %v1119_v51 = vunpack.c.l.s8.bf16 %v647_v49  ;;  %v679_v49 = vld [vmem:[%s16832_s12 + $0x7f8] sm:$0xff] }
 0x250   : > { %1729 = vmatpush2.bf16.msra.mxu0 %v806_v30 }
 0x251   : > { %1770 = vmatpush2.bf16.msra.mxu1 %v934_v54  ;;  %1730 = vmatprep.subr.bf16.mxu0 %v799_v56 }
 0x252   : > { %1771 = vmatprep.subr.bf16.mxu1 %v927_v57  ;;  %v990_v57 = vunpack.c.l.s8.bf16 %v582_v42  ;;  %v614_v42 = vld [vmem:[%s16832_s12 + $0x5f0] sm:$0xff] }
 0x254   : > { %1731 = vmatpush2.bf16.msra.mxu0 %v798_v61 }
 0x255   : > { %1772 = vmatpush2.bf16.msra.mxu1 %v926_v62  ;;  %1732 = vmatprep.subr.bf16.mxu0 %v791_v63  ;;  %v983_v62 = vunpack.c.h.s8.bf16 %v575_v52  ;;  %v1111_v63 = vunpack.c.h.s8.bf16 %v639_v53  ;;  %v671_v53 = vld [vmem:[%s16832_s12 + $0x7b8] sm:$0xff] }
 0x256   : > { %1773 = vmatprep.subr.bf16.mxu1 %v919_v0  ;;  %v574_v0 = vld [vmem:[%s16832_s12 + $0x4b0] sm:$0xff] }
 0x258   : > { %1733 = vmatpush2.bf16.msra.mxu0 %v790_v4 }
 0x259   : > { %1774 = vmatpush2.bf16.msra.mxu1 %v918_v5  ;;  %1734 = vmatprep.subr.bf16.mxu0 %v783_v7  ;;  %v982_v5 = vunpack.c.h.s8.bf16 %v574_v0  ;;  %v1110_v7 = vunpack.c.h.s8.bf16 %v638_v1 }
 0x25a   : > { %1775 = vmatprep.subr.bf16.mxu1 %v911_v9 }
 0x25c   : > { %1735 = vmatpush2.bf16.msra.mxu0 %v782_v13  ;;  %v631_v13 = vld [vmem:[%s16832_s12 + $0x678] sm:$0xff] }
 0x25d   : > { %1776 = vmatpush2.bf16.msra.mxu1 %v910_v14  ;;  %1736 = vmatprep.subr.bf16.mxu0 %v775_v15  ;;  %v1102_v14 = vunpack.c.l.s8.bf16 %v638_v1  ;;  %v599_v1 = vld [vmem:[%s16832_s12 + $0x578] sm:$0xff] }
 0x25e   : > { %1777 = vmatprep.subr.bf16.mxu1 %v903_v16  ;;  %v1095_v16 = vunpack.c.h.s8.bf16 %v631_v13 }
 0x260   : > { %1737 = vmatpush2.bf16.msra.mxu0 %v774_v36  ;;  %v966_v36 = vunpack.c.h.s8.bf16 %v566_v11 }
 0x261   : > { %1778 = vmatpush2.bf16.msra.mxu1 %v902_v37  ;;  %1738 = vmatprep.subr.bf16.mxu0 %v767_v18  ;;  %v1094_v37 = vunpack.c.h.s8.bf16 %v630_v17 }
 0x262   : > { %1779 = vmatprep.subr.bf16.mxu1 %v895_v19  ;;  %v1087_v19 = vunpack.c.l.s8.bf16 %v631_v13 }
 0x264   : > { %1739 = vmatpush2.bf16.msra.mxu0 %v766_v22  ;;  %v958_v22 = vunpack.c.l.s8.bf16 %v566_v11 }
 0x265   : > { %1780 = vmatpush2.bf16.msra.mxu1 %v894_v23  ;;  %1740 = vmatprep.subr.bf16.mxu0 %v759_v24  ;;  %v1086_v23 = vunpack.c.l.s8.bf16 %v630_v17  ;;  %v951_v24 = vunpack.c.h.s8.bf16 %v559_v20 }
 0x266   : > { %1781 = vmatprep.subr.bf16.mxu1 %v887_v25  ;;  %v1079_v25 = vunpack.c.h.s8.bf16 %v623_v21 }
 0x268   : > { %1741 = vmatpush2.bf16.msra.mxu0 %v758_v32  ;;  %v950_v32 = vunpack.c.h.s8.bf16 %v558_v28 }
 0x269   : > { %1782 = vmatpush2.bf16.msra.mxu1 %v886_v33  ;;  %1742 = vmatprep.subr.bf16.mxu0 %v751_v34  ;;  %v1078_v33 = vunpack.c.h.s8.bf16 %v622_v29  ;;  %v943_v34 = vunpack.c.l.s8.bf16 %v559_v20 }
 0x26a   : > { %1783 = vmatprep.subr.bf16.mxu1 %v879_v35  ;;  %v1071_v35 = vunpack.c.l.s8.bf16 %v623_v21 }
 0x26c   : > { %1743 = vmatpush2.bf16.msra.mxu0 %v750_v38  ;;  %v942_v38 = vunpack.c.l.s8.bf16 %v558_v28 }
 0x26d   : > { %1784 = vmatpush2.bf16.msra.mxu1 %v878_v39  ;;  %1794 = vmatprep.subr.bf16.mxu0 %v999_v40  ;;  %v1070_v39 = vunpack.c.l.s8.bf16 %v622_v29  ;;  %v1063_v40 = vunpack.c.h.s8.bf16 %v615_v48 }
 0x26e   : > { %1835 = vmatprep.subr.bf16.mxu1 %v1127_v41  ;;  %v1191_v41 = vunpack.c.h.s8.bf16 %v679_v49 }
 0x26f   : > { %v1500_v30 = vpop.f32.mrf.mxu0  ;;  %1745 = vmatmul.mubr.bf16.vlgmr.msra.gmra.mxu0 %v16902_v46 }
 0x270   : > { %v1541_v54 = vpop.f32.mrf.mxu1  ;;  %1786 = vmatmul.mubr.bf16.vlgmr.msra.gmra.mxu1 %v16906_v47  ;;  %v1501_v56 = vadd.f32 %v1500_v30, %v17124_v60  ;;  %1795 = vmatpush1.bf16.msra.mxu0 %v998_v44  ;;  %v1062_v44 = vunpack.c.h.s8.bf16 %v614_v42  ;;  %v1054_v30 = vunpack.c.l.s8.bf16 %v614_v42 }
 0x271   : > { %1836 = vmatpush1.bf16.msra.mxu1 %v1126_v45  ;;  %v1502_v59 = vpop.f32.mrf.mxu0  ;;  %1796 = vmatprep.subr.bf16.mxu0 %v991_v50  ;;  %v1190_v45 = vunpack.c.h.s8.bf16 %v678_v43  ;;  %v1055_v50 = vunpack.c.l.s8.bf16 %v615_v48 }
 0x272   : > { %v1543_v61 = vpop.f32.mrf.mxu1  ;;  %1837 = vmatprep.subr.bf16.mxu1 %v1119_v51  ;;  %v17167_v3 = vadd.f32 %v1541_v54, %v1501_v56  ;;  %v1503_v46 = vadd.f32 %v1502_v59, %v17128_v6  ;;  %1826 = vmatprep.mubr.bf16.mxu0 %v16918_v31  ;;  %v975_v6 = vunpack.c.l.s8.bf16 %v575_v52  ;;  %v567_v31 = vld [vmem:[%s16832_s12 + $0x478] sm:$0xff]  ;;  %v1183_v51 = vunpack.c.l.s8.bf16 %v679_v49  ;;  %v670_v59 = vld [vmem:[%s16832_s12 + $0x7b0] sm:$0xff] }
 0x273   : > { %1867 = vmatprep.mubr.bf16.mxu1 %v16922_v55  ;;  %v1504_v47 = vpop.f32.mrf.mxu0  ;;  %v974_v55 = vunpack.c.l.s8.bf16 %v574_v0  ;;  %v967_v15 = vunpack.c.h.s8.bf16 %v567_v31  ;;  %v959_v18 = vunpack.c.l.s8.bf16 %v567_v31  ;;  %v607_v52 = vld [vmem:[%s16832_s12 + $0x5b8] sm:$0xff]  ;;  %v1182_v54 = vunpack.c.l.s8.bf16 %v678_v43 }
 0x274   : > { %v1545_v60 = vpop.f32.mrf.mxu1  ;;  %v17172_v4 = vadd.f32 %v1543_v61, %v1503_v46  ;;  %1797 = vmatpush1.bf16.msra.mxu0 %v990_v57  ;;  %v1047_v56 = vunpack.c.h.s8.bf16 %v607_v52  ;;  %v1175_v57 = vunpack.c.h.s8.bf16 %v671_v53  ;;  %v1167_v0 = vunpack.c.l.s8.bf16 %v671_v53  ;;  %v663_v46 = vld [vmem:[%s16832_s12 + $0x778] sm:$0xff] }
 0x275   : > { %1838 = vmatpush1.bf16.msra.mxu1 %v1118_v58  ;;  %v1505_v9 = vpop.f32.mrf.mxu0  ;;  %1798 = vmatprep.subr.bf16.mxu0 %v983_v62  ;;  %v606_v58 = vld [vmem:[%s16832_s12 + $0x5b0] sm:$0xff]  ;;  %v1174_v62 = vunpack.c.h.s8.bf16 %v670_v59  ;;  %v1166_v60 = vunpack.c.l.s8.bf16 %v670_v59  ;;  %v1023_v31 = vunpack.c.l.s8.bf16 %v599_v1  ;;  %v1151_v13 = vunpack.c.l.s8.bf16 %v663_v46 }
 0x276   : > { %v1546_v2 = vpop.f32.mrf.mxu1  ;;  %1839 = vmatprep.subr.bf16.mxu1 %v1111_v63  ;;  %v1046_v61 = vunpack.c.h.s8.bf16 %v606_v58  ;;  %v1039_v63 = vunpack.c.l.s8.bf16 %v607_v52  ;;  %v1038_v47 = vunpack.c.l.s8.bf16 %v606_v58  ;;  %v598_v9 = vld [vmem:[%s16832_s12 + $0x570] sm:$0xff] }
 0x277   : > { %v662_v2 = vld [vmem:[%s16832_s12 + $0x770] sm:$0xff] }
 0x278   : > { %1799 = vmatpush1.bf16.msra.mxu0 %v982_v5  ;;  %v1031_v5 = vunpack.c.h.s8.bf16 %v599_v1 }
 0x279   : > { %1840 = vmatpush1.bf16.msra.mxu1 %v1110_v7  ;;  %1800 = vmatprep.subr.bf16.mxu0 %v975_v6  ;;  %v1159_v7 = vunpack.c.h.s8.bf16 %v663_v46  ;;  %v1030_v6 = vunpack.c.h.s8.bf16 %v598_v9 }
 0x27a   : > { %1841 = vmatprep.subr.bf16.mxu1 %v1103_v10  ;;  %v1158_v10 = vunpack.c.h.s8.bf16 %v662_v2 }
 0x27c   : > { %1801 = vmatpush1.bf16.msra.mxu0 %v974_v55  ;;  %v591_v55 = vld [vmem:[%s16832_s12 + $0x538] sm:$0xff] }
 0x27d   : > { %1842 = vmatpush1.bf16.msra.mxu1 %v1102_v14  ;;  %1802 = vmatprep.subr.bf16.mxu0 %v967_v15  ;;  %v655_v14 = vld [vmem:[%s16832_s12 + $0x738] sm:$0xff]  ;;  %v1022_v15 = vunpack.c.l.s8.bf16 %v598_v9  ;;  %v1015_v11 = vunpack.c.h.s8.bf16 %v591_v55  ;;  %v1007_v20 = vunpack.c.l.s8.bf16 %v591_v55 }
 0x27e   : > { %1843 = vmatprep.subr.bf16.mxu1 %v1095_v16  ;;  %v1150_v16 = vunpack.c.l.s8.bf16 %v662_v2  ;;  %v1143_v17 = vunpack.c.h.s8.bf16 %v655_v14  ;;  %v1135_v21 = vunpack.c.l.s8.bf16 %v655_v14 }
 0x280   : > { %1803 = vmatpush1.bf16.msra.mxu0 %v966_v36  ;;  %v590_v36 = vld [vmem:[%s16832_s12 + $0x530] sm:$0xff] }
 0x281   : > { %1844 = vmatpush1.bf16.msra.mxu1 %v1094_v37  ;;  %1804 = vmatprep.subr.bf16.mxu0 %v959_v18  ;;  %v654_v37 = vld [vmem:[%s16832_s12 + $0x730] sm:$0xff]  ;;  %v1014_v18 = vunpack.c.h.s8.bf16 %v590_v36 }
 0x282   : > { %1845 = vmatprep.subr.bf16.mxu1 %v1087_v19  ;;  %v1142_v19 = vunpack.c.h.s8.bf16 %v654_v37 }
 0x284   : > { %1805 = vmatpush1.bf16.msra.mxu0 %v958_v22  ;;  %v1006_v22 = vunpack.c.l.s8.bf16 %v590_v36 }
 0x285   : > { %1846 = vmatpush1.bf16.msra.mxu1 %v1086_v23  ;;  %1806 = vmatprep.subr.bf16.mxu0 %v951_v24  ;;  %v1134_v23 = vunpack.c.l.s8.bf16 %v654_v37 }
 0x286   : > { %1847 = vmatprep.subr.bf16.mxu1 %v1079_v25 }
 0x288   : > { %1807 = vmatpush1.bf16.msra.mxu0 %v950_v32 }
 0x289   : > { %1848 = vmatpush1.bf16.msra.mxu1 %v1078_v33  ;;  %1808 = vmatprep.subr.bf16.mxu0 %v943_v34 }
 0x28a   : > { %1849 = vmatprep.subr.bf16.mxu1 %v1071_v35 }
 0x28c   : > { %1809 = vmatpush1.bf16.msra.mxu0 %v942_v38 }
 0x28d   : > { %1850 = vmatpush1.bf16.msra.mxu1 %v1070_v39  ;;  %1810 = vmatprep.subr.bf16.mxu0 %v1063_v40 }
 0x28e   : > { %1851 = vmatprep.subr.bf16.mxu1 %v1191_v41 }
 0x290   : > { %1811 = vmatpush2.bf16.msra.mxu0 %v1062_v44 }
 0x291   : > { %1852 = vmatpush2.bf16.msra.mxu1 %v1190_v45  ;;  %1812 = vmatprep.subr.bf16.mxu0 %v1055_v50 }
 0x292   : > { %1853 = vmatprep.subr.bf16.mxu1 %v1183_v51 }
 0x294   : > { %1813 = vmatpush2.bf16.msra.mxu0 %v1054_v30 }
 0x295   : > { %1854 = vmatpush2.bf16.msra.mxu1 %v1182_v54  ;;  %1814 = vmatprep.subr.bf16.mxu0 %v1047_v56 }
 0x296   : > { %1855 = vmatprep.subr.bf16.mxu1 %v1175_v57 }
 0x298   : > { %1815 = vmatpush2.bf16.msra.mxu0 %v1046_v61 }
 0x299   : > { %1856 = vmatpush2.bf16.msra.mxu1 %v1174_v62  ;;  %1816 = vmatprep.subr.bf16.mxu0 %v1039_v63 }
 0x29a   : > { %1857 = vmatprep.subr.bf16.mxu1 %v1167_v0 }
 0x29c   : > { %1817 = vmatpush2.bf16.msra.mxu0 %v1038_v47 }
 0x29d   : > { %1858 = vmatpush2.bf16.msra.mxu1 %v1166_v60  ;;  %1818 = vmatprep.subr.bf16.mxu0 %v1031_v5 }
 0x29e   : > { %1859 = vmatprep.subr.bf16.mxu1 %v1159_v7 }
 0x2a0   : > { %1819 = vmatpush2.bf16.msra.mxu0 %v1030_v6 }
 0x2a1   : > { %1860 = vmatpush2.bf16.msra.mxu1 %v1158_v10  ;;  %1820 = vmatprep.subr.bf16.mxu0 %v1023_v31 }
 0x2a2   : > { %1861 = vmatprep.subr.bf16.mxu1 %v1151_v13 }
 0x2a4   : > { %1821 = vmatpush2.bf16.msra.mxu0 %v1022_v15 }
 0x2a5   : > { %1862 = vmatpush2.bf16.msra.mxu1 %v1150_v16  ;;  %1822 = vmatprep.subr.bf16.mxu0 %v1015_v11 }
 0x2a6   : > { %1863 = vmatprep.subr.bf16.mxu1 %v1143_v17 }
 0x2a8   : > { %1823 = vmatpush2.bf16.msra.mxu0 %v1014_v18 }
 0x2a9   : > { %1864 = vmatpush2.bf16.msra.mxu1 %v1142_v19  ;;  %1824 = vmatprep.subr.bf16.mxu0 %v1007_v20 }
 0x2aa   : > { %1865 = vmatprep.subr.bf16.mxu1 %v1135_v21 }
 0x2ac   : > { %1825 = vmatpush2.bf16.msra.mxu0 %v1006_v22 }
 0x2ad   : > { %1866 = vmatpush2.bf16.msra.mxu1 %v1134_v23 }
 0x2af   : > { %v1582_v24 = vpop.f32.mrf.mxu0  ;;  %1827 = vmatmul.mubr.bf16.vlgmr.msra.gmra.mxu0 %v16960_v26 }
 0x2b0   : > { %v1623_v25 = vpop.f32.mrf.mxu1  ;;  %1868 = vmatmul.mubr.bf16.vlgmr.msra.gmra.mxu1 %v16964_v27 }
 0x2b1   : > { %v1624_v28 = vadd.f32 %v1623_v25, %v1582_v24  ;;  %v1584_v29 = vpop.f32.mrf.mxu0 }
 0x2b2   : > { %v1625_v32 = vpop.f32.mrf.mxu1 }
 0x2b3   : > { %v1626_v33 = vadd.f32 %v1625_v32, %v1584_v29  ;;  %v1586_v34 = vpop.f32.mrf.mxu0 }
 0x2b4   : > { %v1627_v35 = vpop.f32.mrf.mxu1 }
 0x2b5   : > { %v1587_v48 = vpop.f32.mrf.mxu0 }
 0x2b6   : > { %v1628_v49 = vpop.f32.mrf.mxu1 }
 0x2ef   : > { %v1664_v38 = vpop.f32.mrf.mxu0 }
 0x2f0   : > { %v1705_v39 = vpop.f32.mrf.mxu1  ;;  %v1665_v40 = vadd.f32 %v1664_v38, %v1624_v28 }
 0x2f1   : > { %v1666_v41 = vpop.f32.mrf.mxu0 }
 0x2f2   : > { %v1707_v42 = vpop.f32.mrf.mxu1  ;;  %v1706_v43 = vadd.f32 %v1705_v39, %v1665_v40  ;;  %v1667_v44 = vadd.f32 %v1666_v41, %v1626_v33 }
 0x2f3   : > { %v1668_v45 = vpop.f32.mrf.mxu0 }
 0x2f4   : > { %v1709_v50 = vpop.f32.mrf.mxu1  ;;  %v1708_v26 = vadd.f32 %v1707_v42, %v1667_v44 }
 0x2f5   : > { %v1669_v51 = vpop.f32.mrf.mxu0 }
 0x2f6   : > { %v1710_v27 = vpop.f32.mrf.mxu1 }
 0x32f   : > { %v1746_v52 = vpop.f32.mrf.mxu0 }
 0x330   : > { %v1787_v53 = vpop.f32.mrf.mxu1 }
 0x331   : > { %v1788_v30 = vadd.f32 %v1787_v53, %v1746_v52  ;;  %v1748_v54 = vpop.f32.mrf.mxu0 }
 0x332   : > { %v1789_v56 = vpop.f32.mrf.mxu1 }
 0x333   : > { %v1750_v57 = vpop.f32.mrf.mxu0  ;;  %v1790_v0 = vadd.f32 %v1789_v56, %v1748_v54 }
 0x334   : > { %v1791_v58 = vpop.f32.mrf.mxu1 }
 0x335   : > { %v1751_v59 = vpop.f32.mrf.mxu0 }
 0x336   : > { %v1792_v61 = vpop.f32.mrf.mxu1 }
 0x36f   : > { %v1828_v62 = vpop.f32.mrf.mxu0 }
 0x370   : > { %v1869_v63 = vpop.f32.mrf.mxu1  ;;  %v1829_v1 = vadd.f32 %v1828_v62, %v1788_v30 }
 0x371   : > { %v1830_v46 = vpop.f32.mrf.mxu0 }
 0x372   : > { %v1871_v47 = vpop.f32.mrf.mxu1  ;;  %v1870_v60 = vadd.f32 %v1869_v63, %v1829_v1  ;;  %v1831_v5 = vadd.f32 %v1830_v46, %v1790_v0  ;;  %1879 = sbr.rel (%p18421_p7) target bundleno = 891 (0x37b), region = 80 }
 0x373   : > { %v1832_v7 = vpop.f32.mrf.mxu0 }
 0x374   : > { %v1873_v9 = vpop.f32.mrf.mxu1  ;;  %v1872_v2 = vadd.f32 %v1871_v47, %v1831_v5 }
 0x375   : > { %v1833_v6 = vpop.f32.mrf.mxu0 }
 0x376   : > { %v1874_v10 = vpop.f32.mrf.mxu1 }
 0x377   : > { %1880 = vst [vmem:[#allocation2 + $0x30] sm:$0xff] %v17085_v8  ;;  %1881 = vst [vmem:[#allocation2] sm:$0xff] %v17090_v12 }
 0x378   : > { %1882 = vst [vmem:[#allocation2 + $0x18] sm:$0xff] %v17167_v3  ;;  %1883 = vst [vmem:[#allocation2 + $0x10] sm:$0xff] %v17172_v4 }
 0x379   : > { %1884 = vst [vmem:[#allocation2 + $0x8] sm:$0xff] %v1706_v43  ;;  %1885 = vst [vmem:[#allocation2 + $0x20] sm:$0xff] %v1708_v26 }
 0x37a   : > { %1886 = vst [vmem:[#allocation2 + $0x28] sm:$0xff] %v1870_v60  ;;  %1887 = vst [vmem:[#allocation2 + $0x38] sm:$0xff] %v1872_v2 }
 0x37b PF: > { %p18422_p10 = scmp.eq.s32.totalorder %s16636_s28, 0 }
 0x37d   : > { %1891 = sbr.rel (%p18422_p10) target bundleno = 905 (0x389), region = 84 }
 0x382   : > { %v1892_v31 = vld [vmem:[#allocation2 + $0x30] sm:$0xff]  ;;  %v1893_v13 = vld [vmem:[#allocation2] sm:$0xff]  ;;  %v1894_v55 = vld [vmem:[#allocation2 + $0x18] sm:$0xff] }
 0x383   : > { %v1900_v14 = vadd.f32 %v1892_v31, %v17085_v8  ;;  %v1901_v15 = vadd.f32 %v1893_v13, %v17090_v12  ;;  %v1902_v16 = vadd.f32 %v1894_v55, %v17167_v3  ;;  %v1895_v11 = vld [vmem:[#allocation2 + $0x10] sm:$0xff]  ;;  %v1896_v17 = vld [vmem:[#allocation2 + $0x8] sm:$0xff]  ;;  %v1897_v36 = vld [vmem:[#allocation2 + $0x20] sm:$0xff] }
 0x384   : > { %v1903_v37 = vadd.f32 %v1895_v11, %v17172_v4  ;;  %v1904_v18 = vadd.f32 %v1896_v17, %v1706_v43  ;;  %v1905_v19 = vadd.f32 %v1897_v36, %v1708_v26  ;;  %v1898_v20 = vld [vmem:[#allocation2 + $0x28] sm:$0xff]  ;;  %v1899_v21 = vld [vmem:[#allocation2 + $0x38] sm:$0xff] }
 0x385   : > { %1908 = vst [vmem:[#allocation2 + $0x30] sm:$0xff] %v1900_v14  ;;  %1909 = vst [vmem:[#allocation2] sm:$0xff] %v1901_v15  ;;  %v1906_v22 = vadd.f32 %v1898_v20, %v1870_v60  ;;  %v1907_v23 = vadd.f32 %v1899_v21, %v1872_v2 }
 0x386   : > { %1910 = vst [vmem:[#allocation2 + $0x18] sm:$0xff] %v1902_v16  ;;  %1911 = vst [vmem:[#allocation2 + $0x10] sm:$0xff] %v1903_v37 }
 0x387   : > { %1912 = vst [vmem:[#allocation2 + $0x8] sm:$0xff] %v1904_v18  ;;  %1913 = vst [vmem:[#allocation2 + $0x20] sm:$0xff] %v1905_v19 }
 0x388   : > { %1914 = vst [vmem:[#allocation2 + $0x28] sm:$0xff] %v1906_v22  ;;  %1915 = vst [vmem:[#allocation2 + $0x38] sm:$0xff] %v1907_v23 }
 0x389 PF: > { %v1916_v8 = vld [vmem:[%s16838_s18] sm:$0xff]  ;;  %v1917_v12 = vld [vmem:[%s16838_s18 + $0x8] sm:$0xff]  ;;  %s15417_s29 = sshll.u32 %s16636_s28, 11  ;;  %v1918_v3 = vld [vmem:[%s16838_s18 + $0x10] sm:$0xff]  ;;  %p14128_p11 = scmp.ne.s32.totalorder %s16636_s28, 2 }
 0x38a   : > { %v2044_v4 = vunpack.c.l.s8.bf16 %v1916_v8  ;;  %v2045_v24 = vunpack.c.l.s8.bf16 %v1917_v12  ;;  %v1919_v25 = vld [vmem:[%s16838_s18 + $0x18] sm:$0xff]  ;;  %v2046_v28 = vunpack.c.l.s8.bf16 %v1918_v3  ;;  %v1920_v29 = vld [vmem:[%s16838_s18 + $0x20] sm:$0xff]  ;;  %v1921_v32 = vld [vmem:[%s16838_s18 + $0x28] sm:$0xff]  ;;  %v2052_v33 = vunpack.c.h.s8.bf16 %v1916_v8  ;;  %s17227_s27 = scalar_lea.vmem [#allocation3], %s15417_s29 }
 0x38b   : > { %v2047_v34 = vunpack.c.l.s8.bf16 %v1919_v25  ;;  %v2048_v35 = vunpack.c.l.s8.bf16 %v1920_v29  ;;  %v2049_v48 = vunpack.c.l.s8.bf16 %v1921_v32  ;;  %v1922_v49 = vld [vmem:[%s16838_s18 + $0x30] sm:$0xff]  ;;  %v1923_v38 = vld [vmem:[%s16838_s18 + $0x38] sm:$0xff]  ;;  %v2053_v39 = vunpack.c.h.s8.bf16 %v1917_v12  ;;  %v17222_v51 = vld [vmem:[%s16838_s18 + $0x40] sm:$0xff] }
 0x38c   : > { %v13870_v40 = vcombine.low %v2044_v4, %v2045_v24  ;;  %v2050_v41 = vunpack.c.l.s8.bf16 %v1922_v49  ;;  %v2051_v42 = vunpack.c.l.s8.bf16 %v1923_v38  ;;  %v13874_v43 = vcombine.high %v2044_v4, %v2045_v24  ;;  %v17225_v27 = vld [vmem:[%s16838_s18 + $0x48] sm:$0xff]  ;;  %v17236_v61 = vld [vmem:[%s16838_s18 + $0x50] sm:$0xff]  ;;  %v17239_v62 = vld [vmem:[%s16838_s18 + $0x58] sm:$0xff] }
 0x38d   : > { %v13871_v44 = vcombine.low %v2046_v28, %v2047_v34  ;;  %v13872_v45 = vcombine.low %v2048_v35, %v2049_v48  ;;  %v13875_v50 = vcombine.high %v2046_v28, %v2047_v34  ;;  %v13876_v26 = vcombine.high %v2048_v35, %v2049_v48  ;;  %v17247_v47 = vld [vmem:[%s16838_s18 + $0x60] sm:$0xff]  ;;  %v1929_v60 = vld [vmem:[%s16838_s18 + $0x68] sm:$0xff]  ;;  %v17251_v5 = vld [vmem:[%s16838_s18 + $0x70] sm:$0xff] }
 0x38e   : > { %3583 = vst [vmem:[%s17227_s27] sm:$0xff] %v13870_v40  ;;  %v13873_v52 = vcombine.low %v2050_v41, %v2051_v42  ;;  %3587 = vst [vmem:[%s17227_s27 + $0x20] sm:$0xff] %v13874_v43  ;;  %v13877_v53 = vcombine.high %v2050_v41, %v2051_v42  ;;  %v13878_v30 = vcombine.low %v2052_v33, %v2053_v39  ;;  %v2054_v54 = vunpack.c.h.s8.bf16 %v1918_v3  ;;  %v1931_v10 = vld [vmem:[%s16838_s18 + $0x78] sm:$0xff]  ;;  %v17269_v8 = vld [vmem:[%s16838_s18 + $0x80] sm:$0xff] }
 0x38f   : > { %3584 = vst [vmem:[%s17227_s27 + $0x8] sm:$0xff] %v13871_v44  ;;  %3585 = vst [vmem:[%s17227_s27 + $0x10] sm:$0xff] %v13872_v45  ;;  %v2055_v56 = vunpack.c.h.s8.bf16 %v1919_v25  ;;  %v2056_v57 = vunpack.c.h.s8.bf16 %v1920_v29  ;;  %v2057_v58 = vunpack.c.h.s8.bf16 %v1921_v32  ;;  %v2058_v59 = vunpack.c.h.s8.bf16 %v1922_v49  ;;  %v17272_v12 = vld [vmem:[%s16838_s18 + $0x88] sm:$0xff]  ;;  %v17284_v34 = vld [vmem:[%s16838_s18 + $0x90] sm:$0xff] }
 0x390   : > { %3588 = vst [vmem:[%s17227_s27 + $0x28] sm:$0xff] %v13875_v50  ;;  %3589 = vst [vmem:[%s17227_s27 + $0x30] sm:$0xff] %v13876_v26  ;;  %v2059_v63 = vunpack.c.h.s8.bf16 %v1923_v38  ;;  %v13882_v0 = vcombine.high %v2052_v33, %v2053_v39  ;;  %v2060_v1 = vunpack.c.l.s8.bf16 %v17222_v51  ;;  %v2061_v46 = vunpack.c.l.s8.bf16 %v17225_v27  ;;  %v17287_v35 = vld [vmem:[%s16838_s18 + $0x98] sm:$0xff]  ;;  %v17295_v40 = vld [vmem:[%s16838_s18 + $0xa0] sm:$0xff] }
 0x391   : > { %3586 = vst [vmem:[%s17227_s27 + $0x18] sm:$0xff] %v13873_v52  ;;  %3590 = vst [vmem:[%s17227_s27 + $0x38] sm:$0xff] %v13877_v53  ;;  %v13879_v7 = vcombine.low %v2054_v54, %v2055_v56  ;;  %v13880_v9 = vcombine.low %v2056_v57, %v2057_v58  ;;  %v13883_v2 = vcombine.high %v2054_v54, %v2055_v56  ;;  %v2062_v14 = vunpack.c.l.s8.bf16 %v17236_v61  ;;  %v1937_v41 = vld [vmem:[%s16838_s18 + $0xa8] sm:$0xff]  ;;  %v17299_v42 = vld [vmem:[%s16838_s18 + $0xb0] sm:$0xff] }
 0x392   : > { %3591 = vst [vmem:[%s17227_s27 + $0x40] sm:$0xff] %v13878_v30  ;;  %v13884_v6 = vcombine.high %v2056_v57, %v2057_v58  ;;  %v13881_v31 = vcombine.low %v2058_v59, %v2059_v63  ;;  %3595 = vst [vmem:[%s17227_s27 + $0x60] sm:$0xff] %v13882_v0  ;;  %v13885_v13 = vcombine.high %v2058_v59, %v2059_v63  ;;  %v2063_v15 = vunpack.c.l.s8.bf16 %v17239_v62  ;;  %v1939_v26 = vld [vmem:[%s16838_s18 + $0xb8] sm:$0xff] }
 0x393   : > { %v13886_v55 = vcombine.low %v2060_v1, %v2061_v46  ;;  %3592 = vst [vmem:[%s17227_s27 + $0x48] sm:$0xff] %v13879_v7  ;;  %3593 = vst [vmem:[%s17227_s27 + $0x50] sm:$0xff] %v13880_v9  ;;  %v2064_v16 = vunpack.c.l.s8.bf16 %v17247_v47  ;;  %v2065_v11 = vunpack.c.l.s8.bf16 %v1929_v60  ;;  %v2066_v17 = vunpack.c.l.s8.bf16 %v17251_v5 }
 0x394   : > { %3596 = vst [vmem:[%s17227_s27 + $0x68] sm:$0xff] %v13883_v2  ;;  %3597 = vst [vmem:[%s17227_s27 + $0x70] sm:$0xff] %v13884_v6  ;;  %v2067_v36 = vunpack.c.l.s8.bf16 %v1931_v10  ;;  %v13890_v37 = vcombine.high %v2060_v1, %v2061_v46  ;;  %v2068_v18 = vunpack.c.h.s8.bf16 %v17222_v51  ;;  %v2069_v19 = vunpack.c.h.s8.bf16 %v17225_v27 }
 0x395   : > { %3594 = vst [vmem:[%s17227_s27 + $0x58] sm:$0xff] %v13881_v31  ;;  %3598 = vst [vmem:[%s17227_s27 + $0x78] sm:$0xff] %v13885_v13  ;;  %v13887_v20 = vcombine.low %v2062_v14, %v2063_v15  ;;  %v13888_v21 = vcombine.low %v2064_v16, %v2065_v11  ;;  %v13891_v22 = vcombine.high %v2062_v14, %v2063_v15  ;;  %v2070_v25 = vunpack.c.h.s8.bf16 %v17236_v61  ;;  %v17335_v14 = vld [vmem:[%s16838_s18 + $0xd8] sm:$0xff] }
 0x396   : > { %3599 = vst [vmem:[%s17227_s27 + $0x80] sm:$0xff] %v13886_v55  ;;  %v13892_v23 = vcombine.high %v2064_v16, %v2065_v11  ;;  %v13889_v3 = vcombine.low %v2066_v17, %v2067_v36  ;;  %3603 = vst [vmem:[%s17227_s27 + $0xa0] sm:$0xff] %v13890_v37  ;;  %v13893_v4 = vcombine.high %v2066_v17, %v2067_v36  ;;  %v2071_v28 = vunpack.c.h.s8.bf16 %v17239_v62  ;;  %v17332_v55 = vld [vmem:[%s16838_s18 + $0xd0] sm:$0xff]  ;;  %v17343_v36 = vld [vmem:[%s16838_s18 + $0xe0] sm:$0xff] }
 0x397   : > { %v13894_v24 = vcombine.low %v2068_v18, %v2069_v19  ;;  %3600 = vst [vmem:[%s17227_s27 + $0x88] sm:$0xff] %v13887_v20  ;;  %3601 = vst [vmem:[%s17227_s27 + $0x90] sm:$0xff] %v13888_v21  ;;  %v2072_v29 = vunpack.c.h.s8.bf16 %v17247_v47  ;;  %v2073_v32 = vunpack.c.h.s8.bf16 %v1929_v60  ;;  %v2074_v33 = vunpack.c.h.s8.bf16 %v17251_v5  ;;  %v17317_v47 = vld [vmem:[%s16838_s18 + $0xc0] sm:$0xff]  ;;  %v17320_v60 = vld [vmem:[%s16838_s18 + $0xc8] sm:$0xff] }
 0x398   : > { %3604 = vst [vmem:[%s17227_s27 + $0xa8] sm:$0xff] %v13891_v22  ;;  %3605 = vst [vmem:[%s17227_s27 + $0xb0] sm:$0xff] %v13892_v23  ;;  %v2075_v48 = vunpack.c.h.s8.bf16 %v1931_v10  ;;  %v13898_v49 = vcombine.high %v2068_v18, %v2069_v19  ;;  %v2076_v38 = vunpack.c.l.s8.bf16 %v17269_v8  ;;  %v2077_v39 = vunpack.c.l.s8.bf16 %v17272_v12  ;;  %v1945_v37 = vld [vmem:[%s16838_s18 + $0xe8] sm:$0xff]  ;;  %v17347_v18 = vld [vmem:[%s16838_s18 + $0xf0] sm:$0xff] }
 0x399   : > { %3602 = vst [vmem:[%s17227_s27 + $0x98] sm:$0xff] %v13889_v3  ;;  %3606 = vst [vmem:[%s17227_s27 + $0xb8] sm:$0xff] %v13893_v4  ;;  %v13895_v43 = vcombine.low %v2070_v25, %v2071_v28  ;;  %v13896_v44 = vcombine.low %v2072_v29, %v2073_v32  ;;  %v13899_v45 = vcombine.high %v2070_v25, %v2071_v28  ;;  %v2078_v53 = vunpack.c.l.s8.bf16 %v17284_v34  ;;  %v1947_v23 = vld [vmem:[%s16838_s18 + $0xf8] sm:$0xff] }
 0x39a   : > { %3607 = vst [vmem:[%s17227_s27 + $0xc0] sm:$0xff] %v13894_v24  ;;  %v13900_v50 = vcombine.high %v2072_v29, %v2073_v32  ;;  %v13897_v51 = vcombine.low %v2074_v33, %v2075_v48  ;;  %3611 = vst [vmem:[%s17227_s27 + $0xe0] sm:$0xff] %v13898_v49  ;;  %v13901_v27 = vcombine.high %v2074_v33, %v2075_v48  ;;  %v2079_v30 = vunpack.c.l.s8.bf16 %v17287_v35 }
 0x39b   : > { %v13902_v52 = vcombine.low %v2076_v38, %v2077_v39  ;;  %3608 = vst [vmem:[%s17227_s27 + $0xc8] sm:$0xff] %v13895_v43  ;;  %3609 = vst [vmem:[%s17227_s27 + $0xd0] sm:$0xff] %v13896_v44  ;;  %v2080_v54 = vunpack.c.l.s8.bf16 %v17295_v40  ;;  %v2081_v56 = vunpack.c.l.s8.bf16 %v1937_v41  ;;  %v2082_v57 = vunpack.c.l.s8.bf16 %v17299_v42 }
 0x39c   : > { %3612 = vst [vmem:[%s17227_s27 + $0xe8] sm:$0xff] %v13899_v45  ;;  %3613 = vst [vmem:[%s17227_s27 + $0xf0] sm:$0xff] %v13900_v50  ;;  %v2083_v58 = vunpack.c.l.s8.bf16 %v1939_v26  ;;  %v13906_v59 = vcombine.high %v2076_v38, %v2077_v39  ;;  %v2084_v61 = vunpack.c.h.s8.bf16 %v17269_v8  ;;  %v2085_v62 = vunpack.c.h.s8.bf16 %v17272_v12 }
 0x39d   : > { %3610 = vst [vmem:[%s17227_s27 + $0xd8] sm:$0xff] %v13897_v51  ;;  %3614 = vst [vmem:[%s17227_s27 + $0xf8] sm:$0xff] %v13901_v27  ;;  %v13903_v63 = vcombine.low %v2078_v53, %v2079_v30  ;;  %v13904_v0 = vcombine.low %v2080_v54, %v2081_v56  ;;  %v13907_v1 = vcombine.high %v2078_v53, %v2079_v30  ;;  %v2086_v2 = vunpack.c.h.s8.bf16 %v17284_v34  ;;  %v17383_v53 = vld [vmem:[%s16838_s18 + $0x118] sm:$0xff] }
 0x39e   : > { %3615 = vst [vmem:[%s17227_s27 + $0x100] sm:$0xff] %v13902_v52  ;;  %v13908_v46 = vcombine.high %v2080_v54, %v2081_v56  ;;  %v13905_v5 = vcombine.low %v2082_v57, %v2083_v58  ;;  %3619 = vst [vmem:[%s17227_s27 + $0x120] sm:$0xff] %v13906_v59  ;;  %v13909_v7 = vcombine.high %v2082_v57, %v2083_v58  ;;  %v2087_v6 = vunpack.c.h.s8.bf16 %v17287_v35  ;;  %v17380_v52 = vld [vmem:[%s16838_s18 + $0x110] sm:$0xff]  ;;  %v17391_v58 = vld [vmem:[%s16838_s18 + $0x120] sm:$0xff] }
 0x39f   : > { %v13910_v9 = vcombine.low %v2084_v61, %v2085_v62  ;;  %3616 = vst [vmem:[%s17227_s27 + $0x108] sm:$0xff] %v13903_v63  ;;  %3617 = vst [vmem:[%s17227_s27 + $0x110] sm:$0xff] %v13904_v0  ;;  %v2088_v10 = vunpack.c.h.s8.bf16 %v17295_v40  ;;  %v2089_v31 = vunpack.c.h.s8.bf16 %v1937_v41  ;;  %v2090_v13 = vunpack.c.h.s8.bf16 %v17299_v42  ;;  %v17365_v40 = vld [vmem:[%s16838_s18 + $0x100] sm:$0xff]  ;;  %v17368_v41 = vld [vmem:[%s16838_s18 + $0x108] sm:$0xff] }
 0x3a0   : > { %3620 = vst [vmem:[%s17227_s27 + $0x128] sm:$0xff] %v13907_v1  ;;  %3621 = vst [vmem:[%s17227_s27 + $0x130] sm:$0xff] %v13908_v46  ;;  %v2091_v15 = vunpack.c.h.s8.bf16 %v1939_v26  ;;  %v13914_v16 = vcombine.high %v2084_v61, %v2085_v62  ;;  %v2092_v11 = vunpack.c.l.s8.bf16 %v17317_v47  ;;  %v2093_v17 = vunpack.c.l.s8.bf16 %v17320_v60  ;;  %v1953_v59 = vld [vmem:[%s16838_s18 + $0x128] sm:$0xff]  ;;  %v17395_v61 = vld [vmem:[%s16838_s18 + $0x130] sm:$0xff] }
 0x3a1   : > { %3618 = vst [vmem:[%s17227_s27 + $0x118] sm:$0xff] %v13905_v5  ;;  %3622 = vst [vmem:[%s17227_s27 + $0x138] sm:$0xff] %v13909_v7  ;;  %v13911_v19 = vcombine.low %v2086_v2, %v2087_v6  ;;  %v13912_v20 = vcombine.low %v2088_v10, %v2089_v31  ;;  %v13915_v21 = vcombine.high %v2086_v2, %v2087_v6  ;;  %v2094_v4 = vunpack.c.l.s8.bf16 %v17332_v55  ;;  %v1955_v46 = vld [vmem:[%s16838_s18 + $0x138] sm:$0xff] }
 0x3a2   : > { %3623 = vst [vmem:[%s17227_s27 + $0x140] sm:$0xff] %v13910_v9  ;;  %v13916_v22 = vcombine.high %v2088_v10, %v2089_v31  ;;  %v13913_v8 = vcombine.low %v2090_v13, %v2091_v15  ;;  %3627 = vst [vmem:[%s17227_s27 + $0x160] sm:$0xff] %v13914_v16  ;;  %v13917_v12 = vcombine.high %v2090_v13, %v2091_v15  ;;  %v2095_v24 = vunpack.c.l.s8.bf16 %v17335_v14 }
 0x3a3   : > { %v13918_v3 = vcombine.low %v2092_v11, %v2093_v17  ;;  %3624 = vst [vmem:[%s17227_s27 + $0x148] sm:$0xff] %v13911_v19  ;;  %3625 = vst [vmem:[%s17227_s27 + $0x150] sm:$0xff] %v13912_v20  ;;  %v2096_v25 = vunpack.c.l.s8.bf16 %v17343_v36  ;;  %v2097_v28 = vunpack.c.l.s8.bf16 %v1945_v37  ;;  %v2098_v29 = vunpack.c.l.s8.bf16 %v17347_v18 }
 0x3a4   : > { %3628 = vst [vmem:[%s17227_s27 + $0x168] sm:$0xff] %v13915_v21  ;;  %3629 = vst [vmem:[%s17227_s27 + $0x170] sm:$0xff] %v13916_v22  ;;  %v2099_v32 = vunpack.c.l.s8.bf16 %v1947_v23  ;;  %v13922_v33 = vcombine.high %v2092_v11, %v2093_v17  ;;  %v2100_v34 = vunpack.c.h.s8.bf16 %v17317_v47  ;;  %v2101_v35 = vunpack.c.h.s8.bf16 %v17320_v60 }
 0x3a5   : > { %3626 = vst [vmem:[%s17227_s27 + $0x158] sm:$0xff] %v13913_v8  ;;  %3630 = vst [vmem:[%s17227_s27 + $0x178] sm:$0xff] %v13917_v12  ;;  %v13919_v48 = vcombine.low %v2094_v4, %v2095_v24  ;;  %v13920_v49 = vcombine.low %v2096_v25, %v2097_v28  ;;  %v13923_v38 = vcombine.high %v2094_v4, %v2095_v24  ;;  %v2102_v45 = vunpack.c.h.s8.bf16 %v17332_v55  ;;  %v17431_v4 = vld [vmem:[%s16838_s18 + $0x158] sm:$0xff] }
 0x3a6   : > { %3631 = vst [vmem:[%s17227_s27 + $0x180] sm:$0xff] %v13918_v3  ;;  %v13924_v39 = vcombine.high %v2096_v25, %v2097_v28  ;;  %v13921_v42 = vcombine.low %v2098_v29, %v2099_v32  ;;  %3635 = vst [vmem:[%s17227_s27 + $0x1a0] sm:$0xff] %v13922_v33  ;;  %v13925_v43 = vcombine.high %v2098_v29, %v2099_v32  ;;  %v2103_v50 = vunpack.c.h.s8.bf16 %v17335_v14  ;;  %v17428_v3 = vld [vmem:[%s16838_s18 + $0x150] sm:$0xff]  ;;  %v17439_v32 = vld [vmem:[%s16838_s18 + $0x160] sm:$0xff] }
 0x3a7   : > { %v13926_v44 = vcombine.low %v2100_v34, %v2101_v35  ;;  %3632 = vst [vmem:[%s17227_s27 + $0x188] sm:$0xff] %v13919_v48  ;;  %3633 = vst [vmem:[%s17227_s27 + $0x190] sm:$0xff] %v13920_v49  ;;  %v2104_v26 = vunpack.c.h.s8.bf16 %v17343_v36  ;;  %v2105_v51 = vunpack.c.h.s8.bf16 %v1945_v37  ;;  %v2106_v27 = vunpack.c.h.s8.bf16 %v17347_v18  ;;  %v17413_v36 = vld [vmem:[%s16838_s18 + $0x140] sm:$0xff]  ;;  %v17416_v37 = vld [vmem:[%s16838_s18 + $0x148] sm:$0xff] }
 0x3a8   : > { %3636 = vst [vmem:[%s17227_s27 + $0x1a8] sm:$0xff] %v13923_v38  ;;  %3637 = vst [vmem:[%s17227_s27 + $0x1b0] sm:$0xff] %v13924_v39  ;;  %v2107_v30 = vunpack.c.h.s8.bf16 %v1947_v23  ;;  %v13930_v54 = vcombine.high %v2100_v34, %v2101_v35  ;;  %v2108_v56 = vunpack.c.l.s8.bf16 %v17365_v40  ;;  %v2109_v57 = vunpack.c.l.s8.bf16 %v17368_v41  ;;  %v1961_v33 = vld [vmem:[%s16838_s18 + $0x168] sm:$0xff]  ;;  %v17443_v34 = vld [vmem:[%s16838_s18 + $0x170] sm:$0xff] }
 0x3a9   : > { %3634 = vst [vmem:[%s17227_s27 + $0x198] sm:$0xff] %v13921_v42  ;;  %3638 = vst [vmem:[%s17227_s27 + $0x1b8] sm:$0xff] %v13925_v43  ;;  %v13927_v62 = vcombine.low %v2102_v45, %v2103_v50  ;;  %v13928_v63 = vcombine.low %v2104_v26, %v2105_v51  ;;  %v13931_v0 = vcombine.high %v2102_v45, %v2103_v50  ;;  %v2110_v7 = vunpack.c.l.s8.bf16 %v17380_v52  ;;  %v1963_v39 = vld [vmem:[%s16838_s18 + $0x178] sm:$0xff] }
 0x3aa   : > { %3639 = vst [vmem:[%s17227_s27 + $0x1c0] sm:$0xff] %v13926_v44  ;;  %v13932_v1 = vcombine.high %v2104_v26, %v2105_v51  ;;  %v13929_v47 = vcombine.low %v2106_v27, %v2107_v30  ;;  %3643 = vst [vmem:[%s17227_s27 + $0x1e0] sm:$0xff] %v13930_v54  ;;  %v13933_v60 = vcombine.high %v2106_v27, %v2107_v30  ;;  %v2111_v9 = vunpack.c.l.s8.bf16 %v17383_v53 }
 0x3ab   : > { %v13934_v5 = vcombine.low %v2108_v56, %v2109_v57  ;;  %3640 = vst [vmem:[%s17227_s27 + $0x1c8] sm:$0xff] %v13927_v62  ;;  %3641 = vst [vmem:[%s17227_s27 + $0x1d0] sm:$0xff] %v13928_v63  ;;  %v2112_v2 = vunpack.c.l.s8.bf16 %v17391_v58  ;;  %v2113_v6 = vunpack.c.l.s8.bf16 %v1953_v59  ;;  %v2114_v10 = vunpack.c.l.s8.bf16 %v17395_v61 }
 0x3ac   : > { %3644 = vst [vmem:[%s17227_s27 + $0x1e8] sm:$0xff] %v13931_v0  ;;  %3645 = vst [vmem:[%s17227_s27 + $0x1f0] sm:$0xff] %v13932_v1  ;;  %v2115_v31 = vunpack.c.l.s8.bf16 %v1955_v46  ;;  %v13938_v13 = vcombine.high %v2108_v56, %v2109_v57  ;;  %v2116_v55 = vunpack.c.h.s8.bf16 %v17365_v40  ;;  %v2117_v14 = vunpack.c.h.s8.bf16 %v17368_v41 }
 0x3ad   : > { %3642 = vst [vmem:[%s17227_s27 + $0x1d8] sm:$0xff] %v13929_v47  ;;  %3646 = vst [vmem:[%s17227_s27 + $0x1f8] sm:$0xff] %v13933_v60  ;;  %v13935_v15 = vcombine.low %v2110_v7, %v2111_v9  ;;  %v13936_v16 = vcombine.low %v2112_v2, %v2113_v6  ;;  %v13939_v11 = vcombine.high %v2110_v7, %v2111_v9  ;;  %v2118_v21 = vunpack.c.h.s8.bf16 %v17380_v52  ;;  %v17479_v7 = vld [vmem:[%s16838_s18 + $0x198] sm:$0xff] }
 0x3ae   : > { %3647 = vst [vmem:[%s17227_s27 + $0x200] sm:$0xff] %v13934_v5  ;;  %v13940_v17 = vcombine.high %v2112_v2, %v2113_v6  ;;  %v13937_v18 = vcombine.low %v2114_v10, %v2115_v31  ;;  %3651 = vst [vmem:[%s17227_s27 + $0x220] sm:$0xff] %v13938_v13  ;;  %v13941_v19 = vcombine.high %v2114_v10, %v2115_v31  ;;  %v2119_v22 = vunpack.c.h.s8.bf16 %v17383_v53  ;;  %v17476_v5 = vld [vmem:[%s16838_s18 + $0x190] sm:$0xff]  ;;  %v17487_v31 = vld [vmem:[%s16838_s18 + $0x1a0] sm:$0xff] }
 0x3af   : > { %v13942_v20 = vcombine.low %v2116_v55, %v2117_v14  ;;  %3648 = vst [vmem:[%s17227_s27 + $0x208] sm:$0xff] %v13935_v15  ;;  %3649 = vst [vmem:[%s17227_s27 + $0x210] sm:$0xff] %v13936_v16  ;;  %v2120_v23 = vunpack.c.h.s8.bf16 %v17391_v58  ;;  %v2121_v8 = vunpack.c.h.s8.bf16 %v1953_v59  ;;  %v2122_v12 = vunpack.c.h.s8.bf16 %v17395_v61  ;;  %v17461_v58 = vld [vmem:[%s16838_s18 + $0x180] sm:$0xff]  ;;  %v17464_v59 = vld [vmem:[%s16838_s18 + $0x188] sm:$0xff] }
 0x3b0   : > { %3652 = vst [vmem:[%s17227_s27 + $0x228] sm:$0xff] %v13939_v11  ;;  %3653 = vst [vmem:[%s17227_s27 + $0x230] sm:$0xff] %v13940_v17  ;;  %v2123_v24 = vunpack.c.h.s8.bf16 %v1955_v46  ;;  %v13946_v25 = vcombine.high %v2116_v55, %v2117_v14  ;;  %v2124_v28 = vunpack.c.l.s8.bf16 %v17413_v36  ;;  %v2125_v29 = vunpack.c.l.s8.bf16 %v17416_v37  ;;  %v1969_v13 = vld [vmem:[%s16838_s18 + $0x1a8] sm:$0xff]  ;;  %v17491_v55 = vld [vmem:[%s16838_s18 + $0x1b0] sm:$0xff] }
 0x3b1   : > { %3650 = vst [vmem:[%s17227_s27 + $0x218] sm:$0xff] %v13937_v18  ;;  %3654 = vst [vmem:[%s17227_s27 + $0x238] sm:$0xff] %v13941_v19  ;;  %v13943_v35 = vcombine.low %v2118_v21, %v2119_v22  ;;  %v13944_v48 = vcombine.low %v2120_v23, %v2121_v8  ;;  %v13947_v49 = vcombine.high %v2118_v21, %v2119_v22  ;;  %v2126_v43 = vunpack.c.l.s8.bf16 %v17428_v3  ;;  %v1971_v17 = vld [vmem:[%s16838_s18 + $0x1b8] sm:$0xff] }
 0x3b2   : > { %3655 = vst [vmem:[%s17227_s27 + $0x240] sm:$0xff] %v13942_v20  ;;  %v13948_v38 = vcombine.high %v2120_v23, %v2121_v8  ;;  %v13945_v40 = vcombine.low %v2122_v12, %v2123_v24  ;;  %3659 = vst [vmem:[%s17227_s27 + $0x260] sm:$0xff] %v13946_v25  ;;  %v13949_v41 = vcombine.high %v2122_v12, %v2123_v24  ;;  %v2127_v44 = vunpack.c.l.s8.bf16 %v17431_v4 }
 0x3b3   : > { %v13950_v42 = vcombine.low %v2124_v28, %v2125_v29  ;;  %3656 = vst [vmem:[%s17227_s27 + $0x248] sm:$0xff] %v13943_v35  ;;  %3657 = vst [vmem:[%s17227_s27 + $0x250] sm:$0xff] %v13944_v48  ;;  %v2128_v45 = vunpack.c.l.s8.bf16 %v17439_v32  ;;  %v2129_v50 = vunpack.c.l.s8.bf16 %v1961_v33  ;;  %v2130_v26 = vunpack.c.l.s8.bf16 %v17443_v34 }
 0x3b4   : > { %3660 = vst [vmem:[%s17227_s27 + $0x268] sm:$0xff] %v13947_v49  ;;  %3661 = vst [vmem:[%s17227_s27 + $0x270] sm:$0xff] %v13948_v38  ;;  %v2131_v51 = vunpack.c.l.s8.bf16 %v1963_v39  ;;  %v13954_v27 = vcombine.high %v2124_v28, %v2125_v29  ;;  %v2132_v52 = vunpack.c.h.s8.bf16 %v17413_v36  ;;  %v2133_v53 = vunpack.c.h.s8.bf16 %v17416_v37 }
 0x3b5   : > { %3658 = vst [vmem:[%s17227_s27 + $0x258] sm:$0xff] %v13945_v40  ;;  %3662 = vst [vmem:[%s17227_s27 + $0x278] sm:$0xff] %v13949_v41  ;;  %v13951_v30 = vcombine.low %v2126_v43, %v2127_v44  ;;  %v13952_v54 = vcombine.low %v2128_v45, %v2129_v50  ;;  %v13955_v56 = vcombine.high %v2126_v43, %v2127_v44  ;;  %v2134_v0 = vunpack.c.h.s8.bf16 %v17428_v3  ;;  %v17527_v43 = vld [vmem:[%s16838_s18 + $0x1d8] sm:$0xff] }
 0x3b6   : > { %3663 = vst [vmem:[%s17227_s27 + $0x280] sm:$0xff] %v13950_v42  ;;  %v13956_v57 = vcombine.high %v2128_v45, %v2129_v50  ;;  %v13953_v61 = vcombine.low %v2130_v26, %v2131_v51  ;;  %3667 = vst [vmem:[%s17227_s27 + $0x2a0] sm:$0xff] %v13954_v27  ;;  %v13957_v62 = vcombine.high %v2130_v26, %v2131_v51  ;;  %v2135_v1 = vunpack.c.h.s8.bf16 %v17431_v4  ;;  %v17524_v42 = vld [vmem:[%s16838_s18 + $0x1d0] sm:$0xff]  ;;  %v17535_v51 = vld [vmem:[%s16838_s18 + $0x1e0] sm:$0xff] }
 0x3b7   : > { %v13958_v63 = vcombine.low %v2132_v52, %v2133_v53  ;;  %3664 = vst [vmem:[%s17227_s27 + $0x288] sm:$0xff] %v13951_v30  ;;  %3665 = vst [vmem:[%s17227_s27 + $0x290] sm:$0xff] %v13952_v54  ;;  %v2136_v46 = vunpack.c.h.s8.bf16 %v17439_v32  ;;  %v2137_v47 = vunpack.c.h.s8.bf16 %v1961_v33  ;;  %v2138_v60 = vunpack.c.h.s8.bf16 %v17443_v34  ;;  %v17509_v32 = vld [vmem:[%s16838_s18 + $0x1c0] sm:$0xff]  ;;  %v17512_v33 = vld [vmem:[%s16838_s18 + $0x1c8] sm:$0xff] }
 0x3b8   : > { %3668 = vst [vmem:[%s17227_s27 + $0x2a8] sm:$0xff] %v13955_v56  ;;  %3669 = vst [vmem:[%s17227_s27 + $0x2b0] sm:$0xff] %v13956_v57  ;;  %v2139_v9 = vunpack.c.h.s8.bf16 %v1963_v39  ;;  %v13962_v2 = vcombine.high %v2132_v52, %v2133_v53  ;;  %v2140_v6 = vunpack.c.l.s8.bf16 %v17461_v58  ;;  %v2141_v10 = vunpack.c.l.s8.bf16 %v17464_v59  ;;  %v1977_v27 = vld [vmem:[%s16838_s18 + $0x1e8] sm:$0xff]  ;;  %v17539_v52 = vld [vmem:[%s16838_s18 + $0x1f0] sm:$0xff] }
 0x3b9   : > { %3666 = vst [vmem:[%s17227_s27 + $0x298] sm:$0xff] %v13953_v61  ;;  %3670 = vst [vmem:[%s17227_s27 + $0x2b8] sm:$0xff] %v13957_v62  ;;  %v13959_v14 = vcombine.low %v2134_v0, %v2135_v1  ;;  %v13960_v15 = vcombine.low %v2136_v46, %v2137_v47  ;;  %v13963_v16 = vcombine.high %v2134_v0, %v2135_v1  ;;  %v2142_v19 = vunpack.c.l.s8.bf16 %v17476_v5  ;;  %v1979_v57 = vld [vmem:[%s16838_s18 + $0x1f8] sm:$0xff] }
 0x3ba   : > { %3671 = vst [vmem:[%s17227_s27 + $0x2c0] sm:$0xff] %v13958_v63  ;;  %v13964_v11 = vcombine.high %v2136_v46, %v2137_v47  ;;  %v13961_v36 = vcombine.low %v2138_v60, %v2139_v9  ;;  %3675 = vst [vmem:[%s17227_s27 + $0x2e0] sm:$0xff] %v13962_v2  ;;  %v13965_v37 = vcombine.high %v2138_v60, %v2139_v9  ;;  %v2143_v20 = vunpack.c.l.s8.bf16 %v17479_v7 }
 0x3bb   : > { %v13966_v18 = vcombine.low %v2140_v6, %v2141_v10  ;;  %3672 = vst [vmem:[%s17227_s27 + $0x2c8] sm:$0xff] %v13959_v14  ;;  %3673 = vst [vmem:[%s17227_s27 + $0x2d0] sm:$0xff] %v13960_v15  ;;  %v2144_v21 = vunpack.c.l.s8.bf16 %v17487_v31  ;;  %v2145_v22 = vunpack.c.l.s8.bf16 %v1969_v13  ;;  %v2146_v23 = vunpack.c.l.s8.bf16 %v17491_v55 }
 0x3bc   : > { %3676 = vst [vmem:[%s17227_s27 + $0x2e8] sm:$0xff] %v13963_v16  ;;  %3677 = vst [vmem:[%s17227_s27 + $0x2f0] sm:$0xff] %v13964_v11  ;;  %v2147_v8 = vunpack.c.l.s8.bf16 %v1971_v17  ;;  %v13970_v12 = vcombine.high %v2140_v6, %v2141_v10  ;;  %v2148_v3 = vunpack.c.h.s8.bf16 %v17461_v58  ;;  %v2149_v4 = vunpack.c.h.s8.bf16 %v17464_v59 }
 0x3bd   : > { %3674 = vst [vmem:[%s17227_s27 + $0x2d8] sm:$0xff] %v13961_v36  ;;  %3678 = vst [vmem:[%s17227_s27 + $0x2f8] sm:$0xff] %v13965_v37  ;;  %v13967_v24 = vcombine.low %v2142_v19, %v2143_v20  ;;  %v13968_v25 = vcombine.low %v2144_v21, %v2145_v22  ;;  %v13971_v28 = vcombine.high %v2142_v19, %v2143_v20  ;;  %v2150_v49 = vunpack.c.h.s8.bf16 %v17476_v5  ;;  %v17575_v19 = vld [vmem:[%s16838_s18 + $0x218] sm:$0xff] }
 0x3be   : > { %3679 = vst [vmem:[%s17227_s27 + $0x300] sm:$0xff] %v13966_v18  ;;  %v13972_v29 = vcombine.high %v2144_v21, %v2145_v22  ;;  %v13969_v34 = vcombine.low %v2146_v23, %v2147_v8  ;;  %3683 = vst [vmem:[%s17227_s27 + $0x320] sm:$0xff] %v13970_v12  ;;  %v13973_v35 = vcombine.high %v2146_v23, %v2147_v8  ;;  %v2151_v38 = vunpack.c.h.s8.bf16 %v17479_v7  ;;  %v17572_v18 = vld [vmem:[%s16838_s18 + $0x210] sm:$0xff]  ;;  %v17583_v8 = vld [vmem:[%s16838_s18 + $0x220] sm:$0xff] }
 0x3bf   : > { %v13974_v48 = vcombine.low %v2148_v3, %v2149_v4  ;;  %3680 = vst [vmem:[%s17227_s27 + $0x308] sm:$0xff] %v13967_v24  ;;  %3681 = vst [vmem:[%s17227_s27 + $0x310] sm:$0xff] %v13968_v25  ;;  %v2152_v39 = vunpack.c.h.s8.bf16 %v17487_v31  ;;  %v2153_v40 = vunpack.c.h.s8.bf16 %v1969_v13  ;;  %v2154_v41 = vunpack.c.h.s8.bf16 %v17491_v55  ;;  %v17557_v31 = vld [vmem:[%s16838_s18 + $0x200] sm:$0xff]  ;;  %v17560_v13 = vld [vmem:[%s16838_s18 + $0x208] sm:$0xff] }
 0x3c0   : > { %3684 = vst [vmem:[%s17227_s27 + $0x328] sm:$0xff] %v13971_v28  ;;  %3685 = vst [vmem:[%s17227_s27 + $0x330] sm:$0xff] %v13972_v29  ;;  %v2155_v44 = vunpack.c.h.s8.bf16 %v1971_v17  ;;  %v13978_v45 = vcombine.high %v2148_v3, %v2149_v4  ;;  %v2156_v50 = vunpack.c.l.s8.bf16 %v17509_v32  ;;  %v2157_v26 = vunpack.c.l.s8.bf16 %v17512_v33  ;;  %v1985_v12 = vld [vmem:[%s16838_s18 + $0x228] sm:$0xff]  ;;  %v17587_v3 = vld [vmem:[%s16838_s18 + $0x230] sm:$0xff] }
 0x3c1   : > { %3682 = vst [vmem:[%s17227_s27 + $0x318] sm:$0xff] %v13969_v34  ;;  %3686 = vst [vmem:[%s17227_s27 + $0x338] sm:$0xff] %v13973_v35  ;;  %v13975_v53 = vcombine.low %v2150_v49, %v2151_v38  ;;  %v13976_v30 = vcombine.low %v2152_v39, %v2153_v40  ;;  %v13979_v54 = vcombine.high %v2150_v49, %v2151_v38  ;;  %v2158_v62 = vunpack.c.l.s8.bf16 %v17524_v42  ;;  %v1987_v29 = vld [vmem:[%s16838_s18 + $0x238] sm:$0xff] }
 0x3c2   : > { %3687 = vst [vmem:[%s17227_s27 + $0x340] sm:$0xff] %v13974_v48  ;;  %v13980_v56 = vcombine.high %v2152_v39, %v2153_v40  ;;  %v13977_v58 = vcombine.low %v2154_v41, %v2155_v44  ;;  %3691 = vst [vmem:[%s17227_s27 + $0x360] sm:$0xff] %v13978_v45  ;;  %v13981_v59 = vcombine.high %v2154_v41, %v2155_v44  ;;  %v2159_v63 = vunpack.c.l.s8.bf16 %v17527_v43 }
 0x3c3   : > { %v13982_v61 = vcombine.low %v2156_v50, %v2157_v26  ;;  %3688 = vst [vmem:[%s17227_s27 + $0x348] sm:$0xff] %v13975_v53  ;;  %3689 = vst [vmem:[%s17227_s27 + $0x350] sm:$0xff] %v13976_v30  ;;  %v2160_v0 = vunpack.c.l.s8.bf16 %v17535_v51  ;;  %v2161_v1 = vunpack.c.l.s8.bf16 %v1977_v27  ;;  %v2162_v46 = vunpack.c.l.s8.bf16 %v17539_v52 }
 0x3c4   : > { %3692 = vst [vmem:[%s17227_s27 + $0x368] sm:$0xff] %v13979_v54  ;;  %3693 = vst [vmem:[%s17227_s27 + $0x370] sm:$0xff] %v13980_v56  ;;  %v2163_v47 = vunpack.c.l.s8.bf16 %v1979_v57  ;;  %v13986_v60 = vcombine.high %v2156_v50, %v2157_v26  ;;  %v2164_v5 = vunpack.c.h.s8.bf16 %v17509_v32  ;;  %v2165_v7 = vunpack.c.h.s8.bf16 %v17512_v33 }
 0x3c5   : > { %3690 = vst [vmem:[%s17227_s27 + $0x358] sm:$0xff] %v13977_v58  ;;  %3694 = vst [vmem:[%s17227_s27 + $0x378] sm:$0xff] %v13981_v59  ;;  %v13983_v9 = vcombine.low %v2158_v62, %v2159_v63  ;;  %v13984_v2 = vcombine.low %v2160_v0, %v2161_v1  ;;  %v13987_v6 = vcombine.high %v2158_v62, %v2159_v63  ;;  %v2166_v16 = vunpack.c.h.s8.bf16 %v17524_v42  ;;  %v17623_v62 = vld [vmem:[%s16838_s18 + $0x258] sm:$0xff] }
 0x3c6   : > { %3695 = vst [vmem:[%s17227_s27 + $0x380] sm:$0xff] %v13982_v61  ;;  %v13988_v10 = vcombine.high %v2160_v0, %v2161_v1  ;;  %v13985_v55 = vcombine.low %v2162_v46, %v2163_v47  ;;  %3699 = vst [vmem:[%s17227_s27 + $0x3a0] sm:$0xff] %v13986_v60  ;;  %v13989_v14 = vcombine.high %v2162_v46, %v2163_v47  ;;  %v2167_v11 = vunpack.c.h.s8.bf16 %v17527_v43  ;;  %v17620_v61 = vld [vmem:[%s16838_s18 + $0x250] sm:$0xff]  ;;  %v17631_v47 = vld [vmem:[%s16838_s18 + $0x260] sm:$0xff] }
 0x3c7   : > { %v13990_v15 = vcombine.low %v2164_v5, %v2165_v7  ;;  %3696 = vst [vmem:[%s17227_s27 + $0x388] sm:$0xff] %v13983_v9  ;;  %3697 = vst [vmem:[%s17227_s27 + $0x390] sm:$0xff] %v13984_v2  ;;  %v2168_v17 = vunpack.c.h.s8.bf16 %v17535_v51  ;;  %v2169_v36 = vunpack.c.h.s8.bf16 %v1977_v27  ;;  %v2170_v37 = vunpack.c.h.s8.bf16 %v17539_v52  ;;  %v17605_v51 = vld [vmem:[%s16838_s18 + $0x240] sm:$0xff]  ;;  %v17608_v27 = vld [vmem:[%s16838_s18 + $0x248] sm:$0xff] }
 0x3c8   : > { %3700 = vst [vmem:[%s17227_s27 + $0x3a8] sm:$0xff] %v13987_v6  ;;  %3701 = vst [vmem:[%s17227_s27 + $0x3b0] sm:$0xff] %v13988_v10  ;;  %v2171_v20 = vunpack.c.h.s8.bf16 %v1979_v57  ;;  %v13994_v21 = vcombine.high %v2164_v5, %v2165_v7  ;;  %v2172_v22 = vunpack.c.l.s8.bf16 %v17557_v31  ;;  %v2173_v23 = vunpack.c.l.s8.bf16 %v17560_v13  ;;  %v1993_v60 = vld [vmem:[%s16838_s18 + $0x268] sm:$0xff]  ;;  %v17635_v5 = vld [vmem:[%s16838_s18 + $0x270] sm:$0xff] }
 0x3c9   : > { %3698 = vst [vmem:[%s17227_s27 + $0x398] sm:$0xff] %v13985_v55  ;;  %3702 = vst [vmem:[%s17227_s27 + $0x3b8] sm:$0xff] %v13989_v14  ;;  %v13991_v4 = vcombine.low %v2166_v16, %v2167_v11  ;;  %v13992_v24 = vcombine.low %v2168_v17, %v2169_v36  ;;  %v13995_v25 = vcombine.high %v2166_v16, %v2167_v11  ;;  %v2174_v35 = vunpack.c.l.s8.bf16 %v17572_v18  ;;  %v1995_v10 = vld [vmem:[%s16838_s18 + $0x278] sm:$0xff] }
 0x3ca   : > { %3703 = vst [vmem:[%s17227_s27 + $0x3c0] sm:$0xff] %v13990_v15  ;;  %v13996_v28 = vcombine.high %v2168_v17, %v2169_v36  ;;  %v13993_v32 = vcombine.low %v2170_v37, %v2171_v20  ;;  %3707 = vst [vmem:[%s17227_s27 + $0x3e0] sm:$0xff] %v13994_v21  ;;  %v13997_v33 = vcombine.high %v2170_v37, %v2171_v20  ;;  %v2175_v48 = vunpack.c.l.s8.bf16 %v17575_v19 }
 0x3cb   : > { %v13998_v34 = vcombine.low %v2172_v22, %v2173_v23  ;;  %3704 = vst [vmem:[%s17227_s27 + $0x3c8] sm:$0xff] %v13991_v4  ;;  %3705 = vst [vmem:[%s17227_s27 + $0x3d0] sm:$0xff] %v13992_v24  ;;  %v2176_v49 = vunpack.c.l.s8.bf16 %v17583_v8  ;;  %v2177_v38 = vunpack.c.l.s8.bf16 %v1985_v12  ;;  %v2178_v39 = vunpack.c.l.s8.bf16 %v17587_v3 }
 0x3cc   : > { %3708 = vst [vmem:[%s17227_s27 + $0x3e8] sm:$0xff] %v13995_v25  ;;  %3709 = vst [vmem:[%s17227_s27 + $0x3f0] sm:$0xff] %v13996_v28  ;;  %v2179_v40 = vunpack.c.l.s8.bf16 %v1987_v29  ;;  %v14002_v41 = vcombine.high %v2172_v22, %v2173_v23  ;;  %v2180_v42 = vunpack.c.h.s8.bf16 %v17557_v31  ;;  %v2181_v43 = vunpack.c.h.s8.bf16 %v17560_v13 }
 0x3cd   : > { %3706 = vst [vmem:[%s17227_s27 + $0x3d8] sm:$0xff] %v13993_v32  ;;  %3710 = vst [vmem:[%s17227_s27 + $0x3f8] sm:$0xff] %v13997_v33  ;;  %v13999_v44 = vcombine.low %v2174_v35, %v2175_v48  ;;  %v14000_v45 = vcombine.low %v2176_v49, %v2177_v38  ;;  %v14003_v50 = vcombine.high %v2174_v35, %v2175_v48  ;;  %v2182_v54 = vunpack.c.h.s8.bf16 %v17572_v18  ;;  %v17671_v35 = vld [vmem:[%s16838_s18 + $0x298] sm:$0xff] }
 0x3ce   : > { %3711 = vst [vmem:[%s17227_s27 + $0x400] sm:$0xff] %v13998_v34  ;;  %v14004_v26 = vcombine.high %v2176_v49, %v2177_v38  ;;  %v14001_v52 = vcombine.low %v2178_v39, %v2179_v40  ;;  %3715 = vst [vmem:[%s17227_s27 + $0x420] sm:$0xff] %v14002_v41  ;;  %v14005_v53 = vcombine.high %v2178_v39, %v2179_v40  ;;  %v2183_v56 = vunpack.c.h.s8.bf16 %v17575_v19  ;;  %v17668_v34 = vld [vmem:[%s16838_s18 + $0x290] sm:$0xff]  ;;  %v17679_v40 = vld [vmem:[%s16838_s18 + $0x2a0] sm:$0xff] }
 0x3cf   : > { %v14006_v30 = vcombine.low %v2180_v42, %v2181_v43  ;;  %3712 = vst [vmem:[%s17227_s27 + $0x408] sm:$0xff] %v13999_v44  ;;  %3713 = vst [vmem:[%s17227_s27 + $0x410] sm:$0xff] %v14000_v45  ;;  %v2184_v57 = vunpack.c.h.s8.bf16 %v17583_v8  ;;  %v2185_v58 = vunpack.c.h.s8.bf16 %v1985_v12  ;;  %v2186_v59 = vunpack.c.h.s8.bf16 %v17587_v3  ;;  %v17653_v8 = vld [vmem:[%s16838_s18 + $0x280] sm:$0xff]  ;;  %v17656_v12 = vld [vmem:[%s16838_s18 + $0x288] sm:$0xff] }
 0x3d0   : > { %3716 = vst [vmem:[%s17227_s27 + $0x428] sm:$0xff] %v14003_v50  ;;  %3717 = vst [vmem:[%s17227_s27 + $0x430] sm:$0xff] %v14004_v26  ;;  %v2187_v63 = vunpack.c.h.s8.bf16 %v1987_v29  ;;  %v14010_v0 = vcombine.high %v2180_v42, %v2181_v43  ;;  %v2188_v1 = vunpack.c.l.s8.bf16 %v17605_v51  ;;  %v2189_v46 = vunpack.c.l.s8.bf16 %v17608_v27  ;;  %v2001_v41 = vld [vmem:[%s16838_s18 + $0x2a8] sm:$0xff]  ;;  %v17683_v42 = vld [vmem:[%s16838_s18 + $0x2b0] sm:$0xff] }
 0x3d1   : > { %3714 = vst [vmem:[%s17227_s27 + $0x418] sm:$0xff] %v14001_v52  ;;  %3718 = vst [vmem:[%s17227_s27 + $0x438] sm:$0xff] %v14005_v53  ;;  %v14007_v7 = vcombine.low %v2182_v54, %v2183_v56  ;;  %v14008_v9 = vcombine.low %v2184_v57, %v2185_v58  ;;  %v14011_v2 = vcombine.high %v2182_v54, %v2183_v56  ;;  %v2190_v14 = vunpack.c.l.s8.bf16 %v17620_v61  ;;  %v2003_v26 = vld [vmem:[%s16838_s18 + $0x2b8] sm:$0xff] }
 0x3d2   : > { %3719 = vst [vmem:[%s17227_s27 + $0x440] sm:$0xff] %v14006_v30  ;;  %v14012_v6 = vcombine.high %v2184_v57, %v2185_v58  ;;  %v14009_v31 = vcombine.low %v2186_v59, %v2187_v63  ;;  %3723 = vst [vmem:[%s17227_s27 + $0x460] sm:$0xff] %v14010_v0  ;;  %v14013_v13 = vcombine.high %v2186_v59, %v2187_v63  ;;  %v2191_v15 = vunpack.c.l.s8.bf16 %v17623_v62 }
 0x3d3   : > { %v14014_v55 = vcombine.low %v2188_v1, %v2189_v46  ;;  %3720 = vst [vmem:[%s17227_s27 + $0x448] sm:$0xff] %v14007_v7  ;;  %3721 = vst [vmem:[%s17227_s27 + $0x450] sm:$0xff] %v14008_v9  ;;  %v2192_v16 = vunpack.c.l.s8.bf16 %v17631_v47  ;;  %v2193_v11 = vunpack.c.l.s8.bf16 %v1993_v60  ;;  %v2194_v17 = vunpack.c.l.s8.bf16 %v17635_v5 }
 0x3d4   : > { %3724 = vst [vmem:[%s17227_s27 + $0x468] sm:$0xff] %v14011_v2  ;;  %3725 = vst [vmem:[%s17227_s27 + $0x470] sm:$0xff] %v14012_v6  ;;  %v2195_v36 = vunpack.c.l.s8.bf16 %v1995_v10  ;;  %v14018_v37 = vcombine.high %v2188_v1, %v2189_v46  ;;  %v2196_v18 = vunpack.c.h.s8.bf16 %v17605_v51  ;;  %v2197_v19 = vunpack.c.h.s8.bf16 %v17608_v27 }
 0x3d5   : > { %3722 = vst [vmem:[%s17227_s27 + $0x458] sm:$0xff] %v14009_v31  ;;  %3726 = vst [vmem:[%s17227_s27 + $0x478] sm:$0xff] %v14013_v13  ;;  %v14015_v20 = vcombine.low %v2190_v14, %v2191_v15  ;;  %v14016_v21 = vcombine.low %v2192_v16, %v2193_v11  ;;  %v14019_v22 = vcombine.high %v2190_v14, %v2191_v15  ;;  %v2198_v25 = vunpack.c.h.s8.bf16 %v17620_v61  ;;  %v17719_v14 = vld [vmem:[%s16838_s18 + $0x2d8] sm:$0xff] }
 0x3d6   : > { %3727 = vst [vmem:[%s17227_s27 + $0x480] sm:$0xff] %v14014_v55  ;;  %v14020_v23 = vcombine.high %v2192_v16, %v2193_v11  ;;  %v14017_v3 = vcombine.low %v2194_v17, %v2195_v36  ;;  %3731 = vst [vmem:[%s17227_s27 + $0x4a0] sm:$0xff] %v14018_v37  ;;  %v14021_v4 = vcombine.high %v2194_v17, %v2195_v36  ;;  %v2199_v28 = vunpack.c.h.s8.bf16 %v17623_v62  ;;  %v17716_v55 = vld [vmem:[%s16838_s18 + $0x2d0] sm:$0xff]  ;;  %v17727_v36 = vld [vmem:[%s16838_s18 + $0x2e0] sm:$0xff] }
 0x3d7   : > { %v14022_v24 = vcombine.low %v2196_v18, %v2197_v19  ;;  %3728 = vst [vmem:[%s17227_s27 + $0x488] sm:$0xff] %v14015_v20  ;;  %3729 = vst [vmem:[%s17227_s27 + $0x490] sm:$0xff] %v14016_v21  ;;  %v2200_v29 = vunpack.c.h.s8.bf16 %v17631_v47  ;;  %v2201_v32 = vunpack.c.h.s8.bf16 %v1993_v60  ;;  %v2202_v33 = vunpack.c.h.s8.bf16 %v17635_v5  ;;  %v17701_v47 = vld [vmem:[%s16838_s18 + $0x2c0] sm:$0xff]  ;;  %v17704_v60 = vld [vmem:[%s16838_s18 + $0x2c8] sm:$0xff] }
 0x3d8   : > { %3732 = vst [vmem:[%s17227_s27 + $0x4a8] sm:$0xff] %v14019_v22  ;;  %3733 = vst [vmem:[%s17227_s27 + $0x4b0] sm:$0xff] %v14020_v23  ;;  %v2203_v48 = vunpack.c.h.s8.bf16 %v1995_v10  ;;  %v14026_v49 = vcombine.high %v2196_v18, %v2197_v19  ;;  %v2204_v38 = vunpack.c.l.s8.bf16 %v17653_v8  ;;  %v2205_v39 = vunpack.c.l.s8.bf16 %v17656_v12  ;;  %v2009_v37 = vld [vmem:[%s16838_s18 + $0x2e8] sm:$0xff]  ;;  %v17731_v18 = vld [vmem:[%s16838_s18 + $0x2f0] sm:$0xff] }
 0x3d9   : > { %3730 = vst [vmem:[%s17227_s27 + $0x498] sm:$0xff] %v14017_v3  ;;  %3734 = vst [vmem:[%s17227_s27 + $0x4b8] sm:$0xff] %v14021_v4  ;;  %v14023_v43 = vcombine.low %v2198_v25, %v2199_v28  ;;  %v14024_v44 = vcombine.low %v2200_v29, %v2201_v32  ;;  %v14027_v45 = vcombine.high %v2198_v25, %v2199_v28  ;;  %v2206_v53 = vunpack.c.l.s8.bf16 %v17668_v34  ;;  %v2011_v23 = vld [vmem:[%s16838_s18 + $0x2f8] sm:$0xff] }
 0x3da   : > { %3735 = vst [vmem:[%s17227_s27 + $0x4c0] sm:$0xff] %v14022_v24  ;;  %v14028_v50 = vcombine.high %v2200_v29, %v2201_v32  ;;  %v14025_v51 = vcombine.low %v2202_v33, %v2203_v48  ;;  %3739 = vst [vmem:[%s17227_s27 + $0x4e0] sm:$0xff] %v14026_v49  ;;  %v14029_v27 = vcombine.high %v2202_v33, %v2203_v48  ;;  %v2207_v30 = vunpack.c.l.s8.bf16 %v17671_v35 }
 0x3db   : > { %v14030_v52 = vcombine.low %v2204_v38, %v2205_v39  ;;  %3736 = vst [vmem:[%s17227_s27 + $0x4c8] sm:$0xff] %v14023_v43  ;;  %3737 = vst [vmem:[%s17227_s27 + $0x4d0] sm:$0xff] %v14024_v44  ;;  %v2208_v54 = vunpack.c.l.s8.bf16 %v17679_v40  ;;  %v2209_v56 = vunpack.c.l.s8.bf16 %v2001_v41  ;;  %v2210_v57 = vunpack.c.l.s8.bf16 %v17683_v42 }
 0x3dc   : > { %3740 = vst [vmem:[%s17227_s27 + $0x4e8] sm:$0xff] %v14027_v45  ;;  %3741 = vst [vmem:[%s17227_s27 + $0x4f0] sm:$0xff] %v14028_v50  ;;  %v2211_v58 = vunpack.c.l.s8.bf16 %v2003_v26  ;;  %v14034_v59 = vcombine.high %v2204_v38, %v2205_v39  ;;  %v2212_v61 = vunpack.c.h.s8.bf16 %v17653_v8  ;;  %v2213_v62 = vunpack.c.h.s8.bf16 %v17656_v12 }
 0x3dd   : > { %3738 = vst [vmem:[%s17227_s27 + $0x4d8] sm:$0xff] %v14025_v51  ;;  %3742 = vst [vmem:[%s17227_s27 + $0x4f8] sm:$0xff] %v14029_v27  ;;  %v14031_v63 = vcombine.low %v2206_v53, %v2207_v30  ;;  %v14032_v0 = vcombine.low %v2208_v54, %v2209_v56  ;;  %v14035_v1 = vcombine.high %v2206_v53, %v2207_v30  ;;  %v2214_v2 = vunpack.c.h.s8.bf16 %v17668_v34  ;;  %v17767_v53 = vld [vmem:[%s16838_s18 + $0x318] sm:$0xff] }
 0x3de   : > { %3743 = vst [vmem:[%s17227_s27 + $0x500] sm:$0xff] %v14030_v52  ;;  %v14036_v46 = vcombine.high %v2208_v54, %v2209_v56  ;;  %v14033_v5 = vcombine.low %v2210_v57, %v2211_v58  ;;  %3747 = vst [vmem:[%s17227_s27 + $0x520] sm:$0xff] %v14034_v59  ;;  %v14037_v7 = vcombine.high %v2210_v57, %v2211_v58  ;;  %v2215_v6 = vunpack.c.h.s8.bf16 %v17671_v35  ;;  %v17764_v52 = vld [vmem:[%s16838_s18 + $0x310] sm:$0xff]  ;;  %v17775_v58 = vld [vmem:[%s16838_s18 + $0x320] sm:$0xff] }
 0x3df   : > { %v14038_v9 = vcombine.low %v2212_v61, %v2213_v62  ;;  %3744 = vst [vmem:[%s17227_s27 + $0x508] sm:$0xff] %v14031_v63  ;;  %3745 = vst [vmem:[%s17227_s27 + $0x510] sm:$0xff] %v14032_v0  ;;  %v2216_v10 = vunpack.c.h.s8.bf16 %v17679_v40  ;;  %v2217_v31 = vunpack.c.h.s8.bf16 %v2001_v41  ;;  %v2218_v13 = vunpack.c.h.s8.bf16 %v17683_v42  ;;  %v17749_v40 = vld [vmem:[%s16838_s18 + $0x300] sm:$0xff]  ;;  %v17752_v41 = vld [vmem:[%s16838_s18 + $0x308] sm:$0xff] }
 0x3e0   : > { %3748 = vst [vmem:[%s17227_s27 + $0x528] sm:$0xff] %v14035_v1  ;;  %3749 = vst [vmem:[%s17227_s27 + $0x530] sm:$0xff] %v14036_v46  ;;  %v2219_v15 = vunpack.c.h.s8.bf16 %v2003_v26  ;;  %v14042_v16 = vcombine.high %v2212_v61, %v2213_v62  ;;  %v2220_v11 = vunpack.c.l.s8.bf16 %v17701_v47  ;;  %v2221_v17 = vunpack.c.l.s8.bf16 %v17704_v60  ;;  %v2017_v59 = vld [vmem:[%s16838_s18 + $0x328] sm:$0xff]  ;;  %v17779_v61 = vld [vmem:[%s16838_s18 + $0x330] sm:$0xff] }
 0x3e1   : > { %3746 = vst [vmem:[%s17227_s27 + $0x518] sm:$0xff] %v14033_v5  ;;  %3750 = vst [vmem:[%s17227_s27 + $0x538] sm:$0xff] %v14037_v7  ;;  %v14039_v19 = vcombine.low %v2214_v2, %v2215_v6  ;;  %v14040_v20 = vcombine.low %v2216_v10, %v2217_v31  ;;  %v14043_v21 = vcombine.high %v2214_v2, %v2215_v6  ;;  %v2222_v4 = vunpack.c.l.s8.bf16 %v17716_v55  ;;  %v2019_v46 = vld [vmem:[%s16838_s18 + $0x338] sm:$0xff] }
 0x3e2   : > { %3751 = vst [vmem:[%s17227_s27 + $0x540] sm:$0xff] %v14038_v9  ;;  %v14044_v22 = vcombine.high %v2216_v10, %v2217_v31  ;;  %v14041_v8 = vcombine.low %v2218_v13, %v2219_v15  ;;  %3755 = vst [vmem:[%s17227_s27 + $0x560] sm:$0xff] %v14042_v16  ;;  %v14045_v12 = vcombine.high %v2218_v13, %v2219_v15  ;;  %v2223_v24 = vunpack.c.l.s8.bf16 %v17719_v14 }
 0x3e3   : > { %v14046_v3 = vcombine.low %v2220_v11, %v2221_v17  ;;  %3752 = vst [vmem:[%s17227_s27 + $0x548] sm:$0xff] %v14039_v19  ;;  %3753 = vst [vmem:[%s17227_s27 + $0x550] sm:$0xff] %v14040_v20  ;;  %v2224_v25 = vunpack.c.l.s8.bf16 %v17727_v36  ;;  %v2225_v28 = vunpack.c.l.s8.bf16 %v2009_v37  ;;  %v2226_v29 = vunpack.c.l.s8.bf16 %v17731_v18 }
 0x3e4   : > { %3756 = vst [vmem:[%s17227_s27 + $0x568] sm:$0xff] %v14043_v21  ;;  %3757 = vst [vmem:[%s17227_s27 + $0x570] sm:$0xff] %v14044_v22  ;;  %v2227_v32 = vunpack.c.l.s8.bf16 %v2011_v23  ;;  %v14050_v33 = vcombine.high %v2220_v11, %v2221_v17  ;;  %v2228_v34 = vunpack.c.h.s8.bf16 %v17701_v47  ;;  %v2229_v35 = vunpack.c.h.s8.bf16 %v17704_v60 }
 0x3e5   : > { %3754 = vst [vmem:[%s17227_s27 + $0x558] sm:$0xff] %v14041_v8  ;;  %3758 = vst [vmem:[%s17227_s27 + $0x578] sm:$0xff] %v14045_v12  ;;  %v14047_v48 = vcombine.low %v2222_v4, %v2223_v24  ;;  %v14048_v49 = vcombine.low %v2224_v25, %v2225_v28  ;;  %v14051_v38 = vcombine.high %v2222_v4, %v2223_v24  ;;  %v2230_v45 = vunpack.c.h.s8.bf16 %v17716_v55  ;;  %v17815_v4 = vld [vmem:[%s16838_s18 + $0x358] sm:$0xff] }
 0x3e6   : > { %3759 = vst [vmem:[%s17227_s27 + $0x580] sm:$0xff] %v14046_v3  ;;  %v14052_v39 = vcombine.high %v2224_v25, %v2225_v28  ;;  %v14049_v42 = vcombine.low %v2226_v29, %v2227_v32  ;;  %3763 = vst [vmem:[%s17227_s27 + $0x5a0] sm:$0xff] %v14050_v33  ;;  %v14053_v43 = vcombine.high %v2226_v29, %v2227_v32  ;;  %v2231_v50 = vunpack.c.h.s8.bf16 %v17719_v14  ;;  %v17812_v3 = vld [vmem:[%s16838_s18 + $0x350] sm:$0xff]  ;;  %v17823_v32 = vld [vmem:[%s16838_s18 + $0x360] sm:$0xff] }
 0x3e7   : > { %v14054_v44 = vcombine.low %v2228_v34, %v2229_v35  ;;  %3760 = vst [vmem:[%s17227_s27 + $0x588] sm:$0xff] %v14047_v48  ;;  %3761 = vst [vmem:[%s17227_s27 + $0x590] sm:$0xff] %v14048_v49  ;;  %v2232_v26 = vunpack.c.h.s8.bf16 %v17727_v36  ;;  %v2233_v51 = vunpack.c.h.s8.bf16 %v2009_v37  ;;  %v2234_v27 = vunpack.c.h.s8.bf16 %v17731_v18  ;;  %v17797_v36 = vld [vmem:[%s16838_s18 + $0x340] sm:$0xff]  ;;  %v17800_v37 = vld [vmem:[%s16838_s18 + $0x348] sm:$0xff] }
 0x3e8   : > { %3764 = vst [vmem:[%s17227_s27 + $0x5a8] sm:$0xff] %v14051_v38  ;;  %3765 = vst [vmem:[%s17227_s27 + $0x5b0] sm:$0xff] %v14052_v39  ;;  %v2235_v30 = vunpack.c.h.s8.bf16 %v2011_v23  ;;  %v14058_v54 = vcombine.high %v2228_v34, %v2229_v35  ;;  %v2236_v56 = vunpack.c.l.s8.bf16 %v17749_v40  ;;  %v2237_v57 = vunpack.c.l.s8.bf16 %v17752_v41  ;;  %v2025_v33 = vld [vmem:[%s16838_s18 + $0x368] sm:$0xff]  ;;  %v17827_v34 = vld [vmem:[%s16838_s18 + $0x370] sm:$0xff] }
 0x3e9   : > { %3762 = vst [vmem:[%s17227_s27 + $0x598] sm:$0xff] %v14049_v42  ;;  %3766 = vst [vmem:[%s17227_s27 + $0x5b8] sm:$0xff] %v14053_v43  ;;  %v14055_v62 = vcombine.low %v2230_v45, %v2231_v50  ;;  %v14056_v63 = vcombine.low %v2232_v26, %v2233_v51  ;;  %v14059_v0 = vcombine.high %v2230_v45, %v2231_v50  ;;  %v2238_v7 = vunpack.c.l.s8.bf16 %v17764_v52  ;;  %v2027_v39 = vld [vmem:[%s16838_s18 + $0x378] sm:$0xff] }
 0x3ea   : > { %3767 = vst [vmem:[%s17227_s27 + $0x5c0] sm:$0xff] %v14054_v44  ;;  %v14060_v1 = vcombine.high %v2232_v26, %v2233_v51  ;;  %v14057_v47 = vcombine.low %v2234_v27, %v2235_v30  ;;  %3771 = vst [vmem:[%s17227_s27 + $0x5e0] sm:$0xff] %v14058_v54  ;;  %v14061_v60 = vcombine.high %v2234_v27, %v2235_v30  ;;  %v2239_v9 = vunpack.c.l.s8.bf16 %v17767_v53 }
 0x3eb   : > { %v14062_v5 = vcombine.low %v2236_v56, %v2237_v57  ;;  %3768 = vst [vmem:[%s17227_s27 + $0x5c8] sm:$0xff] %v14055_v62  ;;  %3769 = vst [vmem:[%s17227_s27 + $0x5d0] sm:$0xff] %v14056_v63  ;;  %v2240_v2 = vunpack.c.l.s8.bf16 %v17775_v58  ;;  %v2241_v6 = vunpack.c.l.s8.bf16 %v2017_v59  ;;  %v2242_v10 = vunpack.c.l.s8.bf16 %v17779_v61 }
 0x3ec   : > { %3772 = vst [vmem:[%s17227_s27 + $0x5e8] sm:$0xff] %v14059_v0  ;;  %3773 = vst [vmem:[%s17227_s27 + $0x5f0] sm:$0xff] %v14060_v1  ;;  %v2243_v31 = vunpack.c.l.s8.bf16 %v2019_v46  ;;  %v14066_v13 = vcombine.high %v2236_v56, %v2237_v57  ;;  %v2244_v55 = vunpack.c.h.s8.bf16 %v17749_v40  ;;  %v2245_v14 = vunpack.c.h.s8.bf16 %v17752_v41 }
 0x3ed   : > { %3770 = vst [vmem:[%s17227_s27 + $0x5d8] sm:$0xff] %v14057_v47  ;;  %3774 = vst [vmem:[%s17227_s27 + $0x5f8] sm:$0xff] %v14061_v60  ;;  %v14063_v15 = vcombine.low %v2238_v7, %v2239_v9  ;;  %v14064_v16 = vcombine.low %v2240_v2, %v2241_v6  ;;  %v14067_v11 = vcombine.high %v2238_v7, %v2239_v9  ;;  %v2246_v21 = vunpack.c.h.s8.bf16 %v17764_v52  ;;  %v17863_v7 = vld [vmem:[%s16838_s18 + $0x398] sm:$0xff] }
 0x3ee   : > { %3775 = vst [vmem:[%s17227_s27 + $0x600] sm:$0xff] %v14062_v5  ;;  %v14068_v17 = vcombine.high %v2240_v2, %v2241_v6  ;;  %v14065_v18 = vcombine.low %v2242_v10, %v2243_v31  ;;  %3779 = vst [vmem:[%s17227_s27 + $0x620] sm:$0xff] %v14066_v13  ;;  %v14069_v19 = vcombine.high %v2242_v10, %v2243_v31  ;;  %v2247_v22 = vunpack.c.h.s8.bf16 %v17767_v53  ;;  %v17860_v5 = vld [vmem:[%s16838_s18 + $0x390] sm:$0xff]  ;;  %v17871_v31 = vld [vmem:[%s16838_s18 + $0x3a0] sm:$0xff] }
 0x3ef   : > { %v14070_v20 = vcombine.low %v2244_v55, %v2245_v14  ;;  %3776 = vst [vmem:[%s17227_s27 + $0x608] sm:$0xff] %v14063_v15  ;;  %3777 = vst [vmem:[%s17227_s27 + $0x610] sm:$0xff] %v14064_v16  ;;  %v2248_v23 = vunpack.c.h.s8.bf16 %v17775_v58  ;;  %v2249_v8 = vunpack.c.h.s8.bf16 %v2017_v59  ;;  %v2250_v12 = vunpack.c.h.s8.bf16 %v17779_v61  ;;  %v17845_v58 = vld [vmem:[%s16838_s18 + $0x380] sm:$0xff]  ;;  %v17848_v59 = vld [vmem:[%s16838_s18 + $0x388] sm:$0xff] }
 0x3f0   : > { %3780 = vst [vmem:[%s17227_s27 + $0x628] sm:$0xff] %v14067_v11  ;;  %3781 = vst [vmem:[%s17227_s27 + $0x630] sm:$0xff] %v14068_v17  ;;  %v2251_v24 = vunpack.c.h.s8.bf16 %v2019_v46  ;;  %v14074_v25 = vcombine.high %v2244_v55, %v2245_v14  ;;  %v2252_v28 = vunpack.c.l.s8.bf16 %v17797_v36  ;;  %v2253_v29 = vunpack.c.l.s8.bf16 %v17800_v37  ;;  %v2033_v13 = vld [vmem:[%s16838_s18 + $0x3a8] sm:$0xff]  ;;  %v17875_v55 = vld [vmem:[%s16838_s18 + $0x3b0] sm:$0xff] }
 0x3f1   : > { %3778 = vst [vmem:[%s17227_s27 + $0x618] sm:$0xff] %v14065_v18  ;;  %3782 = vst [vmem:[%s17227_s27 + $0x638] sm:$0xff] %v14069_v19  ;;  %v14071_v35 = vcombine.low %v2246_v21, %v2247_v22  ;;  %v14072_v48 = vcombine.low %v2248_v23, %v2249_v8  ;;  %v14075_v49 = vcombine.high %v2246_v21, %v2247_v22  ;;  %v2254_v43 = vunpack.c.l.s8.bf16 %v17812_v3  ;;  %v2035_v17 = vld [vmem:[%s16838_s18 + $0x3b8] sm:$0xff] }
 0x3f2   : > { %3783 = vst [vmem:[%s17227_s27 + $0x640] sm:$0xff] %v14070_v20  ;;  %v14076_v38 = vcombine.high %v2248_v23, %v2249_v8  ;;  %v14073_v40 = vcombine.low %v2250_v12, %v2251_v24  ;;  %3787 = vst [vmem:[%s17227_s27 + $0x660] sm:$0xff] %v14074_v25  ;;  %v14077_v41 = vcombine.high %v2250_v12, %v2251_v24  ;;  %v2255_v44 = vunpack.c.l.s8.bf16 %v17815_v4 }
 0x3f3   : > { %v14078_v42 = vcombine.low %v2252_v28, %v2253_v29  ;;  %3784 = vst [vmem:[%s17227_s27 + $0x648] sm:$0xff] %v14071_v35  ;;  %3785 = vst [vmem:[%s17227_s27 + $0x650] sm:$0xff] %v14072_v48  ;;  %v2256_v45 = vunpack.c.l.s8.bf16 %v17823_v32  ;;  %v2257_v50 = vunpack.c.l.s8.bf16 %v2025_v33  ;;  %v2258_v26 = vunpack.c.l.s8.bf16 %v17827_v34 }
 0x3f4   : > { %3788 = vst [vmem:[%s17227_s27 + $0x668] sm:$0xff] %v14075_v49  ;;  %3789 = vst [vmem:[%s17227_s27 + $0x670] sm:$0xff] %v14076_v38  ;;  %v2259_v51 = vunpack.c.l.s8.bf16 %v2027_v39  ;;  %v14082_v27 = vcombine.high %v2252_v28, %v2253_v29  ;;  %v2260_v52 = vunpack.c.h.s8.bf16 %v17797_v36  ;;  %v2261_v53 = vunpack.c.h.s8.bf16 %v17800_v37 }
 0x3f5   : > { %3786 = vst [vmem:[%s17227_s27 + $0x658] sm:$0xff] %v14073_v40  ;;  %3790 = vst [vmem:[%s17227_s27 + $0x678] sm:$0xff] %v14077_v41  ;;  %v14079_v30 = vcombine.low %v2254_v43, %v2255_v44  ;;  %v14080_v54 = vcombine.low %v2256_v45, %v2257_v50  ;;  %v14083_v56 = vcombine.high %v2254_v43, %v2255_v44  ;;  %v2262_v0 = vunpack.c.h.s8.bf16 %v17812_v3  ;;  %v2039_v43 = vld [vmem:[%s16838_s18 + $0x3d8] sm:$0xff] }
 0x3f6   : > { %3791 = vst [vmem:[%s17227_s27 + $0x680] sm:$0xff] %v14078_v42  ;;  %v14084_v57 = vcombine.high %v2256_v45, %v2257_v50  ;;  %v14081_v61 = vcombine.low %v2258_v26, %v2259_v51  ;;  %3795 = vst [vmem:[%s17227_s27 + $0x6a0] sm:$0xff] %v14082_v27  ;;  %v14085_v62 = vcombine.high %v2258_v26, %v2259_v51  ;;  %v2263_v1 = vunpack.c.h.s8.bf16 %v17815_v4  ;;  %v2038_v42 = vld [vmem:[%s16838_s18 + $0x3d0] sm:$0xff]  ;;  %v2040_v51 = vld [vmem:[%s16838_s18 + $0x3e0] sm:$0xff] }
 0x3f7   : > { %v14086_v63 = vcombine.low %v2260_v52, %v2261_v53  ;;  %3792 = vst [vmem:[%s17227_s27 + $0x688] sm:$0xff] %v14079_v30  ;;  %3793 = vst [vmem:[%s17227_s27 + $0x690] sm:$0xff] %v14080_v54  ;;  %v2264_v46 = vunpack.c.h.s8.bf16 %v17823_v32  ;;  %v2265_v47 = vunpack.c.h.s8.bf16 %v2025_v33  ;;  %v2266_v60 = vunpack.c.h.s8.bf16 %v17827_v34  ;;  %v17893_v32 = vld [vmem:[%s16838_s18 + $0x3c0] sm:$0xff]  ;;  %v17896_v33 = vld [vmem:[%s16838_s18 + $0x3c8] sm:$0xff] }
 0x3f8   : > { %3796 = vst [vmem:[%s17227_s27 + $0x6a8] sm:$0xff] %v14083_v56  ;;  %3797 = vst [vmem:[%s17227_s27 + $0x6b0] sm:$0xff] %v14084_v57  ;;  %v2267_v9 = vunpack.c.h.s8.bf16 %v2027_v39  ;;  %v14090_v2 = vcombine.high %v2260_v52, %v2261_v53  ;;  %v2268_v6 = vunpack.c.l.s8.bf16 %v17845_v58  ;;  %v2269_v10 = vunpack.c.l.s8.bf16 %v17848_v59  ;;  %v2041_v27 = vld [vmem:[%s16838_s18 + $0x3e8] sm:$0xff]  ;;  %v2042_v52 = vld [vmem:[%s16838_s18 + $0x3f0] sm:$0xff] }
 0x3f9   : > { %3794 = vst [vmem:[%s17227_s27 + $0x698] sm:$0xff] %v14081_v61  ;;  %3798 = vst [vmem:[%s17227_s27 + $0x6b8] sm:$0xff] %v14085_v62  ;;  %v14087_v14 = vcombine.low %v2262_v0, %v2263_v1  ;;  %v14088_v15 = vcombine.low %v2264_v46, %v2265_v47  ;;  %v14091_v16 = vcombine.high %v2262_v0, %v2263_v1  ;;  %v2270_v19 = vunpack.c.l.s8.bf16 %v17860_v5  ;;  %v2043_v57 = vld [vmem:[%s16838_s18 + $0x3f8] sm:$0xff] }
 0x3fa   : > { %3799 = vst [vmem:[%s17227_s27 + $0x6c0] sm:$0xff] %v14086_v63  ;;  %v14092_v11 = vcombine.high %v2264_v46, %v2265_v47  ;;  %v14089_v36 = vcombine.low %v2266_v60, %v2267_v9  ;;  %3803 = vst [vmem:[%s17227_s27 + $0x6e0] sm:$0xff] %v14090_v2  ;;  %v14093_v37 = vcombine.high %v2266_v60, %v2267_v9  ;;  %v2271_v20 = vunpack.c.l.s8.bf16 %v17863_v7 }
 0x3fb   : > { %v14094_v18 = vcombine.low %v2268_v6, %v2269_v10  ;;  %3800 = vst [vmem:[%s17227_s27 + $0x6c8] sm:$0xff] %v14087_v14  ;;  %3801 = vst [vmem:[%s17227_s27 + $0x6d0] sm:$0xff] %v14088_v15  ;;  %v2272_v21 = vunpack.c.l.s8.bf16 %v17871_v31  ;;  %v2273_v22 = vunpack.c.l.s8.bf16 %v2033_v13  ;;  %v2274_v23 = vunpack.c.l.s8.bf16 %v17875_v55 }
 0x3fc   : > { %3804 = vst [vmem:[%s17227_s27 + $0x6e8] sm:$0xff] %v14091_v16  ;;  %3805 = vst [vmem:[%s17227_s27 + $0x6f0] sm:$0xff] %v14092_v11  ;;  %v2275_v8 = vunpack.c.l.s8.bf16 %v2035_v17  ;;  %v14098_v12 = vcombine.high %v2268_v6, %v2269_v10  ;;  %v2276_v3 = vunpack.c.h.s8.bf16 %v17845_v58  ;;  %v2277_v4 = vunpack.c.h.s8.bf16 %v17848_v59 }
 0x3fd   : > { %3802 = vst [vmem:[%s17227_s27 + $0x6d8] sm:$0xff] %v14089_v36  ;;  %3806 = vst [vmem:[%s17227_s27 + $0x6f8] sm:$0xff] %v14093_v37  ;;  %v14095_v24 = vcombine.low %v2270_v19, %v2271_v20  ;;  %v14096_v25 = vcombine.low %v2272_v21, %v2273_v22  ;;  %v14099_v28 = vcombine.high %v2270_v19, %v2271_v20  ;;  %v2278_v49 = vunpack.c.h.s8.bf16 %v17860_v5 }
 0x3fe   : > { %3807 = vst [vmem:[%s17227_s27 + $0x700] sm:$0xff] %v14094_v18  ;;  %v14100_v29 = vcombine.high %v2272_v21, %v2273_v22  ;;  %v14097_v34 = vcombine.low %v2274_v23, %v2275_v8  ;;  %3811 = vst [vmem:[%s17227_s27 + $0x720] sm:$0xff] %v14098_v12  ;;  %v14101_v35 = vcombine.high %v2274_v23, %v2275_v8  ;;  %v2279_v38 = vunpack.c.h.s8.bf16 %v17863_v7 }
 0x3ff   : > { %v14102_v48 = vcombine.low %v2276_v3, %v2277_v4  ;;  %3808 = vst [vmem:[%s17227_s27 + $0x708] sm:$0xff] %v14095_v24  ;;  %3809 = vst [vmem:[%s17227_s27 + $0x710] sm:$0xff] %v14096_v25  ;;  %v2280_v39 = vunpack.c.h.s8.bf16 %v17871_v31  ;;  %v2281_v40 = vunpack.c.h.s8.bf16 %v2033_v13  ;;  %v2282_v41 = vunpack.c.h.s8.bf16 %v17875_v55 }
 0x400   : > { %3812 = vst [vmem:[%s17227_s27 + $0x728] sm:$0xff] %v14099_v28  ;;  %3813 = vst [vmem:[%s17227_s27 + $0x730] sm:$0xff] %v14100_v29  ;;  %v2283_v44 = vunpack.c.h.s8.bf16 %v2035_v17  ;;  %v14106_v45 = vcombine.high %v2276_v3, %v2277_v4  ;;  %v2284_v50 = vunpack.c.l.s8.bf16 %v17893_v32  ;;  %v2285_v26 = vunpack.c.l.s8.bf16 %v17896_v33 }
 0x401   : > { %3810 = vst [vmem:[%s17227_s27 + $0x718] sm:$0xff] %v14097_v34  ;;  %3814 = vst [vmem:[%s17227_s27 + $0x738] sm:$0xff] %v14101_v35  ;;  %v14103_v53 = vcombine.low %v2278_v49, %v2279_v38  ;;  %v14104_v30 = vcombine.low %v2280_v39, %v2281_v40  ;;  %v14107_v54 = vcombine.high %v2278_v49, %v2279_v38  ;;  %v2286_v62 = vunpack.c.l.s8.bf16 %v2038_v42 }
 0x402   : > { %3815 = vst [vmem:[%s17227_s27 + $0x740] sm:$0xff] %v14102_v48  ;;  %v14108_v56 = vcombine.high %v2280_v39, %v2281_v40  ;;  %v14105_v58 = vcombine.low %v2282_v41, %v2283_v44  ;;  %3819 = vst [vmem:[%s17227_s27 + $0x760] sm:$0xff] %v14106_v45  ;;  %v14109_v59 = vcombine.high %v2282_v41, %v2283_v44  ;;  %v2287_v63 = vunpack.c.l.s8.bf16 %v2039_v43 }
 0x403   : > { %v14110_v61 = vcombine.low %v2284_v50, %v2285_v26  ;;  %3816 = vst [vmem:[%s17227_s27 + $0x748] sm:$0xff] %v14103_v53  ;;  %3817 = vst [vmem:[%s17227_s27 + $0x750] sm:$0xff] %v14104_v30  ;;  %v2288_v0 = vunpack.c.l.s8.bf16 %v2040_v51  ;;  %v2289_v1 = vunpack.c.l.s8.bf16 %v2041_v27  ;;  %v2290_v46 = vunpack.c.l.s8.bf16 %v2042_v52 }
 0x404   : > { %3820 = vst [vmem:[%s17227_s27 + $0x768] sm:$0xff] %v14107_v54  ;;  %3821 = vst [vmem:[%s17227_s27 + $0x770] sm:$0xff] %v14108_v56  ;;  %v2291_v47 = vunpack.c.l.s8.bf16 %v2043_v57  ;;  %v14114_v60 = vcombine.high %v2284_v50, %v2285_v26  ;;  %v2292_v5 = vunpack.c.h.s8.bf16 %v17893_v32  ;;  %v2293_v7 = vunpack.c.h.s8.bf16 %v17896_v33 }
 0x405   : > { %3818 = vst [vmem:[%s17227_s27 + $0x758] sm:$0xff] %v14105_v58  ;;  %3822 = vst [vmem:[%s17227_s27 + $0x778] sm:$0xff] %v14109_v59  ;;  %v14111_v9 = vcombine.low %v2286_v62, %v2287_v63  ;;  %v14112_v2 = vcombine.low %v2288_v0, %v2289_v1  ;;  %v14115_v6 = vcombine.high %v2286_v62, %v2287_v63  ;;  %v2294_v14 = vunpack.c.h.s8.bf16 %v2038_v42 }
 0x406   : > { %3823 = vst [vmem:[%s17227_s27 + $0x780] sm:$0xff] %v14110_v61  ;;  %v14116_v10 = vcombine.high %v2288_v0, %v2289_v1  ;;  %v14113_v31 = vcombine.low %v2290_v46, %v2291_v47  ;;  %3827 = vst [vmem:[%s17227_s27 + $0x7a0] sm:$0xff] %v14114_v60  ;;  %v14117_v13 = vcombine.high %v2290_v46, %v2291_v47  ;;  %v2295_v15 = vunpack.c.h.s8.bf16 %v2039_v43 }
 0x407   : > { %v14118_v55 = vcombine.low %v2292_v5, %v2293_v7  ;;  %3824 = vst [vmem:[%s17227_s27 + $0x788] sm:$0xff] %v14111_v9  ;;  %3825 = vst [vmem:[%s17227_s27 + $0x790] sm:$0xff] %v14112_v2  ;;  %v2296_v16 = vunpack.c.h.s8.bf16 %v2040_v51  ;;  %v2297_v11 = vunpack.c.h.s8.bf16 %v2041_v27  ;;  %v2298_v17 = vunpack.c.h.s8.bf16 %v2042_v52 }
 0x408   : > { %3828 = vst [vmem:[%s17227_s27 + $0x7a8] sm:$0xff] %v14115_v6  ;;  %3829 = vst [vmem:[%s17227_s27 + $0x7b0] sm:$0xff] %v14116_v10  ;;  %v2299_v36 = vunpack.c.h.s8.bf16 %v2043_v57  ;;  %v14122_v37 = vcombine.high %v2292_v5, %v2293_v7  ;;  %v14119_v18 = vcombine.low %v2294_v14, %v2295_v15  ;;  %v14123_v20 = vcombine.high %v2294_v14, %v2295_v15 }
 0x409   : > { %3826 = vst [vmem:[%s17227_s27 + $0x798] sm:$0xff] %v14113_v31  ;;  %3830 = vst [vmem:[%s17227_s27 + $0x7b8] sm:$0xff] %v14117_v13  ;;  %v14120_v19 = vcombine.low %v2296_v16, %v2297_v11  ;;  %v14124_v21 = vcombine.high %v2296_v16, %v2297_v11  ;;  %3842 = sbr.rel (%p14128_p11) target bundleno = 2937 (0xb79), region = 88 }
 0x40a   : > { %3831 = vst [vmem:[%s17227_s27 + $0x7c0] sm:$0xff] %v14118_v55  ;;  %v14121_v22 = vcombine.low %v2298_v17, %v2299_v36  ;;  %3835 = vst [vmem:[%s17227_s27 + $0x7e0] sm:$0xff] %v14122_v37  ;;  %v14125_v23 = vcombine.high %v2298_v17, %v2299_v36 }
 0x40b   : > { %3832 = vst [vmem:[%s17227_s27 + $0x7c8] sm:$0xff] %v14119_v18  ;;  %3833 = vst [vmem:[%s17227_s27 + $0x7d0] sm:$0xff] %v14120_v19 }
 0x40c   : > { %3836 = vst [vmem:[%s17227_s27 + $0x7e8] sm:$0xff] %v14123_v20  ;;  %3837 = vst [vmem:[%s17227_s27 + $0x7f0] sm:$0xff] %v14124_v21 }
 0x40d   : > { %3834 = vst [vmem:[%s17227_s27 + $0x7d8] sm:$0xff] %v14121_v22  ;;  %3838 = vst [vmem:[%s17227_s27 + $0x7f8] sm:$0xff] %v14125_v23 }
 0x40e   : > { %v15528_v8 = vld [vmem:[#allocation12 + $0xe4] ss:$16 sps:$4 sm:$0xff]   ;;  %v15532_v3 = vld [vmem:[#allocation12 + $0xe0] ss:$16 sps:$4 sm:$0xff]   ;;  %v3863_v0 = vlaneseq }
 0x40f   : > { %v15530_v12 = vld [vmem:[#allocation12 + $0x2e4] ss:$16 sps:$4 sm:$0xff]   ;;  %5525 = vmatprep.subr.bf16.mxu0 %v15528_v8  ;;  %v15533_v4 = vld [vmem:[#allocation12 + $0x2e0] ss:$16 sps:$4 sm:$0xff]  }
 0x410   : > { %5566 = vmatprep.subr.bf16.mxu1 %v15530_v12  ;;  %v15534_v24 = vld [vmem:[#allocation12 + $0xc4] ss:$16 sps:$4 sm:$0xff]   ;;  %5526 = vmatpush1.bf16.msra.mxu0 %v15532_v3  ;;  %v15538_v28 = vld [vmem:[#allocation12 + $0xc0] ss:$16 sps:$4 sm:$0xff]   ;;  %v17944_v5 = vshrl.u32 %v3863_v0, 7 }
 0x411   : > { %5567 = vmatpush1.bf16.msra.mxu1 %v15533_v4  ;;  %v15536_v25 = vld [vmem:[#allocation12 + $0x2c4] ss:$16 sps:$4 sm:$0xff]   ;;  %5527 = vmatprep.subr.bf16.mxu0 %v15534_v24  ;;  %v15539_v29 = vld [vmem:[#allocation12 + $0x2c0] ss:$16 sps:$4 sm:$0xff]  }
 0x412   : > { %5568 = vmatprep.subr.bf16.mxu1 %v15536_v25  ;;  %v15540_v32 = vld [vmem:[#allocation12 + $0xa4] ss:$16 sps:$4 sm:$0xff]   ;;  %v15544_v34 = vld [vmem:[#allocation12 + $0xa0] ss:$16 sps:$4 sm:$0xff]   ;;  %v17947_v10 = vsub.s32 1, %v17944_v5  ;;  %v17950_v31 = vsub.s32 3, %v17944_v5 }
 0x413   : > { %v15542_v33 = vld [vmem:[#allocation12 + $0x2a4] ss:$16 sps:$4 sm:$0xff]   ;;  %v15545_v35 = vld [vmem:[#allocation12 + $0x2a0] ss:$16 sps:$4 sm:$0xff]   ;;  %v17965_v8 = vsub.s32 0, %v17944_v5  ;;  %v17968_v12 = vsub.s32 2, %v17944_v5 }
 0x414   : > { %5528 = vmatpush1.bf16.msra.mxu0 %v15538_v28  ;;  %v15546_v48 = vld [vmem:[#allocation12 + $0x84] ss:$16 sps:$4 sm:$0xff]   ;;  %v15550_v38 = vld [vmem:[#allocation12 + $0x80] ss:$16 sps:$4 sm:$0xff]  }
 0x415   : > { %5569 = vmatpush1.bf16.msra.mxu1 %v15539_v29  ;;  %5529 = vmatprep.subr.bf16.mxu0 %v15540_v32  ;;  %v15548_v49 = vld [vmem:[#allocation12 + $0x284] ss:$16 sps:$4 sm:$0xff]   ;;  %v15551_v39 = vld [vmem:[#allocation12 + $0x280] ss:$16 sps:$4 sm:$0xff]  }
 0x416   : > { %5570 = vmatprep.subr.bf16.mxu1 %v15542_v33  ;;  %v15552_v40 = vld [vmem:[#allocation12 + $0x64] ss:$16 sps:$4 sm:$0xff]   ;;  %v15556_v42 = vld [vmem:[#allocation12 + $0x60] ss:$16 sps:$4 sm:$0xff]  }
 0x417   : > { %v15554_v41 = vld [vmem:[#allocation12 + $0x264] ss:$16 sps:$4 sm:$0xff]   ;;  %v15557_v43 = vld [vmem:[#allocation12 + $0x260] ss:$16 sps:$4 sm:$0xff]  }
 0x418   : > { %5530 = vmatpush1.bf16.msra.mxu0 %v15544_v34  ;;  %v15558_v44 = vld [vmem:[#allocation12 + $0x44] ss:$16 sps:$4 sm:$0xff]   ;;  %v15562_v50 = vld [vmem:[#allocation12 + $0x40] ss:$16 sps:$4 sm:$0xff]  }
 0x419   : > { %5571 = vmatpush1.bf16.msra.mxu1 %v15545_v35  ;;  %5531 = vmatprep.subr.bf16.mxu0 %v15546_v48  ;;  %v15560_v45 = vld [vmem:[#allocation12 + $0x244] ss:$16 sps:$4 sm:$0xff]   ;;  %v15563_v26 = vld [vmem:[#allocation12 + $0x240] ss:$16 sps:$4 sm:$0xff]  }
 0x41a   : > { %5572 = vmatprep.subr.bf16.mxu1 %v15548_v49  ;;  %v15564_v51 = vld [vmem:[#allocation12 + $0x24] ss:$16 sps:$4 sm:$0xff]   ;;  %v15568_v52 = vld [vmem:[#allocation12 + $0x20] ss:$16 sps:$4 sm:$0xff]  }
 0x41b   : > { %v15566_v27 = vld [vmem:[#allocation12 + $0x224] ss:$16 sps:$4 sm:$0xff]   ;;  %v15569_v53 = vld [vmem:[#allocation12 + $0x220] ss:$16 sps:$4 sm:$0xff]  }
 0x41c   : > { %5532 = vmatpush1.bf16.msra.mxu0 %v15550_v38  ;;  %v15570_v30 = vld [vmem:[#allocation12 + $0x4] ss:$16 sps:$4 sm:$0xff]   ;;  %v15574_v56 = vld [vmem:[#allocation12] ss:$16 sps:$4 sm:$0xff]  }
 0x41d   : > { %5573 = vmatpush1.bf16.msra.mxu1 %v15551_v39  ;;  %5533 = vmatprep.subr.bf16.mxu0 %v15552_v40  ;;  %v15572_v54 = vld [vmem:[#allocation12 + $0x204] ss:$16 sps:$4 sm:$0xff]   ;;  %v15575_v57 = vld [vmem:[#allocation12 + $0x200] ss:$16 sps:$4 sm:$0xff]  }
 0x41e   : > { %5574 = vmatprep.subr.bf16.mxu1 %v15554_v41  ;;  %v15576_v58 = vld [vmem:[#allocation12 + $0x1e4] ss:$16 sps:$4 sm:$0xff]   ;;  %v15580_v61 = vld [vmem:[#allocation12 + $0x1e0] ss:$16 sps:$4 sm:$0xff]  }
 0x41f   : > { %v15578_v59 = vld [vmem:[#allocation12 + $0x3e4] ss:$16 sps:$4 sm:$0xff]   ;;  %v15581_v62 = vld [vmem:[#allocation12 + $0x3e0] ss:$16 sps:$4 sm:$0xff]  }
 0x420   : > { %5534 = vmatpush1.bf16.msra.mxu0 %v15556_v42  ;;  %v15582_v63 = vld [vmem:[#allocation12 + $0x1c4] ss:$16 sps:$4 sm:$0xff]   ;;  %v15586_v46 = vld [vmem:[#allocation12 + $0x1c0] ss:$16 sps:$4 sm:$0xff]  }
 0x421   : > { %5575 = vmatpush1.bf16.msra.mxu1 %v15557_v43  ;;  %5535 = vmatprep.subr.bf16.mxu0 %v15558_v44  ;;  %v15584_v1 = vld [vmem:[#allocation12 + $0x3c4] ss:$16 sps:$4 sm:$0xff]   ;;  %v15587_v47 = vld [vmem:[#allocation12 + $0x3c0] ss:$16 sps:$4 sm:$0xff]  }
 0x422   : > { %5576 = vmatprep.subr.bf16.mxu1 %v15560_v45  ;;  %v15588_v60 = vld [vmem:[#allocation12 + $0x1a4] ss:$16 sps:$4 sm:$0xff]   ;;  %v15592_v9 = vld [vmem:[#allocation12 + $0x1a0] ss:$16 sps:$4 sm:$0xff]  }
 0x423   : > { %v15590_v7 = vld [vmem:[#allocation12 + $0x3a4] ss:$16 sps:$4 sm:$0xff]   ;;  %v15593_v2 = vld [vmem:[#allocation12 + $0x3a0] ss:$16 sps:$4 sm:$0xff]  }
 0x424   : > { %5536 = vmatpush1.bf16.msra.mxu0 %v15562_v50  ;;  %v15594_v6 = vld [vmem:[#allocation12 + $0x184] ss:$16 sps:$4 sm:$0xff]   ;;  %v15598_v17 = vld [vmem:[#allocation12 + $0x180] ss:$16 sps:$4 sm:$0xff]  }
 0x425   : > { %5577 = vmatpush1.bf16.msra.mxu1 %v15563_v26  ;;  %5537 = vmatprep.subr.bf16.mxu0 %v15564_v51  ;;  %v15596_v13 = vld [vmem:[#allocation12 + $0x384] ss:$16 sps:$4 sm:$0xff]   ;;  %v15599_v36 = vld [vmem:[#allocation12 + $0x380] ss:$16 sps:$4 sm:$0xff]  }
 0x426   : > { %5578 = vmatprep.subr.bf16.mxu1 %v15566_v27  ;;  %v17952_v55 = vld [vmem:[#allocation10] sm:$0xff]  ;;  %v17954_v14 = vld [vmem:[#allocation10 + $0x2c] sm:$0xff]  ;;  %v3856_v39 = vld [vmem:[#allocation2 + $0x18] sm:$0xff] }
 0x427   : > { %v3855_v15 = vld [vmem:[#allocation2] sm:$0xff]  ;;  %v3919_v16 = vrot.slane %v17952_v55, %v17947_v10  ;;  %v3857_v11 = vld [vmem:[#allocation2 + $0x10] sm:$0xff]  ;;  %v3870_v37 = vrot.slane %v17954_v14, %v17947_v10  ;;  %v3878_v18 = vrot.slane %v17954_v14, %v17950_v31  ;;  %v3927_v19 = vrot.slane %v17952_v55, %v17950_v31  ;;  %v15604_v3 = vld [vmem:[#allocation12 + $0x160] ss:$16 sps:$4 sm:$0xff]  }
 0x428   : > { %5538 = vmatpush1.bf16.msra.mxu0 %v15568_v52  ;;  %v15600_v20 = vld [vmem:[#allocation12 + $0x164] ss:$16 sps:$4 sm:$0xff]   ;;  %v15605_v4 = vld [vmem:[#allocation12 + $0x360] ss:$16 sps:$4 sm:$0xff]   ;;  %v3866_v48 = vrot.slane %v17954_v14, %v17965_v8  ;;  %v3874_v49 = vrot.slane %v17954_v14, %v17968_v12  ;;  %v3915_v43 = vrot.slane %v17952_v55, %v17965_v8  ;;  %v3923_v45 = vrot.slane %v17952_v55, %v17968_v12 }
 0x429   : > { %5579 = vmatpush1.bf16.msra.mxu1 %v15569_v53  ;;  %5539 = vmatprep.subr.bf16.mxu0 %v15570_v30  ;;  %v15602_v21 = vld [vmem:[#allocation12 + $0x364] ss:$16 sps:$4 sm:$0xff]   ;;  %v3904_v22 = vmul.f32 %v3870_v37, %v3855_v15  ;;  %v3906_v23 = vmul.f32 %v3878_v18, %v3857_v11  ;;  %v15610_v32 = vld [vmem:[#allocation12 + $0x140] ss:$16 sps:$4 sm:$0xff]  }
 0x42a   : > { %5580 = vmatprep.subr.bf16.mxu1 %v15572_v54  ;;  %v15606_v28 = vld [vmem:[#allocation12 + $0x144] ss:$16 sps:$4 sm:$0xff]   ;;  %v15611_v35 = vld [vmem:[#allocation12 + $0x340] ss:$16 sps:$4 sm:$0xff]   ;;  %v3905_v44 = vmul.f32 %v3874_v49, %v3856_v39 }
 0x42b   : > { %v3953_v24 = vadd.f32 %v3919_v16, %v3904_v22  ;;  %v3955_v25 = vadd.f32 %v3927_v19, %v3906_v23  ;;  %v15608_v29 = vld [vmem:[#allocation12 + $0x344] ss:$16 sps:$4 sm:$0xff]   ;;  %v15616_v50 = vld [vmem:[#allocation12 + $0x120] ss:$16 sps:$4 sm:$0xff]   ;;  %v17997_v19 = vsub.s32 4, %v17944_v5  ;;  %v18000_v22 = vsub.s32 6, %v17944_v5 }
 0x42c   : > { %5540 = vmatpush1.bf16.msra.mxu0 %v15574_v56  ;;  %v3854_v38 = vld [vmem:[#allocation2 + $0x30] sm:$0xff]  ;;  %v15617_v26 = vld [vmem:[#allocation12 + $0x320] ss:$16 sps:$4 sm:$0xff]   ;;  %v3954_v53 = vadd.f32 %v3923_v45, %v3905_v44 }
 0x42d   : > { %5581 = vmatpush1.bf16.msra.mxu1 %v15575_v57  ;;  %5541 = vmatprep.subr.bf16.mxu0 %v15576_v58  ;;  %v17970_v33 = vpack.c.bf16 %v3953_v24, %v3953_v24  ;;  %v17972_v34 = vpack.c.bf16 %v3955_v25, %v3955_v25  ;;  %v15612_v40 = vld [vmem:[#allocation12 + $0x124] ss:$16 sps:$4 sm:$0xff]   ;;  %v3903_v42 = vmul.f32 %v3866_v48, %v3854_v38  ;;  %v15622_v30 = vld [vmem:[#allocation12 + $0x100] ss:$16 sps:$4 sm:$0xff]  }
 0x42e   : > { %5582 = vmatprep.subr.bf16.mxu1 %v15578_v59  ;;  %v15614_v41 = vld [vmem:[#allocation12 + $0x324] ss:$16 sps:$4 sm:$0xff]   ;;  %v15623_v54 = vld [vmem:[#allocation12 + $0x300] ss:$16 sps:$4 sm:$0xff]   ;;  %v17986_v59 = vpack.c.bf16 %v3954_v53, %v3954_v53 }
 0x42f   : > { %5557 = vmatprep.mubr.bf16.mxu0 %v17970_v33  ;;  %5598 = vmatprep.mubr.bf16.mxu1 %v17972_v34  ;;  %v15618_v51 = vld [vmem:[#allocation12 + $0x104] ss:$16 sps:$4 sm:$0xff]   ;;  %v3952_v52 = vadd.f32 %v3915_v43, %v3903_v42  ;;  %v15645_v15 = vld [vmem:[#allocation12 + $0x680] ss:$16 sps:$4 sm:$0xff]  }
 0x430   : > { %5542 = vmatpush2.bf16.msra.mxu0 %v15580_v61  ;;  %v15620_v27 = vld [vmem:[#allocation12 + $0x304] ss:$16 sps:$4 sm:$0xff]   ;;  %v15624_v61 = vld [vmem:[#allocation12 + $0x4e0] ss:$16 sps:$4 sm:$0xff]  }
 0x431   : > { %5583 = vmatpush2.bf16.msra.mxu1 %v15581_v62  ;;  %5543 = vmatprep.subr.bf16.mxu0 %v15582_v63  ;;  %v15626_v56 = vld [vmem:[#allocation12 + $0x4e4] ss:$16 sps:$4 sm:$0xff]   ;;  %v17984_v58 = vpack.c.bf16 %v3952_v52, %v3952_v52  ;;  %v15627_v62 = vld [vmem:[#allocation12 + $0x6e0] ss:$16 sps:$4 sm:$0xff]  }
 0x432   : > { %5584 = vmatprep.subr.bf16.mxu1 %v15584_v1  ;;  %v15629_v57 = vld [vmem:[#allocation12 + $0x6e4] ss:$16 sps:$4 sm:$0xff]   ;;  %v15630_v1 = vld [vmem:[#allocation12 + $0x4c0] ss:$16 sps:$4 sm:$0xff]  }
 0x433   : > { %v15632_v63 = vld [vmem:[#allocation12 + $0x4c4] ss:$16 sps:$4 sm:$0xff]   ;;  %v15648_v37 = vld [vmem:[#allocation12 + $0x460] ss:$16 sps:$4 sm:$0xff]  }
 0x434   : > { %5544 = vmatpush2.bf16.msra.mxu0 %v15586_v46  ;;  %v15635_v0 = vld [vmem:[#allocation12 + $0x6c4] ss:$16 sps:$4 sm:$0xff]   ;;  %v15633_v46 = vld [vmem:[#allocation12 + $0x6c0] ss:$16 sps:$4 sm:$0xff]  }
 0x435   : > { %5585 = vmatpush2.bf16.msra.mxu1 %v15587_v47  ;;  %5545 = vmatprep.subr.bf16.mxu0 %v15588_v60  ;;  %v15638_v47 = vld [vmem:[#allocation12 + $0x4a4] ss:$16 sps:$4 sm:$0xff]   ;;  %v15651_v18 = vld [vmem:[#allocation12 + $0x660] ss:$16 sps:$4 sm:$0xff]  }
 0x436   : > { %5586 = vmatprep.subr.bf16.mxu1 %v15590_v7  ;;  %v15641_v60 = vld [vmem:[#allocation12 + $0x6a4] ss:$16 sps:$4 sm:$0xff]   ;;  %v15636_v7 = vld [vmem:[#allocation12 + $0x4a0] ss:$16 sps:$4 sm:$0xff]  }
 0x437   : > { %v15650_v16 = vld [vmem:[#allocation12 + $0x464] ss:$16 sps:$4 sm:$0xff]   ;;  %v15654_v23 = vld [vmem:[#allocation12 + $0x440] ss:$16 sps:$4 sm:$0xff]  }
 0x438   : > { %5546 = vmatpush2.bf16.msra.mxu0 %v15592_v9  ;;  %v15639_v9 = vld [vmem:[#allocation12 + $0x6a0] ss:$16 sps:$4 sm:$0xff]   ;;  %v15653_v11 = vld [vmem:[#allocation12 + $0x664] ss:$16 sps:$4 sm:$0xff]  }
 0x439   : > { %5587 = vmatpush2.bf16.msra.mxu1 %v15593_v2  ;;  %5547 = vmatprep.subr.bf16.mxu0 %v15594_v6  ;;  %v15644_v2 = vld [vmem:[#allocation12 + $0x484] ss:$16 sps:$4 sm:$0xff]   ;;  %v15663_v49 = vld [vmem:[#allocation12 + $0x620] ss:$16 sps:$4 sm:$0xff]  }
 0x43a   : > { %5588 = vmatprep.subr.bf16.mxu1 %v15596_v13  ;;  %v15647_v6 = vld [vmem:[#allocation12 + $0x684] ss:$16 sps:$4 sm:$0xff]   ;;  %v15642_v13 = vld [vmem:[#allocation12 + $0x480] ss:$16 sps:$4 sm:$0xff]  }
 0x43b   : > { %v15662_v25 = vld [vmem:[#allocation12 + $0x424] ss:$16 sps:$4 sm:$0xff]   ;;  %v3861_v39 = vld [vmem:[#allocation2 + $0x38] sm:$0xff]  ;;  %v3858_v43 = vld [vmem:[#allocation2 + $0x8] sm:$0xff] }
 0x43c   : > { %5548 = vmatpush2.bf16.msra.mxu0 %v15598_v17  ;;  %v17991_v17 = vsub.s32 5, %v17944_v5  ;;  %v3859_v38 = vld [vmem:[#allocation2 + $0x20] sm:$0xff]  ;;  %v3860_v44 = vld [vmem:[#allocation2 + $0x28] sm:$0xff] }
 0x43d   : > { %5589 = vmatpush2.bf16.msra.mxu1 %v15599_v36  ;;  %5549 = vmatprep.subr.bf16.mxu0 %v15600_v20  ;;  %v17994_v36 = vsub.s32 7, %v17944_v5  ;;  %v15656_v20 = vld [vmem:[#allocation12 + $0x444] ss:$16 sps:$4 sm:$0xff]   ;;  %v3890_v5 = vrot.slane %v17954_v14, %v18000_v22 }
 0x43e   : > { %5590 = vmatprep.subr.bf16.mxu1 %v15602_v21  ;;  %v15659_v21 = vld [vmem:[#allocation12 + $0x644] ss:$16 sps:$4 sm:$0xff]  }
 0x43f   : > { %v3894_v24 = vrot.slane %v17954_v14, %v17994_v36  ;;  %v3943_v48 = vrot.slane %v17952_v55, %v17994_v36  ;;  %v15668_v45 = vld [vmem:[#allocation12 + $0x404] ss:$16 sps:$4 sm:$0xff]  }
 0x440   : > { %5550 = vmatpush2.bf16.msra.mxu0 %v15604_v3  ;;  %v15657_v3 = vld [vmem:[#allocation12 + $0x640] ss:$16 sps:$4 sm:$0xff]  }
 0x441   : > { %5591 = vmatpush2.bf16.msra.mxu1 %v15605_v4  ;;  %5551 = vmatprep.subr.bf16.mxu0 %v15606_v28  ;;  %v3886_v4 = vrot.slane %v17954_v14, %v17991_v17  ;;  %v15665_v28 = vld [vmem:[#allocation12 + $0x624] ss:$16 sps:$4 sm:$0xff]  }
 0x442   : > { %5592 = vmatprep.subr.bf16.mxu1 %v15608_v29  ;;  %v3882_v29 = vrot.slane %v17954_v14, %v17997_v19  ;;  %v3910_v14 = vmul.f32 %v3894_v24, %v3861_v39  ;;  %v15705_v24 = vld [vmem:[#allocation12 + $0x740] ss:$16 sps:$4 sm:$0xff]   ;;  %v15725_v39 = vld [vmem:[#allocation12 + $0x2ec] ss:$16 sps:$4 sm:$0xff]  }
 0x443   : > { %v3908_v42 = vmul.f32 %v3886_v4, %v3859_v38  ;;  %v15702_v4 = vld [vmem:[#allocation12 + $0x540] ss:$16 sps:$4 sm:$0xff]   ;;  %v15722_v38 = vld [vmem:[#allocation12 + $0xec] ss:$16 sps:$4 sm:$0xff]  }
 0x444   : > { %5552 = vmatpush2.bf16.msra.mxu0 %v15610_v32  ;;  %v15660_v32 = vld [vmem:[#allocation12 + $0x420] ss:$16 sps:$4 sm:$0xff]   ;;  %v3959_v52 = vadd.f32 %v3943_v48, %v3910_v14  ;;  %v15723_v14 = vld [vmem:[#allocation12 + $0x2e8] ss:$16 sps:$4 sm:$0xff]  }
 0x445   : > { %5593 = vmatpush2.bf16.msra.mxu1 %v15611_v35  ;;  %5553 = vmatprep.subr.bf16.mxu0 %v15612_v40  ;;  %v3935_v35 = vrot.slane %v17952_v55, %v17991_v17  ;;  %v3931_v40 = vrot.slane %v17952_v55, %v17997_v19  ;;  %v15714_v48 = vld [vmem:[#allocation12 + $0x500] ss:$16 sps:$4 sm:$0xff]  }
 0x446   : > { %5594 = vmatprep.subr.bf16.mxu1 %v15614_v41  ;;  %v3939_v41 = vrot.slane %v17952_v55, %v18000_v22  ;;  %v15666_v55 = vld [vmem:[#allocation12 + $0x400] ss:$16 sps:$4 sm:$0xff]  }
 0x448   : > { %5554 = vmatpush2.bf16.msra.mxu0 %v15616_v50  ;;  %v15671_v50 = vld [vmem:[#allocation12 + $0x604] ss:$16 sps:$4 sm:$0xff]  }
 0x449   : > { %5595 = vmatpush2.bf16.msra.mxu1 %v15617_v26  ;;  %5555 = vmatprep.subr.bf16.mxu0 %v15618_v51  ;;  %v3907_v26 = vmul.f32 %v3882_v29, %v3858_v43  ;;  %v3909_v51 = vmul.f32 %v3890_v5, %v3860_v44  ;;  %v15708_v29 = vld [vmem:[#allocation12 + $0x520] ss:$16 sps:$4 sm:$0xff]   ;;  %v15728_v43 = vld [vmem:[#allocation12 + $0xcc] ss:$16 sps:$4 sm:$0xff]  }
 0x44a   : > { %5596 = vmatprep.subr.bf16.mxu1 %v15620_v27  ;;  %v3957_v27 = vadd.f32 %v3935_v35, %v3908_v42  ;;  %v15711_v5 = vld [vmem:[#allocation12 + $0x720] ss:$16 sps:$4 sm:$0xff]   ;;  %v15719_v35 = vld [vmem:[#allocation12 + $0x704] ss:$16 sps:$4 sm:$0xff]   ;;  %v15720_v42 = vld [vmem:[#allocation12 + $0xe8] ss:$16 sps:$4 sm:$0xff]  }
 0x44b   : > { %v18018_v53 = vadd.f32 %v3931_v40, %v3907_v26  ;;  %v15731_v44 = vld [vmem:[#allocation12 + $0x2cc] ss:$16 sps:$4 sm:$0xff]  }
 0x44c   : > { %5556 = vmatpush2.bf16.msra.mxu0 %v15622_v30  ;;  %v18020_v30 = vadd.f32 %v3939_v41, %v3909_v51  ;;  %v15734_v26 = vld [vmem:[#allocation12 + $0xac] ss:$16 sps:$4 sm:$0xff]  }
 0x44d   : > { %5597 = vmatpush2.bf16.msra.mxu1 %v15623_v54  ;;  %5607 = vmatprep.subr.bf16.mxu0 %v15626_v56  ;;  %v15669_v54 = vld [vmem:[#allocation12 + $0x600] ss:$16 sps:$4 sm:$0xff]   ;;  %v18022_v56 = vpack.c.bf16 %v3957_v27, %v3957_v27  ;;  %v18030_v40 = vpack.c.bf16 %v18018_v53, %v18018_v53  ;;  %v15737_v51 = vld [vmem:[#allocation12 + $0x2ac] ss:$16 sps:$4 sm:$0xff]   ;;  %v15732_v27 = vld [vmem:[#allocation12 + $0xa8] ss:$16 sps:$4 sm:$0xff]  }
 0x44e   : > { %5648 = vmatprep.subr.bf16.mxu1 %v15629_v57  ;;  %v18024_v57 = vpack.c.bf16 %v3959_v52, %v3959_v52  ;;  %v18034_v41 = vpack.c.bf16 %v18020_v30, %v18020_v30  ;;  %v15735_v52 = vld [vmem:[#allocation12 + $0x2a8] ss:$16 sps:$4 sm:$0xff]   ;;  %v15740_v53 = vld [vmem:[#allocation12 + $0x8c] ss:$16 sps:$4 sm:$0xff]  }
 0x44f   : > { %5558 = vmatmul.mubr.bf16.vlgmr.msra.gmra.mxu0 %v17984_v58  ;;  %v15743_v30 = vld [vmem:[#allocation12 + $0x28c] ss:$16 sps:$4 sm:$0xff]  }
 0x450   : > { %5599 = vmatmul.mubr.bf16.vlgmr.msra.gmra.mxu1 %v17986_v59  ;;  %5608 = vmatpush1.bf16.msra.mxu0 %v15624_v61  ;;  %v15674_v61 = vld [vmem:[#allocation12 + $0x5e4] ss:$16 sps:$4 sm:$0xff]  }
 0x451   : > { %5649 = vmatpush1.bf16.msra.mxu1 %v15627_v62  ;;  %5609 = vmatprep.subr.bf16.mxu0 %v15632_v63  ;;  %v15677_v62 = vld [vmem:[#allocation12 + $0x7e4] ss:$16 sps:$4 sm:$0xff]   ;;  %v15672_v63 = vld [vmem:[#allocation12 + $0x5e0] ss:$16 sps:$4 sm:$0xff]  }
 0x452   : > { %5650 = vmatprep.subr.bf16.mxu1 %v15635_v0  ;;  %5639 = vmatprep.mubr.bf16.mxu0 %v18022_v56  ;;  %v15675_v0 = vld [vmem:[#allocation12 + $0x7e0] ss:$16 sps:$4 sm:$0xff]  }
 0x453   : > { %5680 = vmatprep.mubr.bf16.mxu1 %v18024_v57 }
 0x454   : > { %5610 = vmatpush1.bf16.msra.mxu0 %v15630_v1  ;;  %v15680_v1 = vld [vmem:[#allocation12 + $0x5c4] ss:$16 sps:$4 sm:$0xff]  }
 0x455   : > { %5651 = vmatpush1.bf16.msra.mxu1 %v15633_v46  ;;  %5611 = vmatprep.subr.bf16.mxu0 %v15638_v47  ;;  %v15683_v46 = vld [vmem:[#allocation12 + $0x7c4] ss:$16 sps:$4 sm:$0xff]   ;;  %v15678_v47 = vld [vmem:[#allocation12 + $0x5c0] ss:$16 sps:$4 sm:$0xff]  }
 0x456   : > { %5652 = vmatprep.subr.bf16.mxu1 %v15641_v60  ;;  %v15681_v60 = vld [vmem:[#allocation12 + $0x7c0] ss:$16 sps:$4 sm:$0xff]  }
 0x458   : > { %5612 = vmatpush1.bf16.msra.mxu0 %v15636_v7  ;;  %v15686_v7 = vld [vmem:[#allocation12 + $0x5a4] ss:$16 sps:$4 sm:$0xff]  }
 0x459   : > { %5653 = vmatpush1.bf16.msra.mxu1 %v15639_v9  ;;  %5613 = vmatprep.subr.bf16.mxu0 %v15644_v2  ;;  %v15689_v9 = vld [vmem:[#allocation12 + $0x7a4] ss:$16 sps:$4 sm:$0xff]   ;;  %v15684_v2 = vld [vmem:[#allocation12 + $0x5a0] ss:$16 sps:$4 sm:$0xff]  }
 0x45a   : > { %5654 = vmatprep.subr.bf16.mxu1 %v15647_v6  ;;  %v15687_v6 = vld [vmem:[#allocation12 + $0x7a0] ss:$16 sps:$4 sm:$0xff]  }
 0x45c   : > { %5614 = vmatpush1.bf16.msra.mxu0 %v15642_v13  ;;  %v15692_v13 = vld [vmem:[#allocation12 + $0x584] ss:$16 sps:$4 sm:$0xff]  }
 0x45d   : > { %5655 = vmatpush1.bf16.msra.mxu1 %v15645_v15  ;;  %5615 = vmatprep.subr.bf16.mxu0 %v15650_v16  ;;  %v15695_v15 = vld [vmem:[#allocation12 + $0x784] ss:$16 sps:$4 sm:$0xff]   ;;  %v15690_v16 = vld [vmem:[#allocation12 + $0x580] ss:$16 sps:$4 sm:$0xff]  }
 0x45e   : > { %5656 = vmatprep.subr.bf16.mxu1 %v15653_v11  ;;  %v15693_v11 = vld [vmem:[#allocation12 + $0x780] ss:$16 sps:$4 sm:$0xff]  }
 0x460   : > { %5616 = vmatpush1.bf16.msra.mxu0 %v15648_v37  ;;  %v15698_v37 = vld [vmem:[#allocation12 + $0x564] ss:$16 sps:$4 sm:$0xff]  }
 0x461   : > { %5657 = vmatpush1.bf16.msra.mxu1 %v15651_v18  ;;  %5617 = vmatprep.subr.bf16.mxu0 %v15656_v20  ;;  %v15701_v18 = vld [vmem:[#allocation12 + $0x764] ss:$16 sps:$4 sm:$0xff]   ;;  %v15696_v20 = vld [vmem:[#allocation12 + $0x560] ss:$16 sps:$4 sm:$0xff]  }
 0x462   : > { %5658 = vmatprep.subr.bf16.mxu1 %v15659_v21  ;;  %v15699_v21 = vld [vmem:[#allocation12 + $0x760] ss:$16 sps:$4 sm:$0xff]  }
 0x464   : > { %5618 = vmatpush1.bf16.msra.mxu0 %v15654_v23  ;;  %v15704_v23 = vld [vmem:[#allocation12 + $0x544] ss:$16 sps:$4 sm:$0xff]  }
 0x465   : > { %5659 = vmatpush1.bf16.msra.mxu1 %v15657_v3  ;;  %5619 = vmatprep.subr.bf16.mxu0 %v15662_v25  ;;  %v15707_v3 = vld [vmem:[#allocation12 + $0x744] ss:$16 sps:$4 sm:$0xff]  }
 0x466   : > { %5660 = vmatprep.subr.bf16.mxu1 %v15665_v28  ;;  %v15710_v25 = vld [vmem:[#allocation12 + $0x524] ss:$16 sps:$4 sm:$0xff]  }
 0x467   : > { %v15713_v28 = vld [vmem:[#allocation12 + $0x724] ss:$16 sps:$4 sm:$0xff]  }
 0x468   : > { %5620 = vmatpush1.bf16.msra.mxu0 %v15660_v32  ;;  %v15716_v32 = vld [vmem:[#allocation12 + $0x504] ss:$16 sps:$4 sm:$0xff]  }
 0x469   : > { %5661 = vmatpush1.bf16.msra.mxu1 %v15663_v49  ;;  %5621 = vmatprep.subr.bf16.mxu0 %v15668_v45  ;;  %v15717_v49 = vld [vmem:[#allocation12 + $0x700] ss:$16 sps:$4 sm:$0xff]   ;;  %v15726_v45 = vld [vmem:[#allocation12 + $0xc8] ss:$16 sps:$4 sm:$0xff]  }
 0x46a   : > { %5662 = vmatprep.subr.bf16.mxu1 %v15671_v50  ;;  %v15729_v50 = vld [vmem:[#allocation12 + $0x2c8] ss:$16 sps:$4 sm:$0xff]  }
 0x46c   : > { %5622 = vmatpush1.bf16.msra.mxu0 %v15666_v55  ;;  %v15738_v55 = vld [vmem:[#allocation12 + $0x88] ss:$16 sps:$4 sm:$0xff]  }
 0x46d   : > { %5663 = vmatpush1.bf16.msra.mxu1 %v15669_v54  ;;  %5623 = vmatprep.subr.bf16.mxu0 %v15674_v61  ;;  %v15741_v54 = vld [vmem:[#allocation12 + $0x288] ss:$16 sps:$4 sm:$0xff]   ;;  %v15746_v61 = vld [vmem:[#allocation12 + $0x6c] ss:$16 sps:$4 sm:$0xff]  }
 0x46e   : > { %5664 = vmatprep.subr.bf16.mxu1 %v15677_v62  ;;  %v15749_v62 = vld [vmem:[#allocation12 + $0x26c] ss:$16 sps:$4 sm:$0xff]  }
 0x470   : > { %5624 = vmatpush2.bf16.msra.mxu0 %v15672_v63  ;;  %v15752_v63 = vld [vmem:[#allocation12 + $0x4c] ss:$16 sps:$4 sm:$0xff]  }
 0x471   : > { %5665 = vmatpush2.bf16.msra.mxu1 %v15675_v0  ;;  %5625 = vmatprep.subr.bf16.mxu0 %v15680_v1  ;;  %v15755_v0 = vld [vmem:[#allocation12 + $0x24c] ss:$16 sps:$4 sm:$0xff]   ;;  %v15750_v1 = vld [vmem:[#allocation12 + $0x48] ss:$16 sps:$4 sm:$0xff]  }
 0x472   : > { %5666 = vmatprep.subr.bf16.mxu1 %v15683_v46  ;;  %v15753_v46 = vld [vmem:[#allocation12 + $0x248] ss:$16 sps:$4 sm:$0xff]  }
 0x474   : > { %5626 = vmatpush2.bf16.msra.mxu0 %v15678_v47  ;;  %v15758_v47 = vld [vmem:[#allocation12 + $0x2c] ss:$16 sps:$4 sm:$0xff]  }
 0x475   : > { %5667 = vmatpush2.bf16.msra.mxu1 %v15681_v60  ;;  %5627 = vmatprep.subr.bf16.mxu0 %v15686_v7  ;;  %v15761_v60 = vld [vmem:[#allocation12 + $0x22c] ss:$16 sps:$4 sm:$0xff]   ;;  %v15756_v7 = vld [vmem:[#allocation12 + $0x28] ss:$16 sps:$4 sm:$0xff]  }
 0x476   : > { %5668 = vmatprep.subr.bf16.mxu1 %v15689_v9  ;;  %v15759_v9 = vld [vmem:[#allocation12 + $0x228] ss:$16 sps:$4 sm:$0xff]  }
 0x478   : > { %5628 = vmatpush2.bf16.msra.mxu0 %v15684_v2  ;;  %v15764_v2 = vld [vmem:[#allocation12 + $0xc] ss:$16 sps:$4 sm:$0xff]  }
 0x479   : > { %5669 = vmatpush2.bf16.msra.mxu1 %v15687_v6  ;;  %5629 = vmatprep.subr.bf16.mxu0 %v15692_v13  ;;  %v15767_v6 = vld [vmem:[#allocation12 + $0x20c] ss:$16 sps:$4 sm:$0xff]   ;;  %v15762_v13 = vld [vmem:[#allocation12 + $0x8] ss:$16 sps:$4 sm:$0xff]  }
 0x47a   : > { %5670 = vmatprep.subr.bf16.mxu1 %v15695_v15  ;;  %v15765_v15 = vld [vmem:[#allocation12 + $0x208] ss:$16 sps:$4 sm:$0xff]  }
 0x47c   : > { %5630 = vmatpush2.bf16.msra.mxu0 %v15690_v16  ;;  %v15770_v16 = vld [vmem:[#allocation12 + $0x1ec] ss:$16 sps:$4 sm:$0xff]  }
 0x47d   : > { %5671 = vmatpush2.bf16.msra.mxu1 %v15693_v11  ;;  %5631 = vmatprep.subr.bf16.mxu0 %v15698_v37  ;;  %v15773_v11 = vld [vmem:[#allocation12 + $0x3ec] ss:$16 sps:$4 sm:$0xff]   ;;  %v15768_v37 = vld [vmem:[#allocation12 + $0x1e8] ss:$16 sps:$4 sm:$0xff]  }
 0x47e   : > { %5672 = vmatprep.subr.bf16.mxu1 %v15701_v18  ;;  %v15771_v18 = vld [vmem:[#allocation12 + $0x3e8] ss:$16 sps:$4 sm:$0xff]  }
 0x480   : > { %5632 = vmatpush2.bf16.msra.mxu0 %v15696_v20  ;;  %v15776_v20 = vld [vmem:[#allocation12 + $0x1cc] ss:$16 sps:$4 sm:$0xff]  }
 0x481   : > { %5673 = vmatpush2.bf16.msra.mxu1 %v15699_v21  ;;  %5633 = vmatprep.subr.bf16.mxu0 %v15704_v23  ;;  %v15779_v21 = vld [vmem:[#allocation12 + $0x3cc] ss:$16 sps:$4 sm:$0xff]   ;;  %v15774_v23 = vld [vmem:[#allocation12 + $0x1c8] ss:$16 sps:$4 sm:$0xff]  }
 0x482   : > { %5674 = vmatprep.subr.bf16.mxu1 %v15707_v3  ;;  %v15777_v3 = vld [vmem:[#allocation12 + $0x3c8] ss:$16 sps:$4 sm:$0xff]  }
 0x484   : > { %5634 = vmatpush2.bf16.msra.mxu0 %v15702_v4  ;;  %v15782_v4 = vld [vmem:[#allocation12 + $0x1ac] ss:$16 sps:$4 sm:$0xff]  }
 0x485   : > { %5675 = vmatpush2.bf16.msra.mxu1 %v15705_v24  ;;  %5635 = vmatprep.subr.bf16.mxu0 %v15710_v25  ;;  %v15785_v24 = vld [vmem:[#allocation12 + $0x3ac] ss:$16 sps:$4 sm:$0xff]   ;;  %v15780_v25 = vld [vmem:[#allocation12 + $0x1a8] ss:$16 sps:$4 sm:$0xff]  }
 0x486   : > { %5676 = vmatprep.subr.bf16.mxu1 %v15713_v28  ;;  %v15783_v28 = vld [vmem:[#allocation12 + $0x3a8] ss:$16 sps:$4 sm:$0xff]  }
 0x488   : > { %5636 = vmatpush2.bf16.msra.mxu0 %v15708_v29  ;;  %v15788_v29 = vld [vmem:[#allocation12 + $0x18c] ss:$16 sps:$4 sm:$0xff]  }
 0x489   : > { %5677 = vmatpush2.bf16.msra.mxu1 %v15711_v5  ;;  %5637 = vmatprep.subr.bf16.mxu0 %v15716_v32  ;;  %v15791_v5 = vld [vmem:[#allocation12 + $0x38c] ss:$16 sps:$4 sm:$0xff]   ;;  %v15786_v32 = vld [vmem:[#allocation12 + $0x188] ss:$16 sps:$4 sm:$0xff]  }
 0x48a   : > { %5678 = vmatprep.subr.bf16.mxu1 %v15719_v35  ;;  %v15789_v35 = vld [vmem:[#allocation12 + $0x388] ss:$16 sps:$4 sm:$0xff]  }
 0x48c   : > { %5638 = vmatpush2.bf16.msra.mxu0 %v15714_v48  ;;  %v15794_v48 = vld [vmem:[#allocation12 + $0x16c] ss:$16 sps:$4 sm:$0xff]  }
 0x48d   : > { %5679 = vmatpush2.bf16.msra.mxu1 %v15717_v49  ;;  %5689 = vmatprep.subr.bf16.mxu0 %v15722_v38  ;;  %v15797_v49 = vld [vmem:[#allocation12 + $0x36c] ss:$16 sps:$4 sm:$0xff]   ;;  %v15792_v38 = vld [vmem:[#allocation12 + $0x168] ss:$16 sps:$4 sm:$0xff]  }
 0x48e   : > { %5730 = vmatprep.subr.bf16.mxu1 %v15725_v39  ;;  %v15795_v39 = vld [vmem:[#allocation12 + $0x368] ss:$16 sps:$4 sm:$0xff]  }
 0x48f   : > { %5640 = vmatmul.mubr.bf16.vlgmr.msra.gmra.mxu0 %v18030_v40 }
 0x490   : > { %5681 = vmatmul.mubr.bf16.vlgmr.msra.gmra.mxu1 %v18034_v41  ;;  %5690 = vmatpush1.bf16.msra.mxu0 %v15720_v42  ;;  %v15800_v42 = vld [vmem:[#allocation12 + $0x14c] ss:$16 sps:$4 sm:$0xff]  }
 0x491   : > { %5731 = vmatpush1.bf16.msra.mxu1 %v15723_v14  ;;  %5691 = vmatprep.subr.bf16.mxu0 %v15728_v43  ;;  %v15803_v14 = vld [vmem:[#allocation12 + $0x34c] ss:$16 sps:$4 sm:$0xff]   ;;  %v15798_v43 = vld [vmem:[#allocation12 + $0x148] ss:$16 sps:$4 sm:$0xff]  }
 0x492   : > { %5732 = vmatprep.subr.bf16.mxu1 %v15731_v44  ;;  %5721 = vmatprep.mubr.bf16.mxu0 %v17970_v33  ;;  %v15744_v33 = vld [vmem:[#allocation12 + $0x68] ss:$16 sps:$4 sm:$0xff]  }
 0x493   : > { %5762 = vmatprep.mubr.bf16.mxu1 %v17972_v34  ;;  %v15747_v34 = vld [vmem:[#allocation12 + $0x268] ss:$16 sps:$4 sm:$0xff]  }
 0x494   : > { %5692 = vmatpush1.bf16.msra.mxu0 %v15726_v45  ;;  %v15801_v44 = vld [vmem:[#allocation12 + $0x348] ss:$16 sps:$4 sm:$0xff]   ;;  %v15806_v45 = vld [vmem:[#allocation12 + $0x12c] ss:$16 sps:$4 sm:$0xff]  }
 0x495   : > { %5733 = vmatpush1.bf16.msra.mxu1 %v15729_v50  ;;  %5693 = vmatprep.subr.bf16.mxu0 %v15734_v26  ;;  %v15809_v50 = vld [vmem:[#allocation12 + $0x32c] ss:$16 sps:$4 sm:$0xff]   ;;  %v15804_v26 = vld [vmem:[#allocation12 + $0x128] ss:$16 sps:$4 sm:$0xff]  }
 0x496   : > { %5734 = vmatprep.subr.bf16.mxu1 %v15737_v51  ;;  %v15807_v51 = vld [vmem:[#allocation12 + $0x328] ss:$16 sps:$4 sm:$0xff]  }
 0x498   : > { %5694 = vmatpush1.bf16.msra.mxu0 %v15732_v27  ;;  %v15812_v27 = vld [vmem:[#allocation12 + $0x10c] ss:$16 sps:$4 sm:$0xff]  }
 0x499   : > { %5735 = vmatpush1.bf16.msra.mxu1 %v15735_v52  ;;  %5695 = vmatprep.subr.bf16.mxu0 %v15740_v53  ;;  %v15815_v52 = vld [vmem:[#allocation12 + $0x30c] ss:$16 sps:$4 sm:$0xff]   ;;  %v15810_v53 = vld [vmem:[#allocation12 + $0x108] ss:$16 sps:$4 sm:$0xff]  }
 0x49a   : > { %5736 = vmatprep.subr.bf16.mxu1 %v15743_v30  ;;  %v15813_v30 = vld [vmem:[#allocation12 + $0x308] ss:$16 sps:$4 sm:$0xff]  }
 0x49c   : > { %5696 = vmatpush1.bf16.msra.mxu0 %v15738_v55  ;;  %v15818_v55 = vld [vmem:[#allocation12 + $0x4ec] ss:$16 sps:$4 sm:$0xff]  }
 0x49d   : > { %5737 = vmatpush1.bf16.msra.mxu1 %v15741_v54  ;;  %5697 = vmatprep.subr.bf16.mxu0 %v15746_v61  ;;  %v15821_v54 = vld [vmem:[#allocation12 + $0x6ec] ss:$16 sps:$4 sm:$0xff]   ;;  %v15816_v61 = vld [vmem:[#allocation12 + $0x4e8] ss:$16 sps:$4 sm:$0xff]  }
 0x49e   : > { %5738 = vmatprep.subr.bf16.mxu1 %v15749_v62  ;;  %v15819_v62 = vld [vmem:[#allocation12 + $0x6e8] ss:$16 sps:$4 sm:$0xff]  }
 0x4a0   : > { %5698 = vmatpush1.bf16.msra.mxu0 %v15744_v33  ;;  %v15824_v33 = vld [vmem:[#allocation12 + $0x4cc] ss:$16 sps:$4 sm:$0xff]  }
 0x4a1   : > { %5739 = vmatpush1.bf16.msra.mxu1 %v15747_v34  ;;  %5699 = vmatprep.subr.bf16.mxu0 %v15752_v63  ;;  %v15827_v34 = vld [vmem:[#allocation12 + $0x6cc] ss:$16 sps:$4 sm:$0xff]   ;;  %v15822_v63 = vld [vmem:[#allocation12 + $0x4c8] ss:$16 sps:$4 sm:$0xff]  }
 0x4a2   : > { %5740 = vmatprep.subr.bf16.mxu1 %v15755_v0  ;;  %v15825_v0 = vld [vmem:[#allocation12 + $0x6c8] ss:$16 sps:$4 sm:$0xff]  }
 0x4a4   : > { %5700 = vmatpush1.bf16.msra.mxu0 %v15750_v1  ;;  %v15830_v1 = vld [vmem:[#allocation12 + $0x4ac] ss:$16 sps:$4 sm:$0xff]  }
 0x4a5   : > { %5741 = vmatpush1.bf16.msra.mxu1 %v15753_v46  ;;  %5701 = vmatprep.subr.bf16.mxu0 %v15758_v47  ;;  %v15833_v46 = vld [vmem:[#allocation12 + $0x6ac] ss:$16 sps:$4 sm:$0xff]   ;;  %v15828_v47 = vld [vmem:[#allocation12 + $0x4a8] ss:$16 sps:$4 sm:$0xff]  }
 0x4a6   : > { %5742 = vmatprep.subr.bf16.mxu1 %v15761_v60  ;;  %v15831_v60 = vld [vmem:[#allocation12 + $0x6a8] ss:$16 sps:$4 sm:$0xff]  }
 0x4a8   : > { %5702 = vmatpush1.bf16.msra.mxu0 %v15756_v7  ;;  %v15836_v7 = vld [vmem:[#allocation12 + $0x48c] ss:$16 sps:$4 sm:$0xff]  }
 0x4a9   : > { %5743 = vmatpush1.bf16.msra.mxu1 %v15759_v9  ;;  %5703 = vmatprep.subr.bf16.mxu0 %v15764_v2  ;;  %v15834_v9 = vld [vmem:[#allocation12 + $0x488] ss:$16 sps:$4 sm:$0xff]   ;;  %v15842_v2 = vld [vmem:[#allocation12 + $0x46c] ss:$16 sps:$4 sm:$0xff]  }
 0x4aa   : > { %5744 = vmatprep.subr.bf16.mxu1 %v15767_v6  ;;  %v15845_v6 = vld [vmem:[#allocation12 + $0x66c] ss:$16 sps:$4 sm:$0xff]  }
 0x4ac   : > { %5704 = vmatpush1.bf16.msra.mxu0 %v15762_v13  ;;  %v15840_v13 = vld [vmem:[#allocation12 + $0x468] ss:$16 sps:$4 sm:$0xff]  }
 0x4ad   : > { %5745 = vmatpush1.bf16.msra.mxu1 %v15765_v15  ;;  %5705 = vmatprep.subr.bf16.mxu0 %v15770_v16  ;;  %v15843_v15 = vld [vmem:[#allocation12 + $0x668] ss:$16 sps:$4 sm:$0xff]  }
 0x4ae   : > { %5746 = vmatprep.subr.bf16.mxu1 %v15773_v11  ;;  %v15846_v16 = vld [vmem:[#allocation12 + $0x448] ss:$16 sps:$4 sm:$0xff]  }
 0x4af   : > { %v15849_v11 = vld [vmem:[#allocation12 + $0x648] ss:$16 sps:$4 sm:$0xff]  }
 0x4b0   : > { %5706 = vmatpush2.bf16.msra.mxu0 %v15768_v37  ;;  %v15854_v37 = vld [vmem:[#allocation12 + $0x42c] ss:$16 sps:$4 sm:$0xff]  }
 0x4b1   : > { %5747 = vmatpush2.bf16.msra.mxu1 %v15771_v18  ;;  %5707 = vmatprep.subr.bf16.mxu0 %v15776_v20  ;;  %v15857_v18 = vld [vmem:[#allocation12 + $0x62c] ss:$16 sps:$4 sm:$0xff]   ;;  %v15852_v20 = vld [vmem:[#allocation12 + $0x428] ss:$16 sps:$4 sm:$0xff]  }
 0x4b2   : > { %5748 = vmatprep.subr.bf16.mxu1 %v15779_v21  ;;  %v15855_v21 = vld [vmem:[#allocation12 + $0x628] ss:$16 sps:$4 sm:$0xff]  }
 0x4b4   : > { %5708 = vmatpush2.bf16.msra.mxu0 %v15774_v23  ;;  %v15860_v23 = vld [vmem:[#allocation12 + $0x40c] ss:$16 sps:$4 sm:$0xff]  }
 0x4b5   : > { %5749 = vmatpush2.bf16.msra.mxu1 %v15777_v3  ;;  %5709 = vmatprep.subr.bf16.mxu0 %v15782_v4  ;;  %v15863_v3 = vld [vmem:[#allocation12 + $0x60c] ss:$16 sps:$4 sm:$0xff]   ;;  %v15858_v4 = vld [vmem:[#allocation12 + $0x408] ss:$16 sps:$4 sm:$0xff]  }
 0x4b6   : > { %5750 = vmatprep.subr.bf16.mxu1 %v15785_v24  ;;  %v15861_v24 = vld [vmem:[#allocation12 + $0x608] ss:$16 sps:$4 sm:$0xff]  }
 0x4b8   : > { %5710 = vmatpush2.bf16.msra.mxu0 %v15780_v25  ;;  %v15866_v25 = vld [vmem:[#allocation12 + $0x5ec] ss:$16 sps:$4 sm:$0xff]  }
 0x4b9   : > { %5751 = vmatpush2.bf16.msra.mxu1 %v15783_v28  ;;  %5711 = vmatprep.subr.bf16.mxu0 %v15788_v29  ;;  %v15869_v28 = vld [vmem:[#allocation12 + $0x7ec] ss:$16 sps:$4 sm:$0xff]   ;;  %v15864_v29 = vld [vmem:[#allocation12 + $0x5e8] ss:$16 sps:$4 sm:$0xff]  }
 0x4ba   : > { %5752 = vmatprep.subr.bf16.mxu1 %v15791_v5  ;;  %v15867_v5 = vld [vmem:[#allocation12 + $0x7e8] ss:$16 sps:$4 sm:$0xff]  }
 0x4bc   : > { %5712 = vmatpush2.bf16.msra.mxu0 %v15786_v32  ;;  %v15872_v32 = vld [vmem:[#allocation12 + $0x5cc] ss:$16 sps:$4 sm:$0xff]  }
 0x4bd   : > { %5753 = vmatpush2.bf16.msra.mxu1 %v15789_v35  ;;  %5713 = vmatprep.subr.bf16.mxu0 %v15794_v48  ;;  %v15875_v35 = vld [vmem:[#allocation12 + $0x7cc] ss:$16 sps:$4 sm:$0xff]   ;;  %v15870_v48 = vld [vmem:[#allocation12 + $0x5c8] ss:$16 sps:$4 sm:$0xff]  }
 0x4be   : > { %5754 = vmatprep.subr.bf16.mxu1 %v15797_v49  ;;  %v15873_v49 = vld [vmem:[#allocation12 + $0x7c8] ss:$16 sps:$4 sm:$0xff]  }
 0x4c0   : > { %5714 = vmatpush2.bf16.msra.mxu0 %v15792_v38  ;;  %v15878_v38 = vld [vmem:[#allocation12 + $0x5ac] ss:$16 sps:$4 sm:$0xff]  }
 0x4c1   : > { %5755 = vmatpush2.bf16.msra.mxu1 %v15795_v39  ;;  %5715 = vmatprep.subr.bf16.mxu0 %v15800_v42  ;;  %v15881_v39 = vld [vmem:[#allocation12 + $0x7ac] ss:$16 sps:$4 sm:$0xff]   ;;  %v15876_v42 = vld [vmem:[#allocation12 + $0x5a8] ss:$16 sps:$4 sm:$0xff]  }
 0x4c2   : > { %5756 = vmatprep.subr.bf16.mxu1 %v15803_v14  ;;  %v15879_v14 = vld [vmem:[#allocation12 + $0x7a8] ss:$16 sps:$4 sm:$0xff]  }
 0x4c4   : > { %5716 = vmatpush2.bf16.msra.mxu0 %v15798_v43  ;;  %v15884_v43 = vld [vmem:[#allocation12 + $0x58c] ss:$16 sps:$4 sm:$0xff]  }
 0x4c5   : > { %5757 = vmatpush2.bf16.msra.mxu1 %v15801_v44  ;;  %5717 = vmatprep.subr.bf16.mxu0 %v15806_v45  ;;  %v15887_v44 = vld [vmem:[#allocation12 + $0x78c] ss:$16 sps:$4 sm:$0xff]   ;;  %v15882_v45 = vld [vmem:[#allocation12 + $0x588] ss:$16 sps:$4 sm:$0xff]  }
 0x4c6   : > { %5758 = vmatprep.subr.bf16.mxu1 %v15809_v50  ;;  %v15885_v50 = vld [vmem:[#allocation12 + $0x788] ss:$16 sps:$4 sm:$0xff]  }
 0x4c8   : > { %5718 = vmatpush2.bf16.msra.mxu0 %v15804_v26  ;;  %v15890_v26 = vld [vmem:[#allocation12 + $0x56c] ss:$16 sps:$4 sm:$0xff]  }
 0x4c9   : > { %5759 = vmatpush2.bf16.msra.mxu1 %v15807_v51  ;;  %5719 = vmatprep.subr.bf16.mxu0 %v15812_v27  ;;  %v15893_v51 = vld [vmem:[#allocation12 + $0x76c] ss:$16 sps:$4 sm:$0xff]   ;;  %v15888_v27 = vld [vmem:[#allocation12 + $0x568] ss:$16 sps:$4 sm:$0xff]  }
 0x4ca   : > { %5760 = vmatprep.subr.bf16.mxu1 %v15815_v52  ;;  %v15891_v52 = vld [vmem:[#allocation12 + $0x768] ss:$16 sps:$4 sm:$0xff]  }
 0x4cc   : > { %5720 = vmatpush2.bf16.msra.mxu0 %v15810_v53  ;;  %v15896_v53 = vld [vmem:[#allocation12 + $0x54c] ss:$16 sps:$4 sm:$0xff]  }
 0x4cd   : > { %5761 = vmatpush2.bf16.msra.mxu1 %v15813_v30  ;;  %5771 = vmatprep.subr.bf16.mxu0 %v15818_v55  ;;  %v15899_v30 = vld [vmem:[#allocation12 + $0x74c] ss:$16 sps:$4 sm:$0xff]   ;;  %v15894_v55 = vld [vmem:[#allocation12 + $0x548] ss:$16 sps:$4 sm:$0xff]  }
 0x4ce   : > { %5812 = vmatprep.subr.bf16.mxu1 %v15821_v54  ;;  %v15897_v54 = vld [vmem:[#allocation12 + $0x748] ss:$16 sps:$4 sm:$0xff]  }
 0x4cf   : > { %5722 = vmatmul.mubr.bf16.vlgmr.msra.gmra.mxu0 %v17984_v58  ;;  %v15839_v58 = vld [vmem:[#allocation12 + $0x68c] ss:$16 sps:$4 sm:$0xff]  }
 0x4d0   : > { %5763 = vmatmul.mubr.bf16.vlgmr.msra.gmra.mxu1 %v17986_v59  ;;  %5772 = vmatpush1.bf16.msra.mxu0 %v15816_v61  ;;  %v15837_v59 = vld [vmem:[#allocation12 + $0x688] ss:$16 sps:$4 sm:$0xff]   ;;  %v15902_v61 = vld [vmem:[#allocation12 + $0x52c] ss:$16 sps:$4 sm:$0xff]  }
 0x4d1   : > { %5813 = vmatpush1.bf16.msra.mxu1 %v15819_v62  ;;  %5773 = vmatprep.subr.bf16.mxu0 %v15824_v33  ;;  %v15905_v62 = vld [vmem:[#allocation12 + $0x72c] ss:$16 sps:$4 sm:$0xff]   ;;  %v15900_v33 = vld [vmem:[#allocation12 + $0x528] ss:$16 sps:$4 sm:$0xff]  }
 0x4d2   : > { %5814 = vmatprep.subr.bf16.mxu1 %v15827_v34  ;;  %5803 = vmatprep.mubr.bf16.mxu0 %v18022_v56  ;;  %v15848_v56 = vld [vmem:[#allocation12 + $0x44c] ss:$16 sps:$4 sm:$0xff]   ;;  %v15903_v34 = vld [vmem:[#allocation12 + $0x728] ss:$16 sps:$4 sm:$0xff]  }
 0x4d3   : > { %5844 = vmatprep.mubr.bf16.mxu1 %v18024_v57  ;;  %v15851_v57 = vld [vmem:[#allocation12 + $0x64c] ss:$16 sps:$4 sm:$0xff]  }
 0x4d4   : > { %5774 = vmatpush1.bf16.msra.mxu0 %v15822_v63  ;;  %v15908_v63 = vld [vmem:[#allocation12 + $0x50c] ss:$16 sps:$4 sm:$0xff]  }
 0x4d5   : > { %5815 = vmatpush1.bf16.msra.mxu1 %v15825_v0  ;;  %5775 = vmatprep.subr.bf16.mxu0 %v15830_v1  ;;  %v15911_v0 = vld [vmem:[#allocation12 + $0x70c] ss:$16 sps:$4 sm:$0xff]   ;;  %v15906_v1 = vld [vmem:[#allocation12 + $0x508] ss:$16 sps:$4 sm:$0xff]  }
 0x4d6   : > { %5816 = vmatprep.subr.bf16.mxu1 %v15833_v46  ;;  %v15909_v46 = vld [vmem:[#allocation12 + $0x708] ss:$16 sps:$4 sm:$0xff]  }
 0x4d8   : > { %5776 = vmatpush1.bf16.msra.mxu0 %v15828_v47  ;;  %v15914_v47 = vld [vmem:[#allocation13 + $0xe4] ss:$16 sps:$4 sm:$0xff]  }
 0x4d9   : > { %5817 = vmatpush1.bf16.msra.mxu1 %v15831_v60  ;;  %5777 = vmatprep.subr.bf16.mxu0 %v15836_v7  ;;  %v15912_v60 = vld [vmem:[#allocation13 + $0xe0] ss:$16 sps:$4 sm:$0xff]   ;;  %v15917_v7 = vld [vmem:[#allocation13 + $0xc4] ss:$16 sps:$4 sm:$0xff]  }
 0x4da   : > { %5818 = vmatprep.subr.bf16.mxu1 %v15839_v58  ;;  %v15915_v58 = vld [vmem:[#allocation13 + $0xc0] ss:$16 sps:$4 sm:$0xff]  }
 0x4dc   : > { %5778 = vmatpush1.bf16.msra.mxu0 %v15834_v9 }
 0x4dd   : > { %5819 = vmatpush1.bf16.msra.mxu1 %v15837_v59  ;;  %5779 = vmatprep.subr.bf16.mxu0 %v15842_v2 }
 0x4de   : > { %5820 = vmatprep.subr.bf16.mxu1 %v15845_v6 }
 0x4e0   : > { %5780 = vmatpush1.bf16.msra.mxu0 %v15840_v13  ;;  %v15920_v13 = vld [vmem:[#allocation13 + $0xa4] ss:$16 sps:$4 sm:$0xff]  }
 0x4e1   : > { %5821 = vmatpush1.bf16.msra.mxu1 %v15843_v15  ;;  %5781 = vmatprep.subr.bf16.mxu0 %v15848_v56  ;;  %v15918_v15 = vld [vmem:[#allocation13 + $0xa0] ss:$16 sps:$4 sm:$0xff]  }
 0x4e2   : > { %5822 = vmatprep.subr.bf16.mxu1 %v15851_v57 }
 0x4e4   : > { %5782 = vmatpush1.bf16.msra.mxu0 %v15846_v16 }
 0x4e5   : > { %5823 = vmatpush1.bf16.msra.mxu1 %v15849_v11  ;;  %5783 = vmatprep.subr.bf16.mxu0 %v15854_v37  ;;  %v15923_v37 = vld [vmem:[#allocation13 + $0x84] ss:$16 sps:$4 sm:$0xff]  }
 0x4e6   : > { %5824 = vmatprep.subr.bf16.mxu1 %v15857_v18  ;;  %v15921_v18 = vld [vmem:[#allocation13 + $0x80] ss:$16 sps:$4 sm:$0xff]  }
 0x4e8   : > { %5784 = vmatpush1.bf16.msra.mxu0 %v15852_v20  ;;  %v15926_v20 = vld [vmem:[#allocation13 + $0x64] ss:$16 sps:$4 sm:$0xff]  }
 0x4e9   : > { %5825 = vmatpush1.bf16.msra.mxu1 %v15855_v21  ;;  %5785 = vmatprep.subr.bf16.mxu0 %v15860_v23  ;;  %v16011_v21 = vld [vmem:[#allocation13 + $0x2c0] ss:$16 sps:$4 sm:$0xff]   ;;  %v16013_v23 = vld [vmem:[#allocation13 + $0x2c4] ss:$16 sps:$4 sm:$0xff]  }
 0x4ea   : > { %5826 = vmatprep.subr.bf16.mxu1 %v15863_v3  ;;  %v15924_v3 = vld [vmem:[#allocation13 + $0x60] ss:$16 sps:$4 sm:$0xff]  }
 0x4ec   : > { %5786 = vmatpush1.bf16.msra.mxu0 %v15858_v4  ;;  %v16016_v4 = vld [vmem:[#allocation13 + $0x2a4] ss:$16 sps:$4 sm:$0xff]  }
 0x4ed   : > { %5827 = vmatpush1.bf16.msra.mxu1 %v15861_v24  ;;  %5787 = vmatprep.subr.bf16.mxu0 %v15866_v25  ;;  %v15929_v24 = vld [vmem:[#allocation13 + $0x44] ss:$16 sps:$4 sm:$0xff]   ;;  %v16014_v25 = vld [vmem:[#allocation13 + $0x2a0] ss:$16 sps:$4 sm:$0xff]  }
 0x4ee   : > { %5828 = vmatprep.subr.bf16.mxu1 %v15869_v28  ;;  %v15927_v28 = vld [vmem:[#allocation13 + $0x40] ss:$16 sps:$4 sm:$0xff]  }
 0x4f0   : > { %5788 = vmatpush2.bf16.msra.mxu0 %v15864_v29  ;;  %v16019_v29 = vld [vmem:[#allocation13 + $0x284] ss:$16 sps:$4 sm:$0xff]  }
 0x4f1   : > { %5829 = vmatpush2.bf16.msra.mxu1 %v15867_v5  ;;  %5789 = vmatprep.subr.bf16.mxu0 %v15872_v32  ;;  %v15932_v5 = vld [vmem:[#allocation13 + $0x24] ss:$16 sps:$4 sm:$0xff]   ;;  %v15930_v32 = vld [vmem:[#allocation13 + $0x20] ss:$16 sps:$4 sm:$0xff]  }
 0x4f2   : > { %5830 = vmatprep.subr.bf16.mxu1 %v15875_v35  ;;  %v15935_v35 = vld [vmem:[#allocation13 + $0x4] ss:$16 sps:$4 sm:$0xff]  }
 0x4f4   : > { %5790 = vmatpush2.bf16.msra.mxu0 %v15870_v48  ;;  %v16017_v48 = vld [vmem:[#allocation13 + $0x280] ss:$16 sps:$4 sm:$0xff]  }
 0x4f5   : > { %5831 = vmatpush2.bf16.msra.mxu1 %v15873_v49  ;;  %5791 = vmatprep.subr.bf16.mxu0 %v15878_v38  ;;  %v16022_v49 = vld [vmem:[#allocation13 + $0x264] ss:$16 sps:$4 sm:$0xff]   ;;  %v16020_v38 = vld [vmem:[#allocation13 + $0x260] ss:$16 sps:$4 sm:$0xff]  }
 0x4f6   : > { %5832 = vmatprep.subr.bf16.mxu1 %v15881_v39  ;;  %v15933_v39 = vld [vmem:[#allocation13] ss:$16 sps:$4 sm:$0xff]  }
 0x4f8   : > { %5792 = vmatpush2.bf16.msra.mxu0 %v15876_v42  ;;  %v16025_v42 = vld [vmem:[#allocation13 + $0x244] ss:$16 sps:$4 sm:$0xff]  }
 0x4f9   : > { %5833 = vmatpush2.bf16.msra.mxu1 %v15879_v14  ;;  %5793 = vmatprep.subr.bf16.mxu0 %v15884_v43  ;;  %v15938_v14 = vld [vmem:[#allocation13 + $0x1e4] ss:$16 sps:$4 sm:$0xff]   ;;  %v16023_v43 = vld [vmem:[#allocation13 + $0x240] ss:$16 sps:$4 sm:$0xff]  }
 0x4fa   : > { %5834 = vmatprep.subr.bf16.mxu1 %v15887_v44  ;;  %v15936_v44 = vld [vmem:[#allocation13 + $0x1e0] ss:$16 sps:$4 sm:$0xff]  }
 0x4fc   : > { %5794 = vmatpush2.bf16.msra.mxu0 %v15882_v45  ;;  %v16028_v45 = vld [vmem:[#allocation13 + $0x224] ss:$16 sps:$4 sm:$0xff]  }
 0x4fd   : > { %5835 = vmatpush2.bf16.msra.mxu1 %v15885_v50  ;;  %5795 = vmatprep.subr.bf16.mxu0 %v15890_v26  ;;  %v15941_v50 = vld [vmem:[#allocation13 + $0x1c4] ss:$16 sps:$4 sm:$0xff]   ;;  %v16026_v26 = vld [vmem:[#allocation13 + $0x220] ss:$16 sps:$4 sm:$0xff]  }
 0x4fe   : > { %5836 = vmatprep.subr.bf16.mxu1 %v15893_v51  ;;  %v15939_v51 = vld [vmem:[#allocation13 + $0x1c0] ss:$16 sps:$4 sm:$0xff]  }
 0x500   : > { %5796 = vmatpush2.bf16.msra.mxu0 %v15888_v27  ;;  %v16031_v27 = vld [vmem:[#allocation13 + $0x204] ss:$16 sps:$4 sm:$0xff]  }
 0x501   : > { %5837 = vmatpush2.bf16.msra.mxu1 %v15891_v52  ;;  %5797 = vmatprep.subr.bf16.mxu0 %v15896_v53  ;;  %v15944_v52 = vld [vmem:[#allocation13 + $0x1a4] ss:$16 sps:$4 sm:$0xff]   ;;  %v16029_v53 = vld [vmem:[#allocation13 + $0x200] ss:$16 sps:$4 sm:$0xff]  }
 0x502   : > { %5838 = vmatprep.subr.bf16.mxu1 %v15899_v30  ;;  %v15942_v30 = vld [vmem:[#allocation13 + $0x1a0] ss:$16 sps:$4 sm:$0xff]  }
 0x504   : > { %5798 = vmatpush2.bf16.msra.mxu0 %v15894_v55  ;;  %v16034_v55 = vld [vmem:[#allocation13 + $0x3e4] ss:$16 sps:$4 sm:$0xff]  }
 0x505   : > { %5839 = vmatpush2.bf16.msra.mxu1 %v15897_v54  ;;  %5799 = vmatprep.subr.bf16.mxu0 %v15902_v61  ;;  %v15947_v54 = vld [vmem:[#allocation13 + $0x184] ss:$16 sps:$4 sm:$0xff]   ;;  %v16032_v61 = vld [vmem:[#allocation13 + $0x3e0] ss:$16 sps:$4 sm:$0xff]  }
 0x506   : > { %5840 = vmatprep.subr.bf16.mxu1 %v15905_v62  ;;  %v15945_v62 = vld [vmem:[#allocation13 + $0x180] ss:$16 sps:$4 sm:$0xff]  }
 0x508   : > { %5800 = vmatpush2.bf16.msra.mxu0 %v15900_v33  ;;  %v16037_v33 = vld [vmem:[#allocation13 + $0x3c4] ss:$16 sps:$4 sm:$0xff]  }
 0x509   : > { %5841 = vmatpush2.bf16.msra.mxu1 %v15903_v34  ;;  %5801 = vmatprep.subr.bf16.mxu0 %v15908_v63  ;;  %v15950_v34 = vld [vmem:[#allocation13 + $0x164] ss:$16 sps:$4 sm:$0xff]   ;;  %v16035_v63 = vld [vmem:[#allocation13 + $0x3c0] ss:$16 sps:$4 sm:$0xff]  }
 0x50a   : > { %5842 = vmatprep.subr.bf16.mxu1 %v15911_v0  ;;  %v15948_v0 = vld [vmem:[#allocation13 + $0x160] ss:$16 sps:$4 sm:$0xff]  }
 0x50c   : > { %5802 = vmatpush2.bf16.msra.mxu0 %v15906_v1  ;;  %v16040_v1 = vld [vmem:[#allocation13 + $0x3a4] ss:$16 sps:$4 sm:$0xff]  }
 0x50d   : > { %5843 = vmatpush2.bf16.msra.mxu1 %v15909_v46  ;;  %6650 = vmatprep.subr.bf16.mxu0 %v15914_v47  ;;  %v15953_v46 = vld [vmem:[#allocation13 + $0x144] ss:$16 sps:$4 sm:$0xff]   ;;  %v16038_v47 = vld [vmem:[#allocation13 + $0x3a0] ss:$16 sps:$4 sm:$0xff]  }
 0x50f   : > { %v18044_v9 = vpop.f32.mrf.mxu0  ;;  %5804 = vmatmul.mubr.bf16.vlgmr.msra.gmra.mxu0 %v18030_v40  ;;  %v16008_v40 = vld [vmem:[#allocation13 + $0x2e0] ss:$16 sps:$4 sm:$0xff]  }
 0x510   : > { %v18046_v59 = vpop.f32.mrf.mxu1  ;;  %5845 = vmatmul.mubr.bf16.vlgmr.msra.gmra.mxu1 %v18034_v41  ;;  %6651 = vmatpush1.bf16.msra.mxu0 %v15912_v60  ;;  %v16010_v41 = vld [vmem:[#allocation13 + $0x2e4] ss:$16 sps:$4 sm:$0xff]   ;;  %v15951_v60 = vld [vmem:[#allocation13 + $0x140] ss:$16 sps:$4 sm:$0xff]  }
 0x511   : > { %v18050_v2 = vpop.f32.mrf.mxu0  ;;  %6652 = vmatprep.subr.bf16.mxu0 %v15917_v7  ;;  %6691 = vmatprep.subr.bf16.mxu1 %v16010_v41  ;;  %v16043_v7 = vld [vmem:[#allocation13 + $0x384] ss:$16 sps:$4 sm:$0xff]   ;;  %v15962_v41 = vld [vmem:[#allocation13 + $0xec] ss:$16 sps:$4 sm:$0xff]  }
 0x512   : > { %v18052_v6 = vpop.f32.mrf.mxu1  ;;  %6692 = vmatpush1.bf16.msra.mxu1 %v16008_v40  ;;  %v16049_v40 = vld [vmem:[#allocation13 + $0x344] ss:$16 sps:$4 sm:$0xff]  }
 0x513   : > { %v5563_v56 = vpop.f32.mrf.mxu0  ;;  %6693 = vmatprep.subr.bf16.mxu1 %v16013_v23  ;;  %v16047_v23 = vld [vmem:[#allocation13 + $0x340] ss:$16 sps:$4 sm:$0xff]  }
 0x514   : > { %v5604_v57 = vpop.f32.mrf.mxu1  ;;  %6653 = vmatpush1.bf16.msra.mxu0 %v15915_v58  ;;  %v15956_v58 = vld [vmem:[#allocation13 + $0x124] ss:$16 sps:$4 sm:$0xff]   ;;  %v15954_v56 = vld [vmem:[#allocation13 + $0x120] ss:$16 sps:$4 sm:$0xff]  }
 0x515   : > { %v5564_v16 = vpop.f32.mrf.mxu0  ;;  %6654 = vmatprep.subr.bf16.mxu0 %v15920_v13  ;;  %v18054_v13 = vld [vmem:[#allocation10 + $0x8] sm:$0xf]  ;;  %v16046_v57 = vld [vmem:[#allocation13 + $0x364] ss:$16 sps:$4 sm:$0xff]  }
 0x516   : > { %v5605_v11 = vpop.f32.mrf.mxu1  ;;  %6694 = vmatpush1.bf16.msra.mxu1 %v16011_v21  ;;  %v15959_v16 = vld [vmem:[#allocation13 + $0x104] ss:$16 sps:$4 sm:$0xff]  }
 0x517   : > { %6695 = vmatprep.subr.bf16.mxu1 %v16016_v4  ;;  %v4228_v11 = vrot.slane %v18054_v13, %v17965_v8 }
 0x518   : > { %6655 = vmatpush1.bf16.msra.mxu0 %v15918_v15  ;;  %v16041_v15 = vld [vmem:[#allocation13 + $0x380] ss:$16 sps:$4 sm:$0xff]  }
 0x519   : > { %6656 = vmatprep.subr.bf16.mxu0 %v15923_v37  ;;  %v16044_v37 = vld [vmem:[#allocation13 + $0x360] ss:$16 sps:$4 sm:$0xff]   ;;  %v5560_v21 = vadd.f32 %v18044_v9, %v4228_v11  ;;  %v15998_v11 = vld [vmem:[#allocation13 + $0x16c] ss:$16 sps:$4 sm:$0xff]  }
 0x51a   : > { %6696 = vmatpush1.bf16.msra.mxu1 %v16014_v25 }
 0x51b   : > { %6697 = vmatprep.subr.bf16.mxu1 %v16019_v29  ;;  %v5601_v4 = vadd.f32 %v18046_v59, %v5560_v21 }
 0x51c   : > { %6657 = vmatpush1.bf16.msra.mxu0 %v15921_v18  ;;  %v4232_v18 = vrot.slane %v18054_v13, %v17947_v10 }
 0x51d   : > { %6658 = vmatprep.subr.bf16.mxu0 %v15926_v20  ;;  %v15957_v20 = vld [vmem:[#allocation13 + $0x100] ss:$16 sps:$4 sm:$0xff]  }
 0x51e   : > { %6698 = vmatpush1.bf16.msra.mxu1 %v16017_v48 }
 0x51f   : > { %6699 = vmatprep.subr.bf16.mxu1 %v16022_v49  ;;  %v16050_v49 = vld [vmem:[#allocation13 + $0x320] ss:$16 sps:$4 sm:$0xff]  }
 0x520   : > { %6659 = vmatpush1.bf16.msra.mxu0 %v15924_v3  ;;  %v5562_v3 = vadd.f32 %v18050_v2, %v4232_v18  ;;  %v16001_v18 = vld [vmem:[#allocation13 + $0x14c] ss:$16 sps:$4 sm:$0xff]  }
 0x521   : > { %6660 = vmatprep.subr.bf16.mxu0 %v15929_v24 }
 0x522   : > { %6700 = vmatpush1.bf16.msra.mxu1 %v16020_v38 }
 0x523   : > { %6701 = vmatprep.subr.bf16.mxu1 %v16025_v42 }
 0x524   : > { %6661 = vmatpush1.bf16.msra.mxu0 %v15927_v28  ;;  %v5603_v28 = vadd.f32 %v18052_v6, %v5562_v3 }
 0x525   : > { %6662 = vmatprep.subr.bf16.mxu0 %v15932_v5 }
 0x526   : > { %6702 = vmatpush1.bf16.msra.mxu1 %v16023_v43  ;;  %v16055_v43 = vld [vmem:[#allocation13 + $0x304] ss:$16 sps:$4 sm:$0xff]  }
 0x527   : > { %6703 = vmatprep.subr.bf16.mxu1 %v16028_v45  ;;  %v16053_v45 = vld [vmem:[#allocation13 + $0x300] ss:$16 sps:$4 sm:$0xff]  }
 0x528   : > { %6663 = vmatpush1.bf16.msra.mxu0 %v15930_v32 }
 0x529   : > { %6664 = vmatprep.subr.bf16.mxu0 %v15935_v35  ;;  %v16052_v35 = vld [vmem:[#allocation13 + $0x324] ss:$16 sps:$4 sm:$0xff]  }
 0x52a   : > { %6704 = vmatpush1.bf16.msra.mxu1 %v16026_v26 }
 0x52b   : > { %6705 = vmatprep.subr.bf16.mxu1 %v16031_v27  ;;  %v16058_v27 = vld [vmem:[#allocation13 + $0x2ec] ss:$16 sps:$4 sm:$0xff]  }
 0x52c   : > { %6665 = vmatpush1.bf16.msra.mxu0 %v15933_v39 }
 0x52d   : > { %6666 = vmatprep.subr.bf16.mxu0 %v15938_v14 }
 0x52e   : > { %6706 = vmatpush1.bf16.msra.mxu1 %v16029_v53  ;;  %v15968_v53 = vld [vmem:[#allocation13 + $0xac] ss:$16 sps:$4 sm:$0xff]  }
 0x52f   : > { %6707 = vmatprep.subr.bf16.mxu1 %v16034_v55  ;;  %v15971_v55 = vld [vmem:[#allocation13 + $0x8c] ss:$16 sps:$4 sm:$0xff]  }
 0x530   : > { %6667 = vmatpush2.bf16.msra.mxu0 %v15936_v44 }
 0x531   : > { %6668 = vmatprep.subr.bf16.mxu0 %v15941_v50  ;;  %v15960_v50 = vld [vmem:[#allocation13 + $0xe8] ss:$16 sps:$4 sm:$0xff]  }
 0x532   : > { %6708 = vmatpush2.bf16.msra.mxu1 %v16032_v61  ;;  %v15974_v61 = vld [vmem:[#allocation13 + $0x6c] ss:$16 sps:$4 sm:$0xff]  }
 0x533   : > { %6709 = vmatprep.subr.bf16.mxu1 %v16037_v33  ;;  %v15977_v33 = vld [vmem:[#allocation13 + $0x4c] ss:$16 sps:$4 sm:$0xff]  }
 0x534   : > { %6669 = vmatpush2.bf16.msra.mxu0 %v15939_v51  ;;  %v15965_v51 = vld [vmem:[#allocation13 + $0xcc] ss:$16 sps:$4 sm:$0xff]  }
 0x535   : > { %6670 = vmatprep.subr.bf16.mxu0 %v15944_v52  ;;  %v15963_v52 = vld [vmem:[#allocation13 + $0xc8] ss:$16 sps:$4 sm:$0xff]  }
 0x536   : > { %6710 = vmatpush2.bf16.msra.mxu1 %v16035_v63  ;;  %v15980_v63 = vld [vmem:[#allocation13 + $0x2c] ss:$16 sps:$4 sm:$0xff]  }
 0x537   : > { %6711 = vmatprep.subr.bf16.mxu1 %v16040_v1  ;;  %v15983_v1 = vld [vmem:[#allocation13 + $0xc] ss:$16 sps:$4 sm:$0xff]  }
 0x538   : > { %6671 = vmatpush2.bf16.msra.mxu0 %v15942_v30  ;;  %v15966_v30 = vld [vmem:[#allocation13 + $0xa8] ss:$16 sps:$4 sm:$0xff]  }
 0x539   : > { %6672 = vmatprep.subr.bf16.mxu0 %v15947_v54  ;;  %v15969_v54 = vld [vmem:[#allocation13 + $0x88] ss:$16 sps:$4 sm:$0xff]  }
 0x53a   : > { %6712 = vmatpush2.bf16.msra.mxu1 %v16038_v47  ;;  %v15986_v47 = vld [vmem:[#allocation13 + $0x1ec] ss:$16 sps:$4 sm:$0xff]  }
 0x53b   : > { %6713 = vmatprep.subr.bf16.mxu1 %v16043_v7  ;;  %v15989_v7 = vld [vmem:[#allocation13 + $0x1cc] ss:$16 sps:$4 sm:$0xff]  }
 0x53c   : > { %6673 = vmatpush2.bf16.msra.mxu0 %v15945_v62  ;;  %v15972_v62 = vld [vmem:[#allocation13 + $0x68] ss:$16 sps:$4 sm:$0xff]  }
 0x53d   : > { %6674 = vmatprep.subr.bf16.mxu0 %v15950_v34  ;;  %v15975_v34 = vld [vmem:[#allocation13 + $0x48] ss:$16 sps:$4 sm:$0xff]  }
 0x53e   : > { %6714 = vmatpush2.bf16.msra.mxu1 %v16041_v15  ;;  %v15992_v15 = vld [vmem:[#allocation13 + $0x1ac] ss:$16 sps:$4 sm:$0xff]  }
 0x53f   : > { %6715 = vmatprep.subr.bf16.mxu1 %v16046_v57  ;;  %v15995_v57 = vld [vmem:[#allocation13 + $0x18c] ss:$16 sps:$4 sm:$0xff]  }
 0x540   : > { %6675 = vmatpush2.bf16.msra.mxu0 %v15948_v0  ;;  %v15978_v0 = vld [vmem:[#allocation13 + $0x28] ss:$16 sps:$4 sm:$0xff]  }
 0x541   : > { %6676 = vmatprep.subr.bf16.mxu0 %v15953_v46  ;;  %v15981_v46 = vld [vmem:[#allocation13 + $0x8] ss:$16 sps:$4 sm:$0xff]  }
 0x542   : > { %6716 = vmatpush2.bf16.msra.mxu1 %v16044_v37  ;;  %v15996_v37 = vld [vmem:[#allocation13 + $0x168] ss:$16 sps:$4 sm:$0xff]  }
 0x543   : > { %6717 = vmatprep.subr.bf16.mxu1 %v16049_v40  ;;  %v16004_v40 = vld [vmem:[#allocation13 + $0x12c] ss:$16 sps:$4 sm:$0xff]  }
 0x544   : > { %6677 = vmatpush2.bf16.msra.mxu0 %v15951_v60  ;;  %v15984_v60 = vld [vmem:[#allocation13 + $0x1e8] ss:$16 sps:$4 sm:$0xff]  }
 0x545   : > { %6678 = vmatprep.subr.bf16.mxu0 %v15956_v58  ;;  %v15987_v58 = vld [vmem:[#allocation13 + $0x1c8] ss:$16 sps:$4 sm:$0xff]  }
 0x546   : > { %6718 = vmatpush2.bf16.msra.mxu1 %v16047_v23  ;;  %v16002_v23 = vld [vmem:[#allocation13 + $0x128] ss:$16 sps:$4 sm:$0xff]  }
 0x547   : > { %6719 = vmatprep.subr.bf16.mxu1 %v16052_v35  ;;  %v4236_v35 = vrot.slane %v18054_v13, %v17968_v12 }
 0x548   : > { %6679 = vmatpush2.bf16.msra.mxu0 %v15954_v56  ;;  %v15990_v56 = vld [vmem:[#allocation13 + $0x1a8] ss:$16 sps:$4 sm:$0xff]  }
 0x549   : > { %6680 = vmatprep.subr.bf16.mxu0 %v15959_v16  ;;  %v15993_v16 = vld [vmem:[#allocation13 + $0x188] ss:$16 sps:$4 sm:$0xff]  }
 0x54a   : > { %6720 = vmatpush2.bf16.msra.mxu1 %v16050_v49 }
 0x54b   : > { %6721 = vmatprep.subr.bf16.mxu1 %v16055_v43 }
 0x54c   : > { %6681 = vmatpush2.bf16.msra.mxu0 %v15957_v20  ;;  %v15999_v20 = vld [vmem:[#allocation13 + $0x148] ss:$16 sps:$4 sm:$0xff]  }
 0x54d   : > { %6732 = vmatprep.subr.bf16.mxu0 %v15962_v41 }
 0x54e   : > { %6722 = vmatpush2.bf16.msra.mxu1 %v16053_v45 }
 0x54f   : > { %v5641_v24 = vpop.f32.mrf.mxu0  ;;  %6773 = vmatprep.subr.bf16.mxu1 %v16058_v27 }
 0x550   : > { %v5682_v25 = vpop.f32.mrf.mxu1  ;;  %v5642_v29 = vadd.f32 %v5641_v24, %v5601_v4  ;;  %v16007_v24 = vld [vmem:[#allocation13 + $0x10c] ss:$16 sps:$4 sm:$0xff]  }
 0x551   : > { %v5643_v5 = vpop.f32.mrf.mxu0 }
 0x552   : > { %v5684_v32 = vpop.f32.mrf.mxu1  ;;  %v5683_v48 = vadd.f32 %v5682_v25, %v5642_v29  ;;  %v5644_v9 = vadd.f32 %v5643_v5, %v5603_v28  ;;  %v16005_v29 = vld [vmem:[#allocation13 + $0x108] ss:$16 sps:$4 sm:$0xff]  }
 0x553   : > { %v5645_v38 = vpop.f32.mrf.mxu0 }
 0x554   : > { %v5686_v39 = vpop.f32.mrf.mxu1  ;;  %v5685_v2 = vadd.f32 %v5684_v32, %v5644_v9  ;;  %v5853_v42 = vmax.f32 %v5683_v48, 0.0  ;;  %v4240_v48 = vrot.slane %v18054_v13, %v17950_v31  ;;  %v16056_v13 = vld [vmem:[#allocation13 + $0x2e8] ss:$16 sps:$4 sm:$0xff]  }
 0x555   : > { %v5646_v14 = vpop.f32.mrf.mxu0 }
 0x556   : > { %v5687_v59 = vpop.f32.mrf.mxu1  ;;  %v5854_v44 = vmax.f32 %v5685_v2, 0.0  ;;  %v18064_v26 = vpack.c.bf16 %v5853_v42, %v5853_v42 }
 0x558   : > { %v5858_v6 = vpack.c.bf16 %v5854_v44, %v5854_v44 }
 0x55a   : > { %6682 = vmatprep.mubr.bf16.mxu0 %v5858_v6 }
 0x55b   : > { %6683 = vmatmul.mubr.bf16.vlgmr.msra.gmra.mxu0 %v18064_v26 }
 0x55c   : > { %6733 = vmatpush1.bf16.msra.mxu0 %v15960_v50  ;;  %6764 = vmatprep.mubr.bf16.mxu0 %v5858_v6 }
 0x55d   : > { %6734 = vmatprep.subr.bf16.mxu0 %v15965_v51 }
 0x560   : > { %6735 = vmatpush1.bf16.msra.mxu0 %v15963_v52 }
 0x561   : > { %6736 = vmatprep.subr.bf16.mxu0 %v15968_v53 }
 0x564   : > { %6737 = vmatpush1.bf16.msra.mxu0 %v15966_v30 }
 0x565   : > { %6738 = vmatprep.subr.bf16.mxu0 %v15971_v55 }
 0x568   : > { %6739 = vmatpush1.bf16.msra.mxu0 %v15969_v54  ;;  %v16061_v54 = vld [vmem:[#allocation13 + $0x2cc] ss:$16 sps:$4 sm:$0xff]  }
 0x569   : > { %6740 = vmatprep.subr.bf16.mxu0 %v15974_v61  ;;  %v16059_v61 = vld [vmem:[#allocation13 + $0x2c8] ss:$16 sps:$4 sm:$0xff]  }
 0x56c   : > { %6741 = vmatpush1.bf16.msra.mxu0 %v15972_v62  ;;  %v16064_v62 = vld [vmem:[#allocation13 + $0x2ac] ss:$16 sps:$4 sm:$0xff]  }
 0x56d   : > { %6742 = vmatprep.subr.bf16.mxu0 %v15977_v33  ;;  %v16062_v33 = vld [vmem:[#allocation13 + $0x2a8] ss:$16 sps:$4 sm:$0xff]  }
 0x570   : > { %6743 = vmatpush1.bf16.msra.mxu0 %v15975_v34  ;;  %v16067_v34 = vld [vmem:[#allocation13 + $0x28c] ss:$16 sps:$4 sm:$0xff]  }
 0x571   : > { %6744 = vmatprep.subr.bf16.mxu0 %v15980_v63  ;;  %v16104_v63 = vld [vmem:[#allocation15 + $0xe0] ss:$16 sps:$4 sm:$0xff]  }
 0x574   : > { %6745 = vmatpush1.bf16.msra.mxu0 %v15978_v0  ;;  %v16106_v0 = vld [vmem:[#allocation15 + $0xe4] ss:$16 sps:$4 sm:$0xff]  }
 0x575   : > { %6746 = vmatprep.subr.bf16.mxu0 %v15983_v1  ;;  %v16109_v1 = vld [vmem:[#allocation15 + $0xc4] ss:$16 sps:$4 sm:$0xff]  }
 0x578   : > { %6747 = vmatpush1.bf16.msra.mxu0 %v15981_v46  ;;  %v16065_v46 = vld [vmem:[#allocation13 + $0x288] ss:$16 sps:$4 sm:$0xff]  }
 0x579   : > { %6748 = vmatprep.subr.bf16.mxu0 %v15986_v47  ;;  %v16107_v47 = vld [vmem:[#allocation15 + $0xc0] ss:$16 sps:$4 sm:$0xff]  }
 0x57c   : > { %6749 = vmatpush2.bf16.msra.mxu0 %v15984_v60  ;;  %v16070_v60 = vld [vmem:[#allocation13 + $0x26c] ss:$16 sps:$4 sm:$0xff]  }
 0x57d   : > { %6750 = vmatprep.subr.bf16.mxu0 %v15989_v7  ;;  %v16112_v7 = vld [vmem:[#allocation15 + $0xa4] ss:$16 sps:$4 sm:$0xff]  }
 0x580   : > { %6751 = vmatpush2.bf16.msra.mxu0 %v15987_v58  ;;  %v16068_v58 = vld [vmem:[#allocation13 + $0x268] ss:$16 sps:$4 sm:$0xff]  }
 0x581   : > { %6752 = vmatprep.subr.bf16.mxu0 %v15992_v15  ;;  %v16110_v15 = vld [vmem:[#allocation15 + $0xa0] ss:$16 sps:$4 sm:$0xff]  }
 0x584   : > { %6753 = vmatpush2.bf16.msra.mxu0 %v15990_v56  ;;  %v16073_v56 = vld [vmem:[#allocation13 + $0x24c] ss:$16 sps:$4 sm:$0xff]  }
 0x585   : > { %6754 = vmatprep.subr.bf16.mxu0 %v15995_v57  ;;  %v16115_v57 = vld [vmem:[#allocation15 + $0x84] ss:$16 sps:$4 sm:$0xff]  }
 0x588   : > { %6755 = vmatpush2.bf16.msra.mxu0 %v15993_v16  ;;  %v16071_v16 = vld [vmem:[#allocation13 + $0x248] ss:$16 sps:$4 sm:$0xff]  }
 0x589   : > { %6756 = vmatprep.subr.bf16.mxu0 %v15998_v11  ;;  %v16113_v11 = vld [vmem:[#allocation15 + $0x80] ss:$16 sps:$4 sm:$0xff]  }
 0x58c   : > { %6757 = vmatpush2.bf16.msra.mxu0 %v15996_v37  ;;  %v16076_v37 = vld [vmem:[#allocation13 + $0x22c] ss:$16 sps:$4 sm:$0xff]  }
 0x58d   : > { %6758 = vmatprep.subr.bf16.mxu0 %v16001_v18  ;;  %v16118_v18 = vld [vmem:[#allocation15 + $0x64] ss:$16 sps:$4 sm:$0xff]  }
 0x58f   : > { %v5723_v41 = vpop.f32.mrf.mxu0 }
 0x590   : > { %v5764_v21 = vpop.f32.mrf.mxu1  ;;  %6759 = vmatpush2.bf16.msra.mxu0 %v15999_v20  ;;  %v5724_v9 = vadd.f32 %v5723_v41, %v4236_v35  ;;  %v16074_v20 = vld [vmem:[#allocation13 + $0x228] ss:$16 sps:$4 sm:$0xff]   ;;  %v16079_v41 = vld [vmem:[#allocation13 + $0x20c] ss:$16 sps:$4 sm:$0xff]   ;;  %v16125_v35 = vld [vmem:[#allocation15] ss:$16 sps:$4 sm:$0xff]  }
 0x591   : > { %v5725_v3 = vpop.f32.mrf.mxu0  ;;  %6760 = vmatprep.subr.bf16.mxu0 %v16004_v40  ;;  %v16116_v40 = vld [vmem:[#allocation15 + $0x60] ss:$16 sps:$4 sm:$0xff]  }
 0x592   : > { %v5766_v4 = vpop.f32.mrf.mxu1  ;;  %v5726_v49 = vadd.f32 %v5725_v3, %v4240_v48  ;;  %v5765_v38 = vadd.f32 %v5764_v21, %v5724_v9  ;;  %v16121_v21 = vld [vmem:[#allocation15 + $0x44] ss:$16 sps:$4 sm:$0xff]   ;;  %v16119_v3 = vld [vmem:[#allocation15 + $0x40] ss:$16 sps:$4 sm:$0xff]   ;;  %v16088_v48 = vld [vmem:[#allocation13 + $0x3ac] ss:$16 sps:$4 sm:$0xff]  }
 0x593   : > { %v5727_v25 = vpop.f32.mrf.mxu0  ;;  %v16130_v9 = vld [vmem:[#allocation15 + $0x1e4] ss:$16 sps:$4 sm:$0xff]  }
 0x594   : > { %v5768_v28 = vpop.f32.mrf.mxu1  ;;  %6761 = vmatpush2.bf16.msra.mxu0 %v16002_v23  ;;  %v5767_v42 = vadd.f32 %v5766_v4, %v5726_v49  ;;  %v16077_v23 = vld [vmem:[#allocation13 + $0x208] ss:$16 sps:$4 sm:$0xff]   ;;  %v16082_v4 = vld [vmem:[#allocation13 + $0x3ec] ss:$16 sps:$4 sm:$0xff]  }
 0x595   : > { %v5728_v5 = vpop.f32.mrf.mxu0  ;;  %6762 = vmatprep.subr.bf16.mxu0 %v16007_v24  ;;  %v16124_v24 = vld [vmem:[#allocation15 + $0x24] ss:$16 sps:$4 sm:$0xff]   ;;  %v16080_v25 = vld [vmem:[#allocation13 + $0x3e8] ss:$16 sps:$4 sm:$0xff]   ;;  %v16122_v28 = vld [vmem:[#allocation15 + $0x20] ss:$16 sps:$4 sm:$0xff]  }
 0x596   : > { %v5769_v32 = vpop.f32.mrf.mxu1  ;;  %v16127_v5 = vld [vmem:[#allocation15 + $0x4] ss:$16 sps:$4 sm:$0xff]   ;;  %v16086_v49 = vld [vmem:[#allocation13 + $0x3a8] ss:$16 sps:$4 sm:$0xff]  }
 0x597   : > { %v16083_v32 = vld [vmem:[#allocation13 + $0x3c8] ss:$16 sps:$4 sm:$0xff]  }
 0x598   : > { %6763 = vmatpush2.bf16.msra.mxu0 %v16005_v29  ;;  %v16085_v29 = vld [vmem:[#allocation13 + $0x3cc] ss:$16 sps:$4 sm:$0xff]  }
 0x599   : > { %7611 = vmatprep.subr.bf16.mxu0 %v16106_v0 }
 0x59b   : > { %6765 = vmatmul.mubr.bf16.vlgmr.msra.gmra.mxu0 %v18064_v26 }
 0x59c   : > { %7612 = vmatpush1.bf16.msra.mxu0 %v16104_v63  ;;  %v16146_v63 = vld [vmem:[#allocation15 + $0x120] ss:$16 sps:$4 sm:$0xff]  }
 0x59d   : > { %7613 = vmatprep.subr.bf16.mxu0 %v16109_v1 }
 0x5a0   : > { %7614 = vmatpush1.bf16.msra.mxu0 %v16107_v47  ;;  %v16149_v47 = vld [vmem:[#allocation15 + $0x100] ss:$16 sps:$4 sm:$0xff]  }
 0x5a1   : > { %7615 = vmatprep.subr.bf16.mxu0 %v16112_v7  ;;  %v16152_v7 = vld [vmem:[#allocation15 + $0x2e0] ss:$16 sps:$4 sm:$0xff]  }
 0x5a4   : > { %7616 = vmatpush1.bf16.msra.mxu0 %v16110_v15  ;;  %v16157_v15 = vld [vmem:[#allocation15 + $0xec] ss:$16 sps:$4 sm:$0xff]  }
 0x5a5   : > { %7617 = vmatprep.subr.bf16.mxu0 %v16115_v57  ;;  %v16164_v57 = vld [vmem:[#allocation15 + $0x2a0] ss:$16 sps:$4 sm:$0xff]  }
 0x5a8   : > { %7618 = vmatpush1.bf16.msra.mxu0 %v16113_v11  ;;  %v16170_v11 = vld [vmem:[#allocation15 + $0x280] ss:$16 sps:$4 sm:$0xff]  }
 0x5a9   : > { %7619 = vmatprep.subr.bf16.mxu0 %v16118_v18  ;;  %v16176_v18 = vld [vmem:[#allocation15 + $0x260] ss:$16 sps:$4 sm:$0xff]  }
 0x5ac   : > { %7620 = vmatpush1.bf16.msra.mxu0 %v16116_v40  ;;  %v16182_v40 = vld [vmem:[#allocation15 + $0x240] ss:$16 sps:$4 sm:$0xff]  }
 0x5ad   : > { %7621 = vmatprep.subr.bf16.mxu0 %v16121_v21  ;;  %v16188_v21 = vld [vmem:[#allocation15 + $0x220] ss:$16 sps:$4 sm:$0xff]  }
 0x5b0   : > { %7622 = vmatpush1.bf16.msra.mxu0 %v16119_v3  ;;  %v16194_v3 = vld [vmem:[#allocation15 + $0x200] ss:$16 sps:$4 sm:$0xff]  }
 0x5b1   : > { %7623 = vmatprep.subr.bf16.mxu0 %v16124_v24  ;;  %v16200_v24 = vld [vmem:[#allocation15 + $0x3e0] ss:$16 sps:$4 sm:$0xff]  }
 0x5b4   : > { %7624 = vmatpush1.bf16.msra.mxu0 %v16122_v28  ;;  %v16206_v28 = vld [vmem:[#allocation15 + $0x3c0] ss:$16 sps:$4 sm:$0xff]  }
 0x5b5   : > { %7625 = vmatprep.subr.bf16.mxu0 %v16127_v5  ;;  %v16212_v5 = vld [vmem:[#allocation15 + $0x3a0] ss:$16 sps:$4 sm:$0xff]  }
 0x5b8   : > { %7626 = vmatpush1.bf16.msra.mxu0 %v16125_v35  ;;  %v16218_v35 = vld [vmem:[#allocation15 + $0x380] ss:$16 sps:$4 sm:$0xff]  }
 0x5b9   : > { %7627 = vmatprep.subr.bf16.mxu0 %v16130_v9  ;;  %v16224_v9 = vld [vmem:[#allocation15 + $0x360] ss:$16 sps:$4 sm:$0xff]  }
 0x5cf   : > { %v5805_v39 = vpop.f32.mrf.mxu0 }
 0x5d0   : > { %v5846_v2 = vpop.f32.mrf.mxu1  ;;  %v5806_v14 = vadd.f32 %v5805_v39, %v5765_v38  ;;  %v16128_v38 = vld [vmem:[#allocation15 + $0x1e0] ss:$16 sps:$4 sm:$0xff]   ;;  %v16091_v39 = vld [vmem:[#allocation13 + $0x38c] ss:$16 sps:$4 sm:$0xff]  }
 0x5d1   : > { %v5807_v59 = vpop.f32.mrf.mxu0  ;;  %7628 = vmatpush2.bf16.msra.mxu0 %v16128_v38  ;;  %v16230_v38 = vld [vmem:[#allocation15 + $0x340] ss:$16 sps:$4 sm:$0xff]  }
 0x5d2   : > { %v5848_v43 = vpop.f32.mrf.mxu1  ;;  %v5847_v44 = vadd.f32 %v5846_v2, %v5806_v14  ;;  %v5808_v45 = vadd.f32 %v5807_v59, %v5767_v42  ;;  %v16133_v2 = vld [vmem:[#allocation15 + $0x1c4] ss:$16 sps:$4 sm:$0xff]   ;;  %v16089_v42 = vld [vmem:[#allocation13 + $0x388] ss:$16 sps:$4 sm:$0xff]   ;;  %v16131_v14 = vld [vmem:[#allocation15 + $0x1c0] ss:$16 sps:$4 sm:$0xff]  }
 0x5d3   : > { %v5809_v6 = vpop.f32.mrf.mxu0  ;;  %v16094_v59 = vld [vmem:[#allocation13 + $0x36c] ss:$16 sps:$4 sm:$0xff]   ;;  %7629 = vmatprep.subr.bf16.mxu0 %v16133_v2  ;;  %v16238_v2 = vld [vmem:[#allocation15 + $0x324] ss:$16 sps:$4 sm:$0xff]  }
 0x5d4   : > { %v5850_v50 = vpop.f32.mrf.mxu1  ;;  %v5849_v26 = vadd.f32 %v5848_v43, %v5808_v45  ;;  %v5855_v51 = vmax.f32 %v5847_v44, 0.0  ;;  %v16136_v43 = vld [vmem:[#allocation15 + $0x1a4] ss:$16 sps:$4 sm:$0xff]   ;;  %v16092_v44 = vld [vmem:[#allocation13 + $0x368] ss:$16 sps:$4 sm:$0xff]  }
 0x5d5   : > { %v5810_v27 = vpop.f32.mrf.mxu0  ;;  %7630 = vmatpush2.bf16.msra.mxu0 %v16131_v14  ;;  %v16134_v45 = vld [vmem:[#allocation15 + $0x1a0] ss:$16 sps:$4 sm:$0xff]   ;;  %v16097_v6 = vld [vmem:[#allocation13 + $0x34c] ss:$16 sps:$4 sm:$0xff]   ;;  %v16139_v50 = vld [vmem:[#allocation15 + $0x184] ss:$16 sps:$4 sm:$0xff]  }
 0x5d6   : > { %v5851_v52 = vpop.f32.mrf.mxu1  ;;  %v5856_v53 = vmax.f32 %v5849_v26, 0.0  ;;  %v18072_v55 = vpack.c.bf16 %v5855_v51, %v5855_v51  ;;  %7631 = vmatprep.subr.bf16.mxu0 %v16136_v43  ;;  %v16095_v26 = vld [vmem:[#allocation13 + $0x348] ss:$16 sps:$4 sm:$0xff]   ;;  %v16137_v51 = vld [vmem:[#allocation15 + $0x180] ss:$16 sps:$4 sm:$0xff]  }
 0x5d7   : > { %v16100_v27 = vld [vmem:[#allocation13 + $0x32c] ss:$16 sps:$4 sm:$0xff]   ;;  %v16142_v52 = vld [vmem:[#allocation15 + $0x164] ss:$16 sps:$4 sm:$0xff]   ;;  %v16236_v14 = vld [vmem:[#allocation15 + $0x320] ss:$16 sps:$4 sm:$0xff]  }
 0x5d8   : > { %v5860_v30 = vpack.c.bf16 %v5856_v53, %v5856_v53  ;;  %v16098_v53 = vld [vmem:[#allocation13 + $0x328] ss:$16 sps:$4 sm:$0xff]   ;;  %v16244_v43 = vld [vmem:[#allocation15 + $0x304] ss:$16 sps:$4 sm:$0xff]  }
 0x5d9   : > { %7632 = vmatpush2.bf16.msra.mxu0 %v16134_v45  ;;  %v16242_v45 = vld [vmem:[#allocation15 + $0x300] ss:$16 sps:$4 sm:$0xff]  }
 0x5da   : > { %6723 = vmatprep.mubr.bf16.mxu1 %v5860_v30  ;;  %7633 = vmatprep.subr.bf16.mxu0 %v16139_v50  ;;  %v16250_v50 = vld [vmem:[#allocation15 + $0x2ec] ss:$16 sps:$4 sm:$0xff]  }
 0x5db   : > { %6724 = vmatmul.mubr.bf16.vlgmr.msra.gmra.mxu1 %v18072_v55 }
 0x5dc   : > { %6774 = vmatpush1.bf16.msra.mxu1 %v16056_v13  ;;  %6805 = vmatprep.mubr.bf16.mxu1 %v5860_v30  ;;  %v16140_v30 = vld [vmem:[#allocation15 + $0x160] ss:$16 sps:$4 sm:$0xff]   ;;  %v16103_v13 = vld [vmem:[#allocation13 + $0x30c] ss:$16 sps:$4 sm:$0xff]  }
 0x5dd   : > { %6775 = vmatprep.subr.bf16.mxu1 %v16061_v54  ;;  %7634 = vmatpush2.bf16.msra.mxu0 %v16137_v51  ;;  %v16145_v54 = vld [vmem:[#allocation15 + $0x144] ss:$16 sps:$4 sm:$0xff]  }
 0x5de   : > { %7635 = vmatprep.subr.bf16.mxu0 %v16142_v52 }
 0x5e0   : > { %6776 = vmatpush1.bf16.msra.mxu1 %v16059_v61  ;;  %v16101_v61 = vld [vmem:[#allocation13 + $0x308] ss:$16 sps:$4 sm:$0xff]  }
 0x5e1   : > { %6777 = vmatprep.subr.bf16.mxu1 %v16064_v62  ;;  %7636 = vmatpush2.bf16.msra.mxu0 %v16140_v30  ;;  %v16143_v62 = vld [vmem:[#allocation15 + $0x140] ss:$16 sps:$4 sm:$0xff]  }
 0x5e2   : > { %7637 = vmatprep.subr.bf16.mxu0 %v16145_v54 }
 0x5e4   : > { %6778 = vmatpush1.bf16.msra.mxu1 %v16062_v33 }
 0x5e5   : > { %6779 = vmatprep.subr.bf16.mxu1 %v16067_v34  ;;  %7638 = vmatpush2.bf16.msra.mxu0 %v16143_v62  ;;  %v16148_v34 = vld [vmem:[#allocation15 + $0x124] ss:$16 sps:$4 sm:$0xff]  }
 0x5e6   : > { %7639 = vmatprep.subr.bf16.mxu0 %v16148_v34 }
 0x5e8   : > { %6780 = vmatpush1.bf16.msra.mxu1 %v16065_v46  ;;  %v16151_v46 = vld [vmem:[#allocation15 + $0x104] ss:$16 sps:$4 sm:$0xff]  }
 0x5e9   : > { %6781 = vmatprep.subr.bf16.mxu1 %v16070_v60  ;;  %7640 = vmatpush2.bf16.msra.mxu0 %v16146_v63 }
 0x5ea   : > { %7641 = vmatprep.subr.bf16.mxu0 %v16151_v46 }
 0x5ec   : > { %6782 = vmatpush1.bf16.msra.mxu1 %v16068_v58  ;;  %v16154_v58 = vld [vmem:[#allocation15 + $0x2e4] ss:$16 sps:$4 sm:$0xff]  }
 0x5ed   : > { %6783 = vmatprep.subr.bf16.mxu1 %v16073_v56  ;;  %7642 = vmatpush2.bf16.msra.mxu0 %v16149_v47  ;;  %v16160_v56 = vld [vmem:[#allocation15 + $0x2c4] ss:$16 sps:$4 sm:$0xff]   ;;  %v16155_v47 = vld [vmem:[#allocation15 + $0xe8] ss:$16 sps:$4 sm:$0xff]  }
 0x5ee   : > { %7693 = vmatprep.subr.bf16.mxu0 %v16157_v15  ;;  %v16175_v15 = vld [vmem:[#allocation15 + $0x8c] ss:$16 sps:$4 sm:$0xff]  }
 0x5f0   : > { %6784 = vmatpush1.bf16.msra.mxu1 %v16071_v16  ;;  %v16166_v16 = vld [vmem:[#allocation15 + $0x2a4] ss:$16 sps:$4 sm:$0xff]  }
 0x5f1   : > { %6785 = vmatprep.subr.bf16.mxu1 %v16076_v37  ;;  %v16172_v37 = vld [vmem:[#allocation15 + $0x284] ss:$16 sps:$4 sm:$0xff]  }
 0x5f4   : > { %6786 = vmatpush1.bf16.msra.mxu1 %v16074_v20  ;;  %v16178_v20 = vld [vmem:[#allocation15 + $0x264] ss:$16 sps:$4 sm:$0xff]  }
 0x5f5   : > { %6787 = vmatprep.subr.bf16.mxu1 %v16079_v41  ;;  %v16184_v41 = vld [vmem:[#allocation15 + $0x244] ss:$16 sps:$4 sm:$0xff]  }
 0x5f8   : > { %6788 = vmatpush1.bf16.msra.mxu1 %v16077_v23  ;;  %v16190_v23 = vld [vmem:[#allocation15 + $0x224] ss:$16 sps:$4 sm:$0xff]  }
 0x5f9   : > { %6789 = vmatprep.subr.bf16.mxu1 %v16082_v4  ;;  %v16196_v4 = vld [vmem:[#allocation15 + $0x204] ss:$16 sps:$4 sm:$0xff]  }
 0x5fc   : > { %6790 = vmatpush2.bf16.msra.mxu1 %v16080_v25  ;;  %v16202_v25 = vld [vmem:[#allocation15 + $0x3e4] ss:$16 sps:$4 sm:$0xff]  }
 0x5fd   : > { %6791 = vmatprep.subr.bf16.mxu1 %v16085_v29  ;;  %v16208_v29 = vld [vmem:[#allocation15 + $0x3c4] ss:$16 sps:$4 sm:$0xff]  }
 0x600   : > { %6792 = vmatpush2.bf16.msra.mxu1 %v16083_v32  ;;  %v16214_v32 = vld [vmem:[#allocation15 + $0x3a4] ss:$16 sps:$4 sm:$0xff]  }
 0x601   : > { %6793 = vmatprep.subr.bf16.mxu1 %v16088_v48  ;;  %v16220_v48 = vld [vmem:[#allocation15 + $0x384] ss:$16 sps:$4 sm:$0xff]  }
 0x604   : > { %6794 = vmatpush2.bf16.msra.mxu1 %v16086_v49  ;;  %v16226_v49 = vld [vmem:[#allocation15 + $0x364] ss:$16 sps:$4 sm:$0xff]  }
 0x605   : > { %6795 = vmatprep.subr.bf16.mxu1 %v16091_v39  ;;  %v16232_v39 = vld [vmem:[#allocation15 + $0x344] ss:$16 sps:$4 sm:$0xff]  }
 0x608   : > { %6796 = vmatpush2.bf16.msra.mxu1 %v16089_v42 }
 0x609   : > { %6797 = vmatprep.subr.bf16.mxu1 %v16094_v59 }
 0x60c   : > { %6798 = vmatpush2.bf16.msra.mxu1 %v16092_v44 }
 0x60d   : > { %6799 = vmatprep.subr.bf16.mxu1 %v16097_v6 }
 0x610   : > { %6800 = vmatpush2.bf16.msra.mxu1 %v16095_v26  ;;  %v18084_v26 = vld [vmem:[#allocation10 + $0xc] sm:$0xf] }
 0x611   : > { %6801 = vmatprep.subr.bf16.mxu1 %v16100_v27  ;;  %v5993_v51 = vrot.slane %v18084_v26, %v17965_v8  ;;  %v5997_v27 = vrot.slane %v18084_v26, %v17947_v10 }
 0x614   : > { %6802 = vmatpush2.bf16.msra.mxu1 %v16098_v53 }
 0x615   : > { %6803 = vmatprep.subr.bf16.mxu1 %v16103_v13 }
 0x618   : > { %6804 = vmatpush2.bf16.msra.mxu1 %v16101_v61 }
 0x619   : > { %7652 = vmatprep.subr.bf16.mxu1 %v16154_v58  ;;  %v16167_v58 = vld [vmem:[#allocation15 + $0xa8] ss:$16 sps:$4 sm:$0xff]  }
 0x61b   : > { %6806 = vmatmul.mubr.bf16.vlgmr.msra.gmra.mxu1 %v18072_v55  ;;  %v18076_v33 = vpop.f32.mrf.mxu0  ;;  %v16158_v55 = vld [vmem:[#allocation15 + $0x2c0] ss:$16 sps:$4 sm:$0xff]  }
 0x61c   : > { %7653 = vmatpush1.bf16.msra.mxu1 %v16152_v7  ;;  %v6685_v52 = vadd.f32 %v18076_v33, %v5993_v51  ;;  %v16163_v7 = vld [vmem:[#allocation15 + $0xcc] ss:$16 sps:$4 sm:$0xff]   ;;  %v16161_v33 = vld [vmem:[#allocation15 + $0xc8] ss:$16 sps:$4 sm:$0xff]  }
 0x61d   : > { %v18078_v0 = vpop.f32.mrf.mxu0  ;;  %7654 = vmatprep.subr.bf16.mxu1 %v16160_v56  ;;  %v16181_v56 = vld [vmem:[#allocation15 + $0x6c] ss:$16 sps:$4 sm:$0xff]  }
 0x61e   : > { %v6687_v30 = vadd.f32 %v18078_v0, %v5997_v27  ;;  %v16169_v0 = vld [vmem:[#allocation15 + $0xac] ss:$16 sps:$4 sm:$0xff]  }
 0x61f   : > { %v6688_v1 = vpop.f32.mrf.mxu0 }
 0x620   : > { %7655 = vmatpush1.bf16.msra.mxu1 %v16158_v55  ;;  %v16173_v55 = vld [vmem:[#allocation15 + $0x88] ss:$16 sps:$4 sm:$0xff]  }
 0x621   : > { %v6689_v60 = vpop.f32.mrf.mxu0  ;;  %7656 = vmatprep.subr.bf16.mxu1 %v16166_v16  ;;  %v16187_v16 = vld [vmem:[#allocation15 + $0x4c] ss:$16 sps:$4 sm:$0xff]  }
 0x624   : > { %7657 = vmatpush1.bf16.msra.mxu1 %v16164_v57  ;;  %v16179_v57 = vld [vmem:[#allocation15 + $0x68] ss:$16 sps:$4 sm:$0xff]  }
 0x625   : > { %7658 = vmatprep.subr.bf16.mxu1 %v16172_v37  ;;  %v16193_v37 = vld [vmem:[#allocation15 + $0x2c] ss:$16 sps:$4 sm:$0xff]  }
 0x628   : > { %7659 = vmatpush1.bf16.msra.mxu1 %v16170_v11  ;;  %v16185_v11 = vld [vmem:[#allocation15 + $0x48] ss:$16 sps:$4 sm:$0xff]  }
 0x629   : > { %7660 = vmatprep.subr.bf16.mxu1 %v16178_v20  ;;  %v16199_v20 = vld [vmem:[#allocation15 + $0xc] ss:$16 sps:$4 sm:$0xff]  }
 0x62c   : > { %7661 = vmatpush1.bf16.msra.mxu1 %v16176_v18  ;;  %v16191_v18 = vld [vmem:[#allocation15 + $0x28] ss:$16 sps:$4 sm:$0xff]  }
 0x62d   : > { %7662 = vmatprep.subr.bf16.mxu1 %v16184_v41  ;;  %v16205_v41 = vld [vmem:[#allocation15 + $0x1ec] ss:$16 sps:$4 sm:$0xff]  }
 0x630   : > { %7663 = vmatpush1.bf16.msra.mxu1 %v16182_v40  ;;  %v16197_v40 = vld [vmem:[#allocation15 + $0x8] ss:$16 sps:$4 sm:$0xff]  }
 0x631   : > { %7664 = vmatprep.subr.bf16.mxu1 %v16190_v23  ;;  %v16211_v23 = vld [vmem:[#allocation15 + $0x1cc] ss:$16 sps:$4 sm:$0xff]  }
 0x634   : > { %7665 = vmatpush1.bf16.msra.mxu1 %v16188_v21  ;;  %v16203_v21 = vld [vmem:[#allocation15 + $0x1e8] ss:$16 sps:$4 sm:$0xff]  }
 0x635   : > { %7666 = vmatprep.subr.bf16.mxu1 %v16196_v4  ;;  %v16217_v4 = vld [vmem:[#allocation15 + $0x1ac] ss:$16 sps:$4 sm:$0xff]  }
 0x638   : > { %7667 = vmatpush1.bf16.msra.mxu1 %v16194_v3  ;;  %v16209_v3 = vld [vmem:[#allocation15 + $0x1c8] ss:$16 sps:$4 sm:$0xff]  }
 0x639   : > { %7668 = vmatprep.subr.bf16.mxu1 %v16202_v25  ;;  %v16223_v25 = vld [vmem:[#allocation15 + $0x18c] ss:$16 sps:$4 sm:$0xff]  }
 0x63c   : > { %7669 = vmatpush2.bf16.msra.mxu1 %v16200_v24  ;;  %v16215_v24 = vld [vmem:[#allocation15 + $0x1a8] ss:$16 sps:$4 sm:$0xff]  }
 0x63d   : > { %7670 = vmatprep.subr.bf16.mxu1 %v16208_v29  ;;  %v16229_v29 = vld [vmem:[#allocation15 + $0x16c] ss:$16 sps:$4 sm:$0xff]  }
 0x640   : > { %7671 = vmatpush2.bf16.msra.mxu1 %v16206_v28  ;;  %v16221_v28 = vld [vmem:[#allocation15 + $0x188] ss:$16 sps:$4 sm:$0xff]  }
 0x641   : > { %7672 = vmatprep.subr.bf16.mxu1 %v16214_v32  ;;  %v16235_v32 = vld [vmem:[#allocation15 + $0x14c] ss:$16 sps:$4 sm:$0xff]  }
 0x644   : > { %7673 = vmatpush2.bf16.msra.mxu1 %v16212_v5  ;;  %v16227_v5 = vld [vmem:[#allocation15 + $0x168] ss:$16 sps:$4 sm:$0xff]  }
 0x645   : > { %7674 = vmatprep.subr.bf16.mxu1 %v16220_v48  ;;  %v16233_v48 = vld [vmem:[#allocation15 + $0x148] ss:$16 sps:$4 sm:$0xff]  }
 0x648   : > { %7675 = vmatpush2.bf16.msra.mxu1 %v16218_v35  ;;  %v6001_v35 = vrot.slane %v18084_v26, %v17968_v12 }
 0x649   : > { %7676 = vmatprep.subr.bf16.mxu1 %v16226_v49  ;;  %v6005_v49 = vrot.slane %v18084_v26, %v17950_v31 }
 0x64c   : > { %7677 = vmatpush2.bf16.msra.mxu1 %v16224_v9  ;;  %v16241_v9 = vld [vmem:[#allocation15 + $0x12c] ss:$16 sps:$4 sm:$0xff]  }
 0x64d   : > { %7678 = vmatprep.subr.bf16.mxu1 %v16232_v39  ;;  %v16239_v39 = vld [vmem:[#allocation15 + $0x128] ss:$16 sps:$4 sm:$0xff]  }
 0x650   : > { %7679 = vmatpush2.bf16.msra.mxu1 %v16230_v38 }
 0x651   : > { %7680 = vmatprep.subr.bf16.mxu1 %v16238_v2 }
 0x654   : > { %7681 = vmatpush2.bf16.msra.mxu1 %v16236_v14  ;;  %v16247_v14 = vld [vmem:[#allocation15 + $0x10c] ss:$16 sps:$4 sm:$0xff]  }
 0x655   : > { %7682 = vmatprep.subr.bf16.mxu1 %v16244_v43 }
 0x658   : > { %7683 = vmatpush2.bf16.msra.mxu1 %v16242_v45 }
 0x659   : > { %7734 = vmatprep.subr.bf16.mxu1 %v16250_v50  ;;  %v16245_v50 = vld [vmem:[#allocation15 + $0x108] ss:$16 sps:$4 sm:$0xff]  }
 0x65b   : > { %v18080_v42 = vpop.f32.mrf.mxu0 }
 0x65c   : > { %v6767_v38 = vadd.f32 %v18080_v42, %v6001_v35  ;;  %v16248_v42 = vld [vmem:[#allocation15 + $0x2e8] ss:$16 sps:$4 sm:$0xff]  }
 0x65d   : > { %v18082_v59 = vpop.f32.mrf.mxu0  ;;  %v7791_v35 = vld [vmem:[#allocation3 + $0x40] sm:$0xff] }
 0x65e   : > { %v6769_v43 = vadd.f32 %v18082_v59, %v6005_v49  ;;  %v16251_v59 = vld [vmem:[#allocation15 + $0x2c8] ss:$16 sps:$4 sm:$0xff]   ;;  %v16274_v49 = vld [vmem:[#allocation15 + $0x3ec] ss:$16 sps:$4 sm:$0xff]  }
 0x65f   : > { %v6770_v44 = vpop.f32.mrf.mxu0 }
 0x661   : > { %v6771_v6 = vpop.f32.mrf.mxu0 }
 0x69b   : > { %v6725_v53 = vpop.f32.mrf.mxu1 }
 0x69c   : > { %v6726_v13 = vadd.f32 %v6725_v53, %v6685_v52 }
 0x69d   : > { %v6727_v54 = vpop.f32.mrf.mxu1 }
 0x69e   : > { %v6728_v61 = vadd.f32 %v6727_v54, %v6687_v30  ;;  %v6814_v62 = vmax.f32 %v6726_v13, 0.0  ;;  %v16253_v13 = vld [vmem:[#allocation15 + $0x2cc] ss:$16 sps:$4 sm:$0xff]  }
 0x69f   : > { %v6729_v34 = vpop.f32.mrf.mxu1  ;;  %v16256_v54 = vld [vmem:[#allocation15 + $0x2ac] ss:$16 sps:$4 sm:$0xff]  }
 0x6a0   : > { %v6815_v63 = vmax.f32 %v6728_v61, 0.0  ;;  %v18092_v60 = vpack.c.bf16 %v6814_v62, %v6814_v62  ;;  %v16254_v61 = vld [vmem:[#allocation15 + $0x2a8] ss:$16 sps:$4 sm:$0xff]   ;;  %v16259_v62 = vld [vmem:[#allocation15 + $0x28c] ss:$16 sps:$4 sm:$0xff]  }
 0x6a1   : > { %v6730_v1 = vpop.f32.mrf.mxu1  ;;  %v7839_v34 = vld [vmem:[#allocation3 + $0x1c0] sm:$0xff] }
 0x6a2   : > { %v6819_v46 = vpack.c.bf16 %v6815_v63, %v6815_v63  ;;  %v7843_v63 = vld [vmem:[#allocation3 + $0x1e0] sm:$0xff] }
 0x6a3   : > { %v7831_v1 = vld [vmem:[#allocation3 + $0x180] sm:$0xff] }
 0x6a4   : > { %7643 = vmatprep.mubr.bf16.mxu0 %v6819_v46 }
 0x6a5   : > { %7644 = vmatmul.mubr.bf16.vlgmr.msra.gmra.mxu0 %v18092_v60 }
 0x6a6   : > { %7694 = vmatpush1.bf16.msra.mxu0 %v16155_v47  ;;  %7725 = vmatprep.mubr.bf16.mxu0 %v6819_v46  ;;  %v14697_v46 = vcombine.low %v7839_v34, %v7843_v63  ;;  %v14698_v47 = vcombine.high %v7839_v34, %v7843_v63  ;;  %v7887_v34 = vld [vmem:[#allocation3 + $0x340] sm:$0xff] }
 0x6a7   : > { %7695 = vmatprep.subr.bf16.mxu0 %v16163_v7  ;;  %v7835_v7 = vld [vmem:[#allocation3 + $0x1a0] sm:$0xff] }
 0x6a8   : > { %v7891_v63 = vld [vmem:[#allocation3 + $0x360] sm:$0xff] }
 0x6aa   : > { %7696 = vmatpush1.bf16.msra.mxu0 %v16161_v33  ;;  %v14690_v33 = vcombine.high %v7831_v1, %v7835_v7 }
 0x6ab   : > { %7697 = vmatprep.subr.bf16.mxu0 %v16169_v0  ;;  %v7823_v0 = vld [vmem:[#allocation3 + $0x140] sm:$0xff] }
 0x6ae   : > { %7698 = vmatpush1.bf16.msra.mxu0 %v16167_v58  ;;  %v7827_v58 = vld [vmem:[#allocation3 + $0x160] sm:$0xff] }
 0x6af   : > { %7699 = vmatprep.subr.bf16.mxu0 %v16175_v15  ;;  %v16262_v15 = vld [vmem:[#allocation15 + $0x26c] ss:$16 sps:$4 sm:$0xff]  }
 0x6b2   : > { %7700 = vmatpush1.bf16.msra.mxu0 %v16173_v55  ;;  %v14689_v55 = vcombine.low %v7831_v1, %v7835_v7  ;;  %v16281_v1 = vld [vmem:[#allocation15 + $0x388] ss:$16 sps:$4 sm:$0xff]   ;;  %v14746_v7 = vcombine.high %v7887_v34, %v7891_v63 }
 0x6b3   : > { %7701 = vmatprep.subr.bf16.mxu0 %v16181_v56  ;;  %v14682_v56 = vcombine.high %v7823_v0, %v7827_v58 }
 0x6b6   : > { %7702 = vmatpush1.bf16.msra.mxu0 %v16179_v57  ;;  %v7815_v57 = vld [vmem:[#allocation3 + $0x100] sm:$0xff] }
 0x6b7   : > { %7703 = vmatprep.subr.bf16.mxu0 %v16187_v16  ;;  %v7819_v16 = vld [vmem:[#allocation3 + $0x120] sm:$0xff] }
 0x6ba   : > { %7704 = vmatpush1.bf16.msra.mxu0 %v16185_v11  ;;  %v16260_v11 = vld [vmem:[#allocation15 + $0x268] ss:$16 sps:$4 sm:$0xff]  }
 0x6bb   : > { %7705 = vmatprep.subr.bf16.mxu0 %v16193_v37  ;;  %v16265_v37 = vld [vmem:[#allocation15 + $0x24c] ss:$16 sps:$4 sm:$0xff]  }
 0x6be   : > { %7706 = vmatpush1.bf16.msra.mxu0 %v16191_v18  ;;  %v14681_v18 = vcombine.low %v7823_v0, %v7827_v58  ;;  %v7883_v0 = vld [vmem:[#allocation3 + $0x320] sm:$0xff] }
 0x6bf   : > { %7707 = vmatprep.subr.bf16.mxu0 %v16199_v20  ;;  %v14674_v20 = vcombine.high %v7815_v57, %v7819_v16  ;;  %v16284_v58 = vld [vmem:[#allocation15 + $0x368] ss:$16 sps:$4 sm:$0xff]  }
 0x6c2   : > { %7708 = vmatpush1.bf16.msra.mxu0 %v16197_v40  ;;  %v7807_v40 = vld [vmem:[#allocation3 + $0xc0] sm:$0xff] }
 0x6c3   : > { %7709 = vmatprep.subr.bf16.mxu0 %v16205_v41  ;;  %v7811_v41 = vld [vmem:[#allocation3 + $0xe0] sm:$0xff] }
 0x6c6   : > { %7710 = vmatpush2.bf16.msra.mxu0 %v16203_v21  ;;  %v16263_v21 = vld [vmem:[#allocation15 + $0x248] ss:$16 sps:$4 sm:$0xff]  }
 0x6c7   : > { %7711 = vmatprep.subr.bf16.mxu0 %v16211_v23  ;;  %v16268_v23 = vld [vmem:[#allocation15 + $0x22c] ss:$16 sps:$4 sm:$0xff]  }
 0x6ca   : > { %7712 = vmatpush2.bf16.msra.mxu0 %v16209_v3  ;;  %v14673_v3 = vcombine.low %v7815_v57, %v7819_v16  ;;  %v7875_v57 = vld [vmem:[#allocation3 + $0x2e0] sm:$0xff] }
 0x6cb   : > { %7713 = vmatprep.subr.bf16.mxu0 %v16217_v4  ;;  %v14666_v4 = vcombine.high %v7807_v40, %v7811_v41  ;;  %v16287_v16 = vld [vmem:[#allocation15 + $0x348] ss:$16 sps:$4 sm:$0xff]  }
 0x6ce   : > { %7714 = vmatpush2.bf16.msra.mxu0 %v16215_v24  ;;  %v7799_v24 = vld [vmem:[#allocation3 + $0x80] sm:$0xff] }
 0x6cf   : > { %7715 = vmatprep.subr.bf16.mxu0 %v16223_v25  ;;  %v7803_v25 = vld [vmem:[#allocation3 + $0xa0] sm:$0xff] }
 0x6d2   : > { %7716 = vmatpush2.bf16.msra.mxu0 %v16221_v28  ;;  %v16266_v28 = vld [vmem:[#allocation15 + $0x228] ss:$16 sps:$4 sm:$0xff]  }
 0x6d3   : > { %7717 = vmatprep.subr.bf16.mxu0 %v16229_v29  ;;  %v16271_v29 = vld [vmem:[#allocation15 + $0x20c] ss:$16 sps:$4 sm:$0xff]  }
 0x6d6   : > { %7718 = vmatpush2.bf16.msra.mxu0 %v16227_v5  ;;  %v14665_v5 = vcombine.low %v7807_v40, %v7811_v41  ;;  %v7867_v40 = vld [vmem:[#allocation3 + $0x2a0] sm:$0xff] }
 0x6d7   : > { %7719 = vmatprep.subr.bf16.mxu0 %v16235_v32  ;;  %v14658_v32 = vcombine.high %v7799_v24, %v7803_v25  ;;  %v16290_v41 = vld [vmem:[#allocation15 + $0x328] ss:$16 sps:$4 sm:$0xff]  }
 0x6da   : > { %7720 = vmatpush2.bf16.msra.mxu0 %v16233_v48  ;;  %v7795_v48 = vld [vmem:[#allocation3 + $0x60] sm:$0xff] }
 0x6db   : > { %v6807_v2 = vpop.f32.mrf.mxu1  ;;  %7721 = vmatprep.subr.bf16.mxu0 %v16241_v9  ;;  %v16269_v9 = vld [vmem:[#allocation15 + $0x208] ss:$16 sps:$4 sm:$0xff]  }
 0x6dc   : > { %v6808_v44 = vadd.f32 %v6807_v2, %v6767_v38  ;;  %v14657_v38 = vcombine.low %v7799_v24, %v7803_v25  ;;  %v7783_v2 = vld [vmem:[#allocation3] sm:$0xff] }
 0x6dd   : > { %v6809_v45 = vpop.f32.mrf.mxu1  ;;  %v7855_v25 = vld [vmem:[#allocation3 + $0x240] sm:$0xff] }
 0x6de   : > { %v6810_v6 = vadd.f32 %v6809_v45, %v6769_v43  ;;  %7722 = vmatpush2.bf16.msra.mxu0 %v16239_v39  ;;  %v6816_v51 = vmax.f32 %v6808_v44, 0.0  ;;  %v14650_v39 = vcombine.high %v7791_v35, %v7795_v48  ;;  %v16272_v43 = vld [vmem:[#allocation15 + $0x3e8] ss:$16 sps:$4 sm:$0xff]   ;;  %v16277_v44 = vld [vmem:[#allocation15 + $0x3cc] ss:$16 sps:$4 sm:$0xff]   ;;  %v14649_v45 = vcombine.low %v7791_v35, %v7795_v48 }
 0x6df   : > { %v6811_v27 = vpop.f32.mrf.mxu1  ;;  %7723 = vmatprep.subr.bf16.mxu0 %v16247_v14  ;;  %v7787_v14 = vld [vmem:[#allocation3 + $0x20] sm:$0xff] }
 0x6e0   : > { %v6817_v52 = vmax.f32 %v6810_v6, 0.0  ;;  %v18101_v30 = vpack.c.bf16 %v6816_v51, %v6816_v51  ;;  %v14642_v6 = vcombine.high %v7783_v2, %v7787_v14  ;;  %v7907_v51 = vld [vmem:[#allocation3 + $0x3e0] sm:$0xff] }
 0x6e1   : > { %v6812_v53 = vpop.f32.mrf.mxu1  ;;  %v16275_v27 = vld [vmem:[#allocation15 + $0x3c8] ss:$16 sps:$4 sm:$0xff]  }
 0x6e2   : > { %v6821_v26 = vpack.c.bf16 %v6817_v52, %v6817_v52  ;;  %7724 = vmatpush2.bf16.msra.mxu0 %v16245_v50  ;;  %v7903_v50 = vld [vmem:[#allocation3 + $0x3c0] sm:$0xff]  ;;  %v16280_v52 = vld [vmem:[#allocation15 + $0x3ac] ss:$16 sps:$4 sm:$0xff]   ;;  %v14641_v53 = vcombine.low %v7783_v2, %v7787_v14 }
 0x6e3   : > { %9319 = vmatprep.subr.bf16.mxu0 %v14698_v47  ;;  %v7851_v35 = vld [vmem:[#allocation3 + $0x220] sm:$0xff]  ;;  %v18106_v14 = vld [vmem:[#allocation3 + $0x1c8] sm:$0xff] }
 0x6e4   : > { %7684 = vmatprep.mubr.bf16.mxu1 %v6821_v26 }
 0x6e5   : > { %7685 = vmatmul.mubr.bf16.vlgmr.msra.gmra.mxu1 %v18101_v30  ;;  %7726 = vmatmul.mubr.bf16.vlgmr.msra.gmra.mxu0 %v18092_v60  ;;  %v16257_v60 = vld [vmem:[#allocation15 + $0x288] ss:$16 sps:$4 sm:$0xff]  }
 0x6e6   : > { %7735 = vmatpush1.bf16.msra.mxu1 %v16248_v42  ;;  %7766 = vmatprep.mubr.bf16.mxu1 %v6821_v26  ;;  %v14762_v26 = vcombine.high %v7903_v50, %v7907_v51  ;;  %v7895_v42 = vld [vmem:[#allocation3 + $0x380] sm:$0xff] }
 0x6e7   : > { %7736 = vmatprep.subr.bf16.mxu1 %v16253_v13  ;;  %9320 = vmatpush1.bf16.msra.mxu0 %v14697_v46  ;;  %v7899_v13 = vld [vmem:[#allocation3 + $0x3a0] sm:$0xff]  ;;  %v16286_v46 = vld [vmem:[#allocation15 + $0x36c] ss:$16 sps:$4 sm:$0xff]  }
 0x6e8   : > { %9321 = vmatprep.subr.bf16.mxu0 %v14690_v33  ;;  %v14753_v47 = vcombine.low %v7895_v42, %v7899_v13  ;;  %v7879_v33 = vld [vmem:[#allocation3 + $0x300] sm:$0xff] }
 0x6ea   : > { %7737 = vmatpush1.bf16.msra.mxu1 %v16251_v59  ;;  %v16278_v59 = vld [vmem:[#allocation15 + $0x3a8] ss:$16 sps:$4 sm:$0xff]  }
 0x6eb   : > { %7738 = vmatprep.subr.bf16.mxu1 %v16256_v54  ;;  %9322 = vmatpush1.bf16.msra.mxu0 %v14689_v55  ;;  %v16283_v54 = vld [vmem:[#allocation15 + $0x38c] ss:$16 sps:$4 sm:$0xff]   ;;  %v14738_v55 = vcombine.high %v7879_v33, %v7883_v0 }
 0x6ec   : > { %9323 = vmatprep.subr.bf16.mxu0 %v14682_v56  ;;  %v7871_v56 = vld [vmem:[#allocation3 + $0x2c0] sm:$0xff] }
 0x6ee   : > { %7739 = vmatpush1.bf16.msra.mxu1 %v16254_v61  ;;  %v14761_v61 = vcombine.low %v7903_v50, %v7907_v51 }
 0x6ef   : > { %7740 = vmatprep.subr.bf16.mxu1 %v16259_v62  ;;  %9324 = vmatpush1.bf16.msra.mxu0 %v14681_v18  ;;  %v14754_v62 = vcombine.high %v7895_v42, %v7899_v13  ;;  %v14730_v18 = vcombine.high %v7871_v56, %v7875_v57  ;;  %v7943_v42 = vld [vmem:[#allocation3 + $0x500] sm:$0xff] }
 0x6f0   : > { %9325 = vmatprep.subr.bf16.mxu0 %v14674_v20  ;;  %v7863_v20 = vld [vmem:[#allocation3 + $0x280] sm:$0xff] }
 0x6f1   : > { %v14721_v24 = vcombine.low %v7863_v20, %v7867_v40  ;;  %v7947_v13 = vld [vmem:[#allocation3 + $0x520] sm:$0xff] }
 0x6f2   : > { %7741 = vmatpush1.bf16.msra.mxu1 %v16257_v60  ;;  %v16289_v60 = vld [vmem:[#allocation15 + $0x34c] ss:$16 sps:$4 sm:$0xff]  }
 0x6f3   : > { %7742 = vmatprep.subr.bf16.mxu1 %v16262_v15  ;;  %9326 = vmatpush1.bf16.msra.mxu0 %v14673_v3  ;;  %v14745_v15 = vcombine.low %v7887_v34, %v7891_v63  ;;  %v14722_v3 = vcombine.high %v7863_v20, %v7867_v40  ;;  %v8023_v20 = vld [vmem:[#allocation3 + $0x780] sm:$0xff] }
 0x6f4   : > { %9327 = vmatprep.subr.bf16.mxu0 %v14666_v4  ;;  %v16293_v4 = vld [vmem:[#allocation15 + $0x308] ss:$16 sps:$4 sm:$0xff]  }
 0x6f5   : > { %v8027_v40 = vld [vmem:[#allocation3 + $0x7a0] sm:$0xff] }
 0x6f6   : > { %7743 = vmatpush1.bf16.msra.mxu1 %v16260_v11  ;;  %v16292_v11 = vld [vmem:[#allocation15 + $0x32c] ss:$16 sps:$4 sm:$0xff]  }
 0x6f7   : > { %7744 = vmatprep.subr.bf16.mxu1 %v16265_v37  ;;  %9328 = vmatpush1.bf16.msra.mxu0 %v14665_v5  ;;  %v14737_v37 = vcombine.low %v7879_v33, %v7883_v0  ;;  %v7919_v33 = vld [vmem:[#allocation3 + $0x440] sm:$0xff] }
 0x6f8   : > { %9329 = vmatprep.subr.bf16.mxu0 %v14658_v32  ;;  %v7847_v32 = vld [vmem:[#allocation3 + $0x200] sm:$0xff] }
 0x6f9   : > { %v14706_v48 = vcombine.high %v7847_v32, %v7851_v35  ;;  %v7923_v0 = vld [vmem:[#allocation3 + $0x460] sm:$0xff] }
 0x6fa   : > { %7745 = vmatpush1.bf16.msra.mxu1 %v16263_v21  ;;  %v16295_v21 = vld [vmem:[#allocation15 + $0x30c] ss:$16 sps:$4 sm:$0xff]  }
 0x6fb   : > { %7746 = vmatprep.subr.bf16.mxu1 %v16268_v23  ;;  %9330 = vmatpush1.bf16.msra.mxu0 %v14657_v38  ;;  %v14729_v23 = vcombine.low %v7871_v56, %v7875_v57  ;;  %v7971_v38 = vld [vmem:[#allocation3 + $0x5e0] sm:$0xff] }
 0x6fc   : > { %9331 = vmatprep.subr.bf16.mxu0 %v14650_v39 }
 0x6fe   : > { %7747 = vmatpush1.bf16.msra.mxu1 %v16266_v28  ;;  %v7859_v28 = vld [vmem:[#allocation3 + $0x260] sm:$0xff] }
 0x6ff   : > { %7748 = vmatprep.subr.bf16.mxu1 %v16271_v29  ;;  %9332 = vmatpush1.bf16.msra.mxu0 %v14649_v45  ;;  %v14714_v29 = vcombine.high %v7855_v25, %v7859_v28  ;;  %v14713_v5 = vcombine.low %v7855_v25, %v7859_v28  ;;  %v7959_v45 = vld [vmem:[#allocation3 + $0x580] sm:$0xff] }
 0x700   : > { %9333 = vmatprep.subr.bf16.mxu0 %v14642_v6  ;;  %v7963_v6 = vld [vmem:[#allocation3 + $0x5a0] sm:$0xff] }
 0x701   : > { %v14817_v50 = vcombine.low %v7959_v45, %v7963_v6  ;;  %v14818_v51 = vcombine.high %v7959_v45, %v7963_v6  ;;  %v8007_v25 = vld [vmem:[#allocation3 + $0x700] sm:$0xff] }
 0x702   : > { %7749 = vmatpush1.bf16.msra.mxu1 %v16269_v9  ;;  %v14705_v9 = vcombine.low %v7847_v32, %v7851_v35  ;;  %v8011_v28 = vld [vmem:[#allocation3 + $0x720] sm:$0xff] }
 0x703   : > { %7750 = vmatprep.subr.bf16.mxu1 %v16274_v49  ;;  %9334 = vmatpush1.bf16.msra.mxu0 %v14641_v53  ;;  %v7967_v49 = vld [vmem:[#allocation3 + $0x5c0] sm:$0xff] }
 0x704   : > { %9335 = vmatprep.subr.bf16.mxu0 %v14762_v26  ;;  %v14825_v39 = vcombine.low %v7967_v49, %v7971_v38  ;;  %v14826_v2 = vcombine.high %v7967_v49, %v7971_v38  ;;  %v7999_v32 = vld [vmem:[#allocation3 + $0x6c0] sm:$0xff] }
 0x705   : > { %v8003_v35 = vld [vmem:[#allocation3 + $0x6e0] sm:$0xff] }
 0x706   : > { %7751 = vmatpush2.bf16.msra.mxu1 %v16272_v43  ;;  %v18108_v43 = vld [vmem:[#allocation3 + $0x1e8] sm:$0xff]  ;;  %v7991_v49 = vld [vmem:[#allocation3 + $0x680] sm:$0xff] }
 0x707   : > { %7752 = vmatprep.subr.bf16.mxu1 %v16277_v44  ;;  %9336 = vmatpush2.bf16.msra.mxu0 %v14761_v61  ;;  %v14699_v44 = vcombine.low %v18106_v14, %v18108_v43  ;;  %v7935_v61 = vld [vmem:[#allocation3 + $0x4c0] sm:$0xff] }
 0x708   : > { %9337 = vmatprep.subr.bf16.mxu0 %v14754_v62  ;;  %v7939_v62 = vld [vmem:[#allocation3 + $0x4e0] sm:$0xff] }
 0x709   : > { %v14793_v34 = vcombine.low %v7935_v61, %v7939_v62  ;;  %v14794_v63 = vcombine.high %v7935_v61, %v7939_v62  ;;  %v7995_v38 = vld [vmem:[#allocation3 + $0x6a0] sm:$0xff]  ;;  %v18116_v61 = vld [vmem:[#allocation3 + $0x5e8] sm:$0xff] }
 0x70a   : > { %7753 = vmatpush2.bf16.msra.mxu1 %v16275_v27  ;;  %v7951_v27 = vld [vmem:[#allocation3 + $0x540] sm:$0xff] }
 0x70b   : > { %7754 = vmatprep.subr.bf16.mxu1 %v16280_v52  ;;  %9338 = vmatpush2.bf16.msra.mxu0 %v14753_v47  ;;  %v7955_v52 = vld [vmem:[#allocation3 + $0x560] sm:$0xff] }
 0x70c   : > { %9339 = vmatprep.subr.bf16.mxu0 %v14746_v7  ;;  %v14809_v53 = vcombine.low %v7951_v27, %v7955_v52  ;;  %v14810_v26 = vcombine.high %v7951_v27, %v7955_v52  ;;  %v7987_v45 = vld [vmem:[#allocation3 + $0x660] sm:$0xff] }
 0x70d   : > { %v7975_v52 = vld [vmem:[#allocation3 + $0x600] sm:$0xff] }
 0x70e   : > { %7755 = vmatpush2.bf16.msra.mxu1 %v16278_v59  ;;  %v14801_v59 = vcombine.low %v7943_v42, %v7947_v13 }
 0x70f   : > { %7756 = vmatprep.subr.bf16.mxu1 %v16283_v54  ;;  %9340 = vmatpush2.bf16.msra.mxu0 %v14745_v15  ;;  %v14802_v54 = vcombine.high %v7943_v42, %v7947_v13  ;;  %v7911_v15 = vld [vmem:[#allocation3 + $0x400] sm:$0xff] }
 0x710   : > { %9341 = vmatprep.subr.bf16.mxu0 %v14738_v55  ;;  %v7915_v55 = vld [vmem:[#allocation3 + $0x420] sm:$0xff] }
 0x711   : > { %v14769_v56 = vcombine.low %v7911_v15, %v7915_v55  ;;  %v14770_v57 = vcombine.high %v7911_v15, %v7915_v55 }
 0x712   : > { %7757 = vmatpush2.bf16.msra.mxu1 %v16281_v1  ;;  %v7927_v1 = vld [vmem:[#allocation3 + $0x480] sm:$0xff] }
 0x713   : > { %7758 = vmatprep.subr.bf16.mxu1 %v16286_v46  ;;  %9342 = vmatpush2.bf16.msra.mxu0 %v14737_v37  ;;  %v7931_v46 = vld [vmem:[#allocation3 + $0x4a0] sm:$0xff] }
 0x714   : > { %9343 = vmatprep.subr.bf16.mxu0 %v14730_v18  ;;  %v14785_v47 = vcombine.low %v7927_v1, %v7931_v46  ;;  %v14786_v7 = vcombine.high %v7927_v1, %v7931_v46 }
 0x716   : > { %7759 = vmatpush2.bf16.msra.mxu1 %v16284_v58  ;;  %v14777_v58 = vcombine.low %v7919_v33, %v7923_v0 }
 0x717   : > { %7760 = vmatprep.subr.bf16.mxu1 %v16289_v60  ;;  %9344 = vmatpush2.bf16.msra.mxu0 %v14729_v23  ;;  %v14778_v60 = vcombine.high %v7919_v33, %v7923_v0  ;;  %v8015_v23 = vld [vmem:[#allocation3 + $0x740] sm:$0xff] }
 0x718   : > { %9345 = vmatprep.subr.bf16.mxu0 %v14722_v3  ;;  %v8019_v3 = vld [vmem:[#allocation3 + $0x760] sm:$0xff] }
 0x71a   : > { %7761 = vmatpush2.bf16.msra.mxu1 %v16287_v16  ;;  %v8031_v16 = vld [vmem:[#allocation3 + $0x7c0] sm:$0xff] }
 0x71b   : > { %7762 = vmatprep.subr.bf16.mxu1 %v16292_v11  ;;  %9346 = vmatpush2.bf16.msra.mxu0 %v14721_v24  ;;  %v8035_v11 = vld [vmem:[#allocation3 + $0x7e0] sm:$0xff]  ;;  %v14874_v24 = vcombine.high %v8015_v23, %v8019_v3 }
 0x71c   : > { %9347 = vmatprep.subr.bf16.mxu0 %v14714_v29  ;;  %v14889_v37 = vcombine.low %v8031_v16, %v8035_v11  ;;  %v14890_v18 = vcombine.high %v8031_v16, %v8035_v11  ;;  %v14865_v29 = vcombine.low %v8007_v25, %v8011_v28 }
 0x71e   : > { %7763 = vmatpush2.bf16.msra.mxu1 %v16290_v41  ;;  %v14881_v41 = vcombine.low %v8023_v20, %v8027_v40 }
 0x71f   : > { %7764 = vmatprep.subr.bf16.mxu1 %v16295_v21  ;;  %9348 = vmatpush2.bf16.msra.mxu0 %v14713_v5  ;;  %v14882_v21 = vcombine.high %v8023_v20, %v8027_v40  ;;  %v14866_v5 = vcombine.high %v8007_v25, %v8011_v28  ;;  %v7816_v28 = vld [vmem:[#allocation3 + $0x108] sm:$0xff] }
 0x720   : > { %9349 = vmatprep.subr.bf16.mxu0 %v14706_v48  ;;  %v14857_v48 = vcombine.low %v7999_v32, %v8003_v35 }
 0x722   : > { %7765 = vmatpush2.bf16.msra.mxu1 %v16293_v4  ;;  %v14873_v4 = vcombine.low %v8015_v23, %v8019_v3  ;;  %v7824_v3 = vld [vmem:[#allocation3 + $0x148] sm:$0xff] }
 0x723   : > { %9350 = vmatpush2.bf16.msra.mxu0 %v14705_v9  ;;  %9360 = vmatprep.subr.bf16.mxu1 %v14826_v2  ;;  %v14858_v9 = vcombine.high %v7999_v32, %v8003_v35  ;;  %v14850_v2 = vcombine.high %v7991_v49, %v7995_v38  ;;  %v7808_v35 = vld [vmem:[#allocation3 + $0xc8] sm:$0xff] }
 0x725   : > { %7767 = vmatmul.mubr.bf16.vlgmr.msra.gmra.mxu1 %v18101_v30  ;;  %v14700_v30 = vcombine.high %v18106_v14, %v18108_v43  ;;  %v7804_v14 = vld [vmem:[#allocation3 + $0xa8] sm:$0xff] }
 0x726   : > { %9361 = vmatpush1.bf16.msra.mxu1 %v14825_v39  ;;  %v14849_v39 = vcombine.low %v7991_v49, %v7995_v38  ;;  %v7800_v38 = vld [vmem:[#allocation3 + $0x88] sm:$0xff] }
 0x727   : > { %9401 = vmatprep.subr.bf16.mxu0 %v14700_v30  ;;  %9362 = vmatprep.subr.bf16.mxu1 %v14818_v51  ;;  %v7983_v30 = vld [vmem:[#allocation3 + $0x640] sm:$0xff] }
 0x728   : > { %v14842_v6 = vcombine.high %v7983_v30, %v7987_v45  ;;  %v14841_v51 = vcombine.low %v7983_v30, %v7987_v45  ;;  %v14659_v30 = vcombine.low %v7800_v38, %v7804_v14 }
 0x72a   : > { %9363 = vmatpush1.bf16.msra.mxu1 %v14817_v50 }
 0x72b   : > { %9364 = vmatprep.subr.bf16.mxu1 %v14810_v26 }
 0x72e   : > { %9365 = vmatpush1.bf16.msra.mxu1 %v14809_v53  ;;  %v7979_v53 = vld [vmem:[#allocation3 + $0x620] sm:$0xff] }
 0x72f   : > { %9366 = vmatprep.subr.bf16.mxu1 %v14802_v54  ;;  %v14834_v26 = vcombine.high %v7975_v52, %v7979_v53  ;;  %v14833_v13 = vcombine.low %v7975_v52, %v7979_v53  ;;  %v18114_v54 = vld [vmem:[#allocation3 + $0x5c8] sm:$0xff] }
 0x730   : > { %v14828_v62 = vcombine.high %v18114_v54, %v18116_v61  ;;  %v7904_v52 = vld [vmem:[#allocation3 + $0x3c8] sm:$0xff] }
 0x731   : > { %v7908_v53 = vld [vmem:[#allocation3 + $0x3e8] sm:$0xff] }
 0x732   : > { %9367 = vmatpush1.bf16.msra.mxu1 %v14801_v59 }
 0x733   : > { %9368 = vmatprep.subr.bf16.mxu1 %v14794_v63  ;;  %v18122_v63 = vld [vmem:[#allocation10 + $0x10] sm:$0xf] }
 0x734   : > { %v6954_v1 = vrot.slane %v18122_v63, %v17965_v8  ;;  %v6958_v46 = vrot.slane %v18122_v63, %v17947_v10 }
 0x736   : > { %9369 = vmatpush1.bf16.msra.mxu1 %v14793_v34  ;;  %v14827_v34 = vcombine.low %v18114_v54, %v18116_v61 }
 0x737   : > { %9370 = vmatprep.subr.bf16.mxu1 %v14786_v7 }
 0x73a   : > { %9371 = vmatpush1.bf16.msra.mxu1 %v14785_v47 }
 0x73b   : > { %9372 = vmatprep.subr.bf16.mxu1 %v14778_v60 }
 0x73e   : > { %9373 = vmatpush1.bf16.msra.mxu1 %v14777_v58 }
 0x73f   : > { %9374 = vmatprep.subr.bf16.mxu1 %v14770_v57 }
 0x742   : > { %9375 = vmatpush1.bf16.msra.mxu1 %v14769_v56 }
 0x743   : > { %9376 = vmatprep.subr.bf16.mxu1 %v14890_v18  ;;  %v7836_v18 = vld [vmem:[#allocation3 + $0x1a8] sm:$0xff] }
 0x746   : > { %9377 = vmatpush2.bf16.msra.mxu1 %v14889_v37  ;;  %v7832_v37 = vld [vmem:[#allocation3 + $0x188] sm:$0xff] }
 0x747   : > { %9378 = vmatprep.subr.bf16.mxu1 %v14882_v21  ;;  %v14692_v23 = vcombine.high %v7832_v37, %v7836_v18 }
 0x74a   : > { %9379 = vmatpush2.bf16.msra.mxu1 %v14881_v41 }
 0x74b   : > { %9380 = vmatprep.subr.bf16.mxu1 %v14874_v24  ;;  %v14691_v24 = vcombine.low %v7832_v37, %v7836_v18  ;;  %v7864_v18 = vld [vmem:[#allocation3 + $0x288] sm:$0xff] }
 0x74e   : > { %9381 = vmatpush2.bf16.msra.mxu1 %v14873_v4  ;;  %v7828_v4 = vld [vmem:[#allocation3 + $0x168] sm:$0xff] }
 0x74f   : > { %9382 = vmatprep.subr.bf16.mxu1 %v14866_v5  ;;  %v14684_v25 = vcombine.high %v7824_v3, %v7828_v4  ;;  %v14683_v5 = vcombine.low %v7824_v3, %v7828_v4  ;;  %v7856_v3 = vld [vmem:[#allocation3 + $0x248] sm:$0xff] }
 0x750   : > { %v7860_v4 = vld [vmem:[#allocation3 + $0x268] sm:$0xff] }
 0x752   : > { %9383 = vmatpush2.bf16.msra.mxu1 %v14865_v29  ;;  %v7820_v29 = vld [vmem:[#allocation3 + $0x128] sm:$0xff] }
 0x753   : > { %9384 = vmatprep.subr.bf16.mxu1 %v14858_v9  ;;  %v14676_v32 = vcombine.high %v7816_v28, %v7820_v29  ;;  %v14675_v9 = vcombine.low %v7816_v28, %v7820_v29  ;;  %v14716_v28 = vcombine.high %v7856_v3, %v7860_v4  ;;  %v6966_v29 = vrot.slane %v18122_v63, %v17950_v31 }
 0x756   : > { %9385 = vmatpush2.bf16.msra.mxu1 %v14857_v48  ;;  %v7812_v48 = vld [vmem:[#allocation3 + $0xe8] sm:$0xff] }
 0x757   : > { %9386 = vmatprep.subr.bf16.mxu1 %v14850_v2  ;;  %v14668_v49 = vcombine.high %v7808_v35, %v7812_v48  ;;  %v14667_v43 = vcombine.low %v7808_v35, %v7812_v48  ;;  %v7796_v2 = vld [vmem:[#allocation3 + $0x68] sm:$0xff]  ;;  %v14715_v48 = vcombine.low %v7856_v3, %v7860_v4 }
 0x75a   : > { %9387 = vmatpush2.bf16.msra.mxu1 %v14849_v39  ;;  %v7792_v39 = vld [vmem:[#allocation3 + $0x48] sm:$0xff] }
 0x75b   : > { %9388 = vmatprep.subr.bf16.mxu1 %v14842_v6  ;;  %v14652_v45 = vcombine.high %v7792_v39, %v7796_v2  ;;  %v7784_v6 = vld [vmem:[#allocation3 + $0x8] sm:$0xff] }
 0x75e   : > { %9389 = vmatpush2.bf16.msra.mxu1 %v14841_v51  ;;  %v14651_v51 = vcombine.low %v7792_v39, %v7796_v2 }
 0x75f   : > { %9390 = vmatprep.subr.bf16.mxu1 %v14834_v26 }
 0x762   : > { %9391 = vmatpush2.bf16.msra.mxu1 %v14833_v13  ;;  %v7896_v13 = vld [vmem:[#allocation3 + $0x388] sm:$0xff] }
 0x763   : > { %9442 = vmatprep.subr.bf16.mxu1 %v14828_v62  ;;  %v14763_v62 = vcombine.low %v7904_v52, %v7908_v53 }
 0x765   : > { %v7645_v50 = vpop.f32.mrf.mxu0 }
 0x766   : > { %v7646_v47 = vadd.f32 %v7645_v50, %v6954_v1  ;;  %v7788_v50 = vld [vmem:[#allocation3 + $0x28] sm:$0xff] }
 0x767   : > { %v7647_v27 = vpop.f32.mrf.mxu0  ;;  %v14643_v26 = vcombine.low %v7784_v6, %v7788_v50 }
 0x768   : > { %v7648_v0 = vadd.f32 %v7647_v27, %v6958_v46  ;;  %v14644_v27 = vcombine.high %v7784_v6, %v7788_v50  ;;  %v7888_v46 = vld [vmem:[#allocation3 + $0x348] sm:$0xff] }
 0x769   : > { %v7649_v42 = vpop.f32.mrf.mxu0 }
 0x76a   : > { %v14764_v42 = vcombine.high %v7904_v52, %v7908_v53  ;;  %v7833_v52 = vld [vmem:[#allocation3 + $0x190] sm:$0xff] }
 0x76b   : > { %v7650_v59 = vpop.f32.mrf.mxu0  ;;  %v7837_v53 = vld [vmem:[#allocation3 + $0x1b0] sm:$0xff] }
 0x76c   : > { %v7900_v59 = vld [vmem:[#allocation3 + $0x3a8] sm:$0xff] }
 0x76d   : > { %v14756_v1 = vcombine.high %v7896_v13, %v7900_v59 }
 0x7a5   : > { %v7686_v7 = vpop.f32.mrf.mxu1  ;;  %v18128_v33 = vpop.f32.mrf.mxu0 }
 0x7a6   : > { %v7687_v58 = vadd.f32 %v7686_v7, %v7646_v47  ;;  %v7892_v47 = vld [vmem:[#allocation3 + $0x368] sm:$0xff]  ;;  %v14755_v7 = vcombine.low %v7896_v13, %v7900_v59  ;;  %v14694_v59 = vcombine.high %v7833_v52, %v7837_v53 }
 0x7a7   : > { %v7688_v60 = vpop.f32.mrf.mxu1  ;;  %v18130_v15 = vpop.f32.mrf.mxu0 }
 0x7a8   : > { %v7689_v55 = vadd.f32 %v7688_v60, %v7648_v0  ;;  %v7775_v56 = vmax.f32 %v7687_v58, 0.0  ;;  %v14748_v0 = vcombine.high %v7888_v46, %v7892_v47  ;;  %v7880_v58 = vld [vmem:[#allocation3 + $0x308] sm:$0xff] }
 0x7a9   : > { %v7690_v57 = vpop.f32.mrf.mxu1  ;;  %v7731_v16 = vpop.f32.mrf.mxu0  ;;  %v7884_v60 = vld [vmem:[#allocation3 + $0x328] sm:$0xff] }
 0x7aa   : > { %v7776_v11 = vmax.f32 %v7689_v55, 0.0  ;;  %v18134_v21 = vpack.c.bf16 %v7775_v56, %v7775_v56  ;;  %v14747_v55 = vcombine.low %v7888_v46, %v7892_v47  ;;  %v14740_v56 = vcombine.high %v7880_v58, %v7884_v60  ;;  %v7872_v57 = vld [vmem:[#allocation3 + $0x2c8] sm:$0xff]  ;;  %v7825_v46 = vld [vmem:[#allocation3 + $0x150] sm:$0xff] }
 0x7ab   : > { %v7691_v20 = vpop.f32.mrf.mxu1  ;;  %v7732_v40 = vpop.f32.mrf.mxu0  ;;  %v7876_v16 = vld [vmem:[#allocation3 + $0x2e8] sm:$0xff]  ;;  %v7829_v47 = vld [vmem:[#allocation3 + $0x170] sm:$0xff] }
 0x7ac   : > { %v18132_v41 = vpack.c.bf16 %v7776_v11, %v7776_v11  ;;  %v14739_v11 = vcombine.low %v7880_v58, %v7884_v60  ;;  %v14732_v37 = vcombine.high %v7872_v57, %v7876_v16  ;;  %v7868_v20 = vld [vmem:[#allocation3 + $0x2a8] sm:$0xff]  ;;  %v14731_v40 = vcombine.low %v7872_v57, %v7876_v16  ;;  %v7817_v57 = vld [vmem:[#allocation3 + $0x110] sm:$0xff] }
 0x7ad   : > { %v14686_v60 = vcombine.high %v7825_v46, %v7829_v47  ;;  %v7821_v16 = vld [vmem:[#allocation3 + $0x130] sm:$0xff]  ;;  %v14685_v54 = vcombine.low %v7825_v46, %v7829_v47 }
 0x7ae   : > { %9351 = vmatprep.mubr.bf16.mxu0 %v18132_v41  ;;  %v14677_v3 = vcombine.low %v7817_v57, %v7821_v16 }
 0x7af   : > { %9352 = vmatmul.mubr.bf16.vlgmr.msra.gmra.mxu0 %v18134_v21 }
 0x7b0   : > { %9402 = vmatpush1.bf16.msra.mxu0 %v14699_v44  ;;  %9433 = vmatprep.mubr.bf16.mxu0 %v18132_v41  ;;  %v14660_v44 = vcombine.high %v7800_v38, %v7804_v14  ;;  %v7730_v38 = vadd.f32 %v18130_v15, %v6966_v29  ;;  %v7801_v29 = vld [vmem:[#allocation3 + $0x90] sm:$0xff] }
 0x7b1   : > { %9403 = vmatprep.subr.bf16.mxu0 %v14692_v23  ;;  %v14724_v23 = vcombine.high %v7864_v18, %v7868_v20 }
 0x7b4   : > { %9404 = vmatpush1.bf16.msra.mxu0 %v14691_v24  ;;  %v6962_v24 = vrot.slane %v18122_v63, %v17968_v12 }
 0x7b5   : > { %9405 = vmatprep.subr.bf16.mxu0 %v14684_v25  ;;  %v14723_v25 = vcombine.low %v7864_v18, %v7868_v20  ;;  %v7940_v18 = vld [vmem:[#allocation3 + $0x4e8] sm:$0xff]  ;;  %v7809_v20 = vld [vmem:[#allocation3 + $0xd0] sm:$0xff] }
 0x7b6   : > { %v7728_v35 = vadd.f32 %v18128_v33, %v6962_v24  ;;  %v7960_v33 = vld [vmem:[#allocation3 + $0x588] sm:$0xff] }
 0x7b8   : > { %9406 = vmatpush1.bf16.msra.mxu0 %v14683_v5  ;;  %v7848_v5 = vld [vmem:[#allocation3 + $0x208] sm:$0xff] }
 0x7b9   : > { %9407 = vmatprep.subr.bf16.mxu0 %v14676_v32  ;;  %v7852_v32 = vld [vmem:[#allocation3 + $0x228] sm:$0xff] }
 0x7bc   : > { %9408 = vmatpush1.bf16.msra.mxu0 %v14675_v9 }
 0x7bd   : > { %9409 = vmatprep.subr.bf16.mxu0 %v14668_v49  ;;  %v14708_v49 = vcombine.high %v7848_v5, %v7852_v32 }
 0x7c0   : > { %9410 = vmatpush1.bf16.msra.mxu0 %v14667_v43  ;;  %v7841_v43 = vld [vmem:[#allocation3 + $0x1d0] sm:$0xff] }
 0x7c1   : > { %9411 = vmatprep.subr.bf16.mxu0 %v14660_v44  ;;  %v7845_v44 = vld [vmem:[#allocation3 + $0x1f0] sm:$0xff] }
 0x7c2   : > { %v14702_v6 = vcombine.high %v7841_v43, %v7845_v44 }
 0x7c4   : > { %9412 = vmatpush1.bf16.msra.mxu0 %v14659_v30  ;;  %v14707_v30 = vcombine.low %v7848_v5, %v7852_v32  ;;  %v7805_v5 = vld [vmem:[#allocation3 + $0xb0] sm:$0xff] }
 0x7c5   : > { %9413 = vmatprep.subr.bf16.mxu0 %v14652_v45 }
 0x7c8   : > { %9414 = vmatpush1.bf16.msra.mxu0 %v14651_v51 }
 0x7c9   : > { %9415 = vmatprep.subr.bf16.mxu0 %v14644_v27  ;;  %v7964_v27 = vld [vmem:[#allocation3 + $0x5a8] sm:$0xff] }
 0x7ca   : > { %v14820_v13 = vcombine.high %v7960_v33, %v7964_v27 }
 0x7cc   : > { %9416 = vmatpush1.bf16.msra.mxu0 %v14643_v26 }
 0x7cd   : > { %9417 = vmatprep.subr.bf16.mxu0 %v14764_v42  ;;  %v14701_v42 = vcombine.low %v7841_v43, %v7845_v44  ;;  %v7797_v43 = vld [vmem:[#allocation3 + $0x70] sm:$0xff] }
 0x7d0   : > { %9418 = vmatpush2.bf16.msra.mxu0 %v14763_v62  ;;  %v7952_v62 = vld [vmem:[#allocation3 + $0x548] sm:$0xff] }
 0x7d1   : > { %9419 = vmatprep.subr.bf16.mxu0 %v14756_v1  ;;  %v7956_v1 = vld [vmem:[#allocation3 + $0x568] sm:$0xff] }
 0x7d2   : > { %v14812_v58 = vcombine.high %v7952_v62, %v7956_v1 }
 0x7d4   : > { %9420 = vmatpush2.bf16.msra.mxu0 %v14755_v7  ;;  %v14819_v7 = vcombine.low %v7960_v33, %v7964_v27 }
 0x7d5   : > { %9421 = vmatprep.subr.bf16.mxu0 %v14748_v0  ;;  %v14693_v0 = vcombine.low %v7833_v52, %v7837_v53  ;;  %v8032_v53 = vld [vmem:[#allocation3 + $0x7c8] sm:$0xff] }
 0x7d8   : > { %9422 = vmatpush2.bf16.msra.mxu0 %v14747_v55  ;;  %v7944_v55 = vld [vmem:[#allocation3 + $0x508] sm:$0xff] }
 0x7d9   : > { %9423 = vmatprep.subr.bf16.mxu0 %v14740_v56  ;;  %v7948_v56 = vld [vmem:[#allocation3 + $0x528] sm:$0xff] }
 0x7da   : > { %v14804_v61 = vcombine.high %v7944_v55, %v7948_v56 }
 0x7dc   : > { %9424 = vmatpush2.bf16.msra.mxu0 %v14739_v11  ;;  %v14811_v11 = vcombine.low %v7952_v62, %v7956_v1 }
 0x7dd   : > { %9425 = vmatprep.subr.bf16.mxu0 %v14732_v37  ;;  %v7936_v37 = vld [vmem:[#allocation3 + $0x4c8] sm:$0xff] }
 0x7de   : > { %v14796_v4 = vcombine.high %v7936_v37, %v7940_v18  ;;  %v14795_v32 = vcombine.low %v7936_v37, %v7940_v18 }
 0x7e0   : > { %9426 = vmatpush2.bf16.msra.mxu0 %v14731_v40  ;;  %v7813_v40 = vld [vmem:[#allocation3 + $0xf0] sm:$0xff] }
 0x7e1   : > { %9427 = vmatprep.subr.bf16.mxu0 %v14724_v23  ;;  %v14803_v23 = vcombine.low %v7944_v55, %v7948_v56  ;;  %v14670_v24 = vcombine.high %v7809_v20, %v7813_v40 }
 0x7e4   : > { %9428 = vmatpush2.bf16.msra.mxu0 %v14723_v25  ;;  %v7928_v25 = vld [vmem:[#allocation3 + $0x488] sm:$0xff] }
 0x7e5   : > { %v7768_v9 = vpop.f32.mrf.mxu1  ;;  %9429 = vmatprep.subr.bf16.mxu0 %v14716_v28  ;;  %v7932_v28 = vld [vmem:[#allocation3 + $0x4a8] sm:$0xff] }
 0x7e6   : > { %v7769_v14 = vadd.f32 %v7768_v9, %v7728_v35  ;;  %v14669_v35 = vcombine.low %v7809_v20, %v7813_v40  ;;  %v14662_v9 = vcombine.high %v7801_v29, %v7805_v5  ;;  %v14787_v44 = vcombine.low %v7928_v25, %v7932_v28 }
 0x7e7   : > { %v7770_v39 = vpop.f32.mrf.mxu1 }
 0x7e8   : > { %v7771_v2 = vadd.f32 %v7770_v39, %v7730_v38  ;;  %9430 = vmatpush2.bf16.msra.mxu0 %v14715_v48  ;;  %v7777_v45 = vmax.f32 %v7769_v14, 0.0  ;;  %v14788_v48 = vcombine.high %v7928_v25, %v7932_v28  ;;  %v7924_v38 = vld [vmem:[#allocation3 + $0x468] sm:$0xff]  ;;  %v7793_v14 = vld [vmem:[#allocation3 + $0x50] sm:$0xff]  ;;  %v14661_v39 = vcombine.low %v7801_v29, %v7805_v5 }
 0x7e9   : > { %v7772_v63 = vpop.f32.mrf.mxu1  ;;  %9431 = vmatprep.subr.bf16.mxu0 %v14708_v49  ;;  %v7920_v49 = vld [vmem:[#allocation3 + $0x448] sm:$0xff] }
 0x7ea   : > { %v7778_v50 = vmax.f32 %v7771_v2, 0.0  ;;  %v18150_v15 = vpack.c.bf16 %v7777_v45, %v7777_v45  ;;  %v14780_v2 = vcombine.high %v7920_v49, %v7924_v38  ;;  %v7912_v45 = vld [vmem:[#allocation3 + $0x408] sm:$0xff]  ;;  %v14779_v33 = vcombine.low %v7920_v49, %v7924_v38 }
 0x7eb   : > { %v7773_v51 = vpop.f32.mrf.mxu1  ;;  %v7916_v63 = vld [vmem:[#allocation3 + $0x428] sm:$0xff] }
 0x7ec   : > { %v18148_v26 = vpack.c.bf16 %v7778_v50, %v7778_v50  ;;  %9432 = vmatpush2.bf16.msra.mxu0 %v14707_v30  ;;  %v14654_v30 = vcombine.high %v7793_v14, %v7797_v43  ;;  %v7789_v50 = vld [vmem:[#allocation3 + $0x30] sm:$0xff]  ;;  %v14653_v51 = vcombine.low %v7793_v14, %v7797_v43  ;;  %v14772_v27 = vcombine.high %v7912_v45, %v7916_v63 }
 0x7ed   : > { %9483 = vmatprep.subr.bf16.mxu0 %v14702_v6  ;;  %v7785_v6 = vld [vmem:[#allocation3 + $0x10] sm:$0xff]  ;;  %v14771_v62 = vcombine.low %v7912_v45, %v7916_v63 }
 0x7ee   : > { %9392 = vmatprep.mubr.bf16.mxu1 %v18148_v26  ;;  %v14646_v52 = vcombine.high %v7785_v6, %v7789_v50  ;;  %v14645_v1 = vcombine.low %v7785_v6, %v7789_v50 }
 0x7ef   : > { %9393 = vmatmul.mubr.bf16.vlgmr.msra.gmra.mxu1 %v18150_v15  ;;  %9434 = vmatmul.mubr.bf16.vlgmr.msra.gmra.mxu0 %v18134_v21 }
 0x7f0   : > { %9443 = vmatpush1.bf16.msra.mxu1 %v14827_v34  ;;  %9474 = vmatprep.mubr.bf16.mxu1 %v18148_v26  ;;  %v14678_v34 = vcombine.high %v7817_v57, %v7821_v16 }
 0x7f1   : > { %9484 = vmatpush1.bf16.msra.mxu0 %v14701_v42  ;;  %9515 = vmatprep.mubr.bf16.mxu0 %v18132_v41  ;;  %v8036_v42 = vld [vmem:[#allocation3 + $0x7e8] sm:$0xff] }
 0x7f2   : > { %9444 = vmatprep.subr.bf16.mxu1 %v14820_v13  ;;  %9485 = vmatprep.subr.bf16.mxu0 %v14694_v59  ;;  %v7905_v13 = vld [vmem:[#allocation3 + $0x3d0] sm:$0xff]  ;;  %v14892_v46 = vcombine.high %v8032_v53, %v8036_v42  ;;  %v14891_v55 = vcombine.low %v8032_v53, %v8036_v42 }
 0x7f3   : > { %v7909_v59 = vld [vmem:[#allocation3 + $0x3f0] sm:$0xff] }
 0x7f4   : > { %9445 = vmatpush1.bf16.msra.mxu1 %v14819_v7  ;;  %v14766_v47 = vcombine.high %v7905_v13, %v7909_v59  ;;  %v8024_v7 = vld [vmem:[#allocation3 + $0x788] sm:$0xff]  ;;  %v14765_v56 = vcombine.low %v7905_v13, %v7909_v59 }
 0x7f5   : > { %9486 = vmatpush1.bf16.msra.mxu0 %v14693_v0  ;;  %9446 = vmatprep.subr.bf16.mxu1 %v14812_v58  ;;  %v8028_v0 = vld [vmem:[#allocation3 + $0x7a8] sm:$0xff]  ;;  %v7897_v58 = vld [vmem:[#allocation3 + $0x390] sm:$0xff] }
 0x7f6   : > { %9487 = vmatprep.subr.bf16.mxu0 %v14686_v60  ;;  %v7901_v60 = vld [vmem:[#allocation3 + $0x3b0] sm:$0xff]  ;;  %v14884_v57 = vcombine.high %v8024_v7, %v8028_v0  ;;  %v14883_v37 = vcombine.low %v8024_v7, %v8028_v0 }
 0x7f7   : > { %v14758_v16 = vcombine.high %v7897_v58, %v7901_v60  ;;  %v14757_v18 = vcombine.low %v7897_v58, %v7901_v60 }
 0x7f8   : > { %9447 = vmatpush1.bf16.msra.mxu1 %v14811_v11  ;;  %v8016_v11 = vld [vmem:[#allocation3 + $0x748] sm:$0xff] }
 0x7f9   : > { %9488 = vmatpush1.bf16.msra.mxu0 %v14685_v54  ;;  %9448 = vmatprep.subr.bf16.mxu1 %v14804_v61  ;;  %v8020_v54 = vld [vmem:[#allocation3 + $0x768] sm:$0xff]  ;;  %v7889_v61 = vld [vmem:[#allocation3 + $0x350] sm:$0xff] }
 0x7fa   : > { %9489 = vmatprep.subr.bf16.mxu0 %v14678_v34  ;;  %v7893_v34 = vld [vmem:[#allocation3 + $0x370] sm:$0xff]  ;;  %v14876_v20 = vcombine.high %v8016_v11, %v8020_v54  ;;  %v14875_v25 = vcombine.low %v8016_v11, %v8020_v54 }
 0x7fb   : > { %v14750_v40 = vcombine.high %v7889_v61, %v7893_v34  ;;  %v14749_v28 = vcombine.low %v7889_v61, %v7893_v34 }
 0x7fc   : > { %9449 = vmatpush1.bf16.msra.mxu1 %v14803_v23  ;;  %v8008_v23 = vld [vmem:[#allocation3 + $0x708] sm:$0xff] }
 0x7fd   : > { %9490 = vmatpush1.bf16.msra.mxu0 %v14677_v3  ;;  %9450 = vmatprep.subr.bf16.mxu1 %v14796_v4  ;;  %v8012_v3 = vld [vmem:[#allocation3 + $0x728] sm:$0xff]  ;;  %v7881_v4 = vld [vmem:[#allocation3 + $0x310] sm:$0xff] }
 0x7fe   : > { %9491 = vmatprep.subr.bf16.mxu0 %v14670_v24  ;;  %v7885_v24 = vld [vmem:[#allocation3 + $0x330] sm:$0xff]  ;;  %v14868_v29 = vcombine.high %v8008_v23, %v8012_v3  ;;  %v14867_v49 = vcombine.low %v8008_v23, %v8012_v3  ;;  %v7838_v23 = vld [vmem:[#allocation3 + $0x1b8] sm:$0xff] }
 0x7ff   : > { %v14742_v5 = vcombine.high %v7881_v4, %v7885_v24  ;;  %v14741_v38 = vcombine.low %v7881_v4, %v7885_v24  ;;  %v7953_v24 = vld [vmem:[#allocation3 + $0x550] sm:$0xff] }
 0x800   : > { %9451 = vmatpush1.bf16.msra.mxu1 %v14795_v32  ;;  %v8000_v32 = vld [vmem:[#allocation3 + $0x6c8] sm:$0xff] }
 0x801   : > { %9492 = vmatpush1.bf16.msra.mxu0 %v14669_v35  ;;  %9452 = vmatprep.subr.bf16.mxu1 %v14788_v48  ;;  %v8004_v35 = vld [vmem:[#allocation3 + $0x6e8] sm:$0xff]  ;;  %v7873_v48 = vld [vmem:[#allocation3 + $0x2d0] sm:$0xff] }
 0x802   : > { %9493 = vmatprep.subr.bf16.mxu0 %v14662_v9  ;;  %v7877_v9 = vld [vmem:[#allocation3 + $0x2f0] sm:$0xff]  ;;  %v14860_v14 = vcombine.high %v8000_v32, %v8004_v35  ;;  %v14859_v45 = vcombine.low %v8000_v32, %v8004_v35 }
 0x803   : > { %v14734_v43 = vcombine.high %v7873_v48, %v7877_v9  ;;  %v14733_v63 = vcombine.low %v7873_v48, %v7877_v9 }
 0x804   : > { %9453 = vmatpush1.bf16.msra.mxu1 %v14787_v44  ;;  %v7992_v44 = vld [vmem:[#allocation3 + $0x688] sm:$0xff] }
 0x805   : > { %9494 = vmatpush1.bf16.msra.mxu0 %v14661_v39  ;;  %9454 = vmatprep.subr.bf16.mxu1 %v14780_v2  ;;  %v7996_v39 = vld [vmem:[#allocation3 + $0x6a8] sm:$0xff]  ;;  %v7865_v2 = vld [vmem:[#allocation3 + $0x290] sm:$0xff] }
 0x806   : > { %9495 = vmatprep.subr.bf16.mxu0 %v14654_v30  ;;  %v7869_v30 = vld [vmem:[#allocation3 + $0x2b0] sm:$0xff]  ;;  %v14852_v6 = vcombine.high %v7992_v44, %v7996_v39  ;;  %v14851_v53 = vcombine.low %v7992_v44, %v7996_v39 }
 0x807   : > { %v14726_v50 = vcombine.high %v7865_v2, %v7869_v30  ;;  %v14725_v42 = vcombine.low %v7865_v2, %v7869_v30 }
 0x808   : > { %9455 = vmatpush1.bf16.msra.mxu1 %v14779_v33  ;;  %v7984_v33 = vld [vmem:[#allocation3 + $0x648] sm:$0xff] }
 0x809   : > { %9496 = vmatpush1.bf16.msra.mxu0 %v14653_v51  ;;  %9456 = vmatprep.subr.bf16.mxu1 %v14772_v27  ;;  %v7988_v51 = vld [vmem:[#allocation3 + $0x668] sm:$0xff]  ;;  %v7857_v27 = vld [vmem:[#allocation3 + $0x250] sm:$0xff] }
 0x80a   : > { %9497 = vmatprep.subr.bf16.mxu0 %v14646_v52  ;;  %v7861_v52 = vld [vmem:[#allocation3 + $0x270] sm:$0xff]  ;;  %v14844_v13 = vcombine.high %v7984_v33, %v7988_v51  ;;  %v14843_v7 = vcombine.low %v7984_v33, %v7988_v51 }
 0x80b   : > { %v14718_v59 = vcombine.high %v7857_v27, %v7861_v52  ;;  %v14717_v0 = vcombine.low %v7857_v27, %v7861_v52 }
 0x80c   : > { %9457 = vmatpush1.bf16.msra.mxu1 %v14771_v62  ;;  %v7976_v62 = vld [vmem:[#allocation3 + $0x608] sm:$0xff] }
 0x80d   : > { %9498 = vmatpush1.bf16.msra.mxu0 %v14645_v1  ;;  %9458 = vmatprep.subr.bf16.mxu1 %v14892_v46  ;;  %v7980_v1 = vld [vmem:[#allocation3 + $0x628] sm:$0xff]  ;;  %v7849_v46 = vld [vmem:[#allocation3 + $0x210] sm:$0xff] }
 0x80e   : > { %9499 = vmatprep.subr.bf16.mxu0 %v14766_v47  ;;  %v7853_v47 = vld [vmem:[#allocation3 + $0x230] sm:$0xff]  ;;  %v14836_v58 = vcombine.high %v7976_v62, %v7980_v1  ;;  %v14835_v11 = vcombine.low %v7976_v62, %v7980_v1 }
 0x80f   : > { %v14710_v60 = vcombine.high %v7849_v46, %v7853_v47  ;;  %v14709_v54 = vcombine.low %v7849_v46, %v7853_v47 }
 0x810   : > { %9459 = vmatpush2.bf16.msra.mxu1 %v14891_v55  ;;  %v7969_v55 = vld [vmem:[#allocation3 + $0x5d0] sm:$0xff] }
 0x811   : > { %9500 = vmatpush2.bf16.msra.mxu0 %v14765_v56  ;;  %9460 = vmatprep.subr.bf16.mxu1 %v14884_v57  ;;  %v7973_v56 = vld [vmem:[#allocation3 + $0x5f0] sm:$0xff]  ;;  %v7842_v57 = vld [vmem:[#allocation3 + $0x1d8] sm:$0xff] }
 0x812   : > { %9501 = vmatprep.subr.bf16.mxu0 %v14758_v16  ;;  %v7846_v16 = vld [vmem:[#allocation3 + $0x1f8] sm:$0xff]  ;;  %v14830_v61 = vcombine.high %v7969_v55, %v7973_v56 }
 0x813   : > { %v14704_v34 = vcombine.high %v7842_v57, %v7846_v16  ;;  %v14703_v3 = vcombine.low %v7842_v57, %v7846_v16 }
 0x814   : > { %9461 = vmatpush2.bf16.msra.mxu1 %v14883_v37  ;;  %v7961_v37 = vld [vmem:[#allocation3 + $0x590] sm:$0xff] }
 0x815   : > { %9502 = vmatpush2.bf16.msra.mxu0 %v14757_v18  ;;  %9462 = vmatprep.subr.bf16.mxu1 %v14876_v20  ;;  %v7965_v18 = vld [vmem:[#allocation3 + $0x5b0] sm:$0xff]  ;;  %v14829_v20 = vcombine.low %v7969_v55, %v7973_v56 }
 0x816   : > { %9503 = vmatprep.subr.bf16.mxu0 %v14750_v40  ;;  %v7834_v40 = vld [vmem:[#allocation3 + $0x198] sm:$0xff]  ;;  %v14822_v4 = vcombine.high %v7961_v37, %v7965_v18  ;;  %v14821_v32 = vcombine.low %v7961_v37, %v7965_v18 }
 0x817   : > { %v14695_v35 = vcombine.low %v7834_v40, %v7838_v23 }
 0x818   : > { %9463 = vmatpush2.bf16.msra.mxu1 %v14875_v25  ;;  %v7957_v25 = vld [vmem:[#allocation3 + $0x570] sm:$0xff] }
 0x819   : > { %9504 = vmatpush2.bf16.msra.mxu0 %v14749_v28  ;;  %9464 = vmatprep.subr.bf16.mxu1 %v14868_v29  ;;  %v14696_v28 = vcombine.high %v7834_v40, %v7838_v23  ;;  %v7826_v29 = vld [vmem:[#allocation3 + $0x158] sm:$0xff]  ;;  %v14814_v48 = vcombine.high %v7953_v24, %v7957_v25  ;;  %v14813_v44 = vcombine.low %v7953_v24, %v7957_v25  ;;  %v8033_v23 = vld [vmem:[#allocation3 + $0x7d0] sm:$0xff] }
 0x81a   : > { %9505 = vmatprep.subr.bf16.mxu0 %v14742_v5  ;;  %v7830_v5 = vld [vmem:[#allocation3 + $0x178] sm:$0xff] }
 0x81b   : > { %v14688_v9 = vcombine.high %v7826_v29, %v7830_v5  ;;  %v14687_v39 = vcombine.low %v7826_v29, %v7830_v5  ;;  %v7910_v24 = vld [vmem:[#allocation3 + $0x3f8] sm:$0xff] }
 0x81c   : > { %9465 = vmatpush2.bf16.msra.mxu1 %v14867_v49  ;;  %v7945_v49 = vld [vmem:[#allocation3 + $0x510] sm:$0xff] }
 0x81d   : > { %9506 = vmatpush2.bf16.msra.mxu0 %v14741_v38  ;;  %9466 = vmatprep.subr.bf16.mxu1 %v14860_v14  ;;  %v7949_v38 = vld [vmem:[#allocation3 + $0x530] sm:$0xff]  ;;  %v7818_v14 = vld [vmem:[#allocation3 + $0x118] sm:$0xff] }
 0x81e   : > { %9507 = vmatprep.subr.bf16.mxu0 %v14734_v43  ;;  %v7822_v43 = vld [vmem:[#allocation3 + $0x138] sm:$0xff]  ;;  %v14806_v2 = vcombine.high %v7945_v49, %v7949_v38  ;;  %v14805_v33 = vcombine.low %v7945_v49, %v7949_v38 }
 0x81f   : > { %v14680_v30 = vcombine.high %v7818_v14, %v7822_v43  ;;  %v14679_v51 = vcombine.low %v7818_v14, %v7822_v43 }
 0x820   : > { %9467 = vmatpush2.bf16.msra.mxu1 %v14859_v45  ;;  %v7937_v45 = vld [vmem:[#allocation3 + $0x4d0] sm:$0xff] }
 0x821   : > { %9508 = vmatpush2.bf16.msra.mxu0 %v14733_v63  ;;  %9468 = vmatprep.subr.bf16.mxu1 %v14852_v6  ;;  %v7941_v63 = vld [vmem:[#allocation3 + $0x4f0] sm:$0xff]  ;;  %v7810_v6 = vld [vmem:[#allocation3 + $0xd8] sm:$0xff] }
 0x822   : > { %9509 = vmatprep.subr.bf16.mxu0 %v14726_v50  ;;  %v7814_v50 = vld [vmem:[#allocation3 + $0xf8] sm:$0xff]  ;;  %v14798_v27 = vcombine.high %v7937_v45, %v7941_v63  ;;  %v14797_v62 = vcombine.low %v7937_v45, %v7941_v63 }
 0x823   : > { %v14672_v52 = vcombine.high %v7810_v6, %v7814_v50  ;;  %v14671_v1 = vcombine.low %v7810_v6, %v7814_v50 }
 0x824   : > { %9469 = vmatpush2.bf16.msra.mxu1 %v14851_v53  ;;  %v7929_v53 = vld [vmem:[#allocation3 + $0x490] sm:$0xff] }
 0x825   : > { %9510 = vmatpush2.bf16.msra.mxu0 %v14725_v42  ;;  %9470 = vmatprep.subr.bf16.mxu1 %v14844_v13  ;;  %v7933_v42 = vld [vmem:[#allocation3 + $0x4b0] sm:$0xff]  ;;  %v7802_v13 = vld [vmem:[#allocation3 + $0x98] sm:$0xff] }
 0x826   : > { %9511 = vmatprep.subr.bf16.mxu0 %v14718_v59  ;;  %v7806_v59 = vld [vmem:[#allocation3 + $0xb8] sm:$0xff]  ;;  %v14790_v46 = vcombine.high %v7929_v53, %v7933_v42  ;;  %v14789_v55 = vcombine.low %v7929_v53, %v7933_v42 }
 0x827   : > { %v14664_v47 = vcombine.high %v7802_v13, %v7806_v59  ;;  %v14663_v56 = vcombine.low %v7802_v13, %v7806_v59 }
 0x828   : > { %9471 = vmatpush2.bf16.msra.mxu1 %v14843_v7  ;;  %v7921_v7 = vld [vmem:[#allocation3 + $0x450] sm:$0xff] }
 0x829   : > { %9512 = vmatpush2.bf16.msra.mxu0 %v14717_v0  ;;  %9472 = vmatprep.subr.bf16.mxu1 %v14836_v58  ;;  %v7925_v0 = vld [vmem:[#allocation3 + $0x470] sm:$0xff]  ;;  %v7794_v58 = vld [vmem:[#allocation3 + $0x58] sm:$0xff] }
 0x82a   : > { %9513 = vmatprep.subr.bf16.mxu0 %v14710_v60  ;;  %v7798_v60 = vld [vmem:[#allocation3 + $0x78] sm:$0xff]  ;;  %v14782_v57 = vcombine.high %v7921_v7, %v7925_v0  ;;  %v14781_v37 = vcombine.low %v7921_v7, %v7925_v0 }
 0x82b   : > { %v14656_v16 = vcombine.high %v7794_v58, %v7798_v60  ;;  %v14655_v18 = vcombine.low %v7794_v58, %v7798_v60 }
 0x82c   : > { %9473 = vmatpush2.bf16.msra.mxu1 %v14835_v11  ;;  %v7913_v11 = vld [vmem:[#allocation3 + $0x410] sm:$0xff] }
 0x82d   : > { %9514 = vmatpush2.bf16.msra.mxu0 %v14709_v54  ;;  %9524 = vmatprep.subr.bf16.mxu1 %v14830_v61  ;;  %v7917_v54 = vld [vmem:[#allocation3 + $0x430] sm:$0xff]  ;;  %v7786_v61 = vld [vmem:[#allocation3 + $0x18] sm:$0xff] }
 0x82e   : > { %9565 = vmatprep.subr.bf16.mxu0 %v14704_v34  ;;  %v7790_v34 = vld [vmem:[#allocation3 + $0x38] sm:$0xff]  ;;  %v14773_v25 = vcombine.low %v7913_v11, %v7917_v54 }
 0x82f   : > { %9475 = vmatmul.mubr.bf16.vlgmr.msra.gmra.mxu1 %v18150_v15  ;;  %v14648_v40 = vcombine.high %v7786_v61, %v7790_v34 }
 0x830   : > { %9516 = vmatmul.mubr.bf16.vlgmr.msra.gmra.mxu0 %v18134_v21  ;;  %9525 = vmatpush1.bf16.msra.mxu1 %v14829_v20  ;;  %v14774_v20 = vcombine.high %v7913_v11, %v7917_v54 }
 0x831   : > { %9556 = vmatprep.mubr.bf16.mxu1 %v18148_v26  ;;  %9566 = vmatpush1.bf16.msra.mxu0 %v14703_v3  ;;  %v8037_v3 = vld [vmem:[#allocation3 + $0x7f0] sm:$0xff] }
 0x832   : > { %9597 = vmatprep.mubr.bf16.mxu0 %v18132_v41  ;;  %9526 = vmatprep.subr.bf16.mxu1 %v14822_v4  ;;  %v7906_v4 = vld [vmem:[#allocation3 + $0x3d8] sm:$0xff]  ;;  %v14894_v29 = vcombine.high %v8033_v23, %v8037_v3  ;;  %v14893_v49 = vcombine.low %v8033_v23, %v8037_v3 }
 0x833   : > { %9567 = vmatprep.subr.bf16.mxu0 %v14696_v28  ;;  %v14647_v28 = vcombine.low %v7786_v61, %v7790_v34  ;;  %v14768_v5 = vcombine.high %v7906_v4, %v7910_v24  ;;  %v14767_v38 = vcombine.low %v7906_v4, %v7910_v24 }
 0x834   : > { %9527 = vmatpush1.bf16.msra.mxu1 %v14821_v32  ;;  %v8025_v32 = vld [vmem:[#allocation3 + $0x790] sm:$0xff] }
 0x835   : > { %9568 = vmatpush1.bf16.msra.mxu0 %v14695_v35  ;;  %9528 = vmatprep.subr.bf16.mxu1 %v14814_v48  ;;  %v8029_v35 = vld [vmem:[#allocation3 + $0x7b0] sm:$0xff]  ;;  %v7898_v48 = vld [vmem:[#allocation3 + $0x398] sm:$0xff] }
 0x836   : > { %9569 = vmatprep.subr.bf16.mxu0 %v14688_v9  ;;  %v7902_v9 = vld [vmem:[#allocation3 + $0x3b8] sm:$0xff]  ;;  %v14886_v14 = vcombine.high %v8025_v32, %v8029_v35  ;;  %v14885_v45 = vcombine.low %v8025_v32, %v8029_v35 }
 0x837   : > { %v14760_v43 = vcombine.high %v7898_v48, %v7902_v9  ;;  %v14759_v63 = vcombine.low %v7898_v48, %v7902_v9 }
 0x838   : > { %9529 = vmatpush1.bf16.msra.mxu1 %v14813_v44  ;;  %v8017_v44 = vld [vmem:[#allocation3 + $0x750] sm:$0xff] }
 0x839   : > { %9570 = vmatpush1.bf16.msra.mxu0 %v14687_v39  ;;  %9530 = vmatprep.subr.bf16.mxu1 %v14806_v2  ;;  %v8021_v39 = vld [vmem:[#allocation3 + $0x770] sm:$0xff]  ;;  %v7890_v2 = vld [vmem:[#allocation3 + $0x358] sm:$0xff] }
 0x83a   : > { %9571 = vmatprep.subr.bf16.mxu0 %v14680_v30  ;;  %v7894_v30 = vld [vmem:[#allocation3 + $0x378] sm:$0xff]  ;;  %v14878_v6 = vcombine.high %v8017_v44, %v8021_v39  ;;  %v14877_v53 = vcombine.low %v8017_v44, %v8021_v39 }
 0x83b   : > { %v14752_v50 = vcombine.high %v7890_v2, %v7894_v30  ;;  %v14751_v42 = vcombine.low %v7890_v2, %v7894_v30 }
 0x83c   : > { %9531 = vmatpush1.bf16.msra.mxu1 %v14805_v33  ;;  %v8009_v33 = vld [vmem:[#allocation3 + $0x710] sm:$0xff] }
 0x83d   : > { %9572 = vmatpush1.bf16.msra.mxu0 %v14679_v51  ;;  %9532 = vmatprep.subr.bf16.mxu1 %v14798_v27  ;;  %v8013_v51 = vld [vmem:[#allocation3 + $0x730] sm:$0xff]  ;;  %v7882_v27 = vld [vmem:[#allocation3 + $0x318] sm:$0xff] }
 0x83e   : > { %9573 = vmatprep.subr.bf16.mxu0 %v14672_v52  ;;  %v7886_v52 = vld [vmem:[#allocation3 + $0x338] sm:$0xff]  ;;  %v14870_v13 = vcombine.high %v8009_v33, %v8013_v51  ;;  %v14869_v7 = vcombine.low %v8009_v33, %v8013_v51  ;;  %v9806_v33 = vld [vmem:[#allocation3 + $0x9a0] sm:$0xff] }
 0x83f   : > { %v14744_v59 = vcombine.high %v7882_v27, %v7886_v52  ;;  %v14743_v0 = vcombine.low %v7882_v27, %v7886_v52  ;;  %v7954_v52 = vld [vmem:[#allocation3 + $0x558] sm:$0xff] }
 0x840   : > { %9533 = vmatpush1.bf16.msra.mxu1 %v14797_v62  ;;  %v8001_v62 = vld [vmem:[#allocation3 + $0x6d0] sm:$0xff] }
 0x841   : > { %9574 = vmatpush1.bf16.msra.mxu0 %v14671_v1  ;;  %9534 = vmatprep.subr.bf16.mxu1 %v14790_v46  ;;  %v8005_v1 = vld [vmem:[#allocation3 + $0x6f0] sm:$0xff]  ;;  %v7874_v46 = vld [vmem:[#allocation3 + $0x2d8] sm:$0xff] }
 0x842   : > { %9575 = vmatprep.subr.bf16.mxu0 %v14664_v47  ;;  %v7878_v47 = vld [vmem:[#allocation3 + $0x2f8] sm:$0xff]  ;;  %v14862_v58 = vcombine.high %v8001_v62, %v8005_v1  ;;  %v14861_v11 = vcombine.low %v8001_v62, %v8005_v1  ;;  %v9798_v62 = vld [vmem:[#allocation3 + $0x960] sm:$0xff] }
 0x843   : > { %v14736_v60 = vcombine.high %v7874_v46, %v7878_v47  ;;  %v14735_v54 = vcombine.low %v7874_v46, %v7878_v47 }
 0x844   : > { %9535 = vmatpush1.bf16.msra.mxu1 %v14789_v55  ;;  %v7993_v55 = vld [vmem:[#allocation3 + $0x690] sm:$0xff] }
 0x845   : > { %9576 = vmatpush1.bf16.msra.mxu0 %v14663_v56  ;;  %9536 = vmatprep.subr.bf16.mxu1 %v14782_v57  ;;  %v7997_v56 = vld [vmem:[#allocation3 + $0x6b0] sm:$0xff]  ;;  %v7866_v57 = vld [vmem:[#allocation3 + $0x298] sm:$0xff] }
 0x846   : > { %9577 = vmatprep.subr.bf16.mxu0 %v14656_v16  ;;  %v7870_v16 = vld [vmem:[#allocation3 + $0x2b8] sm:$0xff]  ;;  %v14854_v61 = vcombine.high %v7993_v55, %v7997_v56  ;;  %v14853_v23 = vcombine.low %v7993_v55, %v7997_v56  ;;  %v9786_v56 = vld [vmem:[#allocation3 + $0x900] sm:$0xff] }
 0x847   : > { %v14728_v34 = vcombine.high %v7866_v57, %v7870_v16  ;;  %v14727_v3 = vcombine.low %v7866_v57, %v7870_v16  ;;  %v9790_v57 = vld [vmem:[#allocation3 + $0x920] sm:$0xff] }
 0x848   : > { %9537 = vmatpush1.bf16.msra.mxu1 %v14781_v37  ;;  %v7985_v37 = vld [vmem:[#allocation3 + $0x650] sm:$0xff] }
 0x849   : > { %9578 = vmatpush1.bf16.msra.mxu0 %v14655_v18  ;;  %9538 = vmatprep.subr.bf16.mxu1 %v14774_v20  ;;  %v7989_v18 = vld [vmem:[#allocation3 + $0x670] sm:$0xff]  ;;  %v7858_v20 = vld [vmem:[#allocation3 + $0x258] sm:$0xff] }
 0x84a   : > { %9579 = vmatprep.subr.bf16.mxu0 %v14648_v40  ;;  %v7862_v40 = vld [vmem:[#allocation3 + $0x278] sm:$0xff]  ;;  %v14846_v4 = vcombine.high %v7985_v37, %v7989_v18  ;;  %v14845_v32 = vcombine.low %v7985_v37, %v7989_v18 }
 0x84b   : > { %v14720_v24 = vcombine.high %v7858_v20, %v7862_v40  ;;  %v14719_v35 = vcombine.low %v7858_v20, %v7862_v40  ;;  %v7938_v37 = vld [vmem:[#allocation3 + $0x4d8] sm:$0xff]  ;;  %v9778_v20 = vld [vmem:[#allocation3 + $0x8c0] sm:$0xff] }
 0x84c   : > { %9539 = vmatpush1.bf16.msra.mxu1 %v14773_v25  ;;  %v7977_v25 = vld [vmem:[#allocation3 + $0x610] sm:$0xff]  ;;  %v7942_v18 = vld [vmem:[#allocation3 + $0x4f8] sm:$0xff]  ;;  %v9782_v40 = vld [vmem:[#allocation3 + $0x8e0] sm:$0xff] }
 0x84d   : > { %9580 = vmatpush1.bf16.msra.mxu0 %v14647_v28  ;;  %9540 = vmatprep.subr.bf16.mxu1 %v14894_v29  ;;  %v7981_v28 = vld [vmem:[#allocation3 + $0x630] sm:$0xff]  ;;  %v7850_v29 = vld [vmem:[#allocation3 + $0x218] sm:$0xff] }
 0x84e   : > { %9581 = vmatprep.subr.bf16.mxu0 %v14768_v5  ;;  %v7854_v5 = vld [vmem:[#allocation3 + $0x238] sm:$0xff]  ;;  %v14838_v48 = vcombine.high %v7977_v25, %v7981_v28  ;;  %v14837_v44 = vcombine.low %v7977_v25, %v7981_v28 }
 0x84f   : > { %v14712_v9 = vcombine.high %v7850_v29, %v7854_v5  ;;  %v14711_v39 = vcombine.low %v7850_v29, %v7854_v5  ;;  %v7930_v25 = vld [vmem:[#allocation3 + $0x498] sm:$0xff]  ;;  %v9770_v29 = vld [vmem:[#allocation3 + $0x880] sm:$0xff] }
 0x850   : > { %9541 = vmatpush2.bf16.msra.mxu1 %v14893_v49  ;;  %v7970_v49 = vld [vmem:[#allocation3 + $0x5d8] sm:$0xff]  ;;  %v9774_v5 = vld [vmem:[#allocation3 + $0x8a0] sm:$0xff] }
 0x851   : > { %9582 = vmatpush2.bf16.msra.mxu0 %v14767_v38  ;;  %9542 = vmatprep.subr.bf16.mxu1 %v14886_v14  ;;  %v7974_v38 = vld [vmem:[#allocation3 + $0x5f8] sm:$0xff]  ;;  %v9810_v14 = vld [vmem:[#allocation3 + $0x9c0] sm:$0xff] }
 0x852   : > { %9583 = vmatprep.subr.bf16.mxu0 %v14760_v43  ;;  %v9814_v43 = vld [vmem:[#allocation3 + $0x9e0] sm:$0xff]  ;;  %v14832_v2 = vcombine.high %v7970_v49, %v7974_v38  ;;  %v7934_v28 = vld [vmem:[#allocation3 + $0x4b8] sm:$0xff] }
 0x853   : > { %v14954_v30 = vcombine.high %v9810_v14, %v9814_v43  ;;  %v14953_v51 = vcombine.low %v9810_v14, %v9814_v43  ;;  %v9762_v14 = vld [vmem:[#allocation3 + $0x840] sm:$0xff] }
 0x854   : > { %9543 = vmatpush2.bf16.msra.mxu1 %v14885_v45  ;;  %v7962_v45 = vld [vmem:[#allocation3 + $0x598] sm:$0xff]  ;;  %v9766_v43 = vld [vmem:[#allocation3 + $0x860] sm:$0xff] }
 0x855   : > { %9584 = vmatpush2.bf16.msra.mxu0 %v14759_v63  ;;  %9544 = vmatprep.subr.bf16.mxu1 %v14878_v6  ;;  %v7966_v63 = vld [vmem:[#allocation3 + $0x5b8] sm:$0xff]  ;;  %v14831_v6 = vcombine.low %v7970_v49, %v7974_v38 }
 0x856   : > { %9585 = vmatprep.subr.bf16.mxu0 %v14752_v50  ;;  %v9802_v50 = vld [vmem:[#allocation3 + $0x980] sm:$0xff]  ;;  %v14824_v27 = vcombine.high %v7962_v45, %v7966_v63  ;;  %v14823_v1 = vcombine.low %v7962_v45, %v7966_v63  ;;  %v7922_v49 = vld [vmem:[#allocation3 + $0x458] sm:$0xff] }
 0x857   : > { %v14945_v47 = vcombine.low %v9802_v50, %v9806_v33  ;;  %v7926_v38 = vld [vmem:[#allocation3 + $0x478] sm:$0xff] }
 0x858   : > { %9545 = vmatpush2.bf16.msra.mxu1 %v14877_v53  ;;  %v7958_v53 = vld [vmem:[#allocation3 + $0x578] sm:$0xff] }
 0x859   : > { %9586 = vmatpush2.bf16.msra.mxu0 %v14751_v42  ;;  %9546 = vmatprep.subr.bf16.mxu1 %v14870_v13  ;;  %v14946_v13 = vcombine.high %v9802_v50, %v9806_v33  ;;  %v14815_v16 = vcombine.low %v7954_v52, %v7958_v53  ;;  %v7914_v45 = vld [vmem:[#allocation3 + $0x418] sm:$0xff]  ;;  %v9758_v50 = vld [vmem:[#allocation3 + $0x820] sm:$0xff]  ;;  %v14783_v33 = vcombine.low %v7922_v49, %v7926_v38 }
 0x85a   : > { %9587 = vmatprep.subr.bf16.mxu0 %v14744_v59  ;;  %v9794_v59 = vld [vmem:[#allocation3 + $0x940] sm:$0xff]  ;;  %v7918_v63 = vld [vmem:[#allocation3 + $0x438] sm:$0xff] }
 0x85c   : > { %9547 = vmatpush2.bf16.msra.mxu1 %v14869_v7  ;;  %v14816_v7 = vcombine.high %v7954_v52, %v7958_v53  ;;  %v8034_v53 = vld [vmem:[#allocation3 + $0x7d8] sm:$0xff] }
 0x85d   : > { %9588 = vmatpush2.bf16.msra.mxu0 %v14743_v0  ;;  %9548 = vmatprep.subr.bf16.mxu1 %v14862_v58  ;;  %v14938_v0 = vcombine.high %v9794_v59, %v9798_v62  ;;  %v7946_v58 = vld [vmem:[#allocation3 + $0x518] sm:$0xff] }
 0x85e   : > { %9589 = vmatprep.subr.bf16.mxu0 %v14736_v60  ;;  %v7950_v60 = vld [vmem:[#allocation3 + $0x538] sm:$0xff] }
 0x860   : > { %9549 = vmatpush2.bf16.msra.mxu1 %v14861_v11 }
 0x861   : > { %9590 = vmatpush2.bf16.msra.mxu0 %v14735_v54  ;;  %9550 = vmatprep.subr.bf16.mxu1 %v14854_v61  ;;  %v14937_v54 = vcombine.low %v9794_v59, %v9798_v62  ;;  %v14808_v61 = vcombine.high %v7946_v58, %v7950_v60  ;;  %v9874_v59 = vld [vmem:[#allocation3 + $0xbc0] sm:$0xff] }
 0x862   : > { %9591 = vmatprep.subr.bf16.mxu0 %v14728_v34  ;;  %v14930_v34 = vcombine.high %v9786_v56, %v9790_v57  ;;  %v9878_v62 = vld [vmem:[#allocation3 + $0xbe0] sm:$0xff] }
 0x864   : > { %9551 = vmatpush2.bf16.msra.mxu1 %v14853_v23  ;;  %v14807_v23 = vcombine.low %v7946_v58, %v7950_v60  ;;  %v8026_v58 = vld [vmem:[#allocation3 + $0x798] sm:$0xff] }
 0x865   : > { %9592 = vmatpush2.bf16.msra.mxu0 %v14727_v3  ;;  %9552 = vmatprep.subr.bf16.mxu1 %v14846_v4  ;;  %v14929_v3 = vcombine.low %v9786_v56, %v9790_v57  ;;  %v14800_v4 = vcombine.high %v7938_v37, %v7942_v18  ;;  %v8030_v60 = vld [vmem:[#allocation3 + $0x7b8] sm:$0xff]  ;;  %v9870_v56 = vld [vmem:[#allocation3 + $0xba0] sm:$0xff] }
 0x866   : > { %9593 = vmatprep.subr.bf16.mxu0 %v14720_v24  ;;  %v14922_v24 = vcombine.high %v9778_v20, %v9782_v40 }
 0x868   : > { %9553 = vmatpush2.bf16.msra.mxu1 %v14845_v32  ;;  %v14799_v32 = vcombine.low %v7938_v37, %v7942_v18  ;;  %v9858_v37 = vld [vmem:[#allocation3 + $0xb40] sm:$0xff] }
 0x869   : > { %9594 = vmatpush2.bf16.msra.mxu0 %v14719_v35  ;;  %9554 = vmatprep.subr.bf16.mxu1 %v14838_v48  ;;  %v14921_v35 = vcombine.low %v9778_v20, %v9782_v40  ;;  %v14792_v48 = vcombine.high %v7930_v25, %v7934_v28  ;;  %v9862_v18 = vld [vmem:[#allocation3 + $0xb60] sm:$0xff]  ;;  %v14887_v20 = vcombine.low %v8026_v58, %v8030_v60 }
 0x86a   : > { %9595 = vmatprep.subr.bf16.mxu0 %v14712_v9  ;;  %v14914_v9 = vcombine.high %v9770_v29, %v9774_v5 }
 0x86c   : > { %9555 = vmatpush2.bf16.msra.mxu1 %v14837_v44  ;;  %v14791_v44 = vcombine.low %v7930_v25, %v7934_v28  ;;  %v9850_v25 = vld [vmem:[#allocation3 + $0xb00] sm:$0xff] }
 0x86d   : > { %9596 = vmatpush2.bf16.msra.mxu0 %v14711_v39  ;;  %9606 = vmatprep.subr.bf16.mxu1 %v14832_v2  ;;  %v14913_v39 = vcombine.low %v9770_v29, %v9774_v5  ;;  %v14784_v2 = vcombine.high %v7922_v49, %v7926_v38  ;;  %v9854_v28 = vld [vmem:[#allocation3 + $0xb20] sm:$0xff]  ;;  %v15001_v5 = vcombine.low %v9858_v37, %v9862_v18 }
 0x86e   : > { %11290 = vmatprep.subr.bf16.mxu0 %v14954_v30  ;;  %v14906_v30 = vcombine.high %v9762_v14, %v9766_v43  ;;  %v9842_v49 = vld [vmem:[#allocation3 + $0xac0] sm:$0xff] }
 0x86f   : > { %9557 = vmatmul.mubr.bf16.vlgmr.msra.gmra.mxu1 %v18150_v15  ;;  %v18165_v42 = vpop.f32.mrf.mxu0  ;;  %v9846_v38 = vld [vmem:[#allocation3 + $0xae0] sm:$0xff] }
 0x870   : > { %9598 = vmatmul.mubr.bf16.vlgmr.msra.gmra.mxu0 %v18134_v21  ;;  %9607 = vmatpush1.bf16.msra.mxu1 %v14831_v6  ;;  %v9754_v6 = vld [vmem:[#allocation3 + $0x800] sm:$0xff] }
 0x871   : > { %9638 = vmatprep.mubr.bf16.mxu1 %v18148_v26  ;;  %11291 = vmatpush1.bf16.msra.mxu0 %v14953_v51  ;;  %v18169_v46 = vpop.f32.mrf.mxu0  ;;  %v14905_v51 = vcombine.low %v9762_v14, %v9766_v43  ;;  %v14898_v52 = vcombine.high %v9754_v6, %v9758_v50  ;;  %v14993_v43 = vcombine.low %v9850_v25, %v9854_v28 }
 0x872   : > { %11322 = vmatprep.mubr.bf16.mxu0 %v18132_v41  ;;  %9608 = vmatprep.subr.bf16.mxu1 %v14824_v27  ;;  %v14776_v27 = vcombine.high %v7914_v45, %v7918_v63 }
 0x873   : > { %11292 = vmatprep.subr.bf16.mxu0 %v14946_v13  ;;  %v9357_v55 = vpop.f32.mrf.mxu0  ;;  %v8038_v13 = vld [vmem:[#allocation3 + $0x7f8] sm:$0xff] }
 0x874   : > { %9609 = vmatpush1.bf16.msra.mxu1 %v14823_v1  ;;  %v14775_v1 = vcombine.low %v7914_v45, %v7918_v63  ;;  %v9866_v55 = vld [vmem:[#allocation3 + $0xb80] sm:$0xff]  ;;  %v14895_v57 = vcombine.low %v8034_v53, %v8038_v13 }
 0x875   : > { %11293 = vmatpush1.bf16.msra.mxu0 %v14945_v47  ;;  %v9358_v11 = vpop.f32.mrf.mxu0  ;;  %9610 = vmatprep.subr.bf16.mxu1 %v14816_v7  ;;  %v14897_v47 = vcombine.low %v9754_v6, %v9758_v50  ;;  %v14896_v7 = vcombine.high %v8034_v53, %v8038_v13  ;;  %v15009_v40 = vcombine.low %v9866_v55, %v9870_v56  ;;  %v9834_v45 = vld [vmem:[#allocation3 + $0xa80] sm:$0xff] }
 0x876   : > { %11294 = vmatprep.subr.bf16.mxu0 %v14938_v0  ;;  %v15018_v0 = vcombine.high %v9874_v59, %v9878_v62  ;;  %v14888_v11 = vcombine.high %v8026_v58, %v8030_v60  ;;  %v9838_v63 = vld [vmem:[#allocation3 + $0xaa0] sm:$0xff]  ;;  %v14985_v50 = vcombine.low %v9842_v49, %v9846_v38 }
 0x877   : > { %v9826_v53 = vld [vmem:[#allocation3 + $0xa40] sm:$0xff] }
 0x878   : > { %9611 = vmatpush1.bf16.msra.mxu1 %v14815_v16  ;;  %v15017_v16 = vcombine.low %v9874_v59, %v9878_v62  ;;  %v9830_v13 = vld [vmem:[#allocation3 + $0xa60] sm:$0xff]  ;;  %v14977_v62 = vcombine.low %v9834_v45, %v9838_v63 }
 0x879   : > { %11295 = vmatpush1.bf16.msra.mxu0 %v14937_v54  ;;  %9612 = vmatprep.subr.bf16.mxu1 %v14808_v61  ;;  %v15010_v54 = vcombine.high %v9866_v55, %v9870_v56  ;;  %v8018_v61 = vld [vmem:[#allocation3 + $0x758] sm:$0xff]  ;;  %v9818_v58 = vld [vmem:[#allocation3 + $0xa00] sm:$0xff]  ;;  %v14969_v56 = vcombine.low %v9826_v53, %v9830_v13 }
 0x87a   : > { %11296 = vmatprep.subr.bf16.mxu0 %v14930_v34  ;;  %v8022_v34 = vld [vmem:[#allocation3 + $0x778] sm:$0xff]  ;;  %v9822_v60 = vld [vmem:[#allocation3 + $0xa20] sm:$0xff] }
 0x87b   : > { %v14879_v29 = vcombine.low %v8018_v61, %v8022_v34 }
 0x87c   : > { %9613 = vmatpush1.bf16.msra.mxu1 %v14807_v23  ;;  %v14880_v23 = vcombine.high %v8018_v61, %v8022_v34  ;;  %v9811_v61 = vld [vmem:[#allocation3 + $0x9c8] sm:$0xff] }
 0x87d   : > { %11297 = vmatpush1.bf16.msra.mxu0 %v14929_v3  ;;  %9614 = vmatprep.subr.bf16.mxu1 %v14800_v4  ;;  %v15002_v3 = vcombine.high %v9858_v37, %v9862_v18  ;;  %v8010_v4 = vld [vmem:[#allocation3 + $0x718] sm:$0xff]  ;;  %v9815_v34 = vld [vmem:[#allocation3 + $0x9e8] sm:$0xff]  ;;  %v14961_v18 = vcombine.low %v9818_v58, %v9822_v60 }
 0x87e   : > { %11298 = vmatprep.subr.bf16.mxu0 %v14922_v24  ;;  %v8014_v24 = vld [vmem:[#allocation3 + $0x738] sm:$0xff] }
 0x87f   : > { %v14871_v14 = vcombine.low %v8010_v4, %v8014_v24 }
 0x880   : > { %9615 = vmatpush1.bf16.msra.mxu1 %v14799_v32  ;;  %v14872_v32 = vcombine.high %v8010_v4, %v8014_v24  ;;  %v9934_v4 = vld [vmem:[#allocation3 + $0xda0] sm:$0xff] }
 0x881   : > { %11299 = vmatpush1.bf16.msra.mxu0 %v14921_v35  ;;  %9616 = vmatprep.subr.bf16.mxu1 %v14792_v48  ;;  %v14994_v35 = vcombine.high %v9850_v25, %v9854_v28  ;;  %v8002_v48 = vld [vmem:[#allocation3 + $0x6d8] sm:$0xff]  ;;  %v9803_v28 = vld [vmem:[#allocation3 + $0x988] sm:$0xff] }
 0x882   : > { %11300 = vmatprep.subr.bf16.mxu0 %v14914_v9  ;;  %v8006_v9 = vld [vmem:[#allocation3 + $0x6f8] sm:$0xff] }
 0x883   : > { %v14863_v6 = vcombine.low %v8002_v48, %v8006_v9  ;;  %v18174_v25 = vld [vmem:[#allocation10 + $0x14] sm:$0xff] }
 0x884   : > { %9617 = vmatpush1.bf16.msra.mxu1 %v14791_v44  ;;  %v14864_v44 = vcombine.high %v8002_v48, %v8006_v9  ;;  %v9922_v48 = vld [vmem:[#allocation3 + $0xd40] sm:$0xff] }
 0x885   : > { %11301 = vmatpush1.bf16.msra.mxu0 %v14913_v39  ;;  %9618 = vmatprep.subr.bf16.mxu1 %v14784_v2  ;;  %v14986_v39 = vcombine.high %v9842_v49, %v9846_v38  ;;  %v7994_v2 = vld [vmem:[#allocation3 + $0x698] sm:$0xff]  ;;  %v9926_v9 = vld [vmem:[#allocation3 + $0xd60] sm:$0xff]  ;;  %v9700_v38 = vrot.slane %v18174_v25, %v17965_v8 }
 0x886   : > { %11302 = vmatprep.subr.bf16.mxu0 %v14906_v30  ;;  %v7998_v30 = vld [vmem:[#allocation3 + $0x6b8] sm:$0xff] }
 0x887   : > { %v14855_v59 = vcombine.low %v7994_v2, %v7998_v30 }
 0x888   : > { %9619 = vmatpush1.bf16.msra.mxu1 %v14783_v33  ;;  %v14856_v33 = vcombine.high %v7994_v2, %v7998_v30 }
 0x889   : > { %11303 = vmatpush1.bf16.msra.mxu0 %v14905_v51  ;;  %9620 = vmatprep.subr.bf16.mxu1 %v14776_v27  ;;  %v14978_v51 = vcombine.high %v9834_v45, %v9838_v63  ;;  %v7986_v27 = vld [vmem:[#allocation3 + $0x658] sm:$0xff] }
 0x88a   : > { %11304 = vmatprep.subr.bf16.mxu0 %v14898_v52  ;;  %v7990_v52 = vld [vmem:[#allocation3 + $0x678] sm:$0xff] }
 0x88b   : > { %v14847_v55 = vcombine.low %v7986_v27, %v7990_v52 }
 0x88c   : > { %9621 = vmatpush1.bf16.msra.mxu1 %v14775_v1  ;;  %v14848_v1 = vcombine.high %v7986_v27, %v7990_v52 }
 0x88d   : > { %11305 = vmatpush1.bf16.msra.mxu0 %v14897_v47  ;;  %9622 = vmatprep.subr.bf16.mxu1 %v14896_v7  ;;  %v14970_v47 = vcombine.high %v9826_v53, %v9830_v13  ;;  %v7978_v7 = vld [vmem:[#allocation3 + $0x618] sm:$0xff]  ;;  %v9914_v53 = vld [vmem:[#allocation3 + $0xd00] sm:$0xff] }
 0x88e   : > { %11306 = vmatprep.subr.bf16.mxu0 %v15018_v0  ;;  %v7982_v0 = vld [vmem:[#allocation3 + $0x638] sm:$0xff]  ;;  %v9918_v13 = vld [vmem:[#allocation3 + $0xd20] sm:$0xff] }
 0x88f   : > { %v14839_v37 = vcombine.low %v7978_v7, %v7982_v0 }
 0x890   : > { %9623 = vmatpush2.bf16.msra.mxu1 %v14895_v57  ;;  %v14840_v57 = vcombine.high %v7978_v7, %v7982_v0 }
 0x891   : > { %11307 = vmatpush2.bf16.msra.mxu0 %v15017_v16  ;;  %9624 = vmatprep.subr.bf16.mxu1 %v14888_v11  ;;  %v14962_v16 = vcombine.high %v9818_v58, %v9822_v60  ;;  %v9938_v11 = vld [vmem:[#allocation3 + $0xdc0] sm:$0xff]  ;;  %v15065_v58 = vcombine.low %v9922_v48, %v9926_v9 }
 0x892   : > { %11308 = vmatprep.subr.bf16.mxu0 %v15010_v54  ;;  %v9942_v54 = vld [vmem:[#allocation3 + $0xde0] sm:$0xff] }
 0x893   : > { %v15081_v24 = vcombine.low %v9938_v11, %v9942_v54 }
 0x894   : > { %9625 = vmatpush2.bf16.msra.mxu1 %v14887_v20  ;;  %v15082_v20 = vcombine.high %v9938_v11, %v9942_v54  ;;  %v9906_v11 = vld [vmem:[#allocation3 + $0xcc0] sm:$0xff] }
 0x895   : > { %11309 = vmatpush2.bf16.msra.mxu0 %v15009_v40  ;;  %9626 = vmatprep.subr.bf16.mxu1 %v14880_v23  ;;  %v14956_v40 = vcombine.high %v9811_v61, %v9815_v34  ;;  %v18172_v23 = vld [vmem:[#allocation10 + $0x34] sm:$0xff]  ;;  %v9910_v54 = vld [vmem:[#allocation3 + $0xce0] sm:$0xff] }
 0x896   : > { %11310 = vmatprep.subr.bf16.mxu0 %v15002_v3  ;;  %v9930_v3 = vld [vmem:[#allocation3 + $0xd80] sm:$0xff]  ;;  %v9655_v30 = vrot.slane %v18172_v23, %v17947_v10 }
 0x897   : > { %v15073_v45 = vcombine.low %v9930_v3, %v9934_v4 }
 0x898   : > { %9627 = vmatpush2.bf16.msra.mxu1 %v14879_v29  ;;  %v9807_v29 = vld [vmem:[#allocation3 + $0x9a8] sm:$0xff] }
 0x899   : > { %11311 = vmatpush2.bf16.msra.mxu0 %v15001_v5  ;;  %9628 = vmatprep.subr.bf16.mxu1 %v14872_v32  ;;  %v14955_v5 = vcombine.low %v9811_v61, %v9815_v34  ;;  %v9651_v32 = vrot.slane %v18172_v23, %v17965_v8  ;;  %v9779_v61 = vld [vmem:[#allocation3 + $0x8c8] sm:$0xff] }
 0x89a   : > { %11312 = vmatprep.subr.bf16.mxu0 %v14994_v35  ;;  %v15074_v35 = vcombine.high %v9930_v3, %v9934_v4  ;;  %v9783_v34 = vld [vmem:[#allocation3 + $0x8e8] sm:$0xff]  ;;  %v9898_v3 = vld [vmem:[#allocation3 + $0xc80] sm:$0xff] }
 0x89b   : > { %v9902_v4 = vld [vmem:[#allocation3 + $0xca0] sm:$0xff] }
 0x89c   : > { %9629 = vmatpush2.bf16.msra.mxu1 %v14871_v14 }
 0x89d   : > { %11313 = vmatpush2.bf16.msra.mxu0 %v14993_v43  ;;  %9630 = vmatprep.subr.bf16.mxu1 %v14864_v44  ;;  %v14948_v43 = vcombine.high %v9803_v28, %v9807_v29  ;;  %v9795_v44 = vld [vmem:[#allocation3 + $0x948] sm:$0xff] }
 0x89e   : > { %11314 = vmatprep.subr.bf16.mxu0 %v14986_v39  ;;  %v9799_v39 = vld [vmem:[#allocation3 + $0x968] sm:$0xff] }
 0x89f   : > { %v14940_v52 = vcombine.high %v9795_v44, %v9799_v39 }
 0x8a0   : > { %9631 = vmatpush2.bf16.msra.mxu1 %v14863_v6  ;;  %v9704_v6 = vrot.slane %v18174_v25, %v17947_v10 }
 0x8a1   : > { %11315 = vmatpush2.bf16.msra.mxu0 %v14985_v50  ;;  %9632 = vmatprep.subr.bf16.mxu1 %v14856_v33  ;;  %v14947_v33 = vcombine.low %v9803_v28, %v9807_v29  ;;  %v9775_v28 = vld [vmem:[#allocation3 + $0x8a8] sm:$0xff]  ;;  %v15049_v29 = vcombine.low %v9906_v11, %v9910_v54 }
 0x8a2   : > { %11316 = vmatprep.subr.bf16.mxu0 %v14978_v51  ;;  %v15066_v51 = vcombine.high %v9922_v48, %v9926_v9  ;;  %v9890_v48 = vld [vmem:[#allocation3 + $0xc40] sm:$0xff] }
 0x8a3   : > { %v9894_v9 = vld [vmem:[#allocation3 + $0xc60] sm:$0xff] }
 0x8a4   : > { %9633 = vmatpush2.bf16.msra.mxu1 %v14855_v59 }
 0x8a5   : > { %11317 = vmatpush2.bf16.msra.mxu0 %v14977_v62  ;;  %9634 = vmatprep.subr.bf16.mxu1 %v14848_v1  ;;  %v9787_v1 = vld [vmem:[#allocation3 + $0x908] sm:$0xff] }
 0x8a6   : > { %11318 = vmatprep.subr.bf16.mxu0 %v14970_v47  ;;  %v9791_v47 = vld [vmem:[#allocation3 + $0x928] sm:$0xff] }
 0x8a8   : > { %9635 = vmatpush2.bf16.msra.mxu1 %v14847_v55 }
 0x8a9   : > { %11319 = vmatpush2.bf16.msra.mxu0 %v14969_v56  ;;  %9636 = vmatprep.subr.bf16.mxu1 %v14840_v57  ;;  %v14939_v56 = vcombine.low %v9795_v44, %v9799_v39  ;;  %v15058_v57 = vcombine.high %v9914_v53, %v9918_v13  ;;  %v15034_v39 = vcombine.high %v9890_v48, %v9894_v9 }
 0x8aa   : > { %11320 = vmatprep.subr.bf16.mxu0 %v14962_v16  ;;  %v14932_v16 = vcombine.high %v9787_v1, %v9791_v47 }
 0x8ac   : > { %9637 = vmatpush2.bf16.msra.mxu1 %v14839_v37  ;;  %v15057_v37 = vcombine.low %v9914_v53, %v9918_v13  ;;  %v10006_v53 = vld [vmem:[#allocation3 + $0xfe0] sm:$0xff]  ;;  %v9875_v13 = vld [vmem:[#allocation3 + $0xbc8] sm:$0xff] }
 0x8ad   : > { %11321 = vmatpush2.bf16.msra.mxu0 %v14961_v18  ;;  %11331 = vmatprep.subr.bf16.mxu1 %v15082_v20  ;;  %v14931_v18 = vcombine.low %v9787_v1, %v9791_v47  ;;  %v15050_v20 = vcombine.high %v9906_v11, %v9910_v54  ;;  %v9986_v11 = vld [vmem:[#allocation3 + $0xf40] sm:$0xff] }
 0x8ae   : > { %11372 = vmatprep.subr.bf16.mxu0 %v14956_v40  ;;  %v14924_v40 = vcombine.high %v9779_v61, %v9783_v34  ;;  %v9990_v54 = vld [vmem:[#allocation3 + $0xf60] sm:$0xff] }
 0x8af   : > { %9639 = vmatmul.mubr.bf16.vlgmr.msra.gmra.mxu1 %v18150_v15  ;;  %v9394_v49 = vpop.f32.mrf.mxu1  ;;  %v18181_v14 = vpop.f32.mrf.mxu0 }
 0x8b0   : > { %v9395_v2 = vadd.f32 %v9394_v49, %v18165_v42  ;;  %11323 = vmatmul.mubr.bf16.vlgmr.msra.gmra.mxu0 %v18134_v21  ;;  %11332 = vmatpush1.bf16.msra.mxu1 %v15081_v24  ;;  %v9771_v24 = vld [vmem:[#allocation3 + $0x888] sm:$0xff] }
 0x8b1   : > { %11363 = vmatprep.mubr.bf16.mxu1 %v18148_v26  ;;  %11373 = vmatpush1.bf16.msra.mxu0 %v14955_v5  ;;  %v9396_v63 = vpop.f32.mrf.mxu1  ;;  %v18190_v50 = vpop.f32.mrf.mxu0  ;;  %v14923_v5 = vcombine.low %v9779_v61, %v9783_v34  ;;  %v9763_v49 = vld [vmem:[#allocation3 + $0x848] sm:$0xff]  ;;  %v14915_v44 = vcombine.low %v9771_v24, %v9775_v28 }
 0x8b2   : > { %v9688_v27 = vmul.f32 %v9651_v32, %v9395_v2  ;;  %11404 = vmatprep.mubr.bf16.mxu0 %v18132_v41  ;;  %v9397_v42 = vadd.f32 %v9396_v63, %v18169_v46  ;;  %11333 = vmatprep.subr.bf16.mxu1 %v15074_v35  ;;  %v15042_v32 = vcombine.high %v9898_v3, %v9902_v4  ;;  %v9755_v63 = vld [vmem:[#allocation3 + $0x808] sm:$0xff] }
 0x8b3   : > { %v9398_v59 = vpop.f32.mrf.mxu1  ;;  %v9439_v62 = vpop.f32.mrf.mxu0  ;;  %11374 = vmatprep.subr.bf16.mxu0 %v14948_v43  ;;  %v14916_v35 = vcombine.high %v9771_v24, %v9775_v28  ;;  %v15041_v43 = vcombine.low %v9898_v3, %v9902_v4  ;;  %v9859_v61 = vld [vmem:[#allocation3 + $0xb48] sm:$0xff]  ;;  %v9978_v3 = vld [vmem:[#allocation3 + $0xf00] sm:$0xff] }
 0x8b4   : > { %v9737_v7 = vadd.f32 %v9700_v38, %v9688_v27  ;;  %v9689_v0 = vmul.f32 %v9655_v30, %v9397_v42  ;;  %11334 = vmatpush1.bf16.msra.mxu1 %v15073_v45  ;;  %v9767_v38 = vld [vmem:[#allocation3 + $0x868] sm:$0xff]  ;;  %v9882_v30 = vld [vmem:[#allocation3 + $0xc00] sm:$0xff] }
 0x8b5   : > { %11375 = vmatpush1.bf16.msra.mxu0 %v14947_v33  ;;  %v9399_v60 = vpop.f32.mrf.mxu1  ;;  %v9440_v55 = vpop.f32.mrf.mxu0  ;;  %11335 = vmatprep.subr.bf16.mxu1 %v15066_v51  ;;  %v14908_v2 = vcombine.high %v9763_v49, %v9767_v38  ;;  %v9886_v45 = vld [vmem:[#allocation3 + $0xc20] sm:$0xff]  ;;  %v15033_v33 = vcombine.low %v9890_v48, %v9894_v9  ;;  %v14907_v51 = vcombine.low %v9763_v49, %v9767_v38  ;;  %v9879_v59 = vld [vmem:[#allocation3 + $0xbe8] sm:$0xff] }
 0x8b6   : > { %9745 = vst [vmem:[#allocation16] sm:$0xff] %v9737_v7  ;;  %v9738_v46 = vadd.f32 %v9704_v6, %v9689_v0  ;;  %11376 = vmatprep.subr.bf16.mxu0 %v14940_v52  ;;  %v9759_v6 = vld [vmem:[#allocation3 + $0x828] sm:$0xff]  ;;  %v15026_v27 = vcombine.high %v9882_v30, %v9886_v45  ;;  %v10002_v52 = vld [vmem:[#allocation3 + $0xfc0] sm:$0xff]  ;;  %v15025_v62 = vcombine.low %v9882_v30, %v9886_v45 }
 0x8b7   : > { %v14900_v42 = vcombine.high %v9755_v63, %v9759_v6  ;;  %v14899_v1 = vcombine.low %v9755_v63, %v9759_v6  ;;  %v15146_v47 = vcombine.high %v10002_v52, %v10006_v53  ;;  %v15020_v7 = vcombine.high %v9875_v13, %v9879_v59  ;;  %v9994_v0 = vld [vmem:[#allocation3 + $0xf80] sm:$0xff]  ;;  %v9867_v60 = vld [vmem:[#allocation3 + $0xb88] sm:$0xff] }
 0x8b8   : > { %9746 = vst [vmem:[#allocation16 + $0x8] sm:$0xff] %v9738_v46  ;;  %11336 = vmatpush1.bf16.msra.mxu1 %v15065_v58  ;;  %v9998_v58 = vld [vmem:[#allocation3 + $0xfa0] sm:$0xff]  ;;  %v9871_v55 = vld [vmem:[#allocation3 + $0xba8] sm:$0xff] }
 0x8b9   : > { %11377 = vmatpush1.bf16.msra.mxu0 %v14939_v56  ;;  %11337 = vmatprep.subr.bf16.mxu1 %v15058_v57  ;;  %v15145_v56 = vcombine.low %v10002_v52, %v10006_v53  ;;  %v15019_v57 = vcombine.low %v9875_v13, %v9879_v59  ;;  %v15138_v46 = vcombine.high %v9994_v0, %v9998_v58  ;;  %v9863_v34 = vld [vmem:[#allocation3 + $0xb68] sm:$0xff]  ;;  %v9982_v4 = vld [vmem:[#allocation3 + $0xf20] sm:$0xff] }
 0x8ba   : > { %11378 = vmatprep.subr.bf16.mxu0 %v14932_v16  ;;  %v15012_v16 = vcombine.high %v9867_v60, %v9871_v55  ;;  %v9851_v24 = vld [vmem:[#allocation3 + $0xb08] sm:$0xff]  ;;  %v9970_v48 = vld [vmem:[#allocation3 + $0xec0] sm:$0xff] }
 0x8bb   : > { %v9855_v28 = vld [vmem:[#allocation3 + $0xb28] sm:$0xff]  ;;  %v9974_v9 = vld [vmem:[#allocation3 + $0xee0] sm:$0xff] }
 0x8bc   : > { %11338 = vmatpush1.bf16.msra.mxu1 %v15057_v37  ;;  %v15137_v37 = vcombine.low %v9994_v0, %v9998_v58  ;;  %v9843_v49 = vld [vmem:[#allocation3 + $0xac8] sm:$0xff]  ;;  %v9962_v30 = vld [vmem:[#allocation3 + $0xe80] sm:$0xff] }
 0x8bd   : > { %11379 = vmatpush1.bf16.msra.mxu0 %v14931_v18  ;;  %11339 = vmatprep.subr.bf16.mxu1 %v15050_v20  ;;  %v15011_v18 = vcombine.low %v9867_v60, %v9871_v55  ;;  %v15130_v20 = vcombine.high %v9986_v11, %v9990_v54  ;;  %v9847_v38 = vld [vmem:[#allocation3 + $0xae8] sm:$0xff]  ;;  %v9966_v45 = vld [vmem:[#allocation3 + $0xea0] sm:$0xff] }
 0x8be   : > { %11380 = vmatprep.subr.bf16.mxu0 %v14924_v40  ;;  %v15004_v40 = vcombine.high %v9859_v61, %v9863_v34  ;;  %v9835_v63 = vld [vmem:[#allocation3 + $0xa88] sm:$0xff]  ;;  %v9954_v52 = vld [vmem:[#allocation3 + $0xe40] sm:$0xff] }
 0x8bf   : > { %v9839_v6 = vld [vmem:[#allocation3 + $0xaa8] sm:$0xff]  ;;  %v9958_v53 = vld [vmem:[#allocation3 + $0xe60] sm:$0xff] }
 0x8c0   : > { %11340 = vmatpush1.bf16.msra.mxu1 %v15049_v29  ;;  %v15129_v29 = vcombine.low %v9986_v11, %v9990_v54  ;;  %v9827_v13 = vld [vmem:[#allocation3 + $0xa48] sm:$0xff]  ;;  %v9946_v0 = vld [vmem:[#allocation3 + $0xe00] sm:$0xff] }
 0x8c1   : > { %11381 = vmatpush1.bf16.msra.mxu0 %v14923_v5  ;;  %11341 = vmatprep.subr.bf16.mxu1 %v15042_v32  ;;  %v15003_v5 = vcombine.low %v9859_v61, %v9863_v34  ;;  %v15122_v32 = vcombine.high %v9978_v3, %v9982_v4  ;;  %v9831_v59 = vld [vmem:[#allocation3 + $0xa68] sm:$0xff]  ;;  %v9950_v58 = vld [vmem:[#allocation3 + $0xe20] sm:$0xff]  ;;  %v9812_v61 = vld [vmem:[#allocation3 + $0x9d0] sm:$0xff] }
 0x8c2   : > { %11382 = vmatprep.subr.bf16.mxu0 %v14916_v35  ;;  %v14996_v35 = vcombine.high %v9851_v24, %v9855_v28  ;;  %v9819_v60 = vld [vmem:[#allocation3 + $0xa08] sm:$0xff]  ;;  %v9816_v34 = vld [vmem:[#allocation3 + $0x9f0] sm:$0xff] }
 0x8c3   : > { %v9823_v55 = vld [vmem:[#allocation3 + $0xa28] sm:$0xff] }
 0x8c4   : > { %11342 = vmatpush1.bf16.msra.mxu1 %v15041_v43  ;;  %v15121_v43 = vcombine.low %v9978_v3, %v9982_v4  ;;  %v9939_v11 = vld [vmem:[#allocation3 + $0xdc8] sm:$0xff] }
 0x8c5   : > { %11383 = vmatpush1.bf16.msra.mxu0 %v14915_v44  ;;  %11343 = vmatprep.subr.bf16.mxu1 %v15034_v39  ;;  %v14995_v44 = vcombine.low %v9851_v24, %v9855_v28  ;;  %v15114_v39 = vcombine.high %v9970_v48, %v9974_v9  ;;  %v9943_v54 = vld [vmem:[#allocation3 + $0xde8] sm:$0xff]  ;;  %v9804_v28 = vld [vmem:[#allocation3 + $0x990] sm:$0xff] }
 0x8c6   : > { %11384 = vmatprep.subr.bf16.mxu0 %v14908_v2  ;;  %v14988_v2 = vcombine.high %v9843_v49, %v9847_v38  ;;  %v9931_v3 = vld [vmem:[#allocation3 + $0xd88] sm:$0xff]  ;;  %v15083_v24 = vcombine.low %v9939_v11, %v9943_v54 }
 0x8c7   : > { %v9935_v4 = vld [vmem:[#allocation3 + $0xda8] sm:$0xff] }
 0x8c8   : > { %11344 = vmatpush1.bf16.msra.mxu1 %v15033_v33  ;;  %v15113_v33 = vcombine.low %v9970_v48, %v9974_v9  ;;  %v9923_v48 = vld [vmem:[#allocation3 + $0xd48] sm:$0xff] }
 0x8c9   : > { %11385 = vmatpush1.bf16.msra.mxu0 %v14907_v51  ;;  %11345 = vmatprep.subr.bf16.mxu1 %v15026_v27  ;;  %v14987_v51 = vcombine.low %v9843_v49, %v9847_v38  ;;  %v15106_v27 = vcombine.high %v9962_v30, %v9966_v45  ;;  %v9927_v9 = vld [vmem:[#allocation3 + $0xd68] sm:$0xff]  ;;  %v9708_v38 = vrot.slane %v18174_v25, %v17968_v12 }
 0x8ca   : > { %11386 = vmatprep.subr.bf16.mxu0 %v14900_v42  ;;  %v14980_v42 = vcombine.high %v9835_v63, %v9839_v6 }
 0x8cc   : > { %11346 = vmatpush1.bf16.msra.mxu1 %v15025_v62  ;;  %v15105_v62 = vcombine.low %v9962_v30, %v9966_v45  ;;  %v9663_v45 = vrot.slane %v18172_v23, %v17950_v31 }
 0x8cd   : > { %11387 = vmatpush1.bf16.msra.mxu0 %v14899_v1  ;;  %11347 = vmatprep.subr.bf16.mxu1 %v15146_v47  ;;  %v14979_v1 = vcombine.low %v9835_v63, %v9839_v6  ;;  %v15098_v47 = vcombine.high %v9954_v52, %v9958_v53  ;;  %v15075_v63 = vcombine.low %v9931_v3, %v9935_v4 }
 0x8ce   : > { %11388 = vmatprep.subr.bf16.mxu0 %v15020_v7  ;;  %v14972_v7 = vcombine.high %v9827_v13, %v9831_v59 }
 0x8d0   : > { %11348 = vmatpush2.bf16.msra.mxu1 %v15145_v56  ;;  %v15097_v56 = vcombine.low %v9954_v52, %v9958_v53 }
 0x8d1   : > { %11389 = vmatpush2.bf16.msra.mxu0 %v15019_v57  ;;  %11349 = vmatprep.subr.bf16.mxu1 %v15138_v46  ;;  %v14971_v57 = vcombine.low %v9827_v13, %v9831_v59  ;;  %v15090_v46 = vcombine.high %v9946_v0, %v9950_v58  ;;  %v9915_v13 = vld [vmem:[#allocation3 + $0xd08] sm:$0xff] }
 0x8d2   : > { %11390 = vmatprep.subr.bf16.mxu0 %v15012_v16  ;;  %v14964_v16 = vcombine.high %v9819_v60, %v9823_v55  ;;  %v9919_v59 = vld [vmem:[#allocation3 + $0xd28] sm:$0xff] }
 0x8d4   : > { %11350 = vmatpush2.bf16.msra.mxu1 %v15137_v37  ;;  %v15089_v37 = vcombine.low %v9946_v0, %v9950_v58 }
 0x8d5   : > { %11391 = vmatpush2.bf16.msra.mxu0 %v15011_v18  ;;  %11351 = vmatprep.subr.bf16.mxu1 %v15130_v20  ;;  %v14963_v18 = vcombine.low %v9819_v60, %v9823_v55  ;;  %v15084_v20 = vcombine.high %v9939_v11, %v9943_v54  ;;  %v15067_v60 = vcombine.low %v9923_v48, %v9927_v9  ;;  %v9907_v11 = vld [vmem:[#allocation3 + $0xcc8] sm:$0xff] }
 0x8d6   : > { %11392 = vmatprep.subr.bf16.mxu0 %v15004_v40  ;;  %v14958_v40 = vcombine.high %v9812_v61, %v9816_v34  ;;  %v9911_v54 = vld [vmem:[#allocation3 + $0xce8] sm:$0xff] }
 0x8d8   : > { %11352 = vmatpush2.bf16.msra.mxu1 %v15129_v29  ;;  %v9808_v29 = vld [vmem:[#allocation3 + $0x9b0] sm:$0xff] }
 0x8d9   : > { %11393 = vmatpush2.bf16.msra.mxu0 %v15003_v5  ;;  %11353 = vmatprep.subr.bf16.mxu1 %v15122_v32  ;;  %v14957_v5 = vcombine.low %v9812_v61, %v9816_v34  ;;  %v9659_v32 = vrot.slane %v18172_v23, %v17968_v12  ;;  %v9780_v61 = vld [vmem:[#allocation3 + $0x8d0] sm:$0xff] }
 0x8da   : > { %11394 = vmatprep.subr.bf16.mxu0 %v14996_v35  ;;  %v15076_v35 = vcombine.high %v9931_v3, %v9935_v4  ;;  %v9784_v34 = vld [vmem:[#allocation3 + $0x8f0] sm:$0xff]  ;;  %v9899_v3 = vld [vmem:[#allocation3 + $0xc88] sm:$0xff] }
 0x8db   : > { %v9903_v4 = vld [vmem:[#allocation3 + $0xca8] sm:$0xff] }
 0x8dc   : > { %11354 = vmatpush2.bf16.msra.mxu1 %v15121_v43  ;;  %v14950_v43 = vcombine.high %v9804_v28, %v9808_v29 }
 0x8dd   : > { %11395 = vmatpush2.bf16.msra.mxu0 %v14995_v44  ;;  %11355 = vmatprep.subr.bf16.mxu1 %v15114_v39  ;;  %v9796_v44 = vld [vmem:[#allocation3 + $0x950] sm:$0xff] }
 0x8de   : > { %11396 = vmatprep.subr.bf16.mxu0 %v14988_v2  ;;  %v9800_v39 = vld [vmem:[#allocation3 + $0x970] sm:$0xff] }
 0x8df   : > { %v14942_v53 = vcombine.high %v9796_v44, %v9800_v39 }
 0x8e0   : > { %11356 = vmatpush2.bf16.msra.mxu1 %v15113_v33  ;;  %v9712_v33 = vrot.slane %v18174_v25, %v17950_v31 }
 0x8e1   : > { %11397 = vmatpush2.bf16.msra.mxu0 %v14987_v51  ;;  %11357 = vmatprep.subr.bf16.mxu1 %v15106_v27  ;;  %v14949_v51 = vcombine.low %v9804_v28, %v9808_v29  ;;  %v15068_v27 = vcombine.high %v9923_v48, %v9927_v9  ;;  %v9776_v28 = vld [vmem:[#allocation3 + $0x8b0] sm:$0xff]  ;;  %v15051_v29 = vcombine.low %v9907_v11, %v9911_v54  ;;  %v9891_v48 = vld [vmem:[#allocation3 + $0xc48] sm:$0xff] }
 0x8e2   : > { %11398 = vmatprep.subr.bf16.mxu0 %v14980_v42  ;;  %v9895_v9 = vld [vmem:[#allocation3 + $0xc68] sm:$0xff] }
 0x8e4   : > { %11358 = vmatpush2.bf16.msra.mxu1 %v15105_v62 }
 0x8e5   : > { %11399 = vmatpush2.bf16.msra.mxu0 %v14979_v1  ;;  %11359 = vmatprep.subr.bf16.mxu1 %v15098_v47  ;;  %v9788_v1 = vld [vmem:[#allocation3 + $0x910] sm:$0xff] }
 0x8e6   : > { %11400 = vmatprep.subr.bf16.mxu0 %v14972_v7  ;;  %v9792_v47 = vld [vmem:[#allocation3 + $0x930] sm:$0xff] }
 0x8e8   : > { %11360 = vmatpush2.bf16.msra.mxu1 %v15097_v56  ;;  %v15060_v56 = vcombine.high %v9915_v13, %v9919_v59 }
 0x8e9   : > { %11401 = vmatpush2.bf16.msra.mxu0 %v14971_v57  ;;  %11361 = vmatprep.subr.bf16.mxu1 %v15090_v46 }
 0x8ea   : > { %11402 = vmatprep.subr.bf16.mxu0 %v14964_v16  ;;  %v14934_v16 = vcombine.high %v9788_v1, %v9792_v47 }
 0x8ec   : > { %11362 = vmatpush2.bf16.msra.mxu1 %v15089_v37  ;;  %v15059_v37 = vcombine.low %v9915_v13, %v9919_v59  ;;  %v10007_v13 = vld [vmem:[#allocation3 + $0xfe8] sm:$0xff]  ;;  %v9876_v59 = vld [vmem:[#allocation3 + $0xbd0] sm:$0xff] }
 0x8ed   : > { %11403 = vmatpush2.bf16.msra.mxu0 %v14963_v18  ;;  %11413 = vmatprep.subr.bf16.mxu1 %v15084_v20  ;;  %v14933_v18 = vcombine.low %v9788_v1, %v9792_v47  ;;  %v15052_v20 = vcombine.high %v9907_v11, %v9911_v54  ;;  %v9987_v11 = vld [vmem:[#allocation3 + $0xf48] sm:$0xff] }
 0x8ee   : > { %11454 = vmatprep.subr.bf16.mxu0 %v14958_v40  ;;  %v14926_v40 = vcombine.high %v9780_v61, %v9784_v34  ;;  %v9991_v54 = vld [vmem:[#allocation3 + $0xf68] sm:$0xff] }
 0x8ef   : > { %v9476_v49 = vpop.f32.mrf.mxu1  ;;  %11364 = vmatmul.mubr.bf16.vlgmr.msra.gmra.mxu1 %v18150_v15 }
 0x8f0   : > { %v9477_v2 = vadd.f32 %v9476_v49, %v18181_v14  ;;  %v18200_v30 = vpop.f32.mrf.mxu0  ;;  %11405 = vmatmul.mubr.bf16.vlgmr.msra.gmra.mxu0 %v18134_v21  ;;  %11414 = vmatpush1.bf16.msra.mxu1 %v15083_v24  ;;  %v9772_v24 = vld [vmem:[#allocation3 + $0x890] sm:$0xff] }
 0x8f1   : > { %11445 = vmatprep.mubr.bf16.mxu1 %v18148_v26  ;;  %v9478_v6 = vpop.f32.mrf.mxu1  ;;  %11455 = vmatpush1.bf16.msra.mxu0 %v14957_v5  ;;  %v14925_v5 = vcombine.low %v9780_v61, %v9784_v34  ;;  %v9764_v49 = vld [vmem:[#allocation3 + $0x850] sm:$0xff] }
 0x8f2   : > { %v9690_v42 = vmul.f32 %v9659_v32, %v9477_v2  ;;  %v9479_v14 = vadd.f32 %v9478_v6, %v18190_v50  ;;  %11486 = vmatprep.mubr.bf16.mxu0 %v18132_v41  ;;  %v18210_v52 = vpop.f32.mrf.mxu0  ;;  %11415 = vmatprep.subr.bf16.mxu1 %v15076_v35  ;;  %v14941_v50 = vcombine.low %v9796_v44, %v9800_v39  ;;  %v9756_v6 = vld [vmem:[#allocation3 + $0x810] sm:$0xff] }
 0x8f3   : > { %v9480_v62 = vpop.f32.mrf.mxu1  ;;  %11456 = vmatprep.subr.bf16.mxu0 %v14950_v43  ;;  %v15044_v32 = vcombine.high %v9899_v3, %v9903_v4  ;;  %v14918_v35 = vcombine.high %v9772_v24, %v9776_v28  ;;  %v15043_v43 = vcombine.low %v9899_v3, %v9903_v4  ;;  %v14917_v44 = vcombine.low %v9772_v24, %v9776_v28  ;;  %v9860_v61 = vld [vmem:[#allocation3 + $0xb50] sm:$0xff]  ;;  %v9979_v3 = vld [vmem:[#allocation3 + $0xf08] sm:$0xff] }
 0x8f4   : > { %v9739_v7 = vadd.f32 %v9708_v38, %v9690_v42  ;;  %v9691_v0 = vmul.f32 %v9663_v45, %v9479_v14  ;;  %v9521_v58 = vpop.f32.mrf.mxu0  ;;  %11416 = vmatpush1.bf16.msra.mxu1 %v15075_v63  ;;  %v9768_v38 = vld [vmem:[#allocation3 + $0x870] sm:$0xff]  ;;  %v15036_v39 = vcombine.high %v9891_v48, %v9895_v9  ;;  %v9883_v45 = vld [vmem:[#allocation3 + $0xc08] sm:$0xff] }
 0x8f5   : > { %v9481_v55 = vpop.f32.mrf.mxu1  ;;  %11457 = vmatpush1.bf16.msra.mxu0 %v14949_v51  ;;  %11417 = vmatprep.subr.bf16.mxu1 %v15068_v27  ;;  %v14910_v2 = vcombine.high %v9764_v49, %v9768_v38  ;;  %v9887_v63 = vld [vmem:[#allocation3 + $0xc28] sm:$0xff]  ;;  %v15035_v51 = vcombine.low %v9891_v48, %v9895_v9  ;;  %v14909_v27 = vcombine.low %v9764_v49, %v9768_v38  ;;  %v9880_v62 = vld [vmem:[#allocation3 + $0xbf0] sm:$0xff] }
 0x8f6   : > { %9747 = vst [vmem:[#allocation16 + $0x10] sm:$0xff] %v9739_v7  ;;  %v9740_v57 = vadd.f32 %v9712_v33, %v9691_v0  ;;  %v9522_v46 = vpop.f32.mrf.mxu0  ;;  %11458 = vmatprep.subr.bf16.mxu0 %v14942_v53  ;;  %v9760_v33 = vld [vmem:[#allocation3 + $0x830] sm:$0xff]  ;;  %v15028_v42 = vcombine.high %v9883_v45, %v9887_v63  ;;  %v10003_v53 = vld [vmem:[#allocation3 + $0xfc8] sm:$0xff]  ;;  %v15027_v1 = vcombine.low %v9883_v45, %v9887_v63 }
 0x8f7   : > { %v14902_v14 = vcombine.high %v9756_v6, %v9760_v33  ;;  %v14901_v47 = vcombine.low %v9756_v6, %v9760_v33  ;;  %v15148_v7 = vcombine.high %v10003_v53, %v10007_v13  ;;  %v15022_v0 = vcombine.high %v9876_v59, %v9880_v62  ;;  %v9995_v58 = vld [vmem:[#allocation3 + $0xf88] sm:$0xff]  ;;  %v9868_v55 = vld [vmem:[#allocation3 + $0xb90] sm:$0xff] }
 0x8f8   : > { %9748 = vst [vmem:[#allocation16 + $0x18] sm:$0xff] %v9740_v57  ;;  %11418 = vmatpush1.bf16.msra.mxu1 %v15067_v60  ;;  %v9999_v60 = vld [vmem:[#allocation3 + $0xfa8] sm:$0xff]  ;;  %v15021_v57 = vcombine.low %v9876_v59, %v9880_v62  ;;  %v9864_v34 = vld [vmem:[#allocation3 + $0xb70] sm:$0xff] }
 0x8f9   : > { %11459 = vmatpush1.bf16.msra.mxu0 %v14941_v50  ;;  %11419 = vmatprep.subr.bf16.mxu1 %v15060_v56  ;;  %v9872_v50 = vld [vmem:[#allocation3 + $0xbb0] sm:$0xff]  ;;  %v15147_v56 = vcombine.low %v10003_v53, %v10007_v13  ;;  %v15140_v46 = vcombine.high %v9995_v58, %v9999_v60  ;;  %v9983_v4 = vld [vmem:[#allocation3 + $0xf28] sm:$0xff] }
 0x8fa   : > { %11460 = vmatprep.subr.bf16.mxu0 %v14934_v16  ;;  %v15014_v16 = vcombine.high %v9868_v55, %v9872_v50  ;;  %v9852_v24 = vld [vmem:[#allocation3 + $0xb10] sm:$0xff]  ;;  %v9971_v48 = vld [vmem:[#allocation3 + $0xec8] sm:$0xff] }
 0x8fb   : > { %v9856_v28 = vld [vmem:[#allocation3 + $0xb30] sm:$0xff]  ;;  %v9975_v9 = vld [vmem:[#allocation3 + $0xee8] sm:$0xff] }
 0x8fc   : > { %11420 = vmatpush1.bf16.msra.mxu1 %v15059_v37  ;;  %v15139_v37 = vcombine.low %v9995_v58, %v9999_v60  ;;  %v9844_v49 = vld [vmem:[#allocation3 + $0xad0] sm:$0xff]  ;;  %v9963_v45 = vld [vmem:[#allocation3 + $0xe88] sm:$0xff] }
 0x8fd   : > { %11461 = vmatpush1.bf16.msra.mxu0 %v14933_v18  ;;  %11421 = vmatprep.subr.bf16.mxu1 %v15052_v20  ;;  %v15013_v18 = vcombine.low %v9868_v55, %v9872_v50  ;;  %v15132_v20 = vcombine.high %v9987_v11, %v9991_v54  ;;  %v9848_v38 = vld [vmem:[#allocation3 + $0xaf0] sm:$0xff]  ;;  %v9967_v63 = vld [vmem:[#allocation3 + $0xea8] sm:$0xff] }
 0x8fe   : > { %11462 = vmatprep.subr.bf16.mxu0 %v14926_v40  ;;  %v15006_v40 = vcombine.high %v9860_v61, %v9864_v34  ;;  %v9836_v6 = vld [vmem:[#allocation3 + $0xa90] sm:$0xff]  ;;  %v9955_v53 = vld [vmem:[#allocation3 + $0xe48] sm:$0xff] }
 0x8ff   : > { %v9840_v33 = vld [vmem:[#allocation3 + $0xab0] sm:$0xff]  ;;  %v9959_v13 = vld [vmem:[#allocation3 + $0xe68] sm:$0xff] }
 0x900   : > { %11422 = vmatpush1.bf16.msra.mxu1 %v15051_v29  ;;  %v15131_v29 = vcombine.low %v9987_v11, %v9991_v54  ;;  %v9828_v59 = vld [vmem:[#allocation3 + $0xa50] sm:$0xff]  ;;  %v9947_v58 = vld [vmem:[#allocation3 + $0xe08] sm:$0xff] }
 0x901   : > { %11463 = vmatpush1.bf16.msra.mxu0 %v14925_v5  ;;  %11423 = vmatprep.subr.bf16.mxu1 %v15044_v32  ;;  %v15005_v5 = vcombine.low %v9860_v61, %v9864_v34  ;;  %v15124_v32 = vcombine.high %v9979_v3, %v9983_v4  ;;  %v9832_v62 = vld [vmem:[#allocation3 + $0xa70] sm:$0xff]  ;;  %v9951_v60 = vld [vmem:[#allocation3 + $0xe28] sm:$0xff]  ;;  %v9813_v61 = vld [vmem:[#allocation3 + $0x9d8] sm:$0xff] }
 0x902   : > { %11464 = vmatprep.subr.bf16.mxu0 %v14918_v35  ;;  %v14998_v35 = vcombine.high %v9852_v24, %v9856_v28  ;;  %v9820_v55 = vld [vmem:[#allocation3 + $0xa10] sm:$0xff]  ;;  %v9817_v34 = vld [vmem:[#allocation3 + $0x9f8] sm:$0xff] }
 0x903   : > { %v9824_v50 = vld [vmem:[#allocation3 + $0xa30] sm:$0xff] }
 0x904   : > { %11424 = vmatpush1.bf16.msra.mxu1 %v15043_v43  ;;  %v15123_v43 = vcombine.low %v9979_v3, %v9983_v4  ;;  %v9940_v11 = vld [vmem:[#allocation3 + $0xdd0] sm:$0xff] }
 0x905   : > { %11465 = vmatpush1.bf16.msra.mxu0 %v14917_v44  ;;  %11425 = vmatprep.subr.bf16.mxu1 %v15036_v39  ;;  %v14997_v44 = vcombine.low %v9852_v24, %v9856_v28  ;;  %v15116_v39 = vcombine.high %v9971_v48, %v9975_v9  ;;  %v9944_v54 = vld [vmem:[#allocation3 + $0xdf0] sm:$0xff]  ;;  %v9805_v28 = vld [vmem:[#allocation3 + $0x998] sm:$0xff] }
 0x906   : > { %11466 = vmatprep.subr.bf16.mxu0 %v14910_v2  ;;  %v14990_v2 = vcombine.high %v9844_v49, %v9848_v38  ;;  %v9932_v3 = vld [vmem:[#allocation3 + $0xd90] sm:$0xff]  ;;  %v15085_v24 = vcombine.low %v9940_v11, %v9944_v54 }
 0x907   : > { %v9936_v4 = vld [vmem:[#allocation3 + $0xdb0] sm:$0xff] }
 0x908   : > { %11426 = vmatpush1.bf16.msra.mxu1 %v15035_v51  ;;  %v15115_v51 = vcombine.low %v9971_v48, %v9975_v9  ;;  %v9924_v48 = vld [vmem:[#allocation3 + $0xd50] sm:$0xff] }
 0x909   : > { %11467 = vmatpush1.bf16.msra.mxu0 %v14909_v27  ;;  %11427 = vmatprep.subr.bf16.mxu1 %v15028_v42  ;;  %v14989_v27 = vcombine.low %v9844_v49, %v9848_v38  ;;  %v15108_v42 = vcombine.high %v9963_v45, %v9967_v63  ;;  %v9928_v9 = vld [vmem:[#allocation3 + $0xd70] sm:$0xff]  ;;  %v9716_v38 = vrot.slane %v18174_v25, %v17997_v19 }
 0x90a   : > { %11468 = vmatprep.subr.bf16.mxu0 %v14902_v14  ;;  %v14982_v14 = vcombine.high %v9836_v6, %v9840_v33 }
 0x90c   : > { %11428 = vmatpush1.bf16.msra.mxu1 %v15027_v1  ;;  %v15107_v1 = vcombine.low %v9963_v45, %v9967_v63  ;;  %v9671_v63 = vrot.slane %v18172_v23, %v17991_v17 }
 0x90d   : > { %11469 = vmatpush1.bf16.msra.mxu0 %v14901_v47  ;;  %11429 = vmatprep.subr.bf16.mxu1 %v15148_v7  ;;  %v14981_v47 = vcombine.low %v9836_v6, %v9840_v33  ;;  %v15100_v7 = vcombine.high %v9955_v53, %v9959_v13  ;;  %v15077_v6 = vcombine.low %v9932_v3, %v9936_v4 }
 0x90e   : > { %11470 = vmatprep.subr.bf16.mxu0 %v15022_v0  ;;  %v14974_v0 = vcombine.high %v9828_v59, %v9832_v62 }
 0x910   : > { %11430 = vmatpush2.bf16.msra.mxu1 %v15147_v56  ;;  %v15099_v56 = vcombine.low %v9955_v53, %v9959_v13 }
 0x911   : > { %11471 = vmatpush2.bf16.msra.mxu0 %v15021_v57  ;;  %11431 = vmatprep.subr.bf16.mxu1 %v15140_v46  ;;  %v14973_v57 = vcombine.low %v9828_v59, %v9832_v62  ;;  %v15092_v46 = vcombine.high %v9947_v58, %v9951_v60  ;;  %v9920_v59 = vld [vmem:[#allocation3 + $0xd30] sm:$0xff] }
 0x912   : > { %11472 = vmatprep.subr.bf16.mxu0 %v15014_v16  ;;  %v14966_v16 = vcombine.high %v9820_v55, %v9824_v50 }
 0x914   : > { %11432 = vmatpush2.bf16.msra.mxu1 %v15139_v37  ;;  %v15091_v37 = vcombine.low %v9947_v58, %v9951_v60  ;;  %v15069_v58 = vcombine.low %v9924_v48, %v9928_v9 }
 0x915   : > { %11473 = vmatpush2.bf16.msra.mxu0 %v15013_v18  ;;  %11433 = vmatprep.subr.bf16.mxu1 %v15132_v20  ;;  %v14965_v18 = vcombine.low %v9820_v55, %v9824_v50  ;;  %v15086_v20 = vcombine.high %v9940_v11, %v9944_v54  ;;  %v9781_v11 = vld [vmem:[#allocation3 + $0x8d8] sm:$0xff] }
 0x916   : > { %11474 = vmatprep.subr.bf16.mxu0 %v15006_v40  ;;  %v14960_v40 = vcombine.high %v9813_v61, %v9817_v34  ;;  %v9785_v54 = vld [vmem:[#allocation3 + $0x8f8] sm:$0xff] }
 0x918   : > { %11434 = vmatpush2.bf16.msra.mxu1 %v15131_v29  ;;  %v9809_v29 = vld [vmem:[#allocation3 + $0x9b8] sm:$0xff] }
 0x919   : > { %11475 = vmatpush2.bf16.msra.mxu0 %v15005_v5  ;;  %11435 = vmatprep.subr.bf16.mxu1 %v15124_v32  ;;  %v14959_v5 = vcombine.low %v9813_v61, %v9817_v34  ;;  %v9667_v32 = vrot.slane %v18172_v23, %v17997_v19  ;;  %v9916_v23 = vld [vmem:[#allocation3 + $0xd10] sm:$0xff] }
 0x91a   : > { %11476 = vmatprep.subr.bf16.mxu0 %v14998_v35  ;;  %v15078_v35 = vcombine.high %v9932_v3, %v9936_v4  ;;  %v15062_v55 = vcombine.high %v9916_v23, %v9920_v59  ;;  %v15061_v61 = vcombine.low %v9916_v23, %v9920_v59  ;;  %v9773_v3 = vld [vmem:[#allocation3 + $0x898] sm:$0xff] }
 0x91b   : > { %v9777_v4 = vld [vmem:[#allocation3 + $0x8b8] sm:$0xff] }
 0x91c   : > { %11436 = vmatpush2.bf16.msra.mxu1 %v15123_v43  ;;  %v14952_v43 = vcombine.high %v9805_v28, %v9809_v29  ;;  %v9881_v23 = vld [vmem:[#allocation3 + $0xbf8] sm:$0xff] }
 0x91d   : > { %11477 = vmatpush2.bf16.msra.mxu0 %v14997_v44  ;;  %11437 = vmatprep.subr.bf16.mxu1 %v15116_v39  ;;  %v9797_v44 = vld [vmem:[#allocation3 + $0x958] sm:$0xff] }
 0x91e   : > { %11478 = vmatprep.subr.bf16.mxu0 %v14990_v2  ;;  %v9801_v39 = vld [vmem:[#allocation3 + $0x978] sm:$0xff] }
 0x91f   : > { %v14944_v13 = vcombine.high %v9797_v44, %v9801_v39 }
 0x920   : > { %11438 = vmatpush2.bf16.msra.mxu1 %v15115_v51  ;;  %v9720_v51 = vrot.slane %v18174_v25, %v17991_v17 }
 0x921   : > { %11479 = vmatpush2.bf16.msra.mxu0 %v14989_v27  ;;  %11439 = vmatprep.subr.bf16.mxu1 %v15108_v42  ;;  %v14951_v27 = vcombine.low %v9805_v28, %v9809_v29  ;;  %v15070_v42 = vcombine.high %v9924_v48, %v9928_v9  ;;  %v14927_v28 = vcombine.low %v9781_v11, %v9785_v54  ;;  %v9765_v48 = vld [vmem:[#allocation3 + $0x858] sm:$0xff] }
 0x922   : > { %11480 = vmatprep.subr.bf16.mxu0 %v14982_v14  ;;  %v9769_v9 = vld [vmem:[#allocation3 + $0x878] sm:$0xff] }
 0x924   : > { %11440 = vmatpush2.bf16.msra.mxu1 %v15107_v1  ;;  %v9789_v1 = vld [vmem:[#allocation3 + $0x918] sm:$0xff] }
 0x925   : > { %11481 = vmatpush2.bf16.msra.mxu0 %v14981_v47  ;;  %11441 = vmatprep.subr.bf16.mxu1 %v15100_v7  ;;  %v9793_v47 = vld [vmem:[#allocation3 + $0x938] sm:$0xff] }
 0x926   : > { %11482 = vmatprep.subr.bf16.mxu0 %v14974_v0  ;;  %v14935_v34 = vcombine.low %v9789_v1, %v9793_v47 }
 0x928   : > { %11442 = vmatpush2.bf16.msra.mxu1 %v15099_v56 }
 0x929   : > { %11483 = vmatpush2.bf16.msra.mxu0 %v14973_v57  ;;  %11443 = vmatprep.subr.bf16.mxu1 %v15092_v46  ;;  %v14936_v57 = vcombine.high %v9789_v1, %v9793_v47  ;;  %v9908_v46 = vld [vmem:[#allocation3 + $0xcd0] sm:$0xff] }
 0x92a   : > { %11484 = vmatprep.subr.bf16.mxu0 %v14966_v16  ;;  %v9912_v16 = vld [vmem:[#allocation3 + $0xcf0] sm:$0xff] }
 0x92c   : > { %11444 = vmatpush2.bf16.msra.mxu1 %v15091_v37  ;;  %v15054_v37 = vcombine.high %v9908_v46, %v9912_v16 }
 0x92d   : > { %11485 = vmatpush2.bf16.msra.mxu0 %v14965_v18  ;;  %11495 = vmatprep.subr.bf16.mxu1 %v15086_v20  ;;  %v14928_v18 = vcombine.high %v9781_v11, %v9785_v54  ;;  %v9900_v20 = vld [vmem:[#allocation3 + $0xc90] sm:$0xff] }
 0x92e   : > { %11536 = vmatprep.subr.bf16.mxu0 %v14960_v40  ;;  %v9904_v40 = vld [vmem:[#allocation3 + $0xcb0] sm:$0xff] }
 0x92f   : > { %v9558_v49 = vpop.f32.mrf.mxu1  ;;  %11446 = vmatmul.mubr.bf16.vlgmr.msra.gmra.mxu1 %v18150_v15  ;;  %v15046_v29 = vcombine.high %v9900_v20, %v9904_v40 }
 0x930   : > { %v9559_v2 = vadd.f32 %v9558_v49, %v18200_v30  ;;  %v18218_v45 = vpop.f32.mrf.mxu0  ;;  %11487 = vmatmul.mubr.bf16.vlgmr.msra.gmra.mxu0 %v18134_v21  ;;  %11496 = vmatpush1.bf16.msra.mxu1 %v15085_v24  ;;  %v15053_v24 = vcombine.low %v9908_v46, %v9912_v16  ;;  %v15045_v49 = vcombine.low %v9900_v20, %v9904_v40  ;;  %v9861_v46 = vld [vmem:[#allocation3 + $0xb58] sm:$0xff] }
 0x931   : > { %11527 = vmatprep.mubr.bf16.mxu1 %v18148_v26  ;;  %v9560_v33 = vpop.f32.mrf.mxu1  ;;  %11537 = vmatpush1.bf16.msra.mxu0 %v14959_v5  ;;  %v14920_v5 = vcombine.high %v9773_v3, %v9777_v4  ;;  %v9865_v16 = vld [vmem:[#allocation3 + $0xb78] sm:$0xff] }
 0x932   : > { %v9692_v14 = vmul.f32 %v9667_v32, %v9559_v2  ;;  %v9561_v30 = vadd.f32 %v9560_v33, %v18210_v52  ;;  %11568 = vmatprep.mubr.bf16.mxu0 %v18132_v41  ;;  %v18228_v53 = vpop.f32.mrf.mxu0  ;;  %11497 = vmatprep.subr.bf16.mxu1 %v15078_v35  ;;  %v14943_v52 = vcombine.low %v9797_v44, %v9801_v39  ;;  %v9892_v32 = vld [vmem:[#allocation3 + $0xc50] sm:$0xff]  ;;  %v9853_v20 = vld [vmem:[#allocation3 + $0xb18] sm:$0xff] }
 0x933   : > { %v9562_v62 = vpop.f32.mrf.mxu1  ;;  %11538 = vmatprep.subr.bf16.mxu0 %v14952_v43  ;;  %v9896_v35 = vld [vmem:[#allocation3 + $0xc70] sm:$0xff]  ;;  %v14912_v44 = vcombine.high %v9765_v48, %v9769_v9  ;;  %v9857_v40 = vld [vmem:[#allocation3 + $0xb38] sm:$0xff] }
 0x934   : > { %v9741_v7 = vadd.f32 %v9716_v38, %v9692_v14  ;;  %v9693_v25 = vmul.f32 %v9671_v63, %v9561_v30  ;;  %v9603_v0 = vpop.f32.mrf.mxu0  ;;  %11498 = vmatpush1.bf16.msra.mxu1 %v15077_v6  ;;  %v14919_v38 = vcombine.low %v9773_v3, %v9777_v4  ;;  %v15038_v43 = vcombine.high %v9892_v32, %v9896_v35  ;;  %v9884_v39 = vld [vmem:[#allocation3 + $0xc10] sm:$0xff]  ;;  %v9757_v63 = vld [vmem:[#allocation3 + $0x818] sm:$0xff] }
 0x935   : > { %v9563_v60 = vpop.f32.mrf.mxu1  ;;  %11539 = vmatpush1.bf16.msra.mxu0 %v14951_v27  ;;  %11499 = vmatprep.subr.bf16.mxu1 %v15070_v42  ;;  %v9888_v2 = vld [vmem:[#allocation3 + $0xc30] sm:$0xff]  ;;  %v9761_v6 = vld [vmem:[#allocation3 + $0x838] sm:$0xff]  ;;  %v15037_v33 = vcombine.low %v9892_v32, %v9896_v35  ;;  %v15007_v4 = vcombine.low %v9861_v46, %v9865_v16 }
 0x936   : > { %9749 = vst [vmem:[#allocation16 + $0x20] sm:$0xff] %v9741_v7  ;;  %v9742_v50 = vadd.f32 %v9720_v51, %v9693_v25  ;;  %v9604_v56 = vpop.f32.mrf.mxu0  ;;  %11540 = vmatprep.subr.bf16.mxu0 %v14944_v13  ;;  %v14911_v51 = vcombine.low %v9765_v48, %v9769_v9  ;;  %v15030_v27 = vcombine.high %v9884_v39, %v9888_v2  ;;  %v10004_v14 = vld [vmem:[#allocation3 + $0xfd0] sm:$0xff]  ;;  %v9877_v13 = vld [vmem:[#allocation3 + $0xbd8] sm:$0xff] }
 0x937   : > { %v14904_v42 = vcombine.high %v9757_v63, %v9761_v6  ;;  %v10008_v30 = vld [vmem:[#allocation3 + $0xff0] sm:$0xff]  ;;  %v15029_v59 = vcombine.low %v9884_v39, %v9888_v2  ;;  %v14903_v62 = vcombine.low %v9757_v63, %v9761_v6  ;;  %v15024_v47 = vcombine.high %v9877_v13, %v9881_v23  ;;  %v9869_v0 = vld [vmem:[#allocation3 + $0xb98] sm:$0xff] }
 0x938   : > { %9750 = vst [vmem:[#allocation16 + $0x28] sm:$0xff] %v9742_v50  ;;  %11500 = vmatpush1.bf16.msra.mxu1 %v15069_v58  ;;  %v15150_v1 = vcombine.high %v10004_v14, %v10008_v30  ;;  %v9996_v7 = vld [vmem:[#allocation3 + $0xf90] sm:$0xff]  ;;  %v9873_v58 = vld [vmem:[#allocation3 + $0xbb8] sm:$0xff]  ;;  %v15149_v60 = vcombine.low %v10004_v14, %v10008_v30  ;;  %v14999_v9 = vcombine.low %v9853_v20, %v9857_v40 }
 0x939   : > { %11541 = vmatpush1.bf16.msra.mxu0 %v14943_v52  ;;  %11501 = vmatprep.subr.bf16.mxu1 %v15062_v55  ;;  %v10000_v25 = vld [vmem:[#allocation3 + $0xfb0] sm:$0xff]  ;;  %v15023_v52 = vcombine.low %v9877_v13, %v9881_v23  ;;  %v15016_v50 = vcombine.high %v9869_v0, %v9873_v58  ;;  %v15015_v54 = vcombine.low %v9869_v0, %v9873_v58  ;;  %v9845_v32 = vld [vmem:[#allocation3 + $0xad8] sm:$0xff] }
 0x93a   : > { %11542 = vmatprep.subr.bf16.mxu0 %v14936_v57  ;;  %v15142_v55 = vcombine.high %v9996_v7, %v10000_v25  ;;  %v9988_v56 = vld [vmem:[#allocation3 + $0xf50] sm:$0xff]  ;;  %v15141_v11 = vcombine.low %v9996_v7, %v10000_v25  ;;  %v9849_v35 = vld [vmem:[#allocation3 + $0xaf8] sm:$0xff] }
 0x93b   : > { %v9992_v57 = vld [vmem:[#allocation3 + $0xf70] sm:$0xff]  ;;  %v9837_v39 = vld [vmem:[#allocation3 + $0xa98] sm:$0xff]  ;;  %v14991_v6 = vcombine.low %v9845_v32, %v9849_v35 }
 0x93c   : > { %11502 = vmatpush1.bf16.msra.mxu1 %v15061_v61  ;;  %v15134_v61 = vcombine.high %v9988_v56, %v9992_v57  ;;  %v15133_v3 = vcombine.low %v9988_v56, %v9992_v57  ;;  %v9841_v2 = vld [vmem:[#allocation3 + $0xab8] sm:$0xff]  ;;  %v11781_v56 = vld [vmem:[#allocation3 + $0x11c0] sm:$0xff] }
 0x93d   : > { %11543 = vmatpush1.bf16.msra.mxu0 %v14935_v34  ;;  %11503 = vmatprep.subr.bf16.mxu1 %v15054_v37  ;;  %v15008_v34 = vcombine.high %v9861_v46, %v9865_v16  ;;  %v9980_v37 = vld [vmem:[#allocation3 + $0xf10] sm:$0xff]  ;;  %v9829_v14 = vld [vmem:[#allocation3 + $0xa58] sm:$0xff]  ;;  %v14983_v23 = vcombine.low %v9837_v39, %v9841_v2  ;;  %v11785_v57 = vld [vmem:[#allocation3 + $0x11e0] sm:$0xff] }
 0x93e   : > { %11544 = vmatprep.subr.bf16.mxu0 %v14928_v18  ;;  %v9984_v18 = vld [vmem:[#allocation3 + $0xf30] sm:$0xff]  ;;  %v9833_v30 = vld [vmem:[#allocation3 + $0xa78] sm:$0xff] }
 0x93f   : > { %v15125_v48 = vcombine.low %v9980_v37, %v9984_v18  ;;  %v9821_v7 = vld [vmem:[#allocation3 + $0xa18] sm:$0xff]  ;;  %v14975_v58 = vcombine.low %v9829_v14, %v9833_v30 }
 0x940   : > { %11504 = vmatpush1.bf16.msra.mxu1 %v15053_v24  ;;  %v15126_v24 = vcombine.high %v9980_v37, %v9984_v18  ;;  %v9825_v25 = vld [vmem:[#allocation3 + $0xa38] sm:$0xff]  ;;  %v11773_v18 = vld [vmem:[#allocation3 + $0x1180] sm:$0xff] }
 0x941   : > { %11545 = vmatpush1.bf16.msra.mxu0 %v14927_v28  ;;  %11505 = vmatprep.subr.bf16.mxu1 %v15046_v29  ;;  %v15000_v28 = vcombine.high %v9853_v20, %v9857_v40  ;;  %v9972_v29 = vld [vmem:[#allocation3 + $0xed0] sm:$0xff]  ;;  %v14967_v16 = vcombine.low %v9821_v7, %v9825_v25  ;;  %v11777_v20 = vld [vmem:[#allocation3 + $0x11a0] sm:$0xff]  ;;  %v15209_v40 = vcombine.low %v11781_v56, %v11785_v57 }
 0x942   : > { %11546 = vmatprep.subr.bf16.mxu0 %v14920_v5  ;;  %v9976_v5 = vld [vmem:[#allocation3 + $0xef0] sm:$0xff] }
 0x943   : > { %v15117_v63 = vcombine.low %v9972_v29, %v9976_v5 }
 0x944   : > { %11506 = vmatpush1.bf16.msra.mxu1 %v15045_v49  ;;  %v15118_v49 = vcombine.high %v9972_v29, %v9976_v5  ;;  %v9929_v29 = vld [vmem:[#allocation3 + $0xd78] sm:$0xff] }
 0x945   : > { %11547 = vmatpush1.bf16.msra.mxu0 %v14919_v38  ;;  %11507 = vmatprep.subr.bf16.mxu1 %v15038_v43  ;;  %v14992_v38 = vcombine.high %v9845_v32, %v9849_v35  ;;  %v9964_v43 = vld [vmem:[#allocation3 + $0xe90] sm:$0xff] }
 0x946   : > { %11548 = vmatprep.subr.bf16.mxu0 %v14912_v44  ;;  %v9968_v44 = vld [vmem:[#allocation3 + $0xeb0] sm:$0xff] }
 0x947   : > { %v15109_v13 = vcombine.low %v9964_v43, %v9968_v44  ;;  %v16297_v32 = vld [vmem:[#allocation10 + $0x14] sm:$0xff] }
 0x948   : > { %11508 = vmatpush1.bf16.msra.mxu1 %v15037_v33  ;;  %v15110_v33 = vcombine.high %v9964_v43, %v9968_v44  ;;  %v9724_v35 = vrot.slane %v16297_v32, %v18000_v22 }
 0x949   : > { %11549 = vmatpush1.bf16.msra.mxu0 %v14911_v51  ;;  %11509 = vmatprep.subr.bf16.mxu1 %v15030_v27  ;;  %v14984_v51 = vcombine.high %v9837_v39, %v9841_v2  ;;  %v9956_v27 = vld [vmem:[#allocation3 + $0xe50] sm:$0xff] }
 0x94a   : > { %11550 = vmatprep.subr.bf16.mxu0 %v14904_v42  ;;  %v9960_v42 = vld [vmem:[#allocation3 + $0xe70] sm:$0xff] }
 0x94b   : > { %v15101_v0 = vcombine.low %v9956_v27, %v9960_v42 }
 0x94c   : > { %11510 = vmatpush1.bf16.msra.mxu1 %v15029_v59  ;;  %v15102_v59 = vcombine.high %v9956_v27, %v9960_v42 }
 0x94d   : > { %11551 = vmatpush1.bf16.msra.mxu0 %v14903_v62  ;;  %11511 = vmatprep.subr.bf16.mxu1 %v15150_v1  ;;  %v14976_v62 = vcombine.high %v9829_v14, %v9833_v30  ;;  %v9948_v1 = vld [vmem:[#allocation3 + $0xe10] sm:$0xff]  ;;  %v9917_v14 = vld [vmem:[#allocation3 + $0xd18] sm:$0xff] }
 0x94e   : > { %11552 = vmatprep.subr.bf16.mxu0 %v15024_v47  ;;  %v9952_v47 = vld [vmem:[#allocation3 + $0xe30] sm:$0xff]  ;;  %v9921_v30 = vld [vmem:[#allocation3 + $0xd38] sm:$0xff] }
 0x94f   : > { %v15093_v46 = vcombine.low %v9948_v1, %v9952_v47 }
 0x950   : > { %11512 = vmatpush2.bf16.msra.mxu1 %v15149_v60  ;;  %v15094_v60 = vcombine.high %v9948_v1, %v9952_v47 }
 0x951   : > { %11553 = vmatpush2.bf16.msra.mxu0 %v15023_v52  ;;  %11513 = vmatprep.subr.bf16.mxu1 %v15142_v55  ;;  %v14968_v52 = vcombine.high %v9821_v7, %v9825_v25  ;;  %v9941_v55 = vld [vmem:[#allocation3 + $0xdd8] sm:$0xff] }
 0x952   : > { %11554 = vmatprep.subr.bf16.mxu0 %v15016_v50  ;;  %v9945_v50 = vld [vmem:[#allocation3 + $0xdf8] sm:$0xff] }
 0x953   : > { %v15087_v37 = vcombine.low %v9941_v55, %v9945_v50 }
 0x954   : > { %11514 = vmatpush2.bf16.msra.mxu1 %v15141_v11  ;;  %v15088_v11 = vcombine.high %v9941_v55, %v9945_v50  ;;  %v9909_v55 = vld [vmem:[#allocation3 + $0xcd8] sm:$0xff] }
 0x955   : > { %11555 = vmatpush2.bf16.msra.mxu0 %v15015_v54  ;;  %11515 = vmatprep.subr.bf16.mxu1 %v15134_v61  ;;  %v15210_v54 = vcombine.high %v11781_v56, %v11785_v57  ;;  %v9933_v61 = vld [vmem:[#allocation3 + $0xd98] sm:$0xff]  ;;  %v11749_v56 = vld [vmem:[#allocation3 + $0x10c0] sm:$0xff] }
 0x956   : > { %11556 = vmatprep.subr.bf16.mxu0 %v15008_v34  ;;  %v9937_v34 = vld [vmem:[#allocation3 + $0xdb8] sm:$0xff]  ;;  %v11753_v57 = vld [vmem:[#allocation3 + $0x10e0] sm:$0xff] }
 0x957   : > { %v15079_v39 = vcombine.low %v9933_v61, %v9937_v34  ;;  %v9913_v50 = vld [vmem:[#allocation3 + $0xcf8] sm:$0xff] }
 0x958   : > { %11516 = vmatpush2.bf16.msra.mxu1 %v15133_v3  ;;  %v16296_v3 = vld [vmem:[#allocation10 + $0x34] sm:$0xff] }
 0x959   : > { %11557 = vmatpush2.bf16.msra.mxu0 %v15007_v4  ;;  %11517 = vmatprep.subr.bf16.mxu1 %v15126_v24  ;;  %v9675_v4 = vrot.slane %v16296_v3, %v18000_v22  ;;  %v15080_v24 = vcombine.high %v9933_v61, %v9937_v34  ;;  %v9679_v44 = vrot.slane %v16296_v3, %v17994_v36  ;;  %v9901_v61 = vld [vmem:[#allocation3 + $0xc98] sm:$0xff] }
 0x95a   : > { %11558 = vmatprep.subr.bf16.mxu0 %v15000_v28  ;;  %v9925_v28 = vld [vmem:[#allocation3 + $0xd58] sm:$0xff] }
 0x95b   : > { %v15071_v7 = vcombine.low %v9925_v28, %v9929_v29  ;;  %v9905_v34 = vld [vmem:[#allocation3 + $0xcb8] sm:$0xff] }
 0x95c   : > { %11518 = vmatpush2.bf16.msra.mxu1 %v15125_v48  ;;  %v15202_v48 = vcombine.high %v11773_v18, %v11777_v20  ;;  %v15048_v3 = vcombine.high %v9901_v61, %v9905_v34 }
 0x95d   : > { %11559 = vmatpush2.bf16.msra.mxu0 %v14999_v9  ;;  %11519 = vmatprep.subr.bf16.mxu1 %v15118_v49  ;;  %v11765_v9 = vld [vmem:[#allocation3 + $0x1140] sm:$0xff] }
 0x95e   : > { %11560 = vmatprep.subr.bf16.mxu0 %v14992_v38  ;;  %v11769_v49 = vld [vmem:[#allocation3 + $0x1160] sm:$0xff] }
 0x95f   : > { %v15194_v42 = vcombine.high %v11765_v9, %v11769_v49 }
 0x960   : > { %11520 = vmatpush2.bf16.msra.mxu1 %v15117_v63  ;;  %v9728_v63 = vrot.slane %v16297_v32, %v17994_v36  ;;  %v15047_v32 = vcombine.low %v9901_v61, %v9905_v34  ;;  %v11821_v61 = vld [vmem:[#allocation3 + $0x1300] sm:$0xff] }
 0x961   : > { %11561 = vmatpush2.bf16.msra.mxu0 %v14991_v6  ;;  %11521 = vmatprep.subr.bf16.mxu1 %v15110_v33  ;;  %v15201_v6 = vcombine.low %v11773_v18, %v11777_v20  ;;  %v15072_v33 = vcombine.high %v9925_v28, %v9929_v29  ;;  %v11745_v18 = vld [vmem:[#allocation3 + $0x10a0] sm:$0xff]  ;;  %v15055_v20 = vcombine.low %v9909_v55, %v9913_v50  ;;  %v9897_v28 = vld [vmem:[#allocation3 + $0xc78] sm:$0xff] }
 0x962   : > { %11562 = vmatprep.subr.bf16.mxu0 %v14984_v51  ;;  %v11733_v29 = vld [vmem:[#allocation3 + $0x1040] sm:$0xff] }
 0x963   : > { %v11825_v34 = vld [vmem:[#allocation3 + $0x1320] sm:$0xff] }
 0x964   : > { %11522 = vmatpush2.bf16.msra.mxu1 %v15109_v13 }
 0x965   : > { %11563 = vmatpush2.bf16.msra.mxu0 %v14983_v23  ;;  %11523 = vmatprep.subr.bf16.mxu1 %v15102_v59  ;;  %v11757_v23 = vld [vmem:[#allocation3 + $0x1100] sm:$0xff] }
 0x966   : > { %11564 = vmatprep.subr.bf16.mxu0 %v14976_v62  ;;  %v11761_v59 = vld [vmem:[#allocation3 + $0x1120] sm:$0xff] }
 0x968   : > { %11524 = vmatpush2.bf16.msra.mxu1 %v15101_v0  ;;  %v15064_v0 = vcombine.high %v9917_v14, %v9921_v30 }
 0x969   : > { %11565 = vmatpush2.bf16.msra.mxu0 %v14975_v58  ;;  %11525 = vmatprep.subr.bf16.mxu1 %v15094_v60 }
 0x96a   : > { %11566 = vmatprep.subr.bf16.mxu0 %v14968_v52  ;;  %v15186_v52 = vcombine.high %v11757_v23, %v11761_v59 }
 0x96c   : > { %11526 = vmatpush2.bf16.msra.mxu1 %v15093_v46  ;;  %v15063_v46 = vcombine.low %v9917_v14, %v9921_v30  ;;  %v11849_v14 = vld [vmem:[#allocation3 + $0x13e0] sm:$0xff] }
 0x96d   : > { %11567 = vmatpush2.bf16.msra.mxu0 %v14967_v16  ;;  %11577 = vmatprep.subr.bf16.mxu1 %v15088_v11  ;;  %v15185_v16 = vcombine.low %v11757_v23, %v11761_v59  ;;  %v15056_v11 = vcombine.high %v9909_v55, %v9913_v50  ;;  %v11829_v55 = vld [vmem:[#allocation3 + $0x1340] sm:$0xff] }
 0x96e   : > { %13261 = vmatprep.subr.bf16.mxu0 %v15210_v54  ;;  %v15178_v54 = vcombine.high %v11749_v56, %v11753_v57  ;;  %v11833_v50 = vld [vmem:[#allocation3 + $0x1360] sm:$0xff] }
 0x96f   : > { %v9640_v5 = vpop.f32.mrf.mxu1  ;;  %11528 = vmatmul.mubr.bf16.vlgmr.msra.gmra.mxu1 %v18150_v15 }
 0x970   : > { %v9641_v38 = vadd.f32 %v9640_v5, %v18218_v45  ;;  %v18234_v43 = vpop.f32.mrf.mxu0  ;;  %11569 = vmatmul.mubr.bf16.vlgmr.msra.gmra.mxu0 %v18134_v21  ;;  %11578 = vmatpush1.bf16.msra.mxu1 %v15087_v37  ;;  %v11741_v37 = vld [vmem:[#allocation3 + $0x1080] sm:$0xff] }
 0x971   : > { %11609 = vmatprep.mubr.bf16.mxu1 %v18148_v26  ;;  %v9642_v2 = vpop.f32.mrf.mxu1  ;;  %13262 = vmatpush1.bf16.msra.mxu0 %v15209_v40  ;;  %v15177_v40 = vcombine.low %v11749_v56, %v11753_v57  ;;  %v11737_v5 = vld [vmem:[#allocation3 + $0x1060] sm:$0xff] }
 0x972   : > { %v9694_v51 = vmul.f32 %v9675_v4, %v9641_v38  ;;  %v9643_v27 = vadd.f32 %v9642_v2, %v18228_v53  ;;  %13293 = vmatprep.mubr.bf16.mxu0 %v18132_v41  ;;  %v18242_v45 = vpop.f32.mrf.mxu0  ;;  %11579 = vmatprep.subr.bf16.mxu1 %v15080_v24  ;;  %v15193_v53 = vcombine.low %v11765_v9, %v11769_v49  ;;  %v9893_v24 = vld [vmem:[#allocation3 + $0xc58] sm:$0xff] }
 0x973   : > { %v9644_v13 = vpop.f32.mrf.mxu1  ;;  %13263 = vmatprep.subr.bf16.mxu0 %v15202_v48  ;;  %v15170_v4 = vcombine.high %v11741_v37, %v11745_v18  ;;  %v15040_v48 = vcombine.high %v9893_v24, %v9897_v28  ;;  %v15162_v9 = vcombine.high %v11733_v29, %v11737_v5  ;;  %v9885_v49 = vld [vmem:[#allocation3 + $0xc18] sm:$0xff]  ;;  %v15039_v2 = vcombine.low %v9893_v24, %v9897_v28  ;;  %v11813_v24 = vld [vmem:[#allocation3 + $0x12c0] sm:$0xff] }
 0x974   : > { %v9743_v62 = vadd.f32 %v9724_v35, %v9694_v51  ;;  %v9695_v1 = vmul.f32 %v9679_v44, %v9643_v27  ;;  %v11328_v47 = vpop.f32.mrf.mxu0  ;;  %11580 = vmatpush1.bf16.msra.mxu1 %v15079_v39  ;;  %v15169_v35 = vcombine.low %v11741_v37, %v11745_v18  ;;  %v9889_v38 = vld [vmem:[#allocation3 + $0xc38] sm:$0xff]  ;;  %v11725_v44 = vld [vmem:[#allocation3 + $0x1000] sm:$0xff]  ;;  %v15257_v18 = vcombine.low %v11829_v55, %v11833_v50 }
 0x975   : > { %v9645_v25 = vpop.f32.mrf.mxu1  ;;  %13264 = vmatpush1.bf16.msra.mxu0 %v15201_v6  ;;  %11581 = vmatprep.subr.bf16.mxu1 %v15072_v33  ;;  %v11729_v39 = vld [vmem:[#allocation3 + $0x1020] sm:$0xff]  ;;  %v15032_v6 = vcombine.high %v9885_v49, %v9889_v38  ;;  %v10005_v51 = vld [vmem:[#allocation3 + $0xfd8] sm:$0xff]  ;;  %v15031_v30 = vcombine.low %v9885_v49, %v9889_v38 }
 0x976   : > { %9751 = vst [vmem:[#allocation16 + $0x30] sm:$0xff] %v9743_v62  ;;  %v9744_v58 = vadd.f32 %v9728_v63, %v9695_v1  ;;  %v11329_v60 = vpop.f32.mrf.mxu0  ;;  %13265 = vmatprep.subr.bf16.mxu0 %v15194_v42  ;;  %v15161_v63 = vcombine.low %v11733_v29, %v11737_v5  ;;  %v15154_v33 = vcombine.high %v11725_v44, %v11729_v39  ;;  %v10009_v27 = vld [vmem:[#allocation3 + $0xff8] sm:$0xff]  ;;  %v11845_v42 = vld [vmem:[#allocation3 + $0x13c0] sm:$0xff] }
 0x977   : > { %v15153_v13 = vcombine.low %v11725_v44, %v11729_v39  ;;  %v15152_v23 = vcombine.high %v10005_v51, %v10009_v27  ;;  %v15274_v59 = vcombine.high %v11845_v42, %v11849_v14  ;;  %v9997_v62 = vld [vmem:[#allocation3 + $0xf98] sm:$0xff]  ;;  %v11837_v47 = vld [vmem:[#allocation3 + $0x1380] sm:$0xff]  ;;  %v15151_v25 = vcombine.low %v10005_v51, %v10009_v27 }
 0x978   : > { %9752 = vst [vmem:[#allocation16 + $0x38] sm:$0xff] %v9744_v58  ;;  %11582 = vmatpush1.bf16.msra.mxu1 %v15071_v7  ;;  %v10001_v1 = vld [vmem:[#allocation3 + $0xfb8] sm:$0xff]  ;;  %v11841_v7 = vld [vmem:[#allocation3 + $0x13a0] sm:$0xff]  ;;  %v15249_v5 = vcombine.low %v11821_v61, %v11825_v34 }
 0x979   : > { %13266 = vmatpush1.bf16.msra.mxu0 %v15193_v53  ;;  %11583 = vmatprep.subr.bf16.mxu1 %v15064_v0  ;;  %v15273_v53 = vcombine.low %v11845_v42, %v11849_v14  ;;  %v15144_v0 = vcombine.high %v9997_v62, %v10001_v1  ;;  %v15266_v58 = vcombine.high %v11837_v47, %v11841_v7  ;;  %v9989_v60 = vld [vmem:[#allocation3 + $0xf58] sm:$0xff]  ;;  %v11817_v28 = vld [vmem:[#allocation3 + $0x12e0] sm:$0xff] }
 0x97a   : > { %13267 = vmatprep.subr.bf16.mxu0 %v15186_v52  ;;  %v9993_v52 = vld [vmem:[#allocation3 + $0xf78] sm:$0xff]  ;;  %v15143_v56 = vcombine.low %v9997_v62, %v10001_v1  ;;  %v15265_v57 = vcombine.low %v11837_v47, %v11841_v7  ;;  %v11805_v49 = vld [vmem:[#allocation3 + $0x1280] sm:$0xff]  ;;  %v15241_v39 = vcombine.low %v11813_v24, %v11817_v28 }
 0x97b   : > { %v15135_v37 = vcombine.low %v9989_v60, %v9993_v52  ;;  %v11809_v38 = vld [vmem:[#allocation3 + $0x12a0] sm:$0xff] }
 0x97c   : > { %11584 = vmatpush1.bf16.msra.mxu1 %v15063_v46  ;;  %v15136_v46 = vcombine.high %v9989_v60, %v9993_v52  ;;  %v11797_v51 = vld [vmem:[#allocation3 + $0x1240] sm:$0xff]  ;;  %v15233_v14 = vcombine.low %v11805_v49, %v11809_v38  ;;  %v11782_v60 = vld [vmem:[#allocation3 + $0x11c8] sm:$0xff] }
 0x97d   : > { %13268 = vmatpush1.bf16.msra.mxu0 %v15185_v16  ;;  %11585 = vmatprep.subr.bf16.mxu1 %v15056_v11  ;;  %v15258_v16 = vcombine.high %v11829_v55, %v11833_v50  ;;  %v9981_v11 = vld [vmem:[#allocation3 + $0xf18] sm:$0xff]  ;;  %v11801_v27 = vld [vmem:[#allocation3 + $0x1260] sm:$0xff]  ;;  %v11786_v52 = vld [vmem:[#allocation3 + $0x11e8] sm:$0xff] }
 0x97e   : > { %13269 = vmatprep.subr.bf16.mxu0 %v15178_v54  ;;  %v9985_v54 = vld [vmem:[#allocation3 + $0xf38] sm:$0xff]  ;;  %v11789_v62 = vld [vmem:[#allocation3 + $0x1200] sm:$0xff]  ;;  %v15225_v7 = vcombine.low %v11797_v51, %v11801_v27 }
 0x97f   : > { %v15127_v29 = vcombine.low %v9981_v11, %v9985_v54  ;;  %v11793_v1 = vld [vmem:[#allocation3 + $0x1220] sm:$0xff] }
 0x980   : > { %11586 = vmatpush1.bf16.msra.mxu1 %v15055_v20  ;;  %v15128_v20 = vcombine.high %v9981_v11, %v9985_v54  ;;  %v15217_v50 = vcombine.low %v11789_v62, %v11793_v1  ;;  %v11905_v11 = vld [vmem:[#allocation3 + $0x15a0] sm:$0xff] }
 0x981   : > { %13270 = vmatpush1.bf16.msra.mxu0 %v15177_v40  ;;  %11587 = vmatprep.subr.bf16.mxu1 %v15048_v3  ;;  %v15250_v40 = vcombine.high %v11821_v61, %v11825_v34  ;;  %v9973_v3 = vld [vmem:[#allocation3 + $0xed8] sm:$0xff]  ;;  %v11774_v34 = vld [vmem:[#allocation3 + $0x1188] sm:$0xff] }
 0x982   : > { %13271 = vmatprep.subr.bf16.mxu0 %v15170_v4  ;;  %v9977_v4 = vld [vmem:[#allocation3 + $0xef8] sm:$0xff] }
 0x983   : > { %v15119_v44 = vcombine.low %v9973_v3, %v9977_v4  ;;  %v18246_v54 = vld [vmem:[#allocation10 + $0x1c] sm:$0xff] }
 0x984   : > { %11588 = vmatpush1.bf16.msra.mxu1 %v15047_v32  ;;  %v15120_v32 = vcombine.high %v9973_v3, %v9977_v4  ;;  %v11893_v3 = vld [vmem:[#allocation3 + $0x1540] sm:$0xff] }
 0x985   : > { %13272 = vmatpush1.bf16.msra.mxu0 %v15169_v35  ;;  %11589 = vmatprep.subr.bf16.mxu1 %v15040_v48  ;;  %v15242_v35 = vcombine.high %v11813_v24, %v11817_v28  ;;  %v9965_v48 = vld [vmem:[#allocation3 + $0xe98] sm:$0xff]  ;;  %v11897_v4 = vld [vmem:[#allocation3 + $0x1560] sm:$0xff]  ;;  %v11671_v28 = vrot.slane %v18246_v54, %v17965_v8 }
 0x986   : > { %13273 = vmatprep.subr.bf16.mxu0 %v15162_v9  ;;  %v9969_v9 = vld [vmem:[#allocation3 + $0xeb8] sm:$0xff] }
 0x987   : > { %v15111_v42 = vcombine.low %v9965_v48, %v9969_v9 }
 0x988   : > { %11590 = vmatpush1.bf16.msra.mxu1 %v15039_v2  ;;  %v15112_v2 = vcombine.high %v9965_v48, %v9969_v9 }
 0x989   : > { %13274 = vmatpush1.bf16.msra.mxu0 %v15161_v63  ;;  %11591 = vmatprep.subr.bf16.mxu1 %v15032_v6  ;;  %v15234_v63 = vcombine.high %v11805_v49, %v11809_v38  ;;  %v9957_v6 = vld [vmem:[#allocation3 + $0xe58] sm:$0xff] }
 0x98a   : > { %13275 = vmatprep.subr.bf16.mxu0 %v15154_v33  ;;  %v9961_v33 = vld [vmem:[#allocation3 + $0xe78] sm:$0xff] }
 0x98b   : > { %v15103_v47 = vcombine.low %v9957_v6, %v9961_v33 }
 0x98c   : > { %11592 = vmatpush1.bf16.msra.mxu1 %v15031_v30  ;;  %v15104_v30 = vcombine.high %v9957_v6, %v9961_v33 }
 0x98d   : > { %13276 = vmatpush1.bf16.msra.mxu0 %v15153_v13  ;;  %11593 = vmatprep.subr.bf16.mxu1 %v15152_v23  ;;  %v15226_v13 = vcombine.high %v11797_v51, %v11801_v27  ;;  %v9949_v23 = vld [vmem:[#allocation3 + $0xe18] sm:$0xff]  ;;  %v11885_v51 = vld [vmem:[#allocation3 + $0x1500] sm:$0xff] }
 0x98e   : > { %13277 = vmatprep.subr.bf16.mxu0 %v15274_v59  ;;  %v9953_v59 = vld [vmem:[#allocation3 + $0xe38] sm:$0xff]  ;;  %v11889_v27 = vld [vmem:[#allocation3 + $0x1520] sm:$0xff] }
 0x98f   : > { %v15095_v55 = vcombine.low %v9949_v23, %v9953_v59 }
 0x990   : > { %11594 = vmatpush2.bf16.msra.mxu1 %v15151_v25  ;;  %v15096_v25 = vcombine.high %v9949_v23, %v9953_v59 }
 0x991   : > { %13278 = vmatpush2.bf16.msra.mxu0 %v15273_v53  ;;  %11595 = vmatprep.subr.bf16.mxu1 %v15144_v0  ;;  %v15218_v53 = vcombine.high %v11789_v62, %v11793_v1  ;;  %v11909_v0 = vld [vmem:[#allocation3 + $0x15c0] sm:$0xff]  ;;  %v15321_v62 = vcombine.low %v11893_v3, %v11897_v4 }
 0x992   : > { %13279 = vmatprep.subr.bf16.mxu0 %v15266_v58  ;;  %v11913_v58 = vld [vmem:[#allocation3 + $0x15e0] sm:$0xff] }
 0x993   : > { %v15337_v61 = vcombine.low %v11909_v0, %v11913_v58 }
 0x994   : > { %11596 = vmatpush2.bf16.msra.mxu1 %v15143_v56  ;;  %v15338_v56 = vcombine.high %v11909_v0, %v11913_v58  ;;  %v11877_v0 = vld [vmem:[#allocation3 + $0x14c0] sm:$0xff] }
 0x995   : > { %13280 = vmatpush2.bf16.msra.mxu0 %v15265_v57  ;;  %11597 = vmatprep.subr.bf16.mxu1 %v15136_v46  ;;  %v15212_v57 = vcombine.high %v11782_v60, %v11786_v52  ;;  %v18244_v46 = vld [vmem:[#allocation10 + $0x3c] sm:$0xff] }
 0x996   : > { %13281 = vmatprep.subr.bf16.mxu0 %v15258_v16  ;;  %v11901_v16 = vld [vmem:[#allocation3 + $0x1580] sm:$0xff]  ;;  %v11626_v9 = vrot.slane %v18244_v46, %v17947_v10 }
 0x997   : > { %v15329_v49 = vcombine.low %v11901_v16, %v11905_v11  ;;  %v11881_v58 = vld [vmem:[#allocation3 + $0x14e0] sm:$0xff] }
 0x998   : > { %11598 = vmatpush2.bf16.msra.mxu1 %v15135_v37  ;;  %v11778_v37 = vld [vmem:[#allocation3 + $0x11a8] sm:$0xff] }
 0x999   : > { %13282 = vmatpush2.bf16.msra.mxu0 %v15257_v18  ;;  %11599 = vmatprep.subr.bf16.mxu1 %v15128_v20  ;;  %v15211_v18 = vcombine.low %v11782_v60, %v11786_v52  ;;  %v11622_v20 = vrot.slane %v18244_v46, %v17965_v8  ;;  %v11750_v60 = vld [vmem:[#allocation3 + $0x10c8] sm:$0xff] }
 0x99a   : > { %13283 = vmatprep.subr.bf16.mxu0 %v15250_v40  ;;  %v15330_v40 = vcombine.high %v11901_v16, %v11905_v11  ;;  %v11754_v52 = vld [vmem:[#allocation3 + $0x10e8] sm:$0xff]  ;;  %v11869_v16 = vld [vmem:[#allocation3 + $0x1480] sm:$0xff] }
 0x99b   : > { %v11873_v11 = vld [vmem:[#allocation3 + $0x14a0] sm:$0xff] }
 0x99c   : > { %11600 = vmatpush2.bf16.msra.mxu1 %v15127_v29  ;;  %v15204_v29 = vcombine.high %v11774_v34, %v11778_v37 }
 0x99d   : > { %13284 = vmatpush2.bf16.msra.mxu0 %v15249_v5  ;;  %11601 = vmatprep.subr.bf16.mxu1 %v15120_v32  ;;  %v11766_v5 = vld [vmem:[#allocation3 + $0x1148] sm:$0xff] }
 0x99e   : > { %13285 = vmatprep.subr.bf16.mxu0 %v15242_v35  ;;  %v11770_v32 = vld [vmem:[#allocation3 + $0x1168] sm:$0xff] }
 0x99f   : > { %v15196_v33 = vcombine.high %v11766_v5, %v11770_v32 }
 0x9a0   : > { %11602 = vmatpush2.bf16.msra.mxu1 %v15119_v44  ;;  %v11675_v44 = vrot.slane %v18246_v54, %v17947_v10 }
 0x9a1   : > { %13286 = vmatpush2.bf16.msra.mxu0 %v15241_v39  ;;  %11603 = vmatprep.subr.bf16.mxu1 %v15112_v2  ;;  %v15203_v39 = vcombine.low %v11774_v34, %v11778_v37  ;;  %v15322_v2 = vcombine.high %v11893_v3, %v11897_v4  ;;  %v11746_v34 = vld [vmem:[#allocation3 + $0x10a8] sm:$0xff]  ;;  %v15305_v37 = vcombine.low %v11877_v0, %v11881_v58  ;;  %v11861_v3 = vld [vmem:[#allocation3 + $0x1440] sm:$0xff] }
 0x9a2   : > { %13287 = vmatprep.subr.bf16.mxu0 %v15234_v63  ;;  %v11865_v4 = vld [vmem:[#allocation3 + $0x1460] sm:$0xff] }
 0x9a4   : > { %11604 = vmatpush2.bf16.msra.mxu1 %v15111_v42 }
 0x9a5   : > { %13288 = vmatpush2.bf16.msra.mxu0 %v15233_v14  ;;  %11605 = vmatprep.subr.bf16.mxu1 %v15104_v30  ;;  %v11758_v14 = vld [vmem:[#allocation3 + $0x1108] sm:$0xff] }
 0x9a6   : > { %13289 = vmatprep.subr.bf16.mxu0 %v15226_v13  ;;  %v11762_v30 = vld [vmem:[#allocation3 + $0x1128] sm:$0xff] }
 0x9a8   : > { %11606 = vmatpush2.bf16.msra.mxu1 %v15103_v47  ;;  %v15314_v47 = vcombine.high %v11885_v51, %v11889_v27 }
 0x9a9   : > { %13290 = vmatpush2.bf16.msra.mxu0 %v15225_v7  ;;  %11607 = vmatprep.subr.bf16.mxu1 %v15096_v25 }
 0x9aa   : > { %13291 = vmatprep.subr.bf16.mxu0 %v15218_v53  ;;  %v15188_v53 = vcombine.high %v11758_v14, %v11762_v30 }
 0x9ac   : > { %11608 = vmatpush2.bf16.msra.mxu1 %v15095_v55  ;;  %v15313_v55 = vcombine.low %v11885_v51, %v11889_v27  ;;  %v11977_v51 = vld [vmem:[#allocation3 + $0x17e0] sm:$0xff]  ;;  %v11846_v27 = vld [vmem:[#allocation3 + $0x13c8] sm:$0xff] }
 0x9ad   : > { %13292 = vmatpush2.bf16.msra.mxu0 %v15217_v50  ;;  %13302 = vmatprep.subr.bf16.mxu1 %v15338_v56  ;;  %v15187_v50 = vcombine.low %v11758_v14, %v11762_v30  ;;  %v15306_v56 = vcombine.high %v11877_v0, %v11881_v58  ;;  %v11957_v0 = vld [vmem:[#allocation3 + $0x1740] sm:$0xff] }
 0x9ae   : > { %13343 = vmatprep.subr.bf16.mxu0 %v15212_v57  ;;  %v15180_v57 = vcombine.high %v11750_v60, %v11754_v52  ;;  %v11961_v58 = vld [vmem:[#allocation3 + $0x1760] sm:$0xff] }
 0x9af   : > { %v11365_v24 = vpop.f32.mrf.mxu1  ;;  %11610 = vmatmul.mubr.bf16.vlgmr.msra.gmra.mxu1 %v18150_v15 }
 0x9b0   : > { %v11366_v35 = vadd.f32 %v11365_v24, %v18234_v43  ;;  %v18254_v48 = vpop.f32.mrf.mxu0  ;;  %13294 = vmatmul.mubr.bf16.vlgmr.msra.gmra.mxu0 %v18134_v21  ;;  %13303 = vmatpush1.bf16.msra.mxu1 %v15337_v61  ;;  %v11742_v61 = vld [vmem:[#allocation3 + $0x1088] sm:$0xff] }
 0x9b1   : > { %13334 = vmatprep.mubr.bf16.mxu1 %v18148_v26  ;;  %v11367_v38 = vpop.f32.mrf.mxu1  ;;  %13344 = vmatpush1.bf16.msra.mxu0 %v15211_v18  ;;  %v15179_v18 = vcombine.low %v11750_v60, %v11754_v52  ;;  %v11734_v24 = vld [vmem:[#allocation3 + $0x1048] sm:$0xff] }
 0x9b2   : > { %v11659_v63 = vmul.f32 %v11622_v20, %v11366_v35  ;;  %v11368_v43 = vadd.f32 %v11367_v38, %v18242_v45  ;;  %13375 = vmatprep.mubr.bf16.mxu0 %v18132_v41  ;;  %v18264_v6 = vpop.f32.mrf.mxu0  ;;  %13304 = vmatprep.subr.bf16.mxu1 %v15330_v40  ;;  %v15195_v45 = vcombine.low %v11766_v5, %v11770_v32  ;;  %v11726_v38 = vld [vmem:[#allocation3 + $0x1008] sm:$0xff] }
 0x9b3   : > { %v11369_v42 = vpop.f32.mrf.mxu1  ;;  %13345 = vmatprep.subr.bf16.mxu0 %v15204_v29  ;;  %v15298_v20 = vcombine.high %v11869_v16, %v11873_v11  ;;  %v15172_v40 = vcombine.high %v11742_v61, %v11746_v34  ;;  %v15297_v29 = vcombine.low %v11869_v16, %v11873_v11  ;;  %v15171_v5 = vcombine.low %v11742_v61, %v11746_v34  ;;  %v11830_v60 = vld [vmem:[#allocation3 + $0x1348] sm:$0xff]  ;;  %v11949_v16 = vld [vmem:[#allocation3 + $0x1700] sm:$0xff] }
 0x9b4   : > { %v11708_v13 = vadd.f32 %v11671_v28, %v11659_v63  ;;  %v11660_v23 = vmul.f32 %v11626_v9, %v11368_v43  ;;  %v11410_v59 = vpop.f32.mrf.mxu0  ;;  %13305 = vmatpush1.bf16.msra.mxu1 %v15329_v49  ;;  %v11738_v28 = vld [vmem:[#allocation3 + $0x1068] sm:$0xff]  ;;  %v15290_v32 = vcombine.high %v11861_v3, %v11865_v4  ;;  %v11853_v9 = vld [vmem:[#allocation3 + $0x1400] sm:$0xff] }
 0x9b5   : > { %v11370_v1 = vpop.f32.mrf.mxu1  ;;  %13346 = vmatpush1.bf16.msra.mxu0 %v15203_v39  ;;  %13306 = vmatprep.subr.bf16.mxu1 %v15322_v2  ;;  %v15164_v35 = vcombine.high %v11734_v24, %v11738_v28  ;;  %v11857_v49 = vld [vmem:[#allocation3 + $0x1420] sm:$0xff]  ;;  %v15289_v39 = vcombine.low %v11861_v3, %v11865_v4  ;;  %v15163_v2 = vcombine.low %v11734_v24, %v11738_v28  ;;  %v11850_v42 = vld [vmem:[#allocation3 + $0x13e8] sm:$0xff] }
 0x9b6   : > { %11716 = vst [vmem:[#allocation16 + $0x40] sm:$0xff] %v11708_v13  ;;  %v11709_v7 = vadd.f32 %v11675_v44, %v11660_v23  ;;  %v11411_v25 = vpop.f32.mrf.mxu0  ;;  %13347 = vmatprep.subr.bf16.mxu0 %v15196_v33  ;;  %v11730_v44 = vld [vmem:[#allocation3 + $0x1028] sm:$0xff]  ;;  %v15282_v63 = vcombine.high %v11853_v9, %v11857_v49  ;;  %v11973_v33 = vld [vmem:[#allocation3 + $0x17c0] sm:$0xff]  ;;  %v15281_v14 = vcombine.low %v11853_v9, %v11857_v49 }
 0x9b7   : > { %v15156_v43 = vcombine.high %v11726_v38, %v11730_v44  ;;  %v15155_v30 = vcombine.low %v11726_v38, %v11730_v44  ;;  %v15402_v13 = vcombine.high %v11973_v33, %v11977_v51  ;;  %v15276_v23 = vcombine.high %v11846_v27, %v11850_v42  ;;  %v11965_v59 = vld [vmem:[#allocation3 + $0x1780] sm:$0xff]  ;;  %v11838_v1 = vld [vmem:[#allocation3 + $0x1388] sm:$0xff] }
 0x9b8   : > { %11717 = vst [vmem:[#allocation16 + $0x48] sm:$0xff] %v11709_v7  ;;  %13307 = vmatpush1.bf16.msra.mxu1 %v15321_v62  ;;  %v11969_v62 = vld [vmem:[#allocation3 + $0x17a0] sm:$0xff]  ;;  %v15275_v7 = vcombine.low %v11846_v27, %v11850_v42  ;;  %v11834_v52 = vld [vmem:[#allocation3 + $0x1368] sm:$0xff] }
 0x9b9   : > { %13348 = vmatpush1.bf16.msra.mxu0 %v15195_v45  ;;  %13308 = vmatprep.subr.bf16.mxu1 %v15314_v47  ;;  %v11842_v45 = vld [vmem:[#allocation3 + $0x13a8] sm:$0xff]  ;;  %v15401_v47 = vcombine.low %v11973_v33, %v11977_v51  ;;  %v15394_v25 = vcombine.high %v11965_v59, %v11969_v62  ;;  %v11953_v11 = vld [vmem:[#allocation3 + $0x1720] sm:$0xff] }
 0x9ba   : > { %13349 = vmatprep.subr.bf16.mxu0 %v15188_v53  ;;  %v15268_v53 = vcombine.high %v11838_v1, %v11842_v45  ;;  %v11822_v61 = vld [vmem:[#allocation3 + $0x1308] sm:$0xff]  ;;  %v11941_v3 = vld [vmem:[#allocation3 + $0x16c0] sm:$0xff] }
 0x9bb   : > { %v11826_v34 = vld [vmem:[#allocation3 + $0x1328] sm:$0xff]  ;;  %v11945_v4 = vld [vmem:[#allocation3 + $0x16e0] sm:$0xff] }
 0x9bc   : > { %13309 = vmatpush1.bf16.msra.mxu1 %v15313_v55  ;;  %v15393_v55 = vcombine.low %v11965_v59, %v11969_v62  ;;  %v11814_v24 = vld [vmem:[#allocation3 + $0x12c8] sm:$0xff]  ;;  %v11933_v9 = vld [vmem:[#allocation3 + $0x1680] sm:$0xff] }
 0x9bd   : > { %13350 = vmatpush1.bf16.msra.mxu0 %v15187_v50  ;;  %13310 = vmatprep.subr.bf16.mxu1 %v15306_v56  ;;  %v15267_v50 = vcombine.low %v11838_v1, %v11842_v45  ;;  %v15386_v56 = vcombine.high %v11957_v0, %v11961_v58  ;;  %v11818_v28 = vld [vmem:[#allocation3 + $0x12e8] sm:$0xff]  ;;  %v11937_v49 = vld [vmem:[#allocation3 + $0x16a0] sm:$0xff] }
 0x9be   : > { %13351 = vmatprep.subr.bf16.mxu0 %v15180_v57  ;;  %v15260_v57 = vcombine.high %v11830_v60, %v11834_v52  ;;  %v11806_v38 = vld [vmem:[#allocation3 + $0x1288] sm:$0xff]  ;;  %v11925_v33 = vld [vmem:[#allocation3 + $0x1640] sm:$0xff] }
 0x9bf   : > { %v11810_v44 = vld [vmem:[#allocation3 + $0x12a8] sm:$0xff]  ;;  %v11929_v51 = vld [vmem:[#allocation3 + $0x1660] sm:$0xff] }
 0x9c0   : > { %13311 = vmatpush1.bf16.msra.mxu1 %v15305_v37  ;;  %v15385_v37 = vcombine.low %v11957_v0, %v11961_v58  ;;  %v11798_v27 = vld [vmem:[#allocation3 + $0x1248] sm:$0xff]  ;;  %v11917_v59 = vld [vmem:[#allocation3 + $0x1600] sm:$0xff] }
 0x9c1   : > { %13352 = vmatpush1.bf16.msra.mxu0 %v15179_v18  ;;  %13312 = vmatprep.subr.bf16.mxu1 %v15298_v20  ;;  %v15259_v18 = vcombine.low %v11830_v60, %v11834_v52  ;;  %v15378_v20 = vcombine.high %v11949_v16, %v11953_v11  ;;  %v11802_v42 = vld [vmem:[#allocation3 + $0x1268] sm:$0xff]  ;;  %v11921_v62 = vld [vmem:[#allocation3 + $0x1620] sm:$0xff]  ;;  %v11783_v60 = vld [vmem:[#allocation3 + $0x11d0] sm:$0xff] }
 0x9c2   : > { %13353 = vmatprep.subr.bf16.mxu0 %v15172_v40  ;;  %v15252_v40 = vcombine.high %v11822_v61, %v11826_v34  ;;  %v11790_v1 = vld [vmem:[#allocation3 + $0x1208] sm:$0xff]  ;;  %v11787_v52 = vld [vmem:[#allocation3 + $0x11f0] sm:$0xff] }
 0x9c3   : > { %v11794_v45 = vld [vmem:[#allocation3 + $0x1228] sm:$0xff] }
 0x9c4   : > { %13313 = vmatpush1.bf16.msra.mxu1 %v15297_v29  ;;  %v15377_v29 = vcombine.low %v11949_v16, %v11953_v11  ;;  %v11910_v0 = vld [vmem:[#allocation3 + $0x15c8] sm:$0xff] }
 0x9c5   : > { %13354 = vmatpush1.bf16.msra.mxu0 %v15171_v5  ;;  %13314 = vmatprep.subr.bf16.mxu1 %v15290_v32  ;;  %v15251_v5 = vcombine.low %v11822_v61, %v11826_v34  ;;  %v15370_v32 = vcombine.high %v11941_v3, %v11945_v4  ;;  %v11914_v58 = vld [vmem:[#allocation3 + $0x15e8] sm:$0xff]  ;;  %v11775_v34 = vld [vmem:[#allocation3 + $0x1190] sm:$0xff] }
 0x9c6   : > { %13355 = vmatprep.subr.bf16.mxu0 %v15164_v35  ;;  %v15244_v35 = vcombine.high %v11814_v24, %v11818_v28  ;;  %v11902_v16 = vld [vmem:[#allocation3 + $0x1588] sm:$0xff]  ;;  %v15339_v61 = vcombine.low %v11910_v0, %v11914_v58 }
 0x9c7   : > { %v11906_v11 = vld [vmem:[#allocation3 + $0x15a8] sm:$0xff] }
 0x9c8   : > { %13315 = vmatpush1.bf16.msra.mxu1 %v15289_v39  ;;  %v15369_v39 = vcombine.low %v11941_v3, %v11945_v4  ;;  %v11894_v3 = vld [vmem:[#allocation3 + $0x1548] sm:$0xff] }
 0x9c9   : > { %13356 = vmatpush1.bf16.msra.mxu0 %v15163_v2  ;;  %13316 = vmatprep.subr.bf16.mxu1 %v15282_v63  ;;  %v15243_v2 = vcombine.low %v11814_v24, %v11818_v28  ;;  %v15362_v63 = vcombine.high %v11933_v9, %v11937_v49  ;;  %v11898_v4 = vld [vmem:[#allocation3 + $0x1568] sm:$0xff]  ;;  %v11679_v28 = vrot.slane %v18246_v54, %v17968_v12 }
 0x9ca   : > { %13357 = vmatprep.subr.bf16.mxu0 %v15156_v43  ;;  %v15236_v43 = vcombine.high %v11806_v38, %v11810_v44 }
 0x9cc   : > { %13317 = vmatpush1.bf16.msra.mxu1 %v15281_v14  ;;  %v15361_v14 = vcombine.low %v11933_v9, %v11937_v49  ;;  %v11634_v49 = vrot.slane %v18244_v46, %v17950_v31 }
 0x9cd   : > { %13358 = vmatpush1.bf16.msra.mxu0 %v15155_v30  ;;  %13318 = vmatprep.subr.bf16.mxu1 %v15402_v13  ;;  %v15235_v30 = vcombine.low %v11806_v38, %v11810_v44  ;;  %v15354_v13 = vcombine.high %v11925_v33, %v11929_v51  ;;  %v15331_v38 = vcombine.low %v11902_v16, %v11906_v11 }
 0x9ce   : > { %13359 = vmatprep.subr.bf16.mxu0 %v15276_v23  ;;  %v15228_v23 = vcombine.high %v11798_v27, %v11802_v42 }
 0x9d0   : > { %13319 = vmatpush2.bf16.msra.mxu1 %v15401_v47  ;;  %v15353_v47 = vcombine.low %v11925_v33, %v11929_v51 }
 0x9d1   : > { %13360 = vmatpush2.bf16.msra.mxu0 %v15275_v7  ;;  %13320 = vmatprep.subr.bf16.mxu1 %v15394_v25  ;;  %v15227_v7 = vcombine.low %v11798_v27, %v11802_v42  ;;  %v15346_v25 = vcombine.high %v11917_v59, %v11921_v62  ;;  %v11886_v27 = vld [vmem:[#allocation3 + $0x1508] sm:$0xff] }
 0x9d2   : > { %13361 = vmatprep.subr.bf16.mxu0 %v15268_v53  ;;  %v15220_v53 = vcombine.high %v11790_v1, %v11794_v45  ;;  %v11890_v42 = vld [vmem:[#allocation3 + $0x1528] sm:$0xff] }
 0x9d4   : > { %13321 = vmatpush2.bf16.msra.mxu1 %v15393_v55  ;;  %v15345_v55 = vcombine.low %v11917_v59, %v11921_v62 }
 0x9d5   : > { %13362 = vmatpush2.bf16.msra.mxu0 %v15267_v50  ;;  %13322 = vmatprep.subr.bf16.mxu1 %v15386_v56  ;;  %v15219_v50 = vcombine.low %v11790_v1, %v11794_v45  ;;  %v15340_v56 = vcombine.high %v11910_v0, %v11914_v58  ;;  %v15323_v1 = vcombine.low %v11894_v3, %v11898_v4  ;;  %v11878_v0 = vld [vmem:[#allocation3 + $0x14c8] sm:$0xff] }
 0x9d6   : > { %13363 = vmatprep.subr.bf16.mxu0 %v15260_v57  ;;  %v15214_v57 = vcombine.high %v11783_v60, %v11787_v52  ;;  %v11882_v58 = vld [vmem:[#allocation3 + $0x14e8] sm:$0xff] }
 0x9d8   : > { %13323 = vmatpush2.bf16.msra.mxu1 %v15385_v37  ;;  %v11779_v37 = vld [vmem:[#allocation3 + $0x11b0] sm:$0xff] }
 0x9d9   : > { %13364 = vmatpush2.bf16.msra.mxu0 %v15259_v18  ;;  %13324 = vmatprep.subr.bf16.mxu1 %v15378_v20  ;;  %v15213_v18 = vcombine.low %v11783_v60, %v11787_v52  ;;  %v11630_v20 = vrot.slane %v18244_v46, %v17968_v12  ;;  %v11751_v60 = vld [vmem:[#allocation3 + $0x10d0] sm:$0xff] }
 0x9da   : > { %13365 = vmatprep.subr.bf16.mxu0 %v15252_v40  ;;  %v15332_v40 = vcombine.high %v11902_v16, %v11906_v11  ;;  %v11755_v52 = vld [vmem:[#allocation3 + $0x10f0] sm:$0xff]  ;;  %v11870_v16 = vld [vmem:[#allocation3 + $0x1488] sm:$0xff] }
 0x9db   : > { %v11874_v11 = vld [vmem:[#allocation3 + $0x14a8] sm:$0xff] }
 0x9dc   : > { %13325 = vmatpush2.bf16.msra.mxu1 %v15377_v29  ;;  %v15206_v29 = vcombine.high %v11775_v34, %v11779_v37 }
 0x9dd   : > { %13366 = vmatpush2.bf16.msra.mxu0 %v15251_v5  ;;  %13326 = vmatprep.subr.bf16.mxu1 %v15370_v32  ;;  %v11767_v5 = vld [vmem:[#allocation3 + $0x1150] sm:$0xff] }
 0x9de   : > { %13367 = vmatprep.subr.bf16.mxu0 %v15244_v35  ;;  %v11771_v32 = vld [vmem:[#allocation3 + $0x1170] sm:$0xff] }
 0x9df   : > { %v15198_v51 = vcombine.high %v11767_v5, %v11771_v32 }
 0x9e0   : > { %13327 = vmatpush2.bf16.msra.mxu1 %v15369_v39  ;;  %v11683_v39 = vrot.slane %v18246_v54, %v17950_v31 }
 0x9e1   : > { %13368 = vmatpush2.bf16.msra.mxu0 %v15243_v2  ;;  %13328 = vmatprep.subr.bf16.mxu1 %v15362_v63  ;;  %v15205_v2 = vcombine.low %v11775_v34, %v11779_v37  ;;  %v15324_v63 = vcombine.high %v11894_v3, %v11898_v4  ;;  %v11747_v34 = vld [vmem:[#allocation3 + $0x10b0] sm:$0xff]  ;;  %v15307_v37 = vcombine.low %v11878_v0, %v11882_v58  ;;  %v11862_v3 = vld [vmem:[#allocation3 + $0x1448] sm:$0xff] }
 0x9e2   : > { %13369 = vmatprep.subr.bf16.mxu0 %v15236_v43  ;;  %v11866_v4 = vld [vmem:[#allocation3 + $0x1468] sm:$0xff] }
 0x9e4   : > { %13329 = vmatpush2.bf16.msra.mxu1 %v15361_v14 }
 0x9e5   : > { %13370 = vmatpush2.bf16.msra.mxu0 %v15235_v30  ;;  %13330 = vmatprep.subr.bf16.mxu1 %v15354_v13  ;;  %v11759_v30 = vld [vmem:[#allocation3 + $0x1110] sm:$0xff] }
 0x9e6   : > { %13371 = vmatprep.subr.bf16.mxu0 %v15228_v23  ;;  %v11763_v13 = vld [vmem:[#allocation3 + $0x1130] sm:$0xff] }
 0x9e8   : > { %13331 = vmatpush2.bf16.msra.mxu1 %v15353_v47  ;;  %v15316_v47 = vcombine.high %v11886_v27, %v11890_v42 }
 0x9e9   : > { %13372 = vmatpush2.bf16.msra.mxu0 %v15227_v7  ;;  %13332 = vmatprep.subr.bf16.mxu1 %v15346_v25 }
 0x9ea   : > { %13373 = vmatprep.subr.bf16.mxu0 %v15220_v53  ;;  %v15190_v53 = vcombine.high %v11759_v30, %v11763_v13 }
 0x9ec   : > { %13333 = vmatpush2.bf16.msra.mxu1 %v15345_v55  ;;  %v15315_v55 = vcombine.low %v11886_v27, %v11890_v42  ;;  %v11978_v27 = vld [vmem:[#allocation3 + $0x17e8] sm:$0xff]  ;;  %v11847_v42 = vld [vmem:[#allocation3 + $0x13d0] sm:$0xff] }
 0x9ed   : > { %13374 = vmatpush2.bf16.msra.mxu0 %v15219_v50  ;;  %13384 = vmatprep.subr.bf16.mxu1 %v15340_v56  ;;  %v15189_v50 = vcombine.low %v11759_v30, %v11763_v13  ;;  %v15308_v56 = vcombine.high %v11878_v0, %v11882_v58  ;;  %v11958_v0 = vld [vmem:[#allocation3 + $0x1748] sm:$0xff] }
 0x9ee   : > { %13425 = vmatprep.subr.bf16.mxu0 %v15214_v57  ;;  %v15182_v57 = vcombine.high %v11751_v60, %v11755_v52  ;;  %v11962_v58 = vld [vmem:[#allocation3 + $0x1768] sm:$0xff] }
 0x9ef   : > { %v11447_v24 = vpop.f32.mrf.mxu1  ;;  %13335 = vmatmul.mubr.bf16.vlgmr.msra.gmra.mxu1 %v18150_v15 }
 0x9f0   : > { %v11448_v35 = vadd.f32 %v11447_v24, %v18254_v48  ;;  %v18272_v9 = vpop.f32.mrf.mxu0  ;;  %13376 = vmatmul.mubr.bf16.vlgmr.msra.gmra.mxu0 %v18134_v21  ;;  %13385 = vmatpush1.bf16.msra.mxu1 %v15339_v61  ;;  %v11743_v61 = vld [vmem:[#allocation3 + $0x1090] sm:$0xff] }
 0x9f1   : > { %13416 = vmatprep.mubr.bf16.mxu1 %v18148_v26  ;;  %v11449_v44 = vpop.f32.mrf.mxu1  ;;  %13426 = vmatpush1.bf16.msra.mxu0 %v15213_v18  ;;  %v15181_v18 = vcombine.low %v11751_v60, %v11755_v52  ;;  %v11735_v24 = vld [vmem:[#allocation3 + $0x1050] sm:$0xff] }
 0x9f2   : > { %v11661_v43 = vmul.f32 %v11630_v20, %v11448_v35  ;;  %v11450_v48 = vadd.f32 %v11449_v44, %v18264_v6  ;;  %13457 = vmatprep.mubr.bf16.mxu0 %v18132_v41  ;;  %v18282_v33 = vpop.f32.mrf.mxu0  ;;  %13386 = vmatprep.subr.bf16.mxu1 %v15332_v40  ;;  %v15197_v6 = vcombine.low %v11767_v5, %v11771_v32  ;;  %v11727_v44 = vld [vmem:[#allocation3 + $0x1010] sm:$0xff] }
 0x9f3   : > { %v11451_v14 = vpop.f32.mrf.mxu1  ;;  %13427 = vmatprep.subr.bf16.mxu0 %v15206_v29  ;;  %v15300_v20 = vcombine.high %v11870_v16, %v11874_v11  ;;  %v15174_v40 = vcombine.high %v11743_v61, %v11747_v34  ;;  %v15299_v29 = vcombine.low %v11870_v16, %v11874_v11  ;;  %v15173_v5 = vcombine.low %v11743_v61, %v11747_v34  ;;  %v11831_v60 = vld [vmem:[#allocation3 + $0x1350] sm:$0xff]  ;;  %v11950_v16 = vld [vmem:[#allocation3 + $0x1708] sm:$0xff] }
 0x9f4   : > { %v11710_v23 = vadd.f32 %v11679_v28, %v11661_v43  ;;  %v11662_v59 = vmul.f32 %v11634_v49, %v11450_v48  ;;  %v11492_v62 = vpop.f32.mrf.mxu0  ;;  %13387 = vmatpush1.bf16.msra.mxu1 %v15331_v38  ;;  %v11739_v28 = vld [vmem:[#allocation3 + $0x1070] sm:$0xff]  ;;  %v15292_v32 = vcombine.high %v11862_v3, %v11866_v4  ;;  %v11854_v49 = vld [vmem:[#allocation3 + $0x1408] sm:$0xff] }
 0x9f5   : > { %v11452_v45 = vpop.f32.mrf.mxu1  ;;  %13428 = vmatpush1.bf16.msra.mxu0 %v15205_v2  ;;  %13388 = vmatprep.subr.bf16.mxu1 %v15324_v63  ;;  %v15166_v35 = vcombine.high %v11735_v24, %v11739_v28  ;;  %v11858_v38 = vld [vmem:[#allocation3 + $0x1428] sm:$0xff]  ;;  %v15291_v2 = vcombine.low %v11862_v3, %v11866_v4  ;;  %v15165_v63 = vcombine.low %v11735_v24, %v11739_v28  ;;  %v11851_v14 = vld [vmem:[#allocation3 + $0x13f0] sm:$0xff] }
 0x9f6   : > { %11718 = vst [vmem:[#allocation16 + $0x50] sm:$0xff] %v11710_v23  ;;  %v11711_v7 = vadd.f32 %v11683_v39, %v11662_v59  ;;  %v11493_v25 = vpop.f32.mrf.mxu0  ;;  %13429 = vmatprep.subr.bf16.mxu0 %v15198_v51  ;;  %v11731_v39 = vld [vmem:[#allocation3 + $0x1030] sm:$0xff]  ;;  %v15284_v43 = vcombine.high %v11854_v49, %v11858_v38  ;;  %v11974_v51 = vld [vmem:[#allocation3 + $0x17c8] sm:$0xff]  ;;  %v15283_v30 = vcombine.low %v11854_v49, %v11858_v38 }
 0x9f7   : > { %v15158_v48 = vcombine.high %v11727_v44, %v11731_v39  ;;  %v15157_v13 = vcombine.low %v11727_v44, %v11731_v39  ;;  %v15404_v23 = vcombine.high %v11974_v51, %v11978_v27  ;;  %v15278_v59 = vcombine.high %v11847_v42, %v11851_v14  ;;  %v11966_v62 = vld [vmem:[#allocation3 + $0x1788] sm:$0xff]  ;;  %v11839_v45 = vld [vmem:[#allocation3 + $0x1390] sm:$0xff] }
 0x9f8   : > { %11719 = vst [vmem:[#allocation16 + $0x58] sm:$0xff] %v11711_v7  ;;  %13389 = vmatpush1.bf16.msra.mxu1 %v15323_v1  ;;  %v11970_v1 = vld [vmem:[#allocation3 + $0x17a8] sm:$0xff]  ;;  %v15277_v7 = vcombine.low %v11847_v42, %v11851_v14  ;;  %v11835_v52 = vld [vmem:[#allocation3 + $0x1370] sm:$0xff] }
 0x9f9   : > { %13430 = vmatpush1.bf16.msra.mxu0 %v15197_v6  ;;  %13390 = vmatprep.subr.bf16.mxu1 %v15316_v47  ;;  %v11843_v6 = vld [vmem:[#allocation3 + $0x13b0] sm:$0xff]  ;;  %v15403_v47 = vcombine.low %v11974_v51, %v11978_v27  ;;  %v15396_v25 = vcombine.high %v11966_v62, %v11970_v1  ;;  %v11954_v11 = vld [vmem:[#allocation3 + $0x1728] sm:$0xff] }
 0x9fa   : > { %13431 = vmatprep.subr.bf16.mxu0 %v15190_v53  ;;  %v15270_v53 = vcombine.high %v11839_v45, %v11843_v6  ;;  %v11823_v61 = vld [vmem:[#allocation3 + $0x1310] sm:$0xff]  ;;  %v11942_v3 = vld [vmem:[#allocation3 + $0x16c8] sm:$0xff] }
 0x9fb   : > { %v11827_v34 = vld [vmem:[#allocation3 + $0x1330] sm:$0xff]  ;;  %v11946_v4 = vld [vmem:[#allocation3 + $0x16e8] sm:$0xff] }
 0x9fc   : > { %13391 = vmatpush1.bf16.msra.mxu1 %v15315_v55  ;;  %v15395_v55 = vcombine.low %v11966_v62, %v11970_v1  ;;  %v11815_v24 = vld [vmem:[#allocation3 + $0x12d0] sm:$0xff]  ;;  %v11934_v49 = vld [vmem:[#allocation3 + $0x1688] sm:$0xff] }
 0x9fd   : > { %13432 = vmatpush1.bf16.msra.mxu0 %v15189_v50  ;;  %13392 = vmatprep.subr.bf16.mxu1 %v15308_v56  ;;  %v15269_v50 = vcombine.low %v11839_v45, %v11843_v6  ;;  %v15388_v56 = vcombine.high %v11958_v0, %v11962_v58  ;;  %v11819_v28 = vld [vmem:[#allocation3 + $0x12f0] sm:$0xff]  ;;  %v11938_v38 = vld [vmem:[#allocation3 + $0x16a8] sm:$0xff] }
 0x9fe   : > { %13433 = vmatprep.subr.bf16.mxu0 %v15182_v57  ;;  %v15262_v57 = vcombine.high %v11831_v60, %v11835_v52  ;;  %v11807_v44 = vld [vmem:[#allocation3 + $0x1290] sm:$0xff]  ;;  %v11926_v51 = vld [vmem:[#allocation3 + $0x1648] sm:$0xff] }
 0x9ff   : > { %v11811_v39 = vld [vmem:[#allocation3 + $0x12b0] sm:$0xff]  ;;  %v11930_v27 = vld [vmem:[#allocation3 + $0x1668] sm:$0xff] }
 0xa00   : > { %13393 = vmatpush1.bf16.msra.mxu1 %v15307_v37  ;;  %v15387_v37 = vcombine.low %v11958_v0, %v11962_v58  ;;  %v11799_v42 = vld [vmem:[#allocation3 + $0x1250] sm:$0xff]  ;;  %v11918_v62 = vld [vmem:[#allocation3 + $0x1608] sm:$0xff] }
 0xa01   : > { %13434 = vmatpush1.bf16.msra.mxu0 %v15181_v18  ;;  %13394 = vmatprep.subr.bf16.mxu1 %v15300_v20  ;;  %v15261_v18 = vcombine.low %v11831_v60, %v11835_v52  ;;  %v15380_v20 = vcombine.high %v11950_v16, %v11954_v11  ;;  %v11803_v14 = vld [vmem:[#allocation3 + $0x1270] sm:$0xff]  ;;  %v11922_v1 = vld [vmem:[#allocation3 + $0x1628] sm:$0xff]  ;;  %v11784_v60 = vld [vmem:[#allocation3 + $0x11d8] sm:$0xff] }
 0xa02   : > { %13435 = vmatprep.subr.bf16.mxu0 %v15174_v40  ;;  %v15254_v40 = vcombine.high %v11823_v61, %v11827_v34  ;;  %v11791_v45 = vld [vmem:[#allocation3 + $0x1210] sm:$0xff]  ;;  %v11788_v52 = vld [vmem:[#allocation3 + $0x11f8] sm:$0xff] }
 0xa03   : > { %v11795_v6 = vld [vmem:[#allocation3 + $0x1230] sm:$0xff] }
 0xa04   : > { %13395 = vmatpush1.bf16.msra.mxu1 %v15299_v29  ;;  %v15379_v29 = vcombine.low %v11950_v16, %v11954_v11  ;;  %v11911_v0 = vld [vmem:[#allocation3 + $0x15d0] sm:$0xff] }
 0xa05   : > { %13436 = vmatpush1.bf16.msra.mxu0 %v15173_v5  ;;  %13396 = vmatprep.subr.bf16.mxu1 %v15292_v32  ;;  %v15253_v5 = vcombine.low %v11823_v61, %v11827_v34  ;;  %v15372_v32 = vcombine.high %v11942_v3, %v11946_v4  ;;  %v11915_v58 = vld [vmem:[#allocation3 + $0x15f0] sm:$0xff]  ;;  %v11776_v34 = vld [vmem:[#allocation3 + $0x1198] sm:$0xff] }
 0xa06   : > { %13437 = vmatprep.subr.bf16.mxu0 %v15166_v35  ;;  %v15246_v35 = vcombine.high %v11815_v24, %v11819_v28  ;;  %v11903_v16 = vld [vmem:[#allocation3 + $0x1590] sm:$0xff]  ;;  %v15341_v61 = vcombine.low %v11911_v0, %v11915_v58 }
 0xa07   : > { %v11907_v11 = vld [vmem:[#allocation3 + $0x15b0] sm:$0xff] }
 0xa08   : > { %13397 = vmatpush1.bf16.msra.mxu1 %v15291_v2  ;;  %v15371_v2 = vcombine.low %v11942_v3, %v11946_v4  ;;  %v11895_v3 = vld [vmem:[#allocation3 + $0x1550] sm:$0xff] }
 0xa09   : > { %13438 = vmatpush1.bf16.msra.mxu0 %v15165_v63  ;;  %13398 = vmatprep.subr.bf16.mxu1 %v15284_v43  ;;  %v15245_v63 = vcombine.low %v11815_v24, %v11819_v28  ;;  %v15364_v43 = vcombine.high %v11934_v49, %v11938_v38  ;;  %v11899_v4 = vld [vmem:[#allocation3 + $0x1570] sm:$0xff]  ;;  %v11687_v28 = vrot.slane %v18246_v54, %v17997_v19 }
 0xa0a   : > { %13439 = vmatprep.subr.bf16.mxu0 %v15158_v48  ;;  %v15238_v48 = vcombine.high %v11807_v44, %v11811_v39 }
 0xa0c   : > { %13399 = vmatpush1.bf16.msra.mxu1 %v15283_v30  ;;  %v15363_v30 = vcombine.low %v11934_v49, %v11938_v38  ;;  %v11642_v38 = vrot.slane %v18244_v46, %v17991_v17 }
 0xa0d   : > { %13440 = vmatpush1.bf16.msra.mxu0 %v15157_v13  ;;  %13400 = vmatprep.subr.bf16.mxu1 %v15404_v23  ;;  %v15237_v13 = vcombine.low %v11807_v44, %v11811_v39  ;;  %v15356_v23 = vcombine.high %v11926_v51, %v11930_v27  ;;  %v15333_v44 = vcombine.low %v11903_v16, %v11907_v11 }
 0xa0e   : > { %13441 = vmatprep.subr.bf16.mxu0 %v15278_v59  ;;  %v15230_v59 = vcombine.high %v11799_v42, %v11803_v14 }
 0xa10   : > { %13401 = vmatpush2.bf16.msra.mxu1 %v15403_v47  ;;  %v15355_v47 = vcombine.low %v11926_v51, %v11930_v27 }
 0xa11   : > { %13442 = vmatpush2.bf16.msra.mxu0 %v15277_v7  ;;  %13402 = vmatprep.subr.bf16.mxu1 %v15396_v25  ;;  %v15229_v7 = vcombine.low %v11799_v42, %v11803_v14  ;;  %v15348_v25 = vcombine.high %v11918_v62, %v11922_v1  ;;  %v11891_v42 = vld [vmem:[#allocation3 + $0x1530] sm:$0xff] }
 0xa12   : > { %13443 = vmatprep.subr.bf16.mxu0 %v15270_v53  ;;  %v15222_v53 = vcombine.high %v11791_v45, %v11795_v6 }
 0xa14   : > { %13403 = vmatpush2.bf16.msra.mxu1 %v15395_v55  ;;  %v15347_v55 = vcombine.low %v11918_v62, %v11922_v1  ;;  %v15325_v62 = vcombine.low %v11895_v3, %v11899_v4 }
 0xa15   : > { %13444 = vmatpush2.bf16.msra.mxu0 %v15269_v50  ;;  %13404 = vmatprep.subr.bf16.mxu1 %v15388_v56  ;;  %v15221_v50 = vcombine.low %v11791_v45, %v11795_v6  ;;  %v15342_v56 = vcombine.high %v11911_v0, %v11915_v58  ;;  %v11756_v0 = vld [vmem:[#allocation3 + $0x10f8] sm:$0xff] }
 0xa16   : > { %13445 = vmatprep.subr.bf16.mxu0 %v15262_v57  ;;  %v15216_v57 = vcombine.high %v11784_v60, %v11788_v52 }
 0xa18   : > { %13405 = vmatpush2.bf16.msra.mxu1 %v15387_v37  ;;  %v11780_v37 = vld [vmem:[#allocation3 + $0x11b8] sm:$0xff] }
 0xa19   : > { %13446 = vmatpush2.bf16.msra.mxu0 %v15261_v18  ;;  %13406 = vmatprep.subr.bf16.mxu1 %v15380_v20  ;;  %v15215_v18 = vcombine.low %v11784_v60, %v11788_v52  ;;  %v11638_v20 = vrot.slane %v18244_v46, %v17997_v19  ;;  %v11887_v46 = vld [vmem:[#allocation3 + $0x1510] sm:$0xff] }
 0xa1a   : > { %13447 = vmatprep.subr.bf16.mxu0 %v15254_v40  ;;  %v15334_v40 = vcombine.high %v11903_v16, %v11907_v11  ;;  %v15317_v58 = vcombine.low %v11887_v46, %v11891_v42  ;;  %v11748_v16 = vld [vmem:[#allocation3 + $0x10b8] sm:$0xff] }
 0xa1c   : > { %13407 = vmatpush2.bf16.msra.mxu1 %v15379_v29  ;;  %v15208_v29 = vcombine.high %v11776_v34, %v11780_v37 }
 0xa1d   : > { %13448 = vmatpush2.bf16.msra.mxu0 %v15253_v5  ;;  %13408 = vmatprep.subr.bf16.mxu1 %v15372_v32  ;;  %v11768_v5 = vld [vmem:[#allocation3 + $0x1158] sm:$0xff] }
 0xa1e   : > { %13449 = vmatprep.subr.bf16.mxu0 %v15246_v35  ;;  %v11772_v32 = vld [vmem:[#allocation3 + $0x1178] sm:$0xff] }
 0xa1f   : > { %v15200_v27 = vcombine.high %v11768_v5, %v11772_v32 }
 0xa20   : > { %13409 = vmatpush2.bf16.msra.mxu1 %v15371_v2  ;;  %v11691_v2 = vrot.slane %v18246_v54, %v17991_v17 }
 0xa21   : > { %13450 = vmatpush2.bf16.msra.mxu0 %v15245_v63  ;;  %13410 = vmatprep.subr.bf16.mxu1 %v15364_v43  ;;  %v15207_v63 = vcombine.low %v11776_v34, %v11780_v37  ;;  %v15326_v43 = vcombine.high %v11895_v3, %v11899_v4  ;;  %v11740_v3 = vld [vmem:[#allocation3 + $0x1078] sm:$0xff] }
 0xa22   : > { %13451 = vmatprep.subr.bf16.mxu0 %v15238_v48 }
 0xa24   : > { %13411 = vmatpush2.bf16.msra.mxu1 %v15363_v30  ;;  %v11760_v30 = vld [vmem:[#allocation3 + $0x1118] sm:$0xff] }
 0xa25   : > { %13452 = vmatpush2.bf16.msra.mxu0 %v15237_v13  ;;  %13412 = vmatprep.subr.bf16.mxu1 %v15356_v23  ;;  %v11764_v13 = vld [vmem:[#allocation3 + $0x1138] sm:$0xff] }
 0xa26   : > { %13453 = vmatprep.subr.bf16.mxu0 %v15230_v59  ;;  %v15191_v60 = vcombine.low %v11760_v30, %v11764_v13 }
 0xa28   : > { %13413 = vmatpush2.bf16.msra.mxu1 %v15355_v47  ;;  %v15192_v47 = vcombine.high %v11760_v30, %v11764_v13  ;;  %v11967_v13 = vld [vmem:[#allocation3 + $0x1790] sm:$0xff] }
 0xa29   : > { %13454 = vmatpush2.bf16.msra.mxu0 %v15229_v7  ;;  %13414 = vmatprep.subr.bf16.mxu1 %v15348_v25  ;;  %v11879_v7 = vld [vmem:[#allocation3 + $0x14d0] sm:$0xff] }
 0xa2a   : > { %13455 = vmatprep.subr.bf16.mxu0 %v15222_v53  ;;  %v11883_v25 = vld [vmem:[#allocation3 + $0x14f0] sm:$0xff]  ;;  %v11752_v53 = vld [vmem:[#allocation3 + $0x10d8] sm:$0xff] }
 0xa2b   : > { %v15310_v52 = vcombine.high %v11879_v7, %v11883_v25  ;;  %v15309_v11 = vcombine.low %v11879_v7, %v11883_v25  ;;  %v11836_v7 = vld [vmem:[#allocation3 + $0x1378] sm:$0xff] }
 0xa2c   : > { %13415 = vmatpush2.bf16.msra.mxu1 %v15347_v55  ;;  %v15184_v55 = vcombine.high %v11752_v53, %v11756_v0 }
 0xa2d   : > { %13456 = vmatpush2.bf16.msra.mxu0 %v15221_v50  ;;  %13466 = vmatprep.subr.bf16.mxu1 %v15342_v56  ;;  %v11871_v50 = vld [vmem:[#allocation3 + $0x1490] sm:$0xff] }
 0xa2e   : > { %13507 = vmatprep.subr.bf16.mxu0 %v15216_v57  ;;  %v11875_v56 = vld [vmem:[#allocation3 + $0x14b0] sm:$0xff]  ;;  %v11744_v57 = vld [vmem:[#allocation3 + $0x1098] sm:$0xff] }
 0xa2f   : > { %v11529_v24 = vpop.f32.mrf.mxu1  ;;  %13417 = vmatmul.mubr.bf16.vlgmr.msra.gmra.mxu1 %v18150_v15  ;;  %v15302_v34 = vcombine.high %v11871_v50, %v11875_v56  ;;  %v15176_v37 = vcombine.high %v11744_v57, %v11748_v16  ;;  %v15301_v4 = vcombine.low %v11871_v50, %v11875_v56  ;;  %v11828_v50 = vld [vmem:[#allocation3 + $0x1338] sm:$0xff] }
 0xa30   : > { %v11530_v35 = vadd.f32 %v11529_v24, %v18272_v9  ;;  %v18290_v49 = vpop.f32.mrf.mxu0  ;;  %13458 = vmatmul.mubr.bf16.vlgmr.msra.gmra.mxu0 %v18134_v21  ;;  %13467 = vmatpush1.bf16.msra.mxu1 %v15341_v61  ;;  %v15183_v61 = vcombine.low %v11752_v53, %v11756_v0  ;;  %v15175_v24 = vcombine.low %v11744_v57, %v11748_v16 }
 0xa31   : > { %13498 = vmatprep.mubr.bf16.mxu1 %v18148_v26  ;;  %v11531_v39 = vpop.f32.mrf.mxu1  ;;  %13508 = vmatpush1.bf16.msra.mxu0 %v15215_v18  ;;  %v11863_v18 = vld [vmem:[#allocation3 + $0x1450] sm:$0xff] }
 0xa32   : > { %v11663_v48 = vmul.f32 %v11638_v20, %v11530_v35  ;;  %v11532_v9 = vadd.f32 %v11531_v39, %v18282_v33  ;;  %13539 = vmatprep.mubr.bf16.mxu0 %v18132_v41  ;;  %v18300_v51 = vpop.f32.mrf.mxu0  ;;  %13468 = vmatprep.subr.bf16.mxu1 %v15334_v40  ;;  %v15199_v33 = vcombine.low %v11768_v5, %v11772_v32  ;;  %v11867_v20 = vld [vmem:[#allocation3 + $0x1470] sm:$0xff]  ;;  %v11736_v40 = vld [vmem:[#allocation3 + $0x1058] sm:$0xff] }
 0xa33   : > { %v11533_v14 = vpop.f32.mrf.mxu1  ;;  %13509 = vmatprep.subr.bf16.mxu0 %v15208_v29  ;;  %v15318_v41 = vcombine.high %v11887_v46, %v11891_v42  ;;  %v15168_v29 = vcombine.high %v11736_v40, %v11740_v3  ;;  %v11855_v5 = vld [vmem:[#allocation3 + $0x1410] sm:$0xff]  ;;  %v11728_v35 = vld [vmem:[#allocation3 + $0x1018] sm:$0xff]  ;;  %v15167_v39 = vcombine.low %v11736_v40, %v11740_v3 }
 0xa34   : > { %v11712_v23 = vadd.f32 %v11687_v28, %v11663_v48  ;;  %v11664_v54 = vmul.f32 %v11642_v38, %v11532_v9  ;;  %v11574_v59 = vpop.f32.mrf.mxu0  ;;  %13469 = vmatpush1.bf16.msra.mxu1 %v15333_v44  ;;  %v15294_v28 = vcombine.high %v11863_v18, %v11867_v20  ;;  %v11859_v32 = vld [vmem:[#allocation3 + $0x1430] sm:$0xff]  ;;  %v11732_v38 = vld [vmem:[#allocation3 + $0x1038] sm:$0xff]  ;;  %v15293_v44 = vcombine.low %v11863_v18, %v11867_v20 }
 0xa35   : > { %v11534_v1 = vpop.f32.mrf.mxu1  ;;  %13510 = vmatpush1.bf16.msra.mxu0 %v15207_v63  ;;  %13470 = vmatprep.subr.bf16.mxu1 %v15326_v43  ;;  %v15160_v63 = vcombine.high %v11728_v35, %v11732_v38  ;;  %v11975_v43 = vld [vmem:[#allocation3 + $0x17d0] sm:$0xff]  ;;  %v11848_v9 = vld [vmem:[#allocation3 + $0x13d8] sm:$0xff]  ;;  %v15285_v46 = vcombine.low %v11855_v5, %v11859_v32  ;;  %v15159_v42 = vcombine.low %v11728_v35, %v11732_v38 }
 0xa36   : > { %11720 = vst [vmem:[#allocation16 + $0x60] sm:$0xff] %v11712_v23  ;;  %v11713_v45 = vadd.f32 %v11691_v2, %v11664_v54  ;;  %v11575_v6 = vpop.f32.mrf.mxu0  ;;  %13511 = vmatprep.subr.bf16.mxu0 %v15200_v27  ;;  %v15286_v2 = vcombine.high %v11855_v5, %v11859_v32  ;;  %v11979_v48 = vld [vmem:[#allocation3 + $0x17f0] sm:$0xff]  ;;  %v11852_v27 = vld [vmem:[#allocation3 + $0x13f8] sm:$0xff] }
 0xa37   : > { %v15406_v14 = vcombine.high %v11975_v43, %v11979_v48  ;;  %v15280_v30 = vcombine.high %v11848_v9, %v11852_v27  ;;  %v11971_v23 = vld [vmem:[#allocation3 + $0x17b0] sm:$0xff]  ;;  %v11840_v54 = vld [vmem:[#allocation3 + $0x1398] sm:$0xff]  ;;  %v15279_v1 = vcombine.low %v11848_v9, %v11852_v27 }
 0xa38   : > { %11721 = vst [vmem:[#allocation16 + $0x68] sm:$0xff] %v11713_v45  ;;  %13471 = vmatpush1.bf16.msra.mxu1 %v15325_v62  ;;  %v11844_v59 = vld [vmem:[#allocation3 + $0x13b8] sm:$0xff]  ;;  %v15405_v62 = vcombine.low %v11975_v43, %v11979_v48  ;;  %v11959_v45 = vld [vmem:[#allocation3 + $0x1750] sm:$0xff]  ;;  %v15397_v25 = vcombine.low %v11967_v13, %v11971_v23 }
 0xa39   : > { %13512 = vmatpush1.bf16.msra.mxu0 %v15199_v33  ;;  %13472 = vmatprep.subr.bf16.mxu1 %v15318_v41  ;;  %v15398_v33 = vcombine.high %v11967_v13, %v11971_v23  ;;  %v15272_v41 = vcombine.high %v11840_v54, %v11844_v59  ;;  %v11963_v6 = vld [vmem:[#allocation3 + $0x1770] sm:$0xff]  ;;  %v15271_v53 = vcombine.low %v11840_v54, %v11844_v59  ;;  %v11820_v18 = vld [vmem:[#allocation3 + $0x12f8] sm:$0xff] }
 0xa3a   : > { %13513 = vmatprep.subr.bf16.mxu0 %v15192_v47  ;;  %v11832_v47 = vld [vmem:[#allocation3 + $0x1358] sm:$0xff]  ;;  %v15390_v0 = vcombine.high %v11959_v45, %v11963_v6  ;;  %v15389_v56 = vcombine.low %v11959_v45, %v11963_v6 }
 0xa3b   : > { %v15263_v57 = vcombine.low %v11832_v47, %v11836_v7  ;;  %v11812_v5 = vld [vmem:[#allocation3 + $0x12b8] sm:$0xff] }
 0xa3c   : > { %13473 = vmatpush1.bf16.msra.mxu1 %v15317_v58  ;;  %v15264_v58 = vcombine.high %v11832_v47, %v11836_v7  ;;  %v11804_v43 = vld [vmem:[#allocation3 + $0x1278] sm:$0xff] }
 0xa3d   : > { %13514 = vmatpush1.bf16.msra.mxu0 %v15191_v60  ;;  %13474 = vmatprep.subr.bf16.mxu1 %v15310_v52  ;;  %v11951_v60 = vld [vmem:[#allocation3 + $0x1710] sm:$0xff]  ;;  %v11796_v13 = vld [vmem:[#allocation3 + $0x1238] sm:$0xff] }
 0xa3e   : > { %13515 = vmatprep.subr.bf16.mxu0 %v15184_v55  ;;  %v11955_v52 = vld [vmem:[#allocation3 + $0x1730] sm:$0xff]  ;;  %v11824_v55 = vld [vmem:[#allocation3 + $0x1318] sm:$0xff] }
 0xa3f   : > { %v15382_v16 = vcombine.high %v11951_v60, %v11955_v52  ;;  %v15381_v20 = vcombine.low %v11951_v60, %v11955_v52  ;;  %v15255_v40 = vcombine.low %v11824_v55, %v11828_v50  ;;  %v11904_v47 = vld [vmem:[#allocation3 + $0x1598] sm:$0xff] }
 0xa40   : > { %13475 = vmatpush1.bf16.msra.mxu1 %v15309_v11  ;;  %v15256_v11 = vcombine.high %v11824_v55, %v11828_v50  ;;  %v11908_v7 = vld [vmem:[#allocation3 + $0x15b8] sm:$0xff] }
 0xa41   : > { %13516 = vmatpush1.bf16.msra.mxu0 %v15183_v61  ;;  %13476 = vmatprep.subr.bf16.mxu1 %v15302_v34  ;;  %v11943_v61 = vld [vmem:[#allocation3 + $0x16d0] sm:$0xff]  ;;  %v11896_v60 = vld [vmem:[#allocation3 + $0x1558] sm:$0xff] }
 0xa42   : > { %13517 = vmatprep.subr.bf16.mxu0 %v15176_v37  ;;  %v11947_v34 = vld [vmem:[#allocation3 + $0x16f0] sm:$0xff]  ;;  %v11816_v37 = vld [vmem:[#allocation3 + $0x12d8] sm:$0xff] }
 0xa43   : > { %v15374_v3 = vcombine.high %v11943_v61, %v11947_v34  ;;  %v15373_v32 = vcombine.low %v11943_v61, %v11947_v34  ;;  %v15247_v35 = vcombine.low %v11816_v37, %v11820_v18  ;;  %v11900_v52 = vld [vmem:[#allocation3 + $0x1578] sm:$0xff]  ;;  %v15335_v61 = vcombine.low %v11904_v47, %v11908_v7 }
 0xa44   : > { %13477 = vmatpush1.bf16.msra.mxu1 %v15301_v4  ;;  %v15248_v4 = vcombine.high %v11816_v37, %v11820_v18  ;;  %v16299_v50 = vld [vmem:[#allocation10 + $0x1c] sm:$0xff]  ;;  %v15328_v37 = vcombine.high %v11896_v60, %v11900_v52 }
 0xa45   : > { %13518 = vmatpush1.bf16.msra.mxu0 %v15175_v24  ;;  %13478 = vmatprep.subr.bf16.mxu1 %v15294_v28  ;;  %v11935_v24 = vld [vmem:[#allocation3 + $0x1690] sm:$0xff] }
 0xa46   : > { %13519 = vmatprep.subr.bf16.mxu0 %v15168_v29  ;;  %v11939_v28 = vld [vmem:[#allocation3 + $0x16b0] sm:$0xff]  ;;  %v11808_v29 = vld [vmem:[#allocation3 + $0x1298] sm:$0xff] }
 0xa47   : > { %v15366_v38 = vcombine.high %v11935_v24, %v11939_v28  ;;  %v15365_v48 = vcombine.low %v11935_v24, %v11939_v28  ;;  %v15239_v9 = vcombine.low %v11808_v29, %v11812_v5 }
 0xa48   : > { %13479 = vmatpush1.bf16.msra.mxu1 %v15293_v44  ;;  %v15240_v44 = vcombine.high %v11808_v29, %v11812_v5  ;;  %v15327_v5 = vcombine.low %v11896_v60, %v11900_v52  ;;  %v11956_v60 = vld [vmem:[#allocation3 + $0x1738] sm:$0xff] }
 0xa49   : > { %13520 = vmatpush1.bf16.msra.mxu0 %v15167_v39  ;;  %13480 = vmatprep.subr.bf16.mxu1 %v15286_v2  ;;  %v11927_v39 = vld [vmem:[#allocation3 + $0x1650] sm:$0xff] }
 0xa4a   : > { %13521 = vmatprep.subr.bf16.mxu0 %v15160_v63  ;;  %v11931_v2 = vld [vmem:[#allocation3 + $0x1670] sm:$0xff]  ;;  %v11800_v63 = vld [vmem:[#allocation3 + $0x1258] sm:$0xff] }
 0xa4b   : > { %v15358_v27 = vcombine.high %v11927_v39, %v11931_v2  ;;  %v15357_v23 = vcombine.low %v11927_v39, %v11931_v2  ;;  %v15231_v54 = vcombine.low %v11800_v63, %v11804_v43 }
 0xa4c   : > { %13481 = vmatpush1.bf16.msra.mxu1 %v15285_v46  ;;  %v15232_v46 = vcombine.high %v11800_v63, %v11804_v43  ;;  %v11872_v63 = vld [vmem:[#allocation3 + $0x1498] sm:$0xff] }
 0xa4d   : > { %13522 = vmatpush1.bf16.msra.mxu0 %v15159_v42  ;;  %13482 = vmatprep.subr.bf16.mxu1 %v15406_v14  ;;  %v11919_v42 = vld [vmem:[#allocation3 + $0x1610] sm:$0xff]  ;;  %v11876_v43 = vld [vmem:[#allocation3 + $0x14b8] sm:$0xff] }
 0xa4e   : > { %13523 = vmatprep.subr.bf16.mxu0 %v15280_v30  ;;  %v11923_v14 = vld [vmem:[#allocation3 + $0x1630] sm:$0xff]  ;;  %v11792_v30 = vld [vmem:[#allocation3 + $0x1218] sm:$0xff] }
 0xa4f   : > { %v15350_v59 = vcombine.high %v11919_v42, %v11923_v14  ;;  %v15223_v45 = vcombine.low %v11792_v30, %v11796_v13 }
 0xa50   : > { %13483 = vmatpush2.bf16.msra.mxu1 %v15405_v62  ;;  %v15224_v62 = vcombine.high %v11792_v30, %v11796_v13  ;;  %v11856_v30 = vld [vmem:[#allocation3 + $0x1418] sm:$0xff] }
 0xa51   : > { %13524 = vmatpush2.bf16.msra.mxu0 %v15279_v1  ;;  %13484 = vmatprep.subr.bf16.mxu1 %v15398_v33  ;;  %v11912_v1 = vld [vmem:[#allocation3 + $0x15d8] sm:$0xff] }
 0xa52   : > { %13525 = vmatprep.subr.bf16.mxu0 %v15272_v41  ;;  %v11916_v33 = vld [vmem:[#allocation3 + $0x15f8] sm:$0xff]  ;;  %v15349_v41 = vcombine.low %v11919_v42, %v11923_v14  ;;  %v15303_v42 = vcombine.low %v11872_v63, %v11876_v43 }
 0xa53   : > { %v15344_v6 = vcombine.high %v11912_v1, %v11916_v33  ;;  %v11860_v13 = vld [vmem:[#allocation3 + $0x1438] sm:$0xff] }
 0xa54   : > { %13485 = vmatpush2.bf16.msra.mxu1 %v15397_v25  ;;  %v15343_v25 = vcombine.low %v11912_v1, %v11916_v33  ;;  %v15287_v1 = vcombine.low %v11856_v30, %v11860_v13 }
 0xa55   : > { %13526 = vmatpush2.bf16.msra.mxu0 %v15271_v53  ;;  %13486 = vmatprep.subr.bf16.mxu1 %v15390_v0  ;;  %v15336_v53 = vcombine.high %v11904_v47, %v11908_v7  ;;  %v16298_v0 = vld [vmem:[#allocation10 + $0x3c] sm:$0xff] }
 0xa56   : > { %13527 = vmatprep.subr.bf16.mxu0 %v15264_v58  ;;  %v11646_v58 = vrot.slane %v16298_v0, %v18000_v22  ;;  %v11960_v7 = vld [vmem:[#allocation3 + $0x1758] sm:$0xff] }
 0xa58   : > { %13487 = vmatpush2.bf16.msra.mxu1 %v15389_v56  ;;  %v11695_v56 = vrot.slane %v16299_v50, %v18000_v22 }
 0xa59   : > { %13528 = vmatpush2.bf16.msra.mxu0 %v15263_v57  ;;  %13488 = vmatprep.subr.bf16.mxu1 %v15382_v16 }
 0xa5a   : > { %13529 = vmatprep.subr.bf16.mxu0 %v15256_v11  ;;  %v11650_v11 = vrot.slane %v16298_v0, %v17994_v36 }
 0xa5c   : > { %13489 = vmatpush2.bf16.msra.mxu1 %v15381_v20 }
 0xa5d   : > { %13530 = vmatpush2.bf16.msra.mxu0 %v15255_v40  ;;  %13490 = vmatprep.subr.bf16.mxu1 %v15374_v3  ;;  %v11699_v40 = vrot.slane %v16299_v50, %v17994_v36  ;;  %v11944_v50 = vld [vmem:[#allocation3 + $0x16d8] sm:$0xff] }
 0xa5e   : > { %13531 = vmatprep.subr.bf16.mxu0 %v15248_v4  ;;  %v11892_v4 = vld [vmem:[#allocation3 + $0x1538] sm:$0xff] }
 0xa60   : > { %13491 = vmatpush2.bf16.msra.mxu1 %v15373_v32 }
 0xa61   : > { %13532 = vmatpush2.bf16.msra.mxu0 %v15247_v35  ;;  %13492 = vmatprep.subr.bf16.mxu1 %v15366_v38 }
 0xa62   : > { %13533 = vmatprep.subr.bf16.mxu0 %v15240_v44  ;;  %v11880_v44 = vld [vmem:[#allocation3 + $0x14d8] sm:$0xff] }
 0xa64   : > { %13493 = vmatpush2.bf16.msra.mxu1 %v15365_v48 }
 0xa65   : > { %13534 = vmatpush2.bf16.msra.mxu0 %v15239_v9  ;;  %13494 = vmatprep.subr.bf16.mxu1 %v15358_v27  ;;  %v15304_v9 = vcombine.high %v11872_v63, %v11876_v43  ;;  %v11864_v27 = vld [vmem:[#allocation3 + $0x1458] sm:$0xff] }
 0xa66   : > { %13535 = vmatprep.subr.bf16.mxu0 %v15232_v46  ;;  %v11868_v46 = vld [vmem:[#allocation3 + $0x1478] sm:$0xff] }
 0xa67   : > { %v15296_v14 = vcombine.high %v11864_v27, %v11868_v46 }
 0xa68   : > { %13495 = vmatpush2.bf16.msra.mxu1 %v15357_v23  ;;  %v15295_v23 = vcombine.low %v11864_v27, %v11868_v46 }
 0xa69   : > { %13536 = vmatpush2.bf16.msra.mxu0 %v15231_v54  ;;  %13496 = vmatprep.subr.bf16.mxu1 %v15350_v59  ;;  %v15288_v54 = vcombine.high %v11856_v30, %v11860_v13  ;;  %v11976_v59 = vld [vmem:[#allocation3 + $0x17d8] sm:$0xff] }
 0xa6a   : > { %13537 = vmatprep.subr.bf16.mxu0 %v15224_v62  ;;  %v11980_v62 = vld [vmem:[#allocation3 + $0x17f8] sm:$0xff] }
 0xa6b   : > { %v15408_v33 = vcombine.high %v11976_v59, %v11980_v62 }
 0xa6c   : > { %13497 = vmatpush2.bf16.msra.mxu1 %v15349_v41  ;;  %v11968_v41 = vld [vmem:[#allocation3 + $0x1798] sm:$0xff] }
 0xa6d   : > { %13538 = vmatpush2.bf16.msra.mxu0 %v15223_v45  ;;  %13548 = vmatprep.subr.bf16.mxu1 %v15344_v6  ;;  %v11972_v45 = vld [vmem:[#allocation3 + $0x17b8] sm:$0xff]  ;;  %v15407_v6 = vcombine.low %v11976_v59, %v11980_v62 }
 0xa6e   : > { %v15400_v47 = vcombine.high %v11968_v41, %v11972_v45 }
 0xa6f   : > { %v11611_v55 = vpop.f32.mrf.mxu1  ;;  %13499 = vmatmul.mubr.bf16.vlgmr.msra.gmra.mxu1 %v18150_v15 }
 0xa70   : > { %v11612_v57 = vadd.f32 %v11611_v55, %v18290_v49  ;;  %v18306_v16 = vpop.f32.mrf.mxu0  ;;  %13540 = vmatmul.mubr.bf16.vlgmr.msra.gmra.mxu0 %v18134_v21  ;;  %13549 = vmatpush1.bf16.msra.mxu1 %v15343_v25  ;;  %v11888_v49 = vld [vmem:[#allocation3 + $0x1518] sm:$0xff] }
 0xa71   : > { %13580 = vmatprep.mubr.bf16.mxu1 %v18148_v26  ;;  %v11613_v34 = vpop.f32.mrf.mxu1  ;;  %13550 = vmatprep.subr.bf16.mxu1 %v15336_v53  ;;  %v15320_v26 = vcombine.high %v11888_v49, %v11892_v4  ;;  %v15319_v39 = vcombine.low %v11888_v49, %v11892_v4  ;;  %v11964_v25 = vld [vmem:[#allocation3 + $0x1778] sm:$0xff]  ;;  %v15399_v53 = vcombine.low %v11968_v41, %v11972_v45 }
 0xa72   : > { %v11665_v18 = vmul.f32 %v11646_v58, %v11612_v57  ;;  %v11614_v20 = vadd.f32 %v11613_v34, %v18300_v51  ;;  %v18313_v3 = vpop.f32.mrf.mxu0  ;;  %v11884_v51 = vld [vmem:[#allocation3 + $0x14f8] sm:$0xff]  ;;  %v15392_v0 = vcombine.high %v11960_v7, %v11964_v25  ;;  %v15391_v52 = vcombine.low %v11960_v7, %v11964_v25 }
 0xa73   : > { %v11615_v24 = vpop.f32.mrf.mxu1  ;;  %v15312_v2 = vcombine.high %v11880_v44, %v11884_v51  ;;  %v15311_v48 = vcombine.low %v11880_v44, %v11884_v51  ;;  %v11952_v58 = vld [vmem:[#allocation3 + $0x1718] sm:$0xff] }
 0xa74   : > { %v11714_v21 = vadd.f32 %v11695_v56, %v11665_v18  ;;  %v11666_v28 = vmul.f32 %v11650_v11, %v11614_v20  ;;  %v13299_v29 = vpop.f32.mrf.mxu0  ;;  %13551 = vmatpush1.bf16.msra.mxu1 %v15335_v61  ;;  %v15384_v55 = vcombine.high %v11952_v58, %v11956_v60  ;;  %v11948_v56 = vld [vmem:[#allocation3 + $0x16f8] sm:$0xff]  ;;  %v15383_v57 = vcombine.low %v11952_v58, %v11956_v60 }
 0xa75   : > { %v11616_v32 = vpop.f32.mrf.mxu1  ;;  %13552 = vmatprep.subr.bf16.mxu1 %v15328_v37  ;;  %v15376_v11 = vcombine.high %v11944_v50, %v11948_v56  ;;  %v11936_v61 = vld [vmem:[#allocation3 + $0x1698] sm:$0xff]  ;;  %v15375_v37 = vcombine.low %v11944_v50, %v11948_v56 }
 0xa76   : > { %11722 = vst [vmem:[#allocation16 + $0x70] sm:$0xff] %v11714_v21  ;;  %v11715_v35 = vadd.f32 %v11699_v40, %v11666_v28  ;;  %v13300_v38 = vpop.f32.mrf.mxu0  ;;  %v11940_v34 = vld [vmem:[#allocation3 + $0x16b8] sm:$0xff]  ;;  %v18315_v32 = vld [vmem:[#allocation10 + $0x44] sm:$0xff] }
 0xa77   : > { %v15368_v18 = vcombine.high %v11936_v61, %v11940_v34  ;;  %v11928_v20 = vld [vmem:[#allocation3 + $0x1658] sm:$0xff]  ;;  %v15367_v49 = vcombine.low %v11936_v61, %v11940_v34  ;;  %v13601_v13 = vrot.slane %v18315_v32, %v17968_v12 }
 0xa78   : > { %11723 = vst [vmem:[#allocation16 + $0x78] sm:$0xff] %v11715_v35  ;;  %13553 = vmatpush1.bf16.msra.mxu1 %v15327_v5  ;;  %v11932_v40 = vld [vmem:[#allocation3 + $0x1678] sm:$0xff]  ;;  %v13593_v35 = vrot.slane %v18315_v32, %v17965_v8 }
 0xa79   : > { %13554 = vmatprep.subr.bf16.mxu1 %v15320_v26  ;;  %v15360_v4 = vcombine.high %v11928_v20, %v11932_v40  ;;  %v11920_v24 = vld [vmem:[#allocation3 + $0x1618] sm:$0xff]  ;;  %v15359_v28 = vcombine.low %v11928_v20, %v11932_v40  ;;  %v18317_v26 = vld [vmem:[#allocation10 + $0x24] sm:$0xff] }
 0xa7a   : > { %v11924_v21 = vld [vmem:[#allocation3 + $0x1638] sm:$0xff]  ;;  %v13642_v51 = vrot.slane %v18317_v26, %v17965_v8  ;;  %v13654_v41 = vrot.slane %v18317_v26, %v17950_v31  ;;  %v13662_v61 = vrot.slane %v18317_v26, %v17991_v17 }
 0xa7b   : > { %v15352_v29 = vcombine.high %v11920_v24, %v11924_v21  ;;  %v15351_v5 = vcombine.low %v11920_v24, %v11924_v21 }
 0xa7c   : > { %13555 = vmatpush1.bf16.msra.mxu1 %v15319_v39 }
 0xa7d   : > { %13556 = vmatprep.subr.bf16.mxu1 %v15312_v2  ;;  %v13597_v2 = vrot.slane %v18315_v32, %v17947_v10 }
 0xa80   : > { %13557 = vmatpush1.bf16.msra.mxu1 %v15311_v48 }
 0xa81   : > { %13558 = vmatprep.subr.bf16.mxu1 %v15304_v9  ;;  %v13646_v9 = vrot.slane %v18317_v26, %v17947_v10  ;;  %v13605_v10 = vrot.slane %v18315_v32, %v17950_v31  ;;  %v13613_v31 = vrot.slane %v18315_v32, %v17991_v17  ;;  %v13621_v17 = vrot.slane %v18315_v32, %v17994_v36 }
 0xa84   : > { %13559 = vmatpush1.bf16.msra.mxu1 %v15303_v42 }
 0xa85   : > { %13560 = vmatprep.subr.bf16.mxu1 %v15296_v14 }
 0xa88   : > { %13561 = vmatpush1.bf16.msra.mxu1 %v15295_v23 }
 0xa89   : > { %13562 = vmatprep.subr.bf16.mxu1 %v15288_v54 }
 0xa8c   : > { %13563 = vmatpush1.bf16.msra.mxu1 %v15287_v1 }
 0xa8d   : > { %13564 = vmatprep.subr.bf16.mxu1 %v15408_v33 }
 0xa90   : > { %13565 = vmatpush2.bf16.msra.mxu1 %v15407_v6 }
 0xa91   : > { %13566 = vmatprep.subr.bf16.mxu1 %v15400_v47 }
 0xa94   : > { %13567 = vmatpush2.bf16.msra.mxu1 %v15399_v53 }
 0xa95   : > { %13568 = vmatprep.subr.bf16.mxu1 %v15392_v0 }
 0xa98   : > { %13569 = vmatpush2.bf16.msra.mxu1 %v15391_v52 }
 0xa99   : > { %13570 = vmatprep.subr.bf16.mxu1 %v15384_v55  ;;  %v13658_v55 = vrot.slane %v18317_v26, %v17997_v19 }
 0xa9c   : > { %13571 = vmatpush2.bf16.msra.mxu1 %v15383_v57 }
 0xa9d   : > { %13572 = vmatprep.subr.bf16.mxu1 %v15376_v11 }
 0xaa0   : > { %13573 = vmatpush2.bf16.msra.mxu1 %v15375_v37 }
 0xaa1   : > { %13574 = vmatprep.subr.bf16.mxu1 %v15368_v18 }
 0xaa4   : > { %13575 = vmatpush2.bf16.msra.mxu1 %v15367_v49 }
 0xaa5   : > { %13576 = vmatprep.subr.bf16.mxu1 %v15360_v4 }
 0xaa8   : > { %13577 = vmatpush2.bf16.msra.mxu1 %v15359_v28 }
 0xaa9   : > { %13578 = vmatprep.subr.bf16.mxu1 %v15352_v29  ;;  %v13666_v29 = vrot.slane %v18317_v26, %v18000_v22 }
 0xaac   : > { %13579 = vmatpush2.bf16.msra.mxu1 %v15351_v5 }
 0xaaf   : > { %v13336_v38 = vpop.f32.mrf.mxu1  ;;  %13581 = vmatmul.mubr.bf16.vlgmr.msra.gmra.mxu1 %v18150_v15 }
 0xab0   : > { %v13337_v44 = vadd.f32 %v13336_v38, %v18306_v16  ;;  %v13377_v39 = vpop.f32.mrf.mxu0 }
 0xab1   : > { %v13338_v63 = vpop.f32.mrf.mxu1 }
 0xab2   : > { %v13630_v43 = vmul.f32 %v13593_v35, %v13337_v44  ;;  %v13339_v48 = vadd.f32 %v13338_v63, %v18313_v3  ;;  %v13379_v27 = vpop.f32.mrf.mxu0  ;;  %v13650_v3 = vrot.slane %v18317_v26, %v17968_v12  ;;  %v13609_v12 = vrot.slane %v18315_v32, %v17997_v19 }
 0xab3   : > { %v13340_v46 = vpop.f32.mrf.mxu1  ;;  %v13617_v19 = vrot.slane %v18315_v32, %v18000_v22  ;;  %v13670_v44 = vrot.slane %v18317_v26, %v17994_v36 }
 0xab4   : > { %v13679_v42 = vadd.f32 %v13642_v51, %v13630_v43  ;;  %v13631_v15 = vmul.f32 %v13597_v2, %v13339_v48  ;;  %v13381_v14 = vpop.f32.mrf.mxu0 }
 0xab5   : > { %v13341_v16 = vpop.f32.mrf.mxu1 }
 0xab6   : > { %13687 = vst [vmem:[#allocation16 + $0x80] sm:$0xff] %v13679_v42  ;;  %v13680_v30 = vadd.f32 %v13646_v9, %v13631_v15  ;;  %v13382_v8 = vpop.f32.mrf.mxu0 }
 0xab8   : > { %13688 = vst [vmem:[#allocation16 + $0x88] sm:$0xff] %v13680_v30 }
 0xaef   : > { %v13418_v23 = vpop.f32.mrf.mxu1 }
 0xaf0   : > { %v13419_v54 = vadd.f32 %v13418_v23, %v13377_v39  ;;  %v13459_v59 = vpop.f32.mrf.mxu0 }
 0xaf1   : > { %v13420_v62 = vpop.f32.mrf.mxu1 }
 0xaf2   : > { %v13632_v1 = vmul.f32 %v13601_v13, %v13419_v54  ;;  %v13421_v33 = vadd.f32 %v13420_v62, %v13379_v27  ;;  %v13461_v45 = vpop.f32.mrf.mxu0 }
 0xaf3   : > { %v13422_v6 = vpop.f32.mrf.mxu1 }
 0xaf4   : > { %v13681_v47 = vadd.f32 %v13650_v3, %v13632_v1  ;;  %v13633_v7 = vmul.f32 %v13605_v10, %v13421_v33  ;;  %v13463_v25 = vpop.f32.mrf.mxu0 }
 0xaf5   : > { %v13423_v53 = vpop.f32.mrf.mxu1 }
 0xaf6   : > { %13689 = vst [vmem:[#allocation16 + $0x90] sm:$0xff] %v13681_v47  ;;  %v13682_v0 = vadd.f32 %v13654_v41, %v13633_v7  ;;  %v13464_v58 = vpop.f32.mrf.mxu0 }
 0xaf8   : > { %13690 = vst [vmem:[#allocation16 + $0x98] sm:$0xff] %v13682_v0 }
 0xb2f   : > { %v13500_v60 = vpop.f32.mrf.mxu1 }
 0xb30   : > { %v13501_v52 = vadd.f32 %v13500_v60, %v13459_v59  ;;  %v13541_v50 = vpop.f32.mrf.mxu0 }
 0xb31   : > { %v13502_v56 = vpop.f32.mrf.mxu1 }
 0xb32   : > { %v13634_v57 = vmul.f32 %v13609_v12, %v13501_v52  ;;  %v13503_v11 = vadd.f32 %v13502_v56, %v13461_v45  ;;  %v13543_v34 = vpop.f32.mrf.mxu0 }
 0xb33   : > { %v13504_v37 = vpop.f32.mrf.mxu1 }
 0xb34   : > { %v13683_v18 = vadd.f32 %v13658_v55, %v13634_v57  ;;  %v13635_v20 = vmul.f32 %v13613_v31, %v13503_v11  ;;  %v13545_v40 = vpop.f32.mrf.mxu0 }
 0xb35   : > { %v13505_v49 = vpop.f32.mrf.mxu1 }
 0xb36   : > { %13691 = vst [vmem:[#allocation16 + $0xa0] sm:$0xff] %v13683_v18  ;;  %v13684_v4 = vadd.f32 %v13662_v61, %v13635_v20  ;;  %v13546_v24 = vpop.f32.mrf.mxu0 }
 0xb38   : > { %13692 = vst [vmem:[#allocation16 + $0xa8] sm:$0xff] %v13684_v4 }
 0xb6f   : > { %v13582_v21 = vpop.f32.mrf.mxu1 }
 0xb70   : > { %v13583_v28 = vadd.f32 %v13582_v21, %v13541_v50 }
 0xb71   : > { %v13584_v5 = vpop.f32.mrf.mxu1 }
 0xb72   : > { %v13636_v35 = vmul.f32 %v13617_v19, %v13583_v28  ;;  %v13585_v38 = vadd.f32 %v13584_v5, %v13543_v34 }
 0xb73   : > { %v13586_v51 = vpop.f32.mrf.mxu1 }
 0xb74   : > { %v13685_v39 = vadd.f32 %v13666_v29, %v13636_v35  ;;  %v13637_v2 = vmul.f32 %v13621_v17, %v13585_v38 }
 0xb75   : > { %v13587_v63 = vpop.f32.mrf.mxu1 }
 0xb76   : > { %13693 = vst [vmem:[#allocation16 + $0xb0] sm:$0xff] %v13685_v39  ;;  %v13686_v43 = vadd.f32 %v13670_v44, %v13637_v2 }
 0xb78   : > { %13694 = vst [vmem:[#allocation16 + $0xb8] sm:$0xff] %v13686_v43 }
 0xb79 PF: > { %p15476_p1 = scmp.eq.s32.totalorder %s16636_s28, 2  ;;  %s16576_s14 = smov [#allocation16]  }
 0xb7a   : > { %s13702_s11 = sshll.u32 %s16576_s14, 4  ;;  %s13703_s11 = int_to_ptr.vmem [resolvable:$true] %s13702_s11 }
 0xb7b   : > { %s16488_s19 = scalar_lea.vmem %s13703_s11, 3072  ;;  %p16495_p6 = scmp.lt.s32.totalorder %s13703_s11, %s13703_s11 }
 0xb7c   : > { %p16489_p4 = scmp.ne.s32.totalorder %s13703_s11, %s16488_s19  ;;  %p16496_p2 = scmp.lt.s32.totalorder %s16488_s19, %s16488_s19 }
 0xb7e   : > { %p16490_p5 = pnand %p16489_p4, %p15476_p1  ;;  %p16497_p12 = por %p16496_p2, %p16495_p6 }
 0xb80   : > { %p16491_p8 = pneg %p16490_p5 }
 0xb82   : > { %p16498_p13 = pnand %p16497_p12, %p16491_p8 }
 0xb84   : > { %16501 = shalt.err (!%p16498_p13)
}
 0xb85   : > { %15441 = dma.vmem_to_hbm [thread:$0]  (%p15476_p1), %s13703_s11, 3072, %s18386_s7, [#allocation6]  }
 0xb86   : > { %16545 = dma.done.wait (%p15476_p1), [#allocation6], 3072  }
 0xb87   : > { %16547 = vsyncadd (%p15476_p1), [#allocation6], 4294964224 }
 0xb88 PF: > { %p23_p0 = scmp.ge.s32.totalorder %s16683_s21, 5   ;;  %s18423_s24 = smov %s16554_s25 }
 0xb89   : > { %s18424_s25 = smov %s16558_s26  ;;  %s18425_s26 = smov %s16696_s8 }
 0xb8a   : > { %s18426_s27 = smov %s16683_s21  ;;  %25 = sbr.rel (!%p23_p0) target bundleno = 11 (0xb), region = 140 }
 0xb8f   :  { %13715 = vsyncpa [#allocation5], 1 }
 0xb90   :  { %13717 = vsyncpa [#allocation5 + $0x1], 1 }
 0xb91   :  { %13718 = vsyncpa [#allocation8], 1 }
 0xb92   :  { %13720 = vsyncpa [#allocation8 + $0x1], 1 }
 0xb93   :  { %13721 = vsyncpa [#allocation11], 1 }
 0xb94   :  { %13722 = vsyncpa [#allocation14], 1 }
 0xb95   :  { %13723 = vsyncpa [#allocation6], 1 }
 0xb96   :  { %13725 = vsyncpa [#allocation6 + $0x1], 1 }

</bundles_post_ra>
